<compile_context>
chip_gen: v5e
topology: v5e:2x2
jax: 0.10.0
libtpu: 0.0.40
codegen_flags: <defaults>
</compile_context>

<pallas_src>
import functools

import jax
import jax.numpy as jnp
from jax import lax
from jax.experimental import pallas as pl
from jax.experimental.pallas import tpu as pltpu


# ----------------------------- conv-stack kernel -----------------------------

def _conv_stack_kernel(x_ref, w1_ref, w2_ref, w3_ref, bias_ref, o_ref,
                       p2_ref, p3_ref, slab_ref, *, nb):
    # x_ref:    (nb, 3, 1056) bf16  images, 33 rows of 32 (last row = pad)
    # w1_ref:   (5, 10, 15)  bf16   conv1 grouped by dx: [dx](cout, dy*3+cin)
    # w2_ref:   (3, 10, 30)  bf16   conv2: [dx](cout, dy*10+cin)
    # w3_ref:   (3, 10, 30)  bf16   conv3
    # bias_ref: (10, 3)      f32    columns: folded bias1, bias2, bias3
    # o_ref:    (nb, 10, 896) bf16  col j = y*32 + x  (x>=28 masked to 0)
    # p2_ref/p3_ref: (10, 992) bf16 padded activation canvases (31 rows of 32)
    # slab_ref: (30, 900) bf16      row-stacked window slab (shared by convs)

    lane = lax.broadcasted_iota(jnp.int32, (1, 896), 1)
    valid = ((lane % 32) < 28).astype(jnp.float32)      # kill garbage x>=28

    # Only the never-written border columns need zeroing (the 896-wide data
    # region is fully overwritten per image).  Done every grid step -- safe
    # under "parallel" megacore semantics.
    zl = jnp.zeros((10, 33), jnp.bfloat16)
    zr = jnp.zeros((10, 63), jnp.bfloat16)
    p2_ref[:, 0:33] = zl
    p2_ref[:, 929:992] = zr
    p3_ref[:, 0:33] = zl
    p3_ref[:, 929:992] = zr

    def conv(read_rows, w_ref, k, cin, bias_col):
        # Row-grouped conv: stack k row-shifted copies of the source into the
        # slab (rows dy*cin ...), then k column-shifted bf16 MXU dots with
        # K = k*cin, accumulated in f32 (first dot initializes the acc).
        ws = 896 + k - 1
        for dy in range(k):
            slab_ref[dy * cin:(dy + 1) * cin, 0:ws] = read_rows(dy * 32, ws)
        kc = k * cin
        acc = jnp.dot(w_ref[0], slab_ref[0:kc, 0:896],
                      preferred_element_type=jnp.float32)
        for dx in range(1, k):
            acc = acc + jnp.dot(w_ref[dx], slab_ref[0:kc, dx:dx + 896],
                                preferred_element_type=jnp.float32)
        return jnp.maximum(acc + bias_ref[:, bias_col:bias_col + 1], 0.0)

    for b in range(nb):                                   # small static block
        # conv1 (5x5 valid, 3->10) + folded BatchNorm + ReLU
        out0 = conv(lambda off, w: x_ref[b, :, off:off + w],
                    w1_ref, 5, 3, 0) * valid
        p2_ref[:, 33:929] = out0.astype(jnp.bfloat16)

        # conv2 (3x3 pad 1, 10->10) + ReLU
        out2 = conv(lambda off, w: p2_ref[:, off:off + w],
                    w2_ref, 3, 10, 1) * valid
        p3_ref[:, 33:929] = out2.astype(jnp.bfloat16)

        # conv3 (3x3 pad 1, 10->10) + ReLU + residual (out += out0)
        out3 = conv(lambda off, w: p3_ref[:, off:off + w],
                    w3_ref, 3, 10, 2) + p2_ref[:, 33:929]
        o_ref[b] = (out3 * valid).astype(o_ref.dtype)


def conv_stack(x_pad, w1p, w2p, w3p, biases):
    B = x_pad.shape[0]
    nb = 4 if B % 4 == 0 else (2 if B % 2 == 0 else 1)
    return pl.pallas_call(
        functools.partial(_conv_stack_kernel, nb=nb),
        out_shape=jax.ShapeDtypeStruct((B, 10, 896), jnp.bfloat16),
        grid_spec=pltpu.PrefetchScalarGridSpec(
            num_scalar_prefetch=0,
            grid=(B // nb,),
            in_specs=[
                pl.BlockSpec((nb, 3, 1056), lambda i: (i, 0, 0)),
                pl.BlockSpec((5, 10, 15), lambda i: (0, 0, 0)),   # resident
                pl.BlockSpec((3, 10, 30), lambda i: (0, 0, 0)),
                pl.BlockSpec((3, 10, 30), lambda i: (0, 0, 0)),
                pl.BlockSpec((10, 3), lambda i: (0, 0)),
            ],
            out_specs=pl.BlockSpec((nb, 10, 896), lambda i: (i, 0, 0)),
            scratch_shapes=[pltpu.VMEM((10, 992), jnp.bfloat16),
                            pltpu.VMEM((10, 992), jnp.bfloat16),
                            pltpu.VMEM((30, 900), jnp.bfloat16)]),
        compiler_params=pltpu.CompilerParams(
            dimension_semantics=("parallel",)),
    )(x_pad, w1p, w2p, w3p, biases)


# ------------------------------ fc + ova kernel ------------------------------

def _fc_ova_kernel(x_ref, wfc_ref, bfc_ref, wova_ref, bova_ref,
                   feat_ref, pred_ref):
    # x: (TB, 8960) bf16, wfc: (8960, F) bf16 -> plain NN matmul (no transpose
    # of the big weight).  feat reused from registers/VMEM for the 2nd matmul.
    feat = jnp.dot(x_ref[...], wfc_ref[...],
                   preferred_element_type=jnp.float32) + bfc_ref[...]
    feat_ref[...] = feat
    pred_ref[...] = jnp.dot(feat, wova_ref[...],
                            preferred_element_type=jnp.float32) + bova_ref[...]


def fc_ova(flat, wfc, bfc, wova, bova, tb=256):
    B, K = flat.shape
    F = wfc.shape[1]
    C = wova.shape[1]
    tb = min(tb, B)
    Bp = -(-B // tb) * tb
    if Bp != B:                      # pad batch to a multiple of the tile
        flat = jnp.pad(flat, ((0, Bp - B), (0, 0)))
    feat, pred = pl.pallas_call(
        _fc_ova_kernel,
        out_shape=(jax.ShapeDtypeStruct((Bp, F), jnp.float32),
                   jax.ShapeDtypeStruct((Bp, C), jnp.float32)),
        grid_spec=pltpu.PrefetchScalarGridSpec(
            num_scalar_prefetch=0,
            grid=(Bp // tb,),
            in_specs=[
                pl.BlockSpec((tb, K), lambda i: (i, 0)),
                pl.BlockSpec((K, F), lambda i: (0, 0)),   # resident weight
                pl.BlockSpec((1, F), lambda i: (0, 0)),
                pl.BlockSpec((F, C), lambda i: (0, 0)),
                pl.BlockSpec((1, C), lambda i: (0, 0)),
            ],
            out_specs=[pl.BlockSpec((tb, F), lambda i: (i, 0)),
                       pl.BlockSpec((tb, C), lambda i: (i, 0))]),
        compiler_params=pltpu.CompilerParams(
            dimension_semantics=("parallel",),
            vmem_limit_bytes=32 * 1024 * 1024),
    )(flat, wfc, bfc, wova, bova)
    return feat[:B], pred[:B]


# ------------------------------- Forward pass --------------------------------

def net_forward(params, x_nchw):
    B = x_nchw.shape[0]
    eps = 1e-5

    # Fold eval-mode BatchNorm + conv1 bias into the conv1 weights/bias (tiny),
    # then cast all conv MXU operands to bf16.
    scale = params['bn_gamma'] * lax.rsqrt(params['bn_var'] + eps)
    shift = params['bn_beta'] - params['bn_mean'] * scale
    w1p = (params['w1_packed'] * scale[None, :, None]).astype(jnp.bfloat16)
    b1 = params['b1'] * scale + shift
    biases = jnp.stack([b1, params['b2'], params['b3']], axis=1)     # (10, 3)

    # NCHW -> per-image (C, H*W) with 32-wide rows (free reshape) + one pad row
    # for the shifted-window reads (pad values never reach valid outputs).
    x_pad = jnp.pad(x_nchw.reshape(B, 3, 32 * 32),
                    ((0, 0), (0, 0), (0, 32))).astype(jnp.bfloat16)

    act = conv_stack(x_pad, w1p, params['w2_packed'], params['w3_packed'],
                     biases)                                         # (B,10,896)
    flat = act.reshape(B, 10 * 896)                                  # (B, 8960)

    # dropout: eval-mode identity
    feat, pred = fc_ova(flat, params['w_fc_big'], params['b_fc_row'],
                        params['w_ova_t'], params['b_ova_row'])
    return feat, pred


# ------------------------------- Params / init -------------------------------

def init_params(key, feat_dim, class_num):
    ks = jax.random.split(key, 12)

    def n(k, shape, s=0.05):
        return s * jax.random.normal(k, shape, jnp.float32)

    w1 = n(ks[0], (10, 3, 5, 5))          # torch Conv2d layout (O, I, KH, KW)
    b1 = n(ks[1], (10,))
    w2 = n(ks[2], (10, 10, 3, 3))
    b2 = n(ks[3], (10,))
    w3 = n(ks[4], (10, 10, 3, 3))
    b3 = n(ks[5], (10,))
    w_fc = n(ks[6], (feat_dim, 7840), 0.01)   # torch Linear layout (out, in)
    b_fc = n(ks[7], (feat_dim,))
    w_ova = n(ks[8], (class_num, feat_dim))
    b_ova = n(ks[9], (class_num,))
    gamma = 1.0 + 0.1 * jax.random.normal(ks[10], (10,), jnp.float32)
    beta = 0.1 * jax.random.normal(ks[11], (10,), jnp.float32)
    bn_mean = jnp.zeros((10,), jnp.float32)
    bn_var = jnp.ones((10,), jnp.float32)

    # Kernel-layout weights, built ONCE at init (no per-call transposes):
    # conv taps grouped by column offset dx: [dx](cout, dy*cin + cin_idx).
    w1_packed = jnp.transpose(w1, (3, 0, 2, 1)).reshape(5, 10, 15)   # BN folded later
    w2_packed = jnp.transpose(w2, (3, 0, 2, 1)).reshape(3, 10, 30).astype(jnp.bfloat16)
    w3_packed = jnp.transpose(w3, (3, 0, 2, 1)).reshape(3, 10, 30).astype(jnp.bfloat16)
    # fc weight: fold the NCHW flatten order + the kernel's width-32 padding
    # into the input dim (zero columns where the conv kernel emits masked
    # padding), store (in, out) bf16 so the kernel matmul is plain NN form.
    w_fc_big = jnp.pad(w_fc.reshape(feat_dim, 10, 28, 28),
                       ((0, 0), (0, 0), (0, 0), (0, 4)))
    w_fc_big = jnp.transpose(w_fc_big.reshape(feat_dim, 10 * 28 * 32),
                             (1, 0)).astype(jnp.bfloat16)            # (8960, F)

    return dict(
        # torch-layout originals (used by the pure-JAX reference)
        w1=w1, b1=b1, w2=w2, b2=b2, w3=w3, b3=b3,
        w_fc=w_fc, b_fc=b_fc, w_ova=w_ova, b_ova=b_ova,
        bn_gamma=gamma, bn_beta=beta, bn_mean=bn_mean, bn_var=bn_var,
        # kernel-layout tensors
        w1_packed=w1_packed, w2_packed=w2_packed, w3_packed=w3_packed,
        w_fc_big=w_fc_big,
        w_ova_t=jnp.transpose(w_ova, (1, 0)),          # (F, C) f32
        b_fc_row=b_fc.reshape(1, -1),
        b_ova_row=b_ova.reshape(1, -1))


# --------------------------------- Reference ---------------------------------

def reference(params, x_nchw):
    """Pure-JAX reference (eval-mode BN, identity dropout)."""
    dn = ('NHWC', 'HWIO', 'NHWC')
    hi = lax.Precision.HIGHEST
    eps = 1e-5
    x = jnp.transpose(x_nchw, (0, 2, 3, 1))
    w1 = jnp.transpose(params['w1'], (2, 3, 1, 0))
    w2 = jnp.transpose(params['w2'], (2, 3, 1, 0))
    w3 = jnp.transpose(params['w3'], (2, 3, 1, 0))
    y = lax.conv_general_dilated(x, w1, (1, 1), 'VALID',
                                 dimension_numbers=dn, precision=hi) + params['b1']
    y = (y - params['bn_mean']) / jnp.sqrt(params['bn_var'] + eps) \
        * params['bn_gamma'] + params['bn_beta']
    out0 = jnp.maximum(y, 0.0)
    y = lax.conv_general_dilated(out0, w2, (1, 1), 'SAME',
                                 dimension_numbers=dn, precision=hi) + params['b2']
    y = jnp.maximum(y, 0.0)
    y = lax.conv_general_dilated(y, w3, (1, 1), 'SAME',
                                 dimension_numbers=dn, precision=hi) + params['b3']
    y = jnp.maximum(y, 0.0) + out0
    B = x.shape[0]
    flat = jnp.transpose(y, (0, 3, 1, 2)).reshape(B, -1)
    feat = jnp.dot(flat, params['w_fc'].T, precision=hi) + params['b_fc']
    pred = jnp.dot(feat, params['w_ova'].T, precision=hi) + params['b_ova']
    return feat, pred


if __name__ == "__main__":
    key = jax.random.PRNGKey(0)
    kx, kp = jax.random.split(key)
    B, feat_dim, class_num = 2, 32, 8
    # fc expects 7840 = 10*28*28 features => input must be (B, 3, 32, 32)
    x = jax.random.normal(kx, (B, 3, 32, 32), jnp.float32)   # NCHW like torch
    params = init_params(kp, feat_dim, class_num)

    feat, pred = jax.jit(net_forward)(params, x)
    jax.block_until_ready((feat, pred))

    feat_ref, pred_ref = reference(params, x)
    assert feat.shape == (B, feat_dim) and pred.shape == (B, class_num)
    assert jnp.allclose(feat, feat_ref, rtol=2e-2, atol=2e-2)
    assert jnp.allclose(pred, pred_ref, rtol=2e-2, atol=2e-2)

    print("KERNEL_OK")
</pallas_src>

<mosaic_0001>
module attributes {stable_mosaic.version = 11 : i64} {
  func.func @_fc_ova_kernel(%arg0: i32, %arg1: memref<2x8960xbf16, #tpu.memory_space<vmem>>, %arg2: memref<8960x32xbf16, #tpu.memory_space<vmem>>, %arg3: memref<1x32xf32, #tpu.memory_space<vmem>>, %arg4: memref<32x8xf32, #tpu.memory_space<vmem>>, %arg5: memref<1x8xf32, #tpu.memory_space<vmem>>, %arg6: memref<2x32xf32, #tpu.memory_space<vmem>>, %arg7: memref<2x8xf32, #tpu.memory_space<vmem>>) attributes {dimension_semantics = [#tpu.dimension_semantics<parallel>], iteration_bounds = array<i64: 1>, scalar_prefetch = 0 : i64, scratch_operands = 0 : i64, tpu.core_type = #tpu.core_type<tc>, window_params = [{transform_indices = @transform_0, window_bounds = array<i64: 2, 8960>}, {pipeline_mode = #tpu.pipeline_mode<synchronous>, transform_indices = @transform_1, window_bounds = array<i64: 8960, 32>}, {pipeline_mode = #tpu.pipeline_mode<synchronous>, transform_indices = @transform_2, window_bounds = array<i64: 1, 32>}, {pipeline_mode = #tpu.pipeline_mode<synchronous>, transform_indices = @transform_3, window_bounds = array<i64: 32, 8>}, {pipeline_mode = #tpu.pipeline_mode<synchronous>, transform_indices = @transform_4, window_bounds = array<i64: 1, 8>}, {transform_indices = @transform_5, window_bounds = array<i64: 2, 32>}, {transform_indices = @transform_6, window_bounds = array<i64: 2, 8>}]} {
    %c0 = arith.constant 0 : index
    %c0_0 = arith.constant 0 : index
    %0 = vector.load %arg1[%c0, %c0_0] : memref<2x8960xbf16, #tpu.memory_space<vmem>>, vector<2x8960xbf16>
    %c0_1 = arith.constant 0 : index
    %c0_2 = arith.constant 0 : index
    %1 = vector.load %arg2[%c0_1, %c0_2] : memref<8960x32xbf16, #tpu.memory_space<vmem>>, vector<8960x32xbf16>
    %cst = arith.constant dense<0.000000e+00> : vector<2x32xf32>
    %2 = tpu.matmul %0, %1, %cst {dimension_numbers = #tpu.dot_dimension_numbers<[1], [0], [0], [1], [0, 0, 1, 1], [], []>} : vector<2x8960xbf16>, vector<8960x32xbf16>, vector<2x32xf32> -> vector<2x32xf32>
    %c0_3 = arith.constant 0 : index
    %c0_4 = arith.constant 0 : index
    %3 = vector.load %arg3[%c0_3, %c0_4] : memref<1x32xf32, #tpu.memory_space<vmem>>, vector<1x32xf32>
    %4 = vector.broadcast %3 : vector<1x32xf32> to vector<2x32xf32>
    %5 = arith.addf %2, %4 : vector<2x32xf32>
    %c0_5 = arith.constant 0 : index
    %c0_6 = arith.constant 0 : index
    %6 = vector.load %arg6[%c0_5, %c0_6] : memref<2x32xf32, #tpu.memory_space<vmem>>, vector<2x32xf32>
    tpu.vector_store %arg6[%c0_5, %c0_6], %5 {strides = array<i32>} : memref<2x32xf32, #tpu.memory_space<vmem>>, vector<2x32xf32>,
    %c0_7 = arith.constant 0 : index
    %c0_8 = arith.constant 0 : index
    %7 = vector.load %arg4[%c0_7, %c0_8] : memref<32x8xf32, #tpu.memory_space<vmem>>, vector<32x8xf32>
    %cst_9 = arith.constant dense<0.000000e+00> : vector<2x8xf32>
    %8 = tpu.matmul %5, %7, %cst_9 {dimension_numbers = #tpu.dot_dimension_numbers<[1], [0], [0], [1], [0, 0, 1, 1], [], []>} : vector<2x32xf32>, vector<32x8xf32>, vector<2x8xf32> -> vector<2x8xf32>
    %c0_10 = arith.constant 0 : index
    %c0_11 = arith.constant 0 : index
    %9 = vector.load %arg5[%c0_10, %c0_11] : memref<1x8xf32, #tpu.memory_space<vmem>>, vector<1x8xf32>
    %10 = vector.broadcast %9 : vector<1x8xf32> to vector<2x8xf32>
    %11 = arith.addf %8, %10 : vector<2x8xf32>
    %c0_12 = arith.constant 0 : index
    %c0_13 = arith.constant 0 : index
    %12 = vector.load %arg7[%c0_12, %c0_13] : memref<2x8xf32, #tpu.memory_space<vmem>>, vector<2x8xf32>
    tpu.vector_store %arg7[%c0_12, %c0_13], %11 {strides = array<i32>} : memref<2x8xf32, #tpu.memory_space<vmem>>, vector<2x8xf32>,
    return
  }
  func.func @transform_0(%arg0: i32) -> (i32, i32) {
    %c0_i32 = arith.constant 0 : i32
    %c0_i32_0 = arith.constant 0 : i32
    return %arg0, %c0_i32 : i32, i32
  }
  func.func @transform_1(%arg0: i32) -> (i32, i32) {
    %c0_i32 = arith.constant 0 : i32
    %c0_i32_0 = arith.constant 0 : i32
    %c0_i32_1 = arith.constant 0 : i32
    return %c0_i32, %c0_i32_0 : i32, i32
  }
  func.func @transform_2(%arg0: i32) -> (i32, i32) {
    %c0_i32 = arith.constant 0 : i32
    %c0_i32_0 = arith.constant 0 : i32
    %c0_i32_1 = arith.constant 0 : i32
    return %c0_i32, %c0_i32_0 : i32, i32
  }
  func.func @transform_3(%arg0: i32) -> (i32, i32) {
    %c0_i32 = arith.constant 0 : i32
    %c0_i32_0 = arith.constant 0 : i32
    %c0_i32_1 = arith.constant 0 : i32
    return %c0_i32, %c0_i32_0 : i32, i32
  }
  func.func @transform_4(%arg0: i32) -> (i32, i32) {
    %c0_i32 = arith.constant 0 : i32
    %c0_i32_0 = arith.constant 0 : i32
    %c0_i32_1 = arith.constant 0 : i32
    return %c0_i32, %c0_i32_0 : i32, i32
  }
  func.func @transform_5(%arg0: i32) -> (i32, i32) {
    %c0_i32 = arith.constant 0 : i32
    %c0_i32_0 = arith.constant 0 : i32
    return %arg0, %c0_i32 : i32, i32
  }
  func.func @transform_6(%arg0: i32) -> (i32, i32) {
    %c0_i32 = arith.constant 0 : i32
    %c0_i32_0 = arith.constant 0 : i32
    return %arg0, %c0_i32 : i32, i32
  }
}

module attributes {stable_mosaic.version = 11 : i64} {
  func.func @_conv_stack_kernel(%arg0: i32, %arg1: memref<2x3x1056xbf16, #tpu.memory_space<vmem>>, %arg2: memref<5x10x15xbf16, #tpu.memory_space<vmem>>, %arg3: memref<3x10x30xbf16, #tpu.memory_space<vmem>>, %arg4: memref<3x10x30xbf16, #tpu.memory_space<vmem>>, %arg5: memref<10x3xf32, #tpu.memory_space<vmem>>, %arg6: memref<2x10x896xbf16, #tpu.memory_space<vmem>>, %arg7: memref<10x992xbf16, #tpu.memory_space<vmem>>, %arg8: memref<10x992xbf16, #tpu.memory_space<vmem>>, %arg9: memref<30x900xbf16, #tpu.memory_space<vmem>>) attributes {dimension_semantics = [#tpu.dimension_semantics<parallel>], iteration_bounds = array<i64: 1>, scalar_prefetch = 0 : i64, scratch_operands = 3 : i64, tpu.core_type = #tpu.core_type<tc>, window_params = [{transform_indices = @transform_0, window_bounds = array<i64: 2, 3, 1056>}, {pipeline_mode = #tpu.pipeline_mode<synchronous>, transform_indices = @transform_1, window_bounds = array<i64: 5, 10, 15>}, {pipeline_mode = #tpu.pipeline_mode<synchronous>, transform_indices = @transform_2, window_bounds = array<i64: 3, 10, 30>}, {pipeline_mode = #tpu.pipeline_mode<synchronous>, transform_indices = @transform_3, window_bounds = array<i64: 3, 10, 30>}, {pipeline_mode = #tpu.pipeline_mode<synchronous>, transform_indices = @transform_4, window_bounds = array<i64: 10, 3>}, {transform_indices = @transform_5, window_bounds = array<i64: 2, 10, 896>}]} {
    %0 = tpu.iota {dimensions = array<i32: 1>} : vector<1x896xi32>
    %c32_i32 = arith.constant 32 : i32
    %c0_i32 = arith.constant 0 : i32
    %1 = arith.cmpi eq, %c32_i32, %c0_i32 : i32
    %c1_i32 = arith.constant 1 : i32
    %2 = arith.select %1, %c1_i32, %c32_i32 : i32
    %3 = vector.broadcast %2 : i32 to vector<1x896xi32>
    %4 = arith.remsi %0, %3 : vector<1x896xi32>
    %c0_i32_0 = arith.constant 0 : i32
    %5 = vector.broadcast %c0_i32_0 : i32 to vector<1x896xi32>
    %6 = arith.cmpi ne, %4, %5 : vector<1x896xi32>
    %c0_i32_1 = arith.constant 0 : i32
    %7 = vector.broadcast %c0_i32_1 : i32 to vector<1x896xi32>
    %8 = arith.cmpi slt, %4, %7 : vector<1x896xi32>
    %c0_i32_2 = arith.constant 0 : i32
    %9 = arith.cmpi slt, %2, %c0_i32_2 : i32
    %10 = vector.broadcast %9 : i1 to vector<1x896xi1>
    %11 = vector.broadcast %10 : vector<1x896xi1> to vector<1x896xi1>
    %12 = arith.xori %8, %11 : vector<1x896xi1>
    %13 = arith.andi %12, %6 : vector<1x896xi1>
    %14 = vector.broadcast %2 : i32 to vector<1x896xi32>
    %15 = arith.addi %4, %14 : vector<1x896xi32>
    %16 = arith.select %13, %15, %4 : vector<1x896xi1>, vector<1x896xi32>
    %c28_i32 = arith.constant 28 : i32
    %17 = vector.broadcast %c28_i32 : i32 to vector<1x896xi32>
    %18 = arith.cmpi slt, %16, %17 : vector<1x896xi32>
    %19 = arith.extui %18 : vector<1x896xi1> to vector<1x896xi32>
    %20 = arith.sitofp %19 : vector<1x896xi32> to vector<1x896xf32>
    %cst = arith.constant 0.000000e+00 : bf16
    %21 = vector.broadcast %cst : bf16 to vector<10x33xbf16>
    %cst_3 = arith.constant 0.000000e+00 : bf16
    %22 = vector.broadcast %cst_3 : bf16 to vector<10x63xbf16>
    %c0 = arith.constant 0 : index
    %c0_4 = arith.constant 0 : index
    %23 = vector.load %arg7[%c0, %c0_4] : memref<10x992xbf16, #tpu.memory_space<vmem>>, vector<10x33xbf16>
    tpu.vector_store %arg7[%c0, %c0_4], %21 {strides = array<i32>} : memref<10x992xbf16, #tpu.memory_space<vmem>>, vector<10x33xbf16>,
    %c0_5 = arith.constant 0 : index
    %c929 = arith.constant 929 : index
    %24 = vector.load %arg7[%c0_5, %c929] : memref<10x992xbf16, #tpu.memory_space<vmem>>, vector<10x63xbf16>
    tpu.vector_store %arg7[%c0_5, %c929], %22 {strides = array<i32>} : memref<10x992xbf16, #tpu.memory_space<vmem>>, vector<10x63xbf16>,
    %c0_6 = arith.constant 0 : index
    %c0_7 = arith.constant 0 : index
    %25 = vector.load %arg8[%c0_6, %c0_7] : memref<10x992xbf16, #tpu.memory_space<vmem>>, vector<10x33xbf16>
    tpu.vector_store %arg8[%c0_6, %c0_7], %21 {strides = array<i32>} : memref<10x992xbf16, #tpu.memory_space<vmem>>, vector<10x33xbf16>,
    %c0_8 = arith.constant 0 : index
    %c929_9 = arith.constant 929 : index
    %26 = vector.load %arg8[%c0_8, %c929_9] : memref<10x992xbf16, #tpu.memory_space<vmem>>, vector<10x63xbf16>
    tpu.vector_store %arg8[%c0_8, %c929_9], %22 {strides = array<i32>} : memref<10x992xbf16, #tpu.memory_space<vmem>>, vector<10x63xbf16>,
    %c0_10 = arith.constant 0 : index
    %c0_11 = arith.constant 0 : index
    %c0_12 = arith.constant 0 : index
    %27 = vector.load %arg1[%c0_10, %c0_11, %c0_12] : memref<2x3x1056xbf16, #tpu.memory_space<vmem>>, vector<1x3x900xbf16>
    %28 = vector.shape_cast %27 : vector<1x3x900xbf16> to vector<3x900xbf16>
    %c0_13 = arith.constant 0 : index
    %c0_14 = arith.constant 0 : index
    %29 = vector.load %arg9[%c0_13, %c0_14] : memref<30x900xbf16, #tpu.memory_space<vmem>>, vector<3x900xbf16>
    tpu.vector_store %arg9[%c0_13, %c0_14], %28 {strides = array<i32>} : memref<30x900xbf16, #tpu.memory_space<vmem>>, vector<3x900xbf16>,
    %c0_15 = arith.constant 0 : index
    %c0_16 = arith.constant 0 : index
    %c32 = arith.constant 32 : index
    %30 = vector.load %arg1[%c0_15, %c0_16, %c32] : memref<2x3x1056xbf16, #tpu.memory_space<vmem>>, vector<1x3x900xbf16>
    %31 = vector.shape_cast %30 : vector<1x3x900xbf16> to vector<3x900xbf16>
    %c3 = arith.constant 3 : index
    %c0_17 = arith.constant 0 : index
    %32 = vector.load %arg9[%c3, %c0_17] : memref<30x900xbf16, #tpu.memory_space<vmem>>, vector<3x900xbf16>
    tpu.vector_store %arg9[%c3, %c0_17], %31 {strides = array<i32>} : memref<30x900xbf16, #tpu.memory_space<vmem>>, vector<3x900xbf16>,
    %c0_18 = arith.constant 0 : index
    %c0_19 = arith.constant 0 : index
    %c64 = arith.constant 64 : index
    %33 = vector.load %arg1[%c0_18, %c0_19, %c64] : memref<2x3x1056xbf16, #tpu.memory_space<vmem>>, vector<1x3x900xbf16>
    %34 = vector.shape_cast %33 : vector<1x3x900xbf16> to vector<3x900xbf16>
    %c6 = arith.constant 6 : index
    %c0_20 = arith.constant 0 : index
    %35 = vector.load %arg9[%c6, %c0_20] : memref<30x900xbf16, #tpu.memory_space<vmem>>, vector<3x900xbf16>
    tpu.vector_store %arg9[%c6, %c0_20], %34 {strides = array<i32>} : memref<30x900xbf16, #tpu.memory_space<vmem>>, vector<3x900xbf16>,
    %c0_21 = arith.constant 0 : index
    %c0_22 = arith.constant 0 : index
    %c96 = arith.constant 96 : index
    %36 = vector.load %arg1[%c0_21, %c0_22, %c96] : memref<2x3x1056xbf16, #tpu.memory_space<vmem>>, vector<1x3x900xbf16>
    %37 = vector.shape_cast %36 : vector<1x3x900xbf16> to vector<3x900xbf16>
    %c9 = arith.constant 9 : index
    %c0_23 = arith.constant 0 : index
    %38 = vector.load %arg9[%c9, %c0_23] : memref<30x900xbf16, #tpu.memory_space<vmem>>, vector<3x900xbf16>
    tpu.vector_store %arg9[%c9, %c0_23], %37 {strides = array<i32>} : memref<30x900xbf16, #tpu.memory_space<vmem>>, vector<3x900xbf16>,
    %c0_24 = arith.constant 0 : index
    %c0_25 = arith.constant 0 : index
    %c128 = arith.constant 128 : index
    %39 = vector.load %arg1[%c0_24, %c0_25, %c128] : memref<2x3x1056xbf16, #tpu.memory_space<vmem>>, vector<1x3x900xbf16>
    %40 = vector.shape_cast %39 : vector<1x3x900xbf16> to vector<3x900xbf16>
    %c12 = arith.constant 12 : index
    %c0_26 = arith.constant 0 : index
    %41 = vector.load %arg9[%c12, %c0_26] : memref<30x900xbf16, #tpu.memory_space<vmem>>, vector<3x900xbf16>
    tpu.vector_store %arg9[%c12, %c0_26], %40 {strides = array<i32>} : memref<30x900xbf16, #tpu.memory_space<vmem>>, vector<3x900xbf16>,
    %c0_27 = arith.constant 0 : index
    %c0_28 = arith.constant 0 : index
    %c0_29 = arith.constant 0 : index
    %42 = vector.load %arg2[%c0_27, %c0_28, %c0_29] : memref<5x10x15xbf16, #tpu.memory_space<vmem>>, vector<1x10x15xbf16>
    %43 = vector.shape_cast %42 : vector<1x10x15xbf16> to vector<10x15xbf16>
    %c0_30 = arith.constant 0 : index
    %c0_31 = arith.constant 0 : index
    %44 = vector.load %arg9[%c0_30, %c0_31] : memref<30x900xbf16, #tpu.memory_space<vmem>>, vector<15x896xbf16>
    %cst_32 = arith.constant dense<0.000000e+00> : vector<10x896xf32>
    %45 = tpu.matmul %43, %44, %cst_32 {dimension_numbers = #tpu.dot_dimension_numbers<[1], [0], [0], [1], [0, 0, 1, 1], [], []>} : vector<10x15xbf16>, vector<15x896xbf16>, vector<10x896xf32> -> vector<10x896xf32>
    %c1 = arith.constant 1 : index
    %c0_33 = arith.constant 0 : index
    %c0_34 = arith.constant 0 : index
    %46 = vector.load %arg2[%c1, %c0_33, %c0_34] : memref<5x10x15xbf16, #tpu.memory_space<vmem>>, vector<1x10x15xbf16>
    %47 = vector.shape_cast %46 : vector<1x10x15xbf16> to vector<10x15xbf16>
    %c0_35 = arith.constant 0 : index
    %c1_36 = arith.constant 1 : index
    %48 = vector.load %arg9[%c0_35, %c1_36] : memref<30x900xbf16, #tpu.memory_space<vmem>>, vector<15x896xbf16>
    %cst_37 = arith.constant dense<0.000000e+00> : vector<10x896xf32>
    %49 = tpu.matmul %47, %48, %cst_37 {dimension_numbers = #tpu.dot_dimension_numbers<[1], [0], [0], [1], [0, 0, 1, 1], [], []>} : vector<10x15xbf16>, vector<15x896xbf16>, vector<10x896xf32> -> vector<10x896xf32>
    %50 = arith.addf %45, %49 : vector<10x896xf32>
    %c2 = arith.constant 2 : index
    %c0_38 = arith.constant 0 : index
    %c0_39 = arith.constant 0 : index
    %51 = vector.load %arg2[%c2, %c0_38, %c0_39] : memref<5x10x15xbf16, #tpu.memory_space<vmem>>, vector<1x10x15xbf16>
    %52 = vector.shape_cast %51 : vector<1x10x15xbf16> to vector<10x15xbf16>
    %c0_40 = arith.constant 0 : index
    %c2_41 = arith.constant 2 : index
    %53 = vector.load %arg9[%c0_40, %c2_41] : memref<30x900xbf16, #tpu.memory_space<vmem>>, vector<15x896xbf16>
    %cst_42 = arith.constant dense<0.000000e+00> : vector<10x896xf32>
    %54 = tpu.matmul %52, %53, %cst_42 {dimension_numbers = #tpu.dot_dimension_numbers<[1], [0], [0], [1], [0, 0, 1, 1], [], []>} : vector<10x15xbf16>, vector<15x896xbf16>, vector<10x896xf32> -> vector<10x896xf32>
    %55 = arith.addf %50, %54 : vector<10x896xf32>
    %c3_43 = arith.constant 3 : index
    %c0_44 = arith.constant 0 : index
    %c0_45 = arith.constant 0 : index
    %56 = vector.load %arg2[%c3_43, %c0_44, %c0_45] : memref<5x10x15xbf16, #tpu.memory_space<vmem>>, vector<1x10x15xbf16>
    %57 = vector.shape_cast %56 : vector<1x10x15xbf16> to vector<10x15xbf16>
    %c0_46 = arith.constant 0 : index
    %c3_47 = arith.constant 3 : index
    %58 = vector.load %arg9[%c0_46, %c3_47] : memref<30x900xbf16, #tpu.memory_space<vmem>>, vector<15x896xbf16>
    %cst_48 = arith.constant dense<0.000000e+00> : vector<10x896xf32>
    %59 = tpu.matmul %57, %58, %cst_48 {dimension_numbers = #tpu.dot_dimension_numbers<[1], [0], [0], [1], [0, 0, 1, 1], [], []>} : vector<10x15xbf16>, vector<15x896xbf16>, vector<10x896xf32> -> vector<10x896xf32>
    %60 = arith.addf %55, %59 : vector<10x896xf32>
    %c4 = arith.constant 4 : index
    %c0_49 = arith.constant 0 : index
    %c0_50 = arith.constant 0 : index
    %61 = vector.load %arg2[%c4, %c0_49, %c0_50] : memref<5x10x15xbf16, #tpu.memory_space<vmem>>, vector<1x10x15xbf16>
    %62 = vector.shape_cast %61 : vector<1x10x15xbf16> to vector<10x15xbf16>
    %c0_51 = arith.constant 0 : index
    %c4_52 = arith.constant 4 : index
    %63 = vector.load %arg9[%c0_51, %c4_52] : memref<30x900xbf16, #tpu.memory_space<vmem>>, vector<15x896xbf16>
    %cst_53 = arith.constant dense<0.000000e+00> : vector<10x896xf32>
    %64 = tpu.matmul %62, %63, %cst_53 {dimension_numbers = #tpu.dot_dimension_numbers<[1], [0], [0], [1], [0, 0, 1, 1], [], []>} : vector<10x15xbf16>, vector<15x896xbf16>, vector<10x896xf32> -> vector<10x896xf32>
    %65 = arith.addf %60, %64 : vector<10x896xf32>
    %c0_54 = arith.constant 0 : index
    %c0_55 = arith.constant 0 : index
    %66 = vector.load %arg5[%c0_54, %c0_55] : memref<10x3xf32, #tpu.memory_space<vmem>>, vector<10x1xf32>
    %67 = vector.broadcast %66 : vector<10x1xf32> to vector<10x896xf32>
    %68 = arith.addf %65, %67 : vector<10x896xf32>
    %cst_56 = arith.constant 0.000000e+00 : f32
    %69 = vector.broadcast %cst_56 : f32 to vector<10x896xf32>
    %70 = arith.maximumf %68, %69 : vector<10x896xf32>
    %71 = vector.broadcast %20 : vector<1x896xf32> to vector<10x896xf32>
    %72 = arith.mulf %70, %71 : vector<10x896xf32>
    %73 = arith.truncf %72 : vector<10x896xf32> to vector<10x896xbf16>
    %c0_57 = arith.constant 0 : index
    %c33 = arith.constant 33 : index
    %74 = vector.load %arg7[%c0_57, %c33] : memref<10x992xbf16, #tpu.memory_space<vmem>>, vector<10x896xbf16>
    tpu.vector_store %arg7[%c0_57, %c33], %73 {strides = array<i32>} : memref<10x992xbf16, #tpu.memory_space<vmem>>, vector<10x896xbf16>,
    %c0_58 = arith.constant 0 : index
    %c0_59 = arith.constant 0 : index
    %75 = vector.load %arg7[%c0_58, %c0_59] : memref<10x992xbf16, #tpu.memory_space<vmem>>, vector<10x898xbf16>
    %c0_60 = arith.constant 0 : index
    %c0_61 = arith.constant 0 : index
    %76 = vector.load %arg9[%c0_60, %c0_61] : memref<30x900xbf16, #tpu.memory_space<vmem>>, vector<10x898xbf16>
    tpu.vector_store %arg9[%c0_60, %c0_61], %75 {strides = array<i32>} : memref<30x900xbf16, #tpu.memory_space<vmem>>, vector<10x898xbf16>,
    %c0_62 = arith.constant 0 : index
    %c32_63 = arith.constant 32 : index
    %77 = vector.load %arg7[%c0_62, %c32_63] : memref<10x992xbf16, #tpu.memory_space<vmem>>, vector<10x898xbf16>
    %c10 = arith.constant 10 : index
    %c0_64 = arith.constant 0 : index
    %78 = vector.load %arg9[%c10, %c0_64] : memref<30x900xbf16, #tpu.memory_space<vmem>>, vector<10x898xbf16>
    tpu.vector_store %arg9[%c10, %c0_64], %77 {strides = array<i32>} : memref<30x900xbf16, #tpu.memory_space<vmem>>, vector<10x898xbf16>,
    %c0_65 = arith.constant 0 : index
    %c64_66 = arith.constant 64 : index
    %79 = vector.load %arg7[%c0_65, %c64_66] : memref<10x992xbf16, #tpu.memory_space<vmem>>, vector<10x898xbf16>
    %c20 = arith.constant 20 : index
    %c0_67 = arith.constant 0 : index
    %80 = vector.load %arg9[%c20, %c0_67] : memref<30x900xbf16, #tpu.memory_space<vmem>>, vector<10x898xbf16>
    tpu.vector_store %arg9[%c20, %c0_67], %79 {strides = array<i32>} : memref<30x900xbf16, #tpu.memory_space<vmem>>, vector<10x898xbf16>,
    %c0_68 = arith.constant 0 : index
    %c0_69 = arith.constant 0 : index
    %c0_70 = arith.constant 0 : index
    %81 = vector.load %arg3[%c0_68, %c0_69, %c0_70] : memref<3x10x30xbf16, #tpu.memory_space<vmem>>, vector<1x10x30xbf16>
    %82 = vector.shape_cast %81 : vector<1x10x30xbf16> to vector<10x30xbf16>
    %c0_71 = arith.constant 0 : index
    %c0_72 = arith.constant 0 : index
    %83 = vector.load %arg9[%c0_71, %c0_72] : memref<30x900xbf16, #tpu.memory_space<vmem>>, vector<30x896xbf16>
    %cst_73 = arith.constant dense<0.000000e+00> : vector<10x896xf32>
    %84 = tpu.matmul %82, %83, %cst_73 {dimension_numbers = #tpu.dot_dimension_numbers<[1], [0], [0], [1], [0, 0, 1, 1], [], []>} : vector<10x30xbf16>, vector<30x896xbf16>, vector<10x896xf32> -> vector<10x896xf32>
    %c1_74 = arith.constant 1 : index
    %c0_75 = arith.constant 0 : index
    %c0_76 = arith.constant 0 : index
    %85 = vector.load %arg3[%c1_74, %c0_75, %c0_76] : memref<3x10x30xbf16, #tpu.memory_space<vmem>>, vector<1x10x30xbf16>
    %86 = vector.shape_cast %85 : vector<1x10x30xbf16> to vector<10x30xbf16>
    %c0_77 = arith.constant 0 : index
    %c1_78 = arith.constant 1 : index
    %87 = vector.load %arg9[%c0_77, %c1_78] : memref<30x900xbf16, #tpu.memory_space<vmem>>, vector<30x896xbf16>
    %cst_79 = arith.constant dense<0.000000e+00> : vector<10x896xf32>
    %88 = tpu.matmul %86, %87, %cst_79 {dimension_numbers = #tpu.dot_dimension_numbers<[1], [0], [0], [1], [0, 0, 1, 1], [], []>} : vector<10x30xbf16>, vector<30x896xbf16>, vector<10x896xf32> -> vector<10x896xf32>
    %89 = arith.addf %84, %88 : vector<10x896xf32>
    %c2_80 = arith.constant 2 : index
    %c0_81 = arith.constant 0 : index
    %c0_82 = arith.constant 0 : index
    %90 = vector.load %arg3[%c2_80, %c0_81, %c0_82] : memref<3x10x30xbf16, #tpu.memory_space<vmem>>, vector<1x10x30xbf16>
    %91 = vector.shape_cast %90 : vector<1x10x30xbf16> to vector<10x30xbf16>
    %c0_83 = arith.constant 0 : index
    %c2_84 = arith.constant 2 : index
    %92 = vector.load %arg9[%c0_83, %c2_84] : memref<30x900xbf16, #tpu.memory_space<vmem>>, vector<30x896xbf16>
    %cst_85 = arith.constant dense<0.000000e+00> : vector<10x896xf32>
    %93 = tpu.matmul %91, %92, %cst_85 {dimension_numbers = #tpu.dot_dimension_numbers<[1], [0], [0], [1], [0, 0, 1, 1], [], []>} : vector<10x30xbf16>, vector<30x896xbf16>, vector<10x896xf32> -> vector<10x896xf32>
    %94 = arith.addf %89, %93 : vector<10x896xf32>
    %c0_86 = arith.constant 0 : index
    %c1_87 = arith.constant 1 : index
    %95 = vector.load %arg5[%c0_86, %c1_87] : memref<10x3xf32, #tpu.memory_space<vmem>>, vector<10x1xf32>
    %96 = vector.broadcast %95 : vector<10x1xf32> to vector<10x896xf32>
    %97 = arith.addf %94, %96 : vector<10x896xf32>
    %cst_88 = arith.constant 0.000000e+00 : f32
    %98 = vector.broadcast %cst_88 : f32 to vector<10x896xf32>
    %99 = arith.maximumf %97, %98 : vector<10x896xf32>
    %100 = vector.broadcast %20 : vector<1x896xf32> to vector<10x896xf32>
    %101 = arith.mulf %99, %100 : vector<10x896xf32>
    %102 = arith.truncf %101 : vector<10x896xf32> to vector<10x896xbf16>
    %c0_89 = arith.constant 0 : index
    %c33_90 = arith.constant 33 : index
    %103 = vector.load %arg8[%c0_89, %c33_90] : memref<10x992xbf16, #tpu.memory_space<vmem>>, vector<10x896xbf16>
    tpu.vector_store %arg8[%c0_89, %c33_90], %102 {strides = array<i32>} : memref<10x992xbf16, #tpu.memory_space<vmem>>, vector<10x896xbf16>,
    %c0_91 = arith.constant 0 : index
    %c0_92 = arith.constant 0 : index
    %104 = vector.load %arg8[%c0_91, %c0_92] : memref<10x992xbf16, #tpu.memory_space<vmem>>, vector<10x898xbf16>
    %c0_93 = arith.constant 0 : index
    %c0_94 = arith.constant 0 : index
    %105 = vector.load %arg9[%c0_93, %c0_94] : memref<30x900xbf16, #tpu.memory_space<vmem>>, vector<10x898xbf16>
    tpu.vector_store %arg9[%c0_93, %c0_94], %104 {strides = array<i32>} : memref<30x900xbf16, #tpu.memory_space<vmem>>, vector<10x898xbf16>,
    %c0_95 = arith.constant 0 : index
    %c32_96 = arith.constant 32 : index
    %106 = vector.load %arg8[%c0_95, %c32_96] : memref<10x992xbf16, #tpu.memory_space<vmem>>, vector<10x898xbf16>
    %c10_97 = arith.constant 10 : index
    %c0_98 = arith.constant 0 : index
    %107 = vector.load %arg9[%c10_97, %c0_98] : memref<30x900xbf16, #tpu.memory_space<vmem>>, vector<10x898xbf16>
    tpu.vector_store %arg9[%c10_97, %c0_98], %106 {strides = array<i32>} : memref<30x900xbf16, #tpu.memory_space<vmem>>, vector<10x898xbf16>,
    %c0_99 = arith.constant 0 : index
    %c64_100 = arith.constant 64 : index
    %108 = vector.load %arg8[%c0_99, %c64_100] : memref<10x992xbf16, #tpu.memory_space<vmem>>, vector<10x898xbf16>
    %c20_101 = arith.constant 20 : index
    %c0_102 = arith.constant 0 : index
    %109 = vector.load %arg9[%c20_101, %c0_102] : memref<30x900xbf16, #tpu.memory_space<vmem>>, vector<10x898xbf16>
    tpu.vector_store %arg9[%c20_101, %c0_102], %108 {strides = array<i32>} : memref<30x900xbf16, #tpu.memory_space<vmem>>, vector<10x898xbf16>,
    %c0_103 = arith.constant 0 : index
    %c0_104 = arith.constant 0 : index
    %c0_105 = arith.constant 0 : index
    %110 = vector.load %arg4[%c0_103, %c0_104, %c0_105] : memref<3x10x30xbf16, #tpu.memory_space<vmem>>, vector<1x10x30xbf16>
    %111 = vector.shape_cast %110 : vector<1x10x30xbf16> to vector<10x30xbf16>
    %c0_106 = arith.constant 0 : index
    %c0_107 = arith.constant 0 : index
    %112 = vector.load %arg9[%c0_106, %c0_107] : memref<30x900xbf16, #tpu.memory_space<vmem>>, vector<30x896xbf16>
    %cst_108 = arith.constant dense<0.000000e+00> : vector<10x896xf32>
    %113 = tpu.matmul %111, %112, %cst_108 {dimension_numbers = #tpu.dot_dimension_numbers<[1], [0], [0], [1], [0, 0, 1, 1], [], []>} : vector<10x30xbf16>, vector<30x896xbf16>, vector<10x896xf32> -> vector<10x896xf32>
    %c1_109 = arith.constant 1 : index
    %c0_110 = arith.constant 0 : index
    %c0_111 = arith.constant 0 : index
    %114 = vector.load %arg4[%c1_109, %c0_110, %c0_111] : memref<3x10x30xbf16, #tpu.memory_space<vmem>>, vector<1x10x30xbf16>
    %115 = vector.shape_cast %114 : vector<1x10x30xbf16> to vector<10x30xbf16>
    %c0_112 = arith.constant 0 : index
    %c1_113 = arith.constant 1 : index
    %116 = vector.load %arg9[%c0_112, %c1_113] : memref<30x900xbf16, #tpu.memory_space<vmem>>, vector<30x896xbf16>
    %cst_114 = arith.constant dense<0.000000e+00> : vector<10x896xf32>
    %117 = tpu.matmul %115, %116, %cst_114 {dimension_numbers = #tpu.dot_dimension_numbers<[1], [0], [0], [1], [0, 0, 1, 1], [], []>} : vector<10x30xbf16>, vector<30x896xbf16>, vector<10x896xf32> -> vector<10x896xf32>
    %118 = arith.addf %113, %117 : vector<10x896xf32>
    %c2_115 = arith.constant 2 : index
    %c0_116 = arith.constant 0 : index
    %c0_117 = arith.constant 0 : index
    %119 = vector.load %arg4[%c2_115, %c0_116, %c0_117] : memref<3x10x30xbf16, #tpu.memory_space<vmem>>, vector<1x10x30xbf16>
    %120 = vector.shape_cast %119 : vector<1x10x30xbf16> to vector<10x30xbf16>
    %c0_118 = arith.constant 0 : index
    %c2_119 = arith.constant 2 : index
    %121 = vector.load %arg9[%c0_118, %c2_119] : memref<30x900xbf16, #tpu.memory_space<vmem>>, vector<30x896xbf16>
    %cst_120 = arith.constant dense<0.000000e+00> : vector<10x896xf32>
    %122 = tpu.matmul %120, %121, %cst_120 {dimension_numbers = #tpu.dot_dimension_numbers<[1], [0], [0], [1], [0, 0, 1, 1], [], []>} : vector<10x30xbf16>, vector<30x896xbf16>, vector<10x896xf32> -> vector<10x896xf32>
    %123 = arith.addf %118, %122 : vector<10x896xf32>
    %c0_121 = arith.constant 0 : index
    %c2_122 = arith.constant 2 : index
    %124 = vector.load %arg5[%c0_121, %c2_122] : memref<10x3xf32, #tpu.memory_space<vmem>>, vector<10x1xf32>
    %125 = vector.broadcast %124 : vector<10x1xf32> to vector<10x896xf32>
    %126 = arith.addf %123, %125 : vector<10x896xf32>
    %cst_123 = arith.constant 0.000000e+00 : f32
    %127 = vector.broadcast %cst_123 : f32 to vector<10x896xf32>
    %128 = arith.maximumf %126, %127 : vector<10x896xf32>
    %c0_124 = arith.constant 0 : index
    %c33_125 = arith.constant 33 : index
    %129 = vector.load %arg7[%c0_124, %c33_125] : memref<10x992xbf16, #tpu.memory_space<vmem>>, vector<10x896xbf16>
    %130 = arith.extf %129 : vector<10x896xbf16> to vector<10x896xf32>
    %131 = arith.addf %128, %130 : vector<10x896xf32>
    %132 = vector.broadcast %20 : vector<1x896xf32> to vector<10x896xf32>
    %133 = arith.mulf %131, %132 : vector<10x896xf32>
    %134 = arith.truncf %133 : vector<10x896xf32> to vector<10x896xbf16>
    %c0_126 = arith.constant 0 : index
    %c0_127 = arith.constant 0 : index
    %c0_128 = arith.constant 0 : index
    %135 = vector.load %arg6[%c0_126, %c0_127, %c0_128] : memref<2x10x896xbf16, #tpu.memory_space<vmem>>, vector<1x10x896xbf16>
    %136 = vector.shape_cast %135 : vector<1x10x896xbf16> to vector<10x896xbf16>
    %137 = vector.shape_cast %134 : vector<10x896xbf16> to vector<1x10x896xbf16>
    tpu.vector_store %arg6[%c0_126, %c0_127, %c0_128], %137 {strides = array<i32>} : memref<2x10x896xbf16, #tpu.memory_space<vmem>>, vector<1x10x896xbf16>,
    %c1_129 = arith.constant 1 : index
    %c0_130 = arith.constant 0 : index
    %c0_131 = arith.constant 0 : index
    %138 = vector.load %arg1[%c1_129, %c0_130, %c0_131] : memref<2x3x1056xbf16, #tpu.memory_space<vmem>>, vector<1x3x900xbf16>
    %139 = vector.shape_cast %138 : vector<1x3x900xbf16> to vector<3x900xbf16>
    %c0_132 = arith.constant 0 : index
    %c0_133 = arith.constant 0 : index
    %140 = vector.load %arg9[%c0_132, %c0_133] : memref<30x900xbf16, #tpu.memory_space<vmem>>, vector<3x900xbf16>
    tpu.vector_store %arg9[%c0_132, %c0_133], %139 {strides = array<i32>} : memref<30x900xbf16, #tpu.memory_space<vmem>>, vector<3x900xbf16>,
    %c1_134 = arith.constant 1 : index
    %c0_135 = arith.constant 0 : index
    %c32_136 = arith.constant 32 : index
    %141 = vector.load %arg1[%c1_134, %c0_135, %c32_136] : memref<2x3x1056xbf16, #tpu.memory_space<vmem>>, vector<1x3x900xbf16>
    %142 = vector.shape_cast %141 : vector<1x3x900xbf16> to vector<3x900xbf16>
    %c3_137 = arith.constant 3 : index
    %c0_138 = arith.constant 0 : index
    %143 = vector.load %arg9[%c3_137, %c0_138] : memref<30x900xbf16, #tpu.memory_space<vmem>>, vector<3x900xbf16>
    tpu.vector_store %arg9[%c3_137, %c0_138], %142 {strides = array<i32>} : memref<30x900xbf16, #tpu.memory_space<vmem>>, vector<3x900xbf16>,
    %c1_139 = arith.constant 1 : index
    %c0_140 = arith.constant 0 : index
    %c64_141 = arith.constant 64 : index
    %144 = vector.load %arg1[%c1_139, %c0_140, %c64_141] : memref<2x3x1056xbf16, #tpu.memory_space<vmem>>, vector<1x3x900xbf16>
    %145 = vector.shape_cast %144 : vector<1x3x900xbf16> to vector<3x900xbf16>
    %c6_142 = arith.constant 6 : index
    %c0_143 = arith.constant 0 : index
    %146 = vector.load %arg9[%c6_142, %c0_143] : memref<30x900xbf16, #tpu.memory_space<vmem>>, vector<3x900xbf16>
    tpu.vector_store %arg9[%c6_142, %c0_143], %145 {strides = array<i32>} : memref<30x900xbf16, #tpu.memory_space<vmem>>, vector<3x900xbf16>,
    %c1_144 = arith.constant 1 : index
    %c0_145 = arith.constant 0 : index
    %c96_146 = arith.constant 96 : index
    %147 = vector.load %arg1[%c1_144, %c0_145, %c96_146] : memref<2x3x1056xbf16, #tpu.memory_space<vmem>>, vector<1x3x900xbf16>
    %148 = vector.shape_cast %147 : vector<1x3x900xbf16> to vector<3x900xbf16>
    %c9_147 = arith.constant 9 : index
    %c0_148 = arith.constant 0 : index
    %149 = vector.load %arg9[%c9_147, %c0_148] : memref<30x900xbf16, #tpu.memory_space<vmem>>, vector<3x900xbf16>
    tpu.vector_store %arg9[%c9_147, %c0_148], %148 {strides = array<i32>} : memref<30x900xbf16, #tpu.memory_space<vmem>>, vector<3x900xbf16>,
    %c1_149 = arith.constant 1 : index
    %c0_150 = arith.constant 0 : index
    %c128_151 = arith.constant 128 : index
    %150 = vector.load %arg1[%c1_149, %c0_150, %c128_151] : memref<2x3x1056xbf16, #tpu.memory_space<vmem>>, vector<1x3x900xbf16>
    %151 = vector.shape_cast %150 : vector<1x3x900xbf16> to vector<3x900xbf16>
    %c12_152 = arith.constant 12 : index
    %c0_153 = arith.constant 0 : index
    %152 = vector.load %arg9[%c12_152, %c0_153] : memref<30x900xbf16, #tpu.memory_space<vmem>>, vector<3x900xbf16>
    tpu.vector_store %arg9[%c12_152, %c0_153], %151 {strides = array<i32>} : memref<30x900xbf16, #tpu.memory_space<vmem>>, vector<3x900xbf16>,
    %c0_154 = arith.constant 0 : index
    %c0_155 = arith.constant 0 : index
    %c0_156 = arith.constant 0 : index
    %153 = vector.load %arg2[%c0_154, %c0_155, %c0_156] : memref<5x10x15xbf16, #tpu.memory_space<vmem>>, vector<1x10x15xbf16>
    %154 = vector.shape_cast %153 : vector<1x10x15xbf16> to vector<10x15xbf16>
    %c0_157 = arith.constant 0 : index
    %c0_158 = arith.constant 0 : index
    %155 = vector.load %arg9[%c0_157, %c0_158] : memref<30x900xbf16, #tpu.memory_space<vmem>>, vector<15x896xbf16>
    %cst_159 = arith.constant dense<0.000000e+00> : vector<10x896xf32>
    %156 = tpu.matmul %154, %155, %cst_159 {dimension_numbers = #tpu.dot_dimension_numbers<[1], [0], [0], [1], [0, 0, 1, 1], [], []>} : vector<10x15xbf16>, vector<15x896xbf16>, vector<10x896xf32> -> vector<10x896xf32>
    %c1_160 = arith.constant 1 : index
    %c0_161 = arith.constant 0 : index
    %c0_162 = arith.constant 0 : index
    %157 = vector.load %arg2[%c1_160, %c0_161, %c0_162] : memref<5x10x15xbf16, #tpu.memory_space<vmem>>, vector<1x10x15xbf16>
    %158 = vector.shape_cast %157 : vector<1x10x15xbf16> to vector<10x15xbf16>
    %c0_163 = arith.constant 0 : index
    %c1_164 = arith.constant 1 : index
    %159 = vector.load %arg9[%c0_163, %c1_164] : memref<30x900xbf16, #tpu.memory_space<vmem>>, vector<15x896xbf16>
    %cst_165 = arith.constant dense<0.000000e+00> : vector<10x896xf32>
    %160 = tpu.matmul %158, %159, %cst_165 {dimension_numbers = #tpu.dot_dimension_numbers<[1], [0], [0], [1], [0, 0, 1, 1], [], []>} : vector<10x15xbf16>, vector<15x896xbf16>, vector<10x896xf32> -> vector<10x896xf32>
    %161 = arith.addf %156, %160 : vector<10x896xf32>
    %c2_166 = arith.constant 2 : index
    %c0_167 = arith.constant 0 : index
    %c0_168 = arith.constant 0 : index
    %162 = vector.load %arg2[%c2_166, %c0_167, %c0_168] : memref<5x10x15xbf16, #tpu.memory_space<vmem>>, vector<1x10x15xbf16>
    %163 = vector.shape_cast %162 : vector<1x10x15xbf16> to vector<10x15xbf16>
    %c0_169 = arith.constant 0 : index
    %c2_170 = arith.constant 2 : index
    %164 = vector.load %arg9[%c0_169, %c2_170] : memref<30x900xbf16, #tpu.memory_space<vmem>>, vector<15x896xbf16>
    %cst_171 = arith.constant dense<0.000000e+00> : vector<10x896xf32>
    %165 = tpu.matmul %163, %164, %cst_171 {dimension_numbers = #tpu.dot_dimension_numbers<[1], [0], [0], [1], [0, 0, 1, 1], [], []>} : vector<10x15xbf16>, vector<15x896xbf16>, vector<10x896xf32> -> vector<10x896xf32>
    %166 = arith.addf %161, %165 : vector<10x896xf32>
    %c3_172 = arith.constant 3 : index
    %c0_173 = arith.constant 0 : index
    %c0_174 = arith.constant 0 : index
    %167 = vector.load %arg2[%c3_172, %c0_173, %c0_174] : memref<5x10x15xbf16, #tpu.memory_space<vmem>>, vector<1x10x15xbf16>
    %168 = vector.shape_cast %167 : vector<1x10x15xbf16> to vector<10x15xbf16>
    %c0_175 = arith.constant 0 : index
    %c3_176 = arith.constant 3 : index
    %169 = vector.load %arg9[%c0_175, %c3_176] : memref<30x900xbf16, #tpu.memory_space<vmem>>, vector<15x896xbf16>
    %cst_177 = arith.constant dense<0.000000e+00> : vector<10x896xf32>
    %170 = tpu.matmul %168, %169, %cst_177 {dimension_numbers = #tpu.dot_dimension_numbers<[1], [0], [0], [1], [0, 0, 1, 1], [], []>} : vector<10x15xbf16>, vector<15x896xbf16>, vector<10x896xf32> -> vector<10x896xf32>
    %171 = arith.addf %166, %170 : vector<10x896xf32>
    %c4_178 = arith.constant 4 : index
    %c0_179 = arith.constant 0 : index
    %c0_180 = arith.constant 0 : index
    %172 = vector.load %arg2[%c4_178, %c0_179, %c0_180] : memref<5x10x15xbf16, #tpu.memory_space<vmem>>, vector<1x10x15xbf16>
    %173 = vector.shape_cast %172 : vector<1x10x15xbf16> to vector<10x15xbf16>
    %c0_181 = arith.constant 0 : index
    %c4_182 = arith.constant 4 : index
    %174 = vector.load %arg9[%c0_181, %c4_182] : memref<30x900xbf16, #tpu.memory_space<vmem>>, vector<15x896xbf16>
    %cst_183 = arith.constant dense<0.000000e+00> : vector<10x896xf32>
    %175 = tpu.matmul %173, %174, %cst_183 {dimension_numbers = #tpu.dot_dimension_numbers<[1], [0], [0], [1], [0, 0, 1, 1], [], []>} : vector<10x15xbf16>, vector<15x896xbf16>, vector<10x896xf32> -> vector<10x896xf32>
    %176 = arith.addf %171, %175 : vector<10x896xf32>
    %c0_184 = arith.constant 0 : index
    %c0_185 = arith.constant 0 : index
    %177 = vector.load %arg5[%c0_184, %c0_185] : memref<10x3xf32, #tpu.memory_space<vmem>>, vector<10x1xf32>
    %178 = vector.broadcast %177 : vector<10x1xf32> to vector<10x896xf32>
    %179 = arith.addf %176, %178 : vector<10x896xf32>
    %cst_186 = arith.constant 0.000000e+00 : f32
    %180 = vector.broadcast %cst_186 : f32 to vector<10x896xf32>
    %181 = arith.maximumf %179, %180 : vector<10x896xf32>
    %182 = vector.broadcast %20 : vector<1x896xf32> to vector<10x896xf32>
    %183 = arith.mulf %181, %182 : vector<10x896xf32>
    %184 = arith.truncf %183 : vector<10x896xf32> to vector<10x896xbf16>
    %c0_187 = arith.constant 0 : index
    %c33_188 = arith.constant 33 : index
    %185 = vector.load %arg7[%c0_187, %c33_188] : memref<10x992xbf16, #tpu.memory_space<vmem>>, vector<10x896xbf16>
    tpu.vector_store %arg7[%c0_187, %c33_188], %184 {strides = array<i32>} : memref<10x992xbf16, #tpu.memory_space<vmem>>, vector<10x896xbf16>,
    %c0_189 = arith.constant 0 : index
    %c0_190 = arith.constant 0 : index
    %186 = vector.load %arg7[%c0_189, %c0_190] : memref<10x992xbf16, #tpu.memory_space<vmem>>, vector<10x898xbf16>
    %c0_191 = arith.constant 0 : index
    %c0_192 = arith.constant 0 : index
    %187 = vector.load %arg9[%c0_191, %c0_192] : memref<30x900xbf16, #tpu.memory_space<vmem>>, vector<10x898xbf16>
    tpu.vector_store %arg9[%c0_191, %c0_192], %186 {strides = array<i32>} : memref<30x900xbf16, #tpu.memory_space<vmem>>, vector<10x898xbf16>,
    %c0_193 = arith.constant 0 : index
    %c32_194 = arith.constant 32 : index
    %188 = vector.load %arg7[%c0_193, %c32_194] : memref<10x992xbf16, #tpu.memory_space<vmem>>, vector<10x898xbf16>
    %c10_195 = arith.constant 10 : index
    %c0_196 = arith.constant 0 : index
    %189 = vector.load %arg9[%c10_195, %c0_196] : memref<30x900xbf16, #tpu.memory_space<vmem>>, vector<10x898xbf16>
    tpu.vector_store %arg9[%c10_195, %c0_196], %188 {strides = array<i32>} : memref<30x900xbf16, #tpu.memory_space<vmem>>, vector<10x898xbf16>,
    %c0_197 = arith.constant 0 : index
    %c64_198 = arith.constant 64 : index
    %190 = vector.load %arg7[%c0_197, %c64_198] : memref<10x992xbf16, #tpu.memory_space<vmem>>, vector<10x898xbf16>
    %c20_199 = arith.constant 20 : index
    %c0_200 = arith.constant 0 : index
    %191 = vector.load %arg9[%c20_199, %c0_200] : memref<30x900xbf16, #tpu.memory_space<vmem>>, vector<10x898xbf16>
    tpu.vector_store %arg9[%c20_199, %c0_200], %190 {strides = array<i32>} : memref<30x900xbf16, #tpu.memory_space<vmem>>, vector<10x898xbf16>,
    %c0_201 = arith.constant 0 : index
    %c0_202 = arith.constant 0 : index
    %c0_203 = arith.constant 0 : index
    %192 = vector.load %arg3[%c0_201, %c0_202, %c0_203] : memref<3x10x30xbf16, #tpu.memory_space<vmem>>, vector<1x10x30xbf16>
    %193 = vector.shape_cast %192 : vector<1x10x30xbf16> to vector<10x30xbf16>
    %c0_204 = arith.constant 0 : index
    %c0_205 = arith.constant 0 : index
    %194 = vector.load %arg9[%c0_204, %c0_205] : memref<30x900xbf16, #tpu.memory_space<vmem>>, vector<30x896xbf16>
    %cst_206 = arith.constant dense<0.000000e+00> : vector<10x896xf32>
    %195 = tpu.matmul %193, %194, %cst_206 {dimension_numbers = #tpu.dot_dimension_numbers<[1], [0], [0], [1], [0, 0, 1, 1], [], []>} : vector<10x30xbf16>, vector<30x896xbf16>, vector<10x896xf32> -> vector<10x896xf32>
    %c1_207 = arith.constant 1 : index
    %c0_208 = arith.constant 0 : index
    %c0_209 = arith.constant 0 : index
    %196 = vector.load %arg3[%c1_207, %c0_208, %c0_209] : memref<3x10x30xbf16, #tpu.memory_space<vmem>>, vector<1x10x30xbf16>
    %197 = vector.shape_cast %196 : vector<1x10x30xbf16> to vector<10x30xbf16>
    %c0_210 = arith.constant 0 : index
    %c1_211 = arith.constant 1 : index
    %198 = vector.load %arg9[%c0_210, %c1_211] : memref<30x900xbf16, #tpu.memory_space<vmem>>, vector<30x896xbf16>
    %cst_212 = arith.constant dense<0.000000e+00> : vector<10x896xf32>
    %199 = tpu.matmul %197, %198, %cst_212 {dimension_numbers = #tpu.dot_dimension_numbers<[1], [0], [0], [1], [0, 0, 1, 1], [], []>} : vector<10x30xbf16>, vector<30x896xbf16>, vector<10x896xf32> -> vector<10x896xf32>
    %200 = arith.addf %195, %199 : vector<10x896xf32>
    %c2_213 = arith.constant 2 : index
    %c0_214 = arith.constant 0 : index
    %c0_215 = arith.constant 0 : index
    %201 = vector.load %arg3[%c2_213, %c0_214, %c0_215] : memref<3x10x30xbf16, #tpu.memory_space<vmem>>, vector<1x10x30xbf16>
    %202 = vector.shape_cast %201 : vector<1x10x30xbf16> to vector<10x30xbf16>
    %c0_216 = arith.constant 0 : index
    %c2_217 = arith.constant 2 : index
    %203 = vector.load %arg9[%c0_216, %c2_217] : memref<30x900xbf16, #tpu.memory_space<vmem>>, vector<30x896xbf16>
    %cst_218 = arith.constant dense<0.000000e+00> : vector<10x896xf32>
    %204 = tpu.matmul %202, %203, %cst_218 {dimension_numbers = #tpu.dot_dimension_numbers<[1], [0], [0], [1], [0, 0, 1, 1], [], []>} : vector<10x30xbf16>, vector<30x896xbf16>, vector<10x896xf32> -> vector<10x896xf32>
    %205 = arith.addf %200, %204 : vector<10x896xf32>
    %c0_219 = arith.constant 0 : index
    %c1_220 = arith.constant 1 : index
    %206 = vector.load %arg5[%c0_219, %c1_220] : memref<10x3xf32, #tpu.memory_space<vmem>>, vector<10x1xf32>
    %207 = vector.broadcast %206 : vector<10x1xf32> to vector<10x896xf32>
    %208 = arith.addf %205, %207 : vector<10x896xf32>
    %cst_221 = arith.constant 0.000000e+00 : f32
    %209 = vector.broadcast %cst_221 : f32 to vector<10x896xf32>
    %210 = arith.maximumf %208, %209 : vector<10x896xf32>
    %211 = vector.broadcast %20 : vector<1x896xf32> to vector<10x896xf32>
    %212 = arith.mulf %210, %211 : vector<10x896xf32>
    %213 = arith.truncf %212 : vector<10x896xf32> to vector<10x896xbf16>
    %c0_222 = arith.constant 0 : index
    %c33_223 = arith.constant 33 : index
    %214 = vector.load %arg8[%c0_222, %c33_223] : memref<10x992xbf16, #tpu.memory_space<vmem>>, vector<10x896xbf16>
    tpu.vector_store %arg8[%c0_222, %c33_223], %213 {strides = array<i32>} : memref<10x992xbf16, #tpu.memory_space<vmem>>, vector<10x896xbf16>,
    %c0_224 = arith.constant 0 : index
    %c0_225 = arith.constant 0 : index
    %215 = vector.load %arg8[%c0_224, %c0_225] : memref<10x992xbf16, #tpu.memory_space<vmem>>, vector<10x898xbf16>
    %c0_226 = arith.constant 0 : index
    %c0_227 = arith.constant 0 : index
    %216 = vector.load %arg9[%c0_226, %c0_227] : memref<30x900xbf16, #tpu.memory_space<vmem>>, vector<10x898xbf16>
    tpu.vector_store %arg9[%c0_226, %c0_227], %215 {strides = array<i32>} : memref<30x900xbf16, #tpu.memory_space<vmem>>, vector<10x898xbf16>,
    %c0_228 = arith.constant 0 : index
    %c32_229 = arith.constant 32 : index
    %217 = vector.load %arg8[%c0_228, %c32_229] : memref<10x992xbf16, #tpu.memory_space<vmem>>, vector<10x898xbf16>
    %c10_230 = arith.constant 10 : index
    %c0_231 = arith.constant 0 : index
    %218 = vector.load %arg9[%c10_230, %c0_231] : memref<30x900xbf16, #tpu.memory_space<vmem>>, vector<10x898xbf16>
    tpu.vector_store %arg9[%c10_230, %c0_231], %217 {strides = array<i32>} : memref<30x900xbf16, #tpu.memory_space<vmem>>, vector<10x898xbf16>,
    %c0_232 = arith.constant 0 : index
    %c64_233 = arith.constant 64 : index
    %219 = vector.load %arg8[%c0_232, %c64_233] : memref<10x992xbf16, #tpu.memory_space<vmem>>, vector<10x898xbf16>
    %c20_234 = arith.constant 20 : index
    %c0_235 = arith.constant 0 : index
    %220 = vector.load %arg9[%c20_234, %c0_235] : memref<30x900xbf16, #tpu.memory_space<vmem>>, vector<10x898xbf16>
    tpu.vector_store %arg9[%c20_234, %c0_235], %219 {strides = array<i32>} : memref<30x900xbf16, #tpu.memory_space<vmem>>, vector<10x898xbf16>,
    %c0_236 = arith.constant 0 : index
    %c0_237 = arith.constant 0 : index
    %c0_238 = arith.constant 0 : index
    %221 = vector.load %arg4[%c0_236, %c0_237, %c0_238] : memref<3x10x30xbf16, #tpu.memory_space<vmem>>, vector<1x10x30xbf16>
    %222 = vector.shape_cast %221 : vector<1x10x30xbf16> to vector<10x30xbf16>
    %c0_239 = arith.constant 0 : index
    %c0_240 = arith.constant 0 : index
    %223 = vector.load %arg9[%c0_239, %c0_240] : memref<30x900xbf16, #tpu.memory_space<vmem>>, vector<30x896xbf16>
    %cst_241 = arith.constant dense<0.000000e+00> : vector<10x896xf32>
    %224 = tpu.matmul %222, %223, %cst_241 {dimension_numbers = #tpu.dot_dimension_numbers<[1], [0], [0], [1], [0, 0, 1, 1], [], []>} : vector<10x30xbf16>, vector<30x896xbf16>, vector<10x896xf32> -> vector<10x896xf32>
    %c1_242 = arith.constant 1 : index
    %c0_243 = arith.constant 0 : index
    %c0_244 = arith.constant 0 : index
    %225 = vector.load %arg4[%c1_242, %c0_243, %c0_244] : memref<3x10x30xbf16, #tpu.memory_space<vmem>>, vector<1x10x30xbf16>
    %226 = vector.shape_cast %225 : vector<1x10x30xbf16> to vector<10x30xbf16>
    %c0_245 = arith.constant 0 : index
    %c1_246 = arith.constant 1 : index
    %227 = vector.load %arg9[%c0_245, %c1_246] : memref<30x900xbf16, #tpu.memory_space<vmem>>, vector<30x896xbf16>
    %cst_247 = arith.constant dense<0.000000e+00> : vector<10x896xf32>
    %228 = tpu.matmul %226, %227, %cst_247 {dimension_numbers = #tpu.dot_dimension_numbers<[1], [0], [0], [1], [0, 0, 1, 1], [], []>} : vector<10x30xbf16>, vector<30x896xbf16>, vector<10x896xf32> -> vector<10x896xf32>
    %229 = arith.addf %224, %228 : vector<10x896xf32>
    %c2_248 = arith.constant 2 : index
    %c0_249 = arith.constant 0 : index
    %c0_250 = arith.constant 0 : index
    %230 = vector.load %arg4[%c2_248, %c0_249, %c0_250] : memref<3x10x30xbf16, #tpu.memory_space<vmem>>, vector<1x10x30xbf16>
    %231 = vector.shape_cast %230 : vector<1x10x30xbf16> to vector<10x30xbf16>
    %c0_251 = arith.constant 0 : index
    %c2_252 = arith.constant 2 : index
    %232 = vector.load %arg9[%c0_251, %c2_252] : memref<30x900xbf16, #tpu.memory_space<vmem>>, vector<30x896xbf16>
    %cst_253 = arith.constant dense<0.000000e+00> : vector<10x896xf32>
    %233 = tpu.matmul %231, %232, %cst_253 {dimension_numbers = #tpu.dot_dimension_numbers<[1], [0], [0], [1], [0, 0, 1, 1], [], []>} : vector<10x30xbf16>, vector<30x896xbf16>, vector<10x896xf32> -> vector<10x896xf32>
    %234 = arith.addf %229, %233 : vector<10x896xf32>
    %c0_254 = arith.constant 0 : index
    %c2_255 = arith.constant 2 : index
    %235 = vector.load %arg5[%c0_254, %c2_255] : memref<10x3xf32, #tpu.memory_space<vmem>>, vector<10x1xf32>
    %236 = vector.broadcast %235 : vector<10x1xf32> to vector<10x896xf32>
    %237 = arith.addf %234, %236 : vector<10x896xf32>
    %cst_256 = arith.constant 0.000000e+00 : f32
    %238 = vector.broadcast %cst_256 : f32 to vector<10x896xf32>
    %239 = arith.maximumf %237, %238 : vector<10x896xf32>
    %c0_257 = arith.constant 0 : index
    %c33_258 = arith.constant 33 : index
    %240 = vector.load %arg7[%c0_257, %c33_258] : memref<10x992xbf16, #tpu.memory_space<vmem>>, vector<10x896xbf16>
    %241 = arith.extf %240 : vector<10x896xbf16> to vector<10x896xf32>
    %242 = arith.addf %239, %241 : vector<10x896xf32>
    %243 = vector.broadcast %20 : vector<1x896xf32> to vector<10x896xf32>
    %244 = arith.mulf %242, %243 : vector<10x896xf32>
    %245 = arith.truncf %244 : vector<10x896xf32> to vector<10x896xbf16>
    %c1_259 = arith.constant 1 : index
    %c0_260 = arith.constant 0 : index
    %c0_261 = arith.constant 0 : index
    %246 = vector.load %arg6[%c1_259, %c0_260, %c0_261] : memref<2x10x896xbf16, #tpu.memory_space<vmem>>, vector<1x10x896xbf16>
    %247 = vector.shape_cast %246 : vector<1x10x896xbf16> to vector<10x896xbf16>
    %248 = vector.shape_cast %245 : vector<10x896xbf16> to vector<1x10x896xbf16>
    tpu.vector_store %arg6[%c1_259, %c0_260, %c0_261], %248 {strides = array<i32>} : memref<2x10x896xbf16, #tpu.memory_space<vmem>>, vector<1x10x896xbf16>,
    return
  }
  func.func @transform_0(%arg0: i32) -> (i32, i32, i32) {
    %c0_i32 = arith.constant 0 : i32
    %c0_i32_0 = arith.constant 0 : i32
    %c0_i32_1 = arith.constant 0 : i32
    return %arg0, %c0_i32, %c0_i32_0 : i32, i32, i32
  }
  func.func @transform_1(%arg0: i32) -> (i32, i32, i32) {
    %c0_i32 = arith.constant 0 : i32
    %c0_i32_0 = arith.constant 0 : i32
    %c0_i32_1 = arith.constant 0 : i32
    %c0_i32_2 = arith.constant 0 : i32
    return %c0_i32, %c0_i32_0, %c0_i32_1 : i32, i32, i32
  }
  func.func @transform_2(%arg0: i32) -> (i32, i32, i32) {
    %c0_i32 = arith.constant 0 : i32
    %c0_i32_0 = arith.constant 0 : i32
    %c0_i32_1 = arith.constant 0 : i32
    %c0_i32_2 = arith.constant 0 : i32
    return %c0_i32, %c0_i32_0, %c0_i32_1 : i32, i32, i32
  }
  func.func @transform_3(%arg0: i32) -> (i32, i32, i32) {
    %c0_i32 = arith.constant 0 : i32
    %c0_i32_0 = arith.constant 0 : i32
    %c0_i32_1 = arith.constant 0 : i32
    %c0_i32_2 = arith.constant 0 : i32
    return %c0_i32, %c0_i32_0, %c0_i32_1 : i32, i32, i32
  }
  func.func @transform_4(%arg0: i32) -> (i32, i32) {
    %c0_i32 = arith.constant 0 : i32
    %c0_i32_0 = arith.constant 0 : i32
    %c0_i32_1 = arith.constant 0 : i32
    return %c0_i32, %c0_i32_0 : i32, i32
  }
  func.func @transform_5(%arg0: i32) -> (i32, i32, i32) {
    %c0_i32 = arith.constant 0 : i32
    %c0_i32_0 = arith.constant 0 : i32
    %c0_i32_1 = arith.constant 0 : i32
    return %arg0, %c0_i32, %c0_i32_0 : i32, i32, i32
  }
}

</mosaic_0001>

<bundles_post_ra>
// kernel: net_forward.3
= control target key start
LH: loop header
LB: loop body
LE: loop exit
PB: predicated region body
PF: predicated region fallthrough
CT: control target
= control target key end

     0   :  { %12 = vsyncpa [#allocation3], 0  ;;  %s10293_s0 = inlined_call_operand.vmem [shape: bf16[2,8960], index: 0, kind: input, shape index: {}]   ;;  %s10294_s1 = inlined_call_operand.vmem [shape: bf16[8960,32], index: 1, kind: input, shape index: {}]   ;;  %s10295_s2 = inlined_call_operand.vmem [shape: f32[1,32], index: 2, kind: input, shape index: {}]   ;;  %s10296_s3 = inlined_call_operand.vmem [shape: f32[32,8], index: 3, kind: input, shape index: {}]   ;;  %s10297_s4 = inlined_call_operand.vmem [shape: f32[1,8], index: 4, kind: input, shape index: {}]   ;;  %s10298_s5 = inlined_call_operand.hbm [shape: f32[2,32], index: 5, kind: output, shape index: {0}]   ;;  %s10299_s6 = inlined_call_operand.hbm [shape: f32[2,8], index: 6, kind: output, shape index: {1}]  }
   0x1   :  { %v7901_v0 = vld [vmem:[%s10294_s1 + $0x38] sm:$0xff]  ;;  %v7900_v4 = vld [vmem:[%s10294_s1 + $0x30] sm:$0xff]  ;;  %v7899_v8 = vld [vmem:[%s10294_s1 + $0x28] sm:$0xff] }
   0x2   :  { %v7909_v1 = vld [vmem:[%s10294_s1 + $0x78] sm:$0xff]  ;;  %4675 = vmatpush.bf16.msra.mxu0 %v7901_v0  ;;  %v7908_v5 = vld [vmem:[%s10294_s1 + $0x70] sm:$0xff]  ;;  %v7907_v9 = vld [vmem:[%s10294_s1 + $0x68] sm:$0xff] }
   0x3   :  { %v7917_v2 = vld [vmem:[%s10294_s1 + $0xb8] sm:$0xff]  ;;  %4688 = vmatpush.bf16.msra.mxu1 %v7909_v1  ;;  %v7916_v6 = vld [vmem:[%s10294_s1 + $0xb0] sm:$0xff]  ;;  %v7915_v10 = vld [vmem:[%s10294_s1 + $0xa8] sm:$0xff] }
   0x4   :  { %v7925_v3 = vld [vmem:[%s10294_s1 + $0xf8] sm:$0xff]  ;;  %4701 = vmatpush.bf16.msra.mxu2 %v7917_v2  ;;  %v7924_v7 = vld [vmem:[%s10294_s1 + $0xf0] sm:$0xff]  ;;  %v7923_v11 = vld [vmem:[%s10294_s1 + $0xe8] sm:$0xff] }
   0x5   :  { %4714 = vmatpush.bf16.msra.mxu3 %v7925_v3  ;;  %v7898_v12 = vld [vmem:[%s10294_s1 + $0x20] sm:$0xff]  ;;  %v7897_v16 = vld [vmem:[%s10294_s1 + $0x18] sm:$0xff]  ;;  %v7896_v21 = vld [vmem:[%s10294_s1 + $0x10] sm:$0xff] }
   0x6   :  { %4676 = vmatpush.bf16.msra.mxu0 %v7900_v4  ;;  %v7906_v13 = vld [vmem:[%s10294_s1 + $0x60] sm:$0xff]  ;;  %v7905_v17 = vld [vmem:[%s10294_s1 + $0x58] sm:$0xff]  ;;  %v7904_v22 = vld [vmem:[%s10294_s1 + $0x50] sm:$0xff] }
   0x7   :  { %4689 = vmatpush.bf16.msra.mxu1 %v7908_v5  ;;  %v7914_v14 = vld [vmem:[%s10294_s1 + $0xa0] sm:$0xff]  ;;  %v7913_v18 = vld [vmem:[%s10294_s1 + $0x98] sm:$0xff]  ;;  %v7912_v23 = vld [vmem:[%s10294_s1 + $0x90] sm:$0xff] }
   0x8   :  { %4702 = vmatpush.bf16.msra.mxu2 %v7916_v6  ;;  %v7922_v15 = vld [vmem:[%s10294_s1 + $0xe0] sm:$0xff]  ;;  %v7921_v19 = vld [vmem:[%s10294_s1 + $0xd8] sm:$0xff]  ;;  %v7920_v24 = vld [vmem:[%s10294_s1 + $0xd0] sm:$0xff] }
   0x9   :  { %4715 = vmatpush.bf16.msra.mxu3 %v7924_v7  ;;  %v24_v20 = vld [vmem:[%s10293_s0] sm:$0xff] }
   0xa   :  { %4677 = vmatpush.bf16.msra.mxu0 %v7899_v8  ;;  %1158 = vst [vmem:[#allocation1] ss:$9 sm:$0xff] %v24_v20 }
   0xb   :  { %4690 = vmatpush.bf16.msra.mxu1 %v7907_v9 }
   0xc   :  { %4703 = vmatpush.bf16.msra.mxu2 %v7915_v10 }
   0xd   :  { %4716 = vmatpush.bf16.msra.mxu3 %v7923_v11 }
   0xe   :  { %4678 = vmatpush.bf16.msra.mxu0 %v7898_v12 }
   0xf   :  { %4691 = vmatpush.bf16.msra.mxu1 %v7906_v13 }
  0x10   :  { %4704 = vmatpush.bf16.msra.mxu2 %v7914_v14 }
  0x11   :  { %4717 = vmatpush.bf16.msra.mxu3 %v7922_v15 }
  0x12   :  { %4679 = vmatpush.bf16.msra.mxu0 %v7897_v16 }
  0x13   :  { %4692 = vmatpush.bf16.msra.mxu1 %v7905_v17 }
  0x14   :  { %4705 = vmatpush.bf16.msra.mxu2 %v7913_v18 }
  0x15   :  { %4718 = vmatpush.bf16.msra.mxu3 %v7921_v19 }
  0x16   :  { %13 = vsyncpa [#allocation5], 0  ;;  %4680 = vmatpush.bf16.msra.mxu0 %v7896_v21  ;;  %v7895_v25 = vld [vmem:[%s10294_s1 + $0x8] sm:$0xff]  ;;  %v7894_v29 = vld [vmem:[%s10294_s1] sm:$0xff]  ;;  %vm5595_vm0 = vcmask 261120   ;;  %vm5585_vm1 = vcmask 254976  }
  0x17   :  { %4693 = vmatpush.bf16.msra.mxu1 %v7904_v22  ;;  %v7903_v26 = vld [vmem:[%s10294_s1 + $0x48] sm:$0xff]  ;;  %v7902_v30 = vld [vmem:[%s10294_s1 + $0x40] sm:$0xff]  ;;  %v7933_v32 = vld [vmem:[%s10294_s1 + $0x138] sm:$0xff]  ;;  %s5628_s30 = sshll.u32 %s10298_s5, 4  ;;  %s8511_s9 = smov [#allocation4]   ;;  %vm5619_vm2 = vcmask 58368   ;;  %s5629_s30 = int_to_ptr.hbm [resolvable:$true] %s5628_s30 }
  0x18   :  { %4706 = vmatpush.bf16.msra.mxu2 %v7912_v23  ;;  %v7911_v27 = vld [vmem:[%s10294_s1 + $0x88] sm:$0xff]  ;;  %v7910_v31 = vld [vmem:[%s10294_s1 + $0x80] sm:$0xff]  ;;  %v7941_v33 = vld [vmem:[%s10294_s1 + $0x178] sm:$0xff]  ;;  %s5637_s10 = sshll.u32 %s8511_s9, 4  ;;  %s5639_s13 = sshll.u32 %s10299_s6, 4  ;;  %s5638_s10 = int_to_ptr.vmem [resolvable:$true] %s5637_s10  ;;  %s5640_s13 = int_to_ptr.hbm [resolvable:$true] %s5639_s13 }
  0x19   :  { %4719 = vmatpush.bf16.msra.mxu3 %v7920_v24  ;;  %v7919_v28 = vld [vmem:[%s10294_s1 + $0xc8] sm:$0xff]  ;;  %v7949_v34 = vld [vmem:[%s10294_s1 + $0x1b8] sm:$0xff]  ;;  %v7918_v35 = vld [vmem:[%s10294_s1 + $0xc0] sm:$0xff] }
  0x1a   :  { %4681 = vmatpush.bf16.msra.mxu0 %v7895_v25  ;;  %v7957_v36 = vld [vmem:[%s10294_s1 + $0x1f8] sm:$0xff]  ;;  %v1159_v37 = vld [vmem:[#allocation1] sm:$0xff]  ;;  %v7932_v38 = vld [vmem:[%s10294_s1 + $0x130] sm:$0xff] }
  0x1b   :  { %4694 = vmatpush.bf16.msra.mxu1 %v7903_v26  ;;  %v1161_v39 = vld [vmem:[#allocation1 + $0x12] sm:$0xff]  ;;  %v1160_v42 = vld [vmem:[#allocation1 + $0x9] sm:$0xff]  ;;  %v1162_v44 = vld [vmem:[#allocation1 + $0x1b] sm:$0xff] }
  0x1c   :  { %4707 = vmatpush.bf16.msra.mxu2 %v7911_v27  ;;  %v7940_v40 = vld [vmem:[%s10294_s1 + $0x170] sm:$0xff]  ;;  %v7931_v45 = vld [vmem:[%s10294_s1 + $0x128] sm:$0xff]  ;;  %v8682_v51 = vld [vmem:[#allocation1 + $0x3f] sm:$0xff] }
  0x1d   :  { %4720 = vmatpush.bf16.msra.mxu3 %v7919_v28  ;;  %v7948_v41 = vld [vmem:[%s10294_s1 + $0x1b0] sm:$0xff]  ;;  %v7939_v46 = vld [vmem:[%s10294_s1 + $0x168] sm:$0xff]  ;;  %v7930_v54 = vld [vmem:[%s10294_s1 + $0x120] sm:$0xff] }
  0x1e   :  { %4682 = vmatpush.bf16.msra.mxu0 %v7894_v29  ;;  %v7956_v43 = vld [vmem:[%s10294_s1 + $0x1f0] sm:$0xff]  ;;  %v7947_v47 = vld [vmem:[%s10294_s1 + $0x1a8] sm:$0xff]  ;;  %v7938_v55 = vld [vmem:[%s10294_s1 + $0x160] sm:$0xff] }
  0x1f   :  { %4695 = vmatpush.bf16.msra.mxu1 %v7902_v30  ;;  %v7955_v48 = vld [vmem:[%s10294_s1 + $0x1e8] sm:$0xff]  ;;  %v1165_v49 = vld [vmem:[#allocation1 + $0x36] sm:$0xff]  ;;  %v7946_v56 = vld [vmem:[%s10294_s1 + $0x1a0] sm:$0xff] }
  0x20   :  { %4708 = vmatpush.bf16.msra.mxu2 %v7910_v31  ;;  %v1163_v50 = vld [vmem:[#allocation1 + $0x24] sm:$0xff]  ;;  %v1164_v53 = vld [vmem:[#allocation1 + $0x2d] sm:$0xff]  ;;  %v7929_v58 = vld [vmem:[%s10294_s1 + $0x118] sm:$0xff] }
  0x21   :  { %4721 = vmatpush.bf16.msra.mxu3 %v7918_v35  ;;  %4683 = vmatmul.bf16.vlgmr.msra.gmra.mxu0 %v1159_v37  ;;  %v25_v52 = vld [vmem:[%s10293_s0 + $0x8] sm:$0xff]  ;;  %v7954_v57 = vld [vmem:[%s10294_s1 + $0x1e0] sm:$0xff]  ;;  %v7937_v59 = vld [vmem:[%s10294_s1 + $0x158] sm:$0xff] }
  0x22   :  { %4727 = vmatpush.bf16.msrb.mxu0 %v7933_v32  ;;  %4696 = vmatmul.bf16.vlgmr.msra.gmra.mxu1 %v1160_v42  ;;  %1168 = vst [vmem:[#allocation1] ss:$9 sm:$0xff] %v25_v52  ;;  %v7945_v60 = vld [vmem:[%s10294_s1 + $0x198] sm:$0xff]  ;;  %v7928_v62 = vld [vmem:[%s10294_s1 + $0x110] sm:$0xff]  ;;  %v7927_v2 = vld [vmem:[%s10294_s1 + $0x108] sm:$0xff] }
  0x23   :  { %4740 = vmatpush.bf16.msrb.mxu1 %v7941_v33  ;;  %4709 = vmatmul.bf16.vlgmr.msra.gmra.mxu2 %v1161_v39  ;;  %v7953_v61 = vld [vmem:[%s10294_s1 + $0x1d8] sm:$0xff]  ;;  %v7936_v63 = vld [vmem:[%s10294_s1 + $0x150] sm:$0xff]  ;;  %v7935_v3 = vld [vmem:[%s10294_s1 + $0x148] sm:$0xff] }
  0x24   :  { %4753 = vmatpush.bf16.msrb.mxu2 %v7949_v34  ;;  %4722 = vmatmul.bf16.vlgmr.msra.gmra.mxu3 %v1162_v44  ;;  %v7944_v0 = vld [vmem:[%s10294_s1 + $0x190] sm:$0xff]  ;;  %v7943_v4 = vld [vmem:[%s10294_s1 + $0x188] sm:$0xff]  ;;  %v7926_v6 = vld [vmem:[%s10294_s1 + $0x100] sm:$0xff] }
  0x25   :  { %4766 = vmatpush.bf16.msrb.mxu3 %v7957_v36  ;;  %v7952_v1 = vld [vmem:[%s10294_s1 + $0x1d0] sm:$0xff]  ;;  %v7951_v5 = vld [vmem:[%s10294_s1 + $0x1c8] sm:$0xff]  ;;  %v7934_v7 = vld [vmem:[%s10294_s1 + $0x140] sm:$0xff] }
  0x26   :  { %4728 = vmatpush.bf16.msrb.mxu0 %v7932_v38  ;;  %v7942_v8 = vld [vmem:[%s10294_s1 + $0x180] sm:$0xff]  ;;  %v7965_v9 = vld [vmem:[%s10294_s1 + $0x238] sm:$0xff]  ;;  %v7964_v14 = vld [vmem:[%s10294_s1 + $0x230] sm:$0xff] }
  0x27   :  { %4741 = vmatpush.bf16.msrb.mxu1 %v7940_v40  ;;  %v7973_v10 = vld [vmem:[%s10294_s1 + $0x278] sm:$0xff]  ;;  %v7950_v12 = vld [vmem:[%s10294_s1 + $0x1c0] sm:$0xff]  ;;  %v7972_v15 = vld [vmem:[%s10294_s1 + $0x270] sm:$0xff] }
  0x28   :  { %4754 = vmatpush.bf16.msrb.mxu2 %v7948_v41  ;;  %v7981_v11 = vld [vmem:[%s10294_s1 + $0x2b8] sm:$0xff]  ;;  %v7980_v16 = vld [vmem:[%s10294_s1 + $0x2b0] sm:$0xff]  ;;  %v7963_v18 = vld [vmem:[%s10294_s1 + $0x228] sm:$0xff] }
  0x29   :  { %4767 = vmatpush.bf16.msrb.mxu3 %v7956_v43  ;;  %v7989_v13 = vld [vmem:[%s10294_s1 + $0x2f8] sm:$0xff]  ;;  %v7988_v17 = vld [vmem:[%s10294_s1 + $0x2f0] sm:$0xff]  ;;  %v7971_v19 = vld [vmem:[%s10294_s1 + $0x268] sm:$0xff] }
  0x2a   :  { %4729 = vmatpush.bf16.msrb.mxu0 %v7931_v45  ;;  %v7979_v20 = vld [vmem:[%s10294_s1 + $0x2a8] sm:$0xff]  ;;  %v7962_v22 = vld [vmem:[%s10294_s1 + $0x220] sm:$0xff]  ;;  %v7961_v26 = vld [vmem:[%s10294_s1 + $0x218] sm:$0xff] }
  0x2b   :  { %4742 = vmatpush.bf16.msrb.mxu1 %v7939_v46  ;;  %v7987_v21 = vld [vmem:[%s10294_s1 + $0x2e8] sm:$0xff]  ;;  %v7970_v23 = vld [vmem:[%s10294_s1 + $0x260] sm:$0xff]  ;;  %v7969_v27 = vld [vmem:[%s10294_s1 + $0x258] sm:$0xff] }
  0x2c   :  { %4755 = vmatpush.bf16.msrb.mxu2 %v7947_v47  ;;  %v7978_v24 = vld [vmem:[%s10294_s1 + $0x2a0] sm:$0xff]  ;;  %v7977_v28 = vld [vmem:[%s10294_s1 + $0x298] sm:$0xff]  ;;  %v7960_v30 = vld [vmem:[%s10294_s1 + $0x210] sm:$0xff] }
  0x2d   :  { %4768 = vmatpush.bf16.msrb.mxu3 %v7955_v48  ;;  %v7986_v25 = vld [vmem:[%s10294_s1 + $0x2e0] sm:$0xff]  ;;  %v7985_v29 = vld [vmem:[%s10294_s1 + $0x2d8] sm:$0xff]  ;;  %v7968_v31 = vld [vmem:[%s10294_s1 + $0x250] sm:$0xff] }
  0x2e   :  { %4730 = vmatpush.bf16.msrb.mxu0 %v7930_v54  ;;  %v7976_v32 = vld [vmem:[%s10294_s1 + $0x290] sm:$0xff]  ;;  %v7959_v34 = vld [vmem:[%s10294_s1 + $0x208] sm:$0xff]  ;;  %v7958_v38 = vld [vmem:[%s10294_s1 + $0x200] sm:$0xff] }
  0x2f   :  { %4743 = vmatpush.bf16.msrb.mxu1 %v7938_v55  ;;  %v7984_v33 = vld [vmem:[%s10294_s1 + $0x2d0] sm:$0xff]  ;;  %v7967_v35 = vld [vmem:[%s10294_s1 + $0x248] sm:$0xff]  ;;  %v7966_v39 = vld [vmem:[%s10294_s1 + $0x240] sm:$0xff] }
  0x30   :  { %4756 = vmatpush.bf16.msrb.mxu2 %v7946_v56  ;;  %v7975_v36 = vld [vmem:[%s10294_s1 + $0x288] sm:$0xff]  ;;  %v7974_v40 = vld [vmem:[%s10294_s1 + $0x280] sm:$0xff]  ;;  %v7997_v41 = vld [vmem:[%s10294_s1 + $0x338] sm:$0xff] }
  0x31   :  { %4769 = vmatpush.bf16.msrb.mxu3 %v7954_v57  ;;  %v7983_v37 = vld [vmem:[%s10294_s1 + $0x2c8] sm:$0xff]  ;;  %v8005_v42 = vld [vmem:[%s10294_s1 + $0x378] sm:$0xff]  ;;  %v7982_v44 = vld [vmem:[%s10294_s1 + $0x2c0] sm:$0xff] }
  0x32   :  { %4731 = vmatpush.bf16.msrb.mxu0 %v7929_v58  ;;  %v8013_v43 = vld [vmem:[%s10294_s1 + $0x3b8] sm:$0xff]  ;;  %v1169_v45 = vld [vmem:[#allocation1] sm:$0xff]  ;;  %v7996_v48 = vld [vmem:[%s10294_s1 + $0x330] sm:$0xff] }
  0x33   :  { %4744 = vmatpush.bf16.msrb.mxu1 %v7937_v59  ;;  %v8021_v46 = vld [vmem:[%s10294_s1 + $0x3f8] sm:$0xff]  ;;  %v8012_v52 = vld [vmem:[%s10294_s1 + $0x3b0] sm:$0xff]  ;;  %v7995_v54 = vld [vmem:[%s10294_s1 + $0x328] sm:$0xff] }
  0x34   :  { %4757 = vmatpush.bf16.msrb.mxu2 %v7945_v60  ;;  %v1171_v47 = vld [vmem:[#allocation1 + $0x12] sm:$0xff]  ;;  %v8003_v55 = vld [vmem:[%s10294_s1 + $0x368] sm:$0xff]  ;;  %v7994_v58 = vld [vmem:[%s10294_s1 + $0x320] sm:$0xff] }
  0x35   :  { %4770 = vmatpush.bf16.msrb.mxu3 %v7953_v61  ;;  %v8011_v56 = vld [vmem:[%s10294_s1 + $0x3a8] sm:$0xff]  ;;  %v8002_v59 = vld [vmem:[%s10294_s1 + $0x360] sm:$0xff] }
  0x36   :  { %4732 = vmatpush.bf16.msrb.mxu0 %v7928_v62  ;;  %v8019_v57 = vld [vmem:[%s10294_s1 + $0x3e8] sm:$0xff]  ;;  %v8010_v60 = vld [vmem:[%s10294_s1 + $0x3a0] sm:$0xff]  ;;  %v7993_v62 = vld [vmem:[%s10294_s1 + $0x318] sm:$0xff] }
  0x37   :  { %4745 = vmatpush.bf16.msrb.mxu1 %v7936_v63  ;;  %v8018_v61 = vld [vmem:[%s10294_s1 + $0x3e0] sm:$0xff]  ;;  %v8001_v63 = vld [vmem:[%s10294_s1 + $0x358] sm:$0xff] }
  0x38   :  { %4758 = vmatpush.bf16.msrb.mxu2 %v7944_v0  ;;  %v8009_v0 = vld [vmem:[%s10294_s1 + $0x398] sm:$0xff] }
  0x39   :  { %4771 = vmatpush.bf16.msrb.mxu3 %v7952_v1  ;;  %v8017_v1 = vld [vmem:[%s10294_s1 + $0x3d8] sm:$0xff] }
  0x3a   :  { %4733 = vmatpush.bf16.msrb.mxu0 %v7927_v2  ;;  %v7992_v2 = vld [vmem:[%s10294_s1 + $0x310] sm:$0xff] }
  0x3b   :  { %4746 = vmatpush.bf16.msrb.mxu1 %v7935_v3  ;;  %v8000_v3 = vld [vmem:[%s10294_s1 + $0x350] sm:$0xff] }
  0x3c   :  { %4759 = vmatpush.bf16.msrb.mxu2 %v7943_v4  ;;  %v8008_v4 = vld [vmem:[%s10294_s1 + $0x390] sm:$0xff] }
  0x3d   :  { %4772 = vmatpush.bf16.msrb.mxu3 %v7951_v5  ;;  %v8016_v5 = vld [vmem:[%s10294_s1 + $0x3d0] sm:$0xff] }
  0x3e   :  { %4734 = vmatpush.bf16.msrb.mxu0 %v7926_v6  ;;  %v7991_v6 = vld [vmem:[%s10294_s1 + $0x308] sm:$0xff] }
  0x3f   :  { %4747 = vmatpush.bf16.msrb.mxu1 %v7934_v7  ;;  %v7999_v7 = vld [vmem:[%s10294_s1 + $0x348] sm:$0xff] }
  0x40   :  { %4760 = vmatpush.bf16.msrb.mxu2 %v7942_v8  ;;  %v8007_v8 = vld [vmem:[%s10294_s1 + $0x388] sm:$0xff] }
  0x41   :  { %4773 = vmatpush.bf16.msrb.mxu3 %v7950_v12  ;;  %4735 = vmatmul.bf16.vlgmr.msrb.gmra.mxu0 %v1163_v50  ;;  %v8004_v50 = vld [vmem:[%s10294_s1 + $0x370] sm:$0xff]  ;;  %v1176_v12 = vld [vmem:[#allocation1 + $0x3f] sm:$0xff] }
  0x42   :  { %4779 = vmatpush.bf16.msra.mxu0 %v7965_v9  ;;  %4748 = vmatmul.bf16.vlgmr.msrb.gmra.mxu1 %v1164_v53  ;;  %v8020_v53 = vld [vmem:[%s10294_s1 + $0x3f0] sm:$0xff]  ;;  %v1173_v9 = vld [vmem:[#allocation1 + $0x24] sm:$0xff] }
  0x43   :  { %4792 = vmatpush.bf16.msra.mxu1 %v7973_v10  ;;  %4761 = vmatmul.bf16.vlgmr.msrb.gmra.mxu2 %v1165_v49  ;;  %v1170_v49 = vld [vmem:[#allocation1 + $0x9] sm:$0xff]  ;;  %v1175_v10 = vld [vmem:[#allocation1 + $0x36] sm:$0xff] }
  0x44   :  { %4805 = vmatpush.bf16.msra.mxu2 %v7981_v11  ;;  %4774 = vmatmul.bf16.vlgmr.msrb.gmra.mxu3 %v8682_v51  ;;  %v1172_v51 = vld [vmem:[#allocation1 + $0x1b] sm:$0xff]  ;;  %v1174_v11 = vld [vmem:[#allocation1 + $0x2d] sm:$0xff] }
  0x45   :  { %4818 = vmatpush.bf16.msra.mxu3 %v7989_v13  ;;  %v26_v13 = vld [vmem:[%s10293_s0 + $0x10] sm:$0xff] }
  0x46   :  { %4780 = vmatpush.bf16.msra.mxu0 %v7964_v14  ;;  %v8015_v14 = vld [vmem:[%s10294_s1 + $0x3c8] sm:$0xff]  ;;  %1178 = vst [vmem:[#allocation1] ss:$9 sm:$0xff] %v26_v13  ;;  %v8065_v13 = vld [vmem:[%s10294_s1 + $0x558] sm:$0xff] }
  0x47   :  { %4793 = vmatpush.bf16.msra.mxu1 %v7972_v15  ;;  %v7990_v15 = vld [vmem:[%s10294_s1 + $0x300] sm:$0xff] }
  0x48   :  { %4806 = vmatpush.bf16.msra.mxu2 %v7980_v16  ;;  %v7998_v16 = vld [vmem:[%s10294_s1 + $0x340] sm:$0xff] }
  0x49   :  { %4819 = vmatpush.bf16.msra.mxu3 %v7988_v17  ;;  %v8029_v17 = vld [vmem:[%s10294_s1 + $0x438] sm:$0xff] }
  0x4a   :  { %4781 = vmatpush.bf16.msra.mxu0 %v7963_v18  ;;  %v8006_v18 = vld [vmem:[%s10294_s1 + $0x380] sm:$0xff] }
  0x4b   :  { %4794 = vmatpush.bf16.msra.mxu1 %v7971_v19  ;;  %v8037_v19 = vld [vmem:[%s10294_s1 + $0x478] sm:$0xff] }
  0x4c   :  { %4807 = vmatpush.bf16.msra.mxu2 %v7979_v20  ;;  %v8045_v20 = vld [vmem:[%s10294_s1 + $0x4b8] sm:$0xff] }
  0x4d   :  { %4820 = vmatpush.bf16.msra.mxu3 %v7987_v21  ;;  %v8014_v21 = vld [vmem:[%s10294_s1 + $0x3c0] sm:$0xff] }
  0x4e   :  { %4782 = vmatpush.bf16.msra.mxu0 %v7962_v22  ;;  %v8053_v22 = vld [vmem:[%s10294_s1 + $0x4f8] sm:$0xff] }
  0x4f   :  { %4795 = vmatpush.bf16.msra.mxu1 %v7970_v23  ;;  %v8028_v23 = vld [vmem:[%s10294_s1 + $0x430] sm:$0xff] }
  0x50   :  { %4808 = vmatpush.bf16.msra.mxu2 %v7978_v24  ;;  %v8036_v24 = vld [vmem:[%s10294_s1 + $0x470] sm:$0xff] }
  0x51   :  { %4821 = vmatpush.bf16.msra.mxu3 %v7986_v25  ;;  %v8044_v25 = vld [vmem:[%s10294_s1 + $0x4b0] sm:$0xff] }
  0x52   :  { %4783 = vmatpush.bf16.msra.mxu0 %v7961_v26  ;;  %v8052_v26 = vld [vmem:[%s10294_s1 + $0x4f0] sm:$0xff] }
  0x53   :  { %4796 = vmatpush.bf16.msra.mxu1 %v7969_v27  ;;  %v8027_v27 = vld [vmem:[%s10294_s1 + $0x428] sm:$0xff] }
  0x54   :  { %4809 = vmatpush.bf16.msra.mxu2 %v7977_v28  ;;  %v8035_v28 = vld [vmem:[%s10294_s1 + $0x468] sm:$0xff] }
  0x55   :  { %4822 = vmatpush.bf16.msra.mxu3 %v7985_v29  ;;  %v8043_v29 = vld [vmem:[%s10294_s1 + $0x4a8] sm:$0xff] }
  0x56   :  { %4784 = vmatpush.bf16.msra.mxu0 %v7960_v30  ;;  %v8051_v30 = vld [vmem:[%s10294_s1 + $0x4e8] sm:$0xff] }
  0x57   :  { %4797 = vmatpush.bf16.msra.mxu1 %v7968_v31  ;;  %v8026_v31 = vld [vmem:[%s10294_s1 + $0x420] sm:$0xff] }
  0x58   :  { %4810 = vmatpush.bf16.msra.mxu2 %v7976_v32  ;;  %v8034_v32 = vld [vmem:[%s10294_s1 + $0x460] sm:$0xff] }
  0x59   :  { %4823 = vmatpush.bf16.msra.mxu3 %v7984_v33  ;;  %v8042_v33 = vld [vmem:[%s10294_s1 + $0x4a0] sm:$0xff] }
  0x5a   :  { %4785 = vmatpush.bf16.msra.mxu0 %v7959_v34  ;;  %v8050_v34 = vld [vmem:[%s10294_s1 + $0x4e0] sm:$0xff] }
  0x5b   :  { %4798 = vmatpush.bf16.msra.mxu1 %v7967_v35  ;;  %v8025_v35 = vld [vmem:[%s10294_s1 + $0x418] sm:$0xff] }
  0x5c   :  { %4811 = vmatpush.bf16.msra.mxu2 %v7975_v36  ;;  %v8033_v36 = vld [vmem:[%s10294_s1 + $0x458] sm:$0xff] }
  0x5d   :  { %4824 = vmatpush.bf16.msra.mxu3 %v7983_v37  ;;  %v8041_v37 = vld [vmem:[%s10294_s1 + $0x498] sm:$0xff] }
  0x5e   :  { %4786 = vmatpush.bf16.msra.mxu0 %v7958_v38  ;;  %v8049_v38 = vld [vmem:[%s10294_s1 + $0x4d8] sm:$0xff] }
  0x5f   :  { %4799 = vmatpush.bf16.msra.mxu1 %v7966_v39  ;;  %v8024_v39 = vld [vmem:[%s10294_s1 + $0x410] sm:$0xff] }
  0x60   :  { %4812 = vmatpush.bf16.msra.mxu2 %v7974_v40  ;;  %v8032_v40 = vld [vmem:[%s10294_s1 + $0x450] sm:$0xff] }
  0x61   :  { %4825 = vmatpush.bf16.msra.mxu3 %v7982_v44  ;;  %4787 = vmatmul.bf16.vlgmr.msra.gmra.mxu0 %v1169_v45  ;;  %v8031_v44 = vld [vmem:[%s10294_s1 + $0x448] sm:$0xff] }
  0x62   :  { %4831 = vmatpush.bf16.msrb.mxu0 %v7997_v41  ;;  %4800 = vmatmul.bf16.vlgmr.msra.gmra.mxu1 %v1170_v49  ;;  %v8040_v41 = vld [vmem:[%s10294_s1 + $0x490] sm:$0xff]  ;;  %v8039_v45 = vld [vmem:[%s10294_s1 + $0x488] sm:$0xff]  ;;  %v8038_v49 = vld [vmem:[%s10294_s1 + $0x480] sm:$0xff] }
  0x63   :  { %4844 = vmatpush.bf16.msrb.mxu1 %v8005_v42  ;;  %4813 = vmatmul.bf16.vlgmr.msra.gmra.mxu2 %v1171_v47  ;;  %v8048_v42 = vld [vmem:[%s10294_s1 + $0x4d0] sm:$0xff]  ;;  %v8022_v47 = vld [vmem:[%s10294_s1 + $0x400] sm:$0xff] }
  0x64   :  { %4857 = vmatpush.bf16.msrb.mxu2 %v8013_v43  ;;  %4826 = vmatmul.bf16.vlgmr.msra.gmra.mxu3 %v1172_v51  ;;  %v8023_v43 = vld [vmem:[%s10294_s1 + $0x408] sm:$0xff]  ;;  %v8069_v51 = vld [vmem:[%s10294_s1 + $0x578] sm:$0xff] }
  0x65   :  { %4870 = vmatpush.bf16.msrb.mxu3 %v8021_v46  ;;  %v8047_v46 = vld [vmem:[%s10294_s1 + $0x4c8] sm:$0xff] }
  0x66   :  { %4832 = vmatpush.bf16.msrb.mxu0 %v7996_v48  ;;  %v8030_v48 = vld [vmem:[%s10294_s1 + $0x440] sm:$0xff] }
  0x67   :  { %4845 = vmatpush.bf16.msrb.mxu1 %v8004_v50  ;;  %v8061_v50 = vld [vmem:[%s10294_s1 + $0x538] sm:$0xff] }
  0x68   :  { %4858 = vmatpush.bf16.msrb.mxu2 %v8012_v52  ;;  %v8077_v52 = vld [vmem:[%s10294_s1 + $0x5b8] sm:$0xff] }
  0x69   :  { %4871 = vmatpush.bf16.msrb.mxu3 %v8020_v53  ;;  %v8046_v53 = vld [vmem:[%s10294_s1 + $0x4c0] sm:$0xff] }
  0x6a   :  { %4833 = vmatpush.bf16.msrb.mxu0 %v7995_v54  ;;  %v1179_v54 = vld [vmem:[#allocation1] sm:$0xff] }
  0x6b   :  { %4846 = vmatpush.bf16.msrb.mxu1 %v8003_v55  ;;  %v1181_v55 = vld [vmem:[#allocation1 + $0x12] sm:$0xff] }
  0x6c   :  { %4859 = vmatpush.bf16.msrb.mxu2 %v8011_v56  ;;  %v8085_v56 = vld [vmem:[%s10294_s1 + $0x5f8] sm:$0xff] }
  0x6d   :  { %4872 = vmatpush.bf16.msrb.mxu3 %v8019_v57  ;;  %v1180_v57 = vld [vmem:[#allocation1 + $0x9] sm:$0xff] }
  0x6e   :  { %4834 = vmatpush.bf16.msrb.mxu0 %v7994_v58  ;;  %v8060_v58 = vld [vmem:[%s10294_s1 + $0x530] sm:$0xff] }
  0x6f   :  { %4847 = vmatpush.bf16.msrb.mxu1 %v8002_v59  ;;  %v1182_v59 = vld [vmem:[#allocation1 + $0x1b] sm:$0xff] }
  0x70   :  { %4860 = vmatpush.bf16.msrb.mxu2 %v8010_v60  ;;  %v8068_v60 = vld [vmem:[%s10294_s1 + $0x570] sm:$0xff] }
  0x71   :  { %4873 = vmatpush.bf16.msrb.mxu3 %v8018_v61  ;;  %v8076_v61 = vld [vmem:[%s10294_s1 + $0x5b0] sm:$0xff] }
  0x72   :  { %4835 = vmatpush.bf16.msrb.mxu0 %v7993_v62  ;;  %v8084_v62 = vld [vmem:[%s10294_s1 + $0x5f0] sm:$0xff] }
  0x73   :  { %4848 = vmatpush.bf16.msrb.mxu1 %v8001_v63  ;;  %v8059_v63 = vld [vmem:[%s10294_s1 + $0x528] sm:$0xff] }
  0x74   :  { %4861 = vmatpush.bf16.msrb.mxu2 %v8009_v0  ;;  %v8067_v0 = vld [vmem:[%s10294_s1 + $0x568] sm:$0xff] }
  0x75   :  { %4874 = vmatpush.bf16.msrb.mxu3 %v8017_v1  ;;  %v8075_v1 = vld [vmem:[%s10294_s1 + $0x5a8] sm:$0xff] }
  0x76   :  { %4836 = vmatpush.bf16.msrb.mxu0 %v7992_v2  ;;  %v8456_v2 = vld [vmem:[%s10295_s2] ss:$0 sm:$0xff] }
  0x77   :  { %4849 = vmatpush.bf16.msrb.mxu1 %v8000_v3  ;;  %v8083_v3 = vld [vmem:[%s10294_s1 + $0x5e8] sm:$0xff] }
  0x78   :  { %4862 = vmatpush.bf16.msrb.mxu2 %v8008_v4  ;;  %v8058_v4 = vld [vmem:[%s10294_s1 + $0x520] sm:$0xff] }
  0x79   :  { %4875 = vmatpush.bf16.msrb.mxu3 %v8016_v5 }
  0x7a   :  { %4837 = vmatpush.bf16.msrb.mxu0 %v7991_v6  ;;  %v8066_v6 = vld [vmem:[%s10294_s1 + $0x560] sm:$0xff] }
  0x7b   :  { %4850 = vmatpush.bf16.msrb.mxu1 %v7999_v7  ;;  %v8074_v7 = vld [vmem:[%s10294_s1 + $0x5a0] sm:$0xff] }
  0x7c   :  { %4863 = vmatpush.bf16.msrb.mxu2 %v8007_v8 }
  0x7d   :  { %4876 = vmatpush.bf16.msrb.mxu3 %v8015_v14  ;;  %v8073_v14 = vld [vmem:[%s10294_s1 + $0x598] sm:$0xff] }
  0x7e   :  { %4838 = vmatpush.bf16.msrb.mxu0 %v7990_v15  ;;  %v8081_v15 = vld [vmem:[%s10294_s1 + $0x5d8] sm:$0xff] }
  0x7f   :  { %4851 = vmatpush.bf16.msrb.mxu1 %v7998_v16 }
  0x80   :  { %4864 = vmatpush.bf16.msrb.mxu2 %v8006_v18 }
  0x81   :  { %4877 = vmatpush.bf16.msrb.mxu3 %v8014_v21  ;;  %4839 = vmatmul.bf16.vlgmr.msrb.gmra.mxu0 %v1173_v9  ;;  %v8072_v21 = vld [vmem:[%s10294_s1 + $0x590] sm:$0xff] }
  0x82   :  { %4883 = vmatpush.bf16.msra.mxu0 %v8029_v17  ;;  %4852 = vmatmul.bf16.vlgmr.msrb.gmra.mxu1 %v1174_v11  ;;  %v8056_v17 = vld [vmem:[%s10294_s1 + $0x510] sm:$0xff] }
  0x83   :  { %4896 = vmatpush.bf16.msra.mxu1 %v8037_v19  ;;  %4865 = vmatmul.bf16.vlgmr.msrb.gmra.mxu2 %v1175_v10  ;;  %v8082_v10 = vld [vmem:[%s10294_s1 + $0x5e0] sm:$0xff] }
  0x84   :  { %4909 = vmatpush.bf16.msra.mxu2 %v8045_v20  ;;  %4878 = vmatmul.bf16.vlgmr.msrb.gmra.mxu3 %v1176_v12  ;;  %v8057_v12 = vld [vmem:[%s10294_s1 + $0x518] sm:$0xff]  ;;  %v8064_v20 = vld [vmem:[%s10294_s1 + $0x550] sm:$0xff] }
  0x85   :  { %4922 = vmatpush.bf16.msra.mxu3 %v8053_v22 }
  0x86   :  { %4884 = vmatpush.bf16.msra.mxu0 %v8028_v23 }
  0x87   :  { %4897 = vmatpush.bf16.msra.mxu1 %v8036_v24  ;;  %v8080_v24 = vld [vmem:[%s10294_s1 + $0x5d0] sm:$0xff] }
  0x88   :  { %4910 = vmatpush.bf16.msra.mxu2 %v8044_v25 }
  0x89   :  { %4923 = vmatpush.bf16.msra.mxu3 %v8052_v26  ;;  %v8055_v26 = vld [vmem:[%s10294_s1 + $0x508] sm:$0xff] }
  0x8a   :  { %4885 = vmatpush.bf16.msra.mxu0 %v8027_v27  ;;  %v8063_v27 = vld [vmem:[%s10294_s1 + $0x548] sm:$0xff] }
  0x8b   :  { %4898 = vmatpush.bf16.msra.mxu1 %v8035_v28  ;;  %v8071_v28 = vld [vmem:[%s10294_s1 + $0x588] sm:$0xff] }
  0x8c   :  { %4911 = vmatpush.bf16.msra.mxu2 %v8043_v29  ;;  %v1183_v29 = vld [vmem:[#allocation1 + $0x24] sm:$0xff] }
  0x8d   :  { %4924 = vmatpush.bf16.msra.mxu3 %v8051_v30  ;;  %v1185_v30 = vld [vmem:[#allocation1 + $0x36] sm:$0xff] }
  0x8e   :  { %4886 = vmatpush.bf16.msra.mxu0 %v8026_v31  ;;  %v1184_v31 = vld [vmem:[#allocation1 + $0x2d] sm:$0xff] }
  0x8f   :  { %4899 = vmatpush.bf16.msra.mxu1 %v8034_v32  ;;  %v1186_v32 = vld [vmem:[#allocation1 + $0x3f] sm:$0xff] }
  0x90   :  { %4912 = vmatpush.bf16.msra.mxu2 %v8042_v33  ;;  %v27_v33 = vld [vmem:[%s10293_s0 + $0x18] sm:$0xff] }
  0x91   :  { %4925 = vmatpush.bf16.msra.mxu3 %v8050_v34  ;;  %v8079_v34 = vld [vmem:[%s10294_s1 + $0x5c8] sm:$0xff]  ;;  %1188 = vst [vmem:[#allocation1] ss:$9 sm:$0xff] %v27_v33 }
  0x92   :  { %4887 = vmatpush.bf16.msra.mxu0 %v8025_v35  ;;  %v8123_v33 = vld [vmem:[%s10294_s1 + $0x728] sm:$0xff] }
  0x93   :  { %4900 = vmatpush.bf16.msra.mxu1 %v8033_v36  ;;  %v8054_v36 = vld [vmem:[%s10294_s1 + $0x500] sm:$0xff] }
  0x94   :  { %4913 = vmatpush.bf16.msra.mxu2 %v8041_v37  ;;  %v8062_v37 = vld [vmem:[%s10294_s1 + $0x540] sm:$0xff] }
  0x95   :  { %4926 = vmatpush.bf16.msra.mxu3 %v8049_v38  ;;  %v8070_v38 = vld [vmem:[%s10294_s1 + $0x580] sm:$0xff] }
  0x96   :  { %4888 = vmatpush.bf16.msra.mxu0 %v8024_v39  ;;  %v8093_v39 = vld [vmem:[%s10294_s1 + $0x638] sm:$0xff] }
  0x97   :  { %4901 = vmatpush.bf16.msra.mxu1 %v8032_v40  ;;  %v8101_v40 = vld [vmem:[%s10294_s1 + $0x678] sm:$0xff] }
  0x98   :  { %4914 = vmatpush.bf16.msra.mxu2 %v8040_v41 }
  0x99   :  { %4927 = vmatpush.bf16.msra.mxu3 %v8048_v42  ;;  %v8109_v42 = vld [vmem:[%s10294_s1 + $0x6b8] sm:$0xff] }
  0x9a   :  { %4889 = vmatpush.bf16.msra.mxu0 %v8023_v43  ;;  %v8078_v43 = vld [vmem:[%s10294_s1 + $0x5c0] sm:$0xff] }
  0x9b   :  { %4902 = vmatpush.bf16.msra.mxu1 %v8031_v44  ;;  %v8117_v44 = vld [vmem:[%s10294_s1 + $0x6f8] sm:$0xff] }
  0x9c   :  { %4915 = vmatpush.bf16.msra.mxu2 %v8039_v45  ;;  %v8092_v45 = vld [vmem:[%s10294_s1 + $0x630] sm:$0xff] }
  0x9d   :  { %4928 = vmatpush.bf16.msra.mxu3 %v8047_v46  ;;  %v8100_v46 = vld [vmem:[%s10294_s1 + $0x670] sm:$0xff] }
  0x9e   :  { %4890 = vmatpush.bf16.msra.mxu0 %v8022_v47  ;;  %v4684_v5 = vpop.f32.mrf.mxu0  ;;  %v8108_v47 = vld [vmem:[%s10294_s1 + $0x6b0] sm:$0xff] }
  0x9f   :  { %4903 = vmatpush.bf16.msra.mxu1 %v8030_v48  ;;  %v4685_v8 = vadd.f32 %v8456_v2, %v4684_v5  ;;  %v4697_v9 = vpop.f32.mrf.mxu1  ;;  %v8116_v48 = vld [vmem:[%s10294_s1 + $0x6f0] sm:$0xff] }
  0xa0   :  { %4916 = vmatpush.bf16.msra.mxu2 %v8038_v49  ;;  %v8091_v49 = vld [vmem:[%s10294_s1 + $0x628] sm:$0xff]  ;;  %v8104_v5 = vld [vmem:[%s10294_s1 + $0x690] sm:$0xff] }
  0xa1   :  { %4929 = vmatpush.bf16.msra.mxu3 %v8046_v53  ;;  %4891 = vmatmul.bf16.vlgmr.msra.gmra.mxu0 %v1179_v54  ;;  %v4698_v11 = vadd.f32 %v4697_v9, %v4685_v8  ;;  %v8090_v53 = vld [vmem:[%s10294_s1 + $0x620] sm:$0xff] }
  0xa2   :  { %4935 = vmatpush.bf16.msrb.mxu0 %v8061_v50  ;;  %4904 = vmatmul.bf16.vlgmr.msra.gmra.mxu1 %v1180_v57  ;;  %v8099_v50 = vld [vmem:[%s10294_s1 + $0x668] sm:$0xff]  ;;  %v8098_v54 = vld [vmem:[%s10294_s1 + $0x660] sm:$0xff] }
  0xa3   :  { %4948 = vmatpush.bf16.msrb.mxu1 %v8069_v51  ;;  %4917 = vmatmul.bf16.vlgmr.msra.gmra.mxu2 %v1181_v55  ;;  %v8107_v51 = vld [vmem:[%s10294_s1 + $0x6a8] sm:$0xff]  ;;  %v8106_v55 = vld [vmem:[%s10294_s1 + $0x6a0] sm:$0xff] }
  0xa4   :  { %4961 = vmatpush.bf16.msrb.mxu2 %v8077_v52  ;;  %4930 = vmatmul.bf16.vlgmr.msra.gmra.mxu3 %v1182_v59  ;;  %v8115_v52 = vld [vmem:[%s10294_s1 + $0x6e8] sm:$0xff]  ;;  %v8114_v59 = vld [vmem:[%s10294_s1 + $0x6e0] sm:$0xff] }
  0xa5   :  { %4974 = vmatpush.bf16.msrb.mxu3 %v8085_v56 }
  0xa6   :  { %4936 = vmatpush.bf16.msrb.mxu0 %v8060_v58  ;;  %v4710_v16 = vpop.f32.mrf.mxu2  ;;  %v4686_v19 = vpop.f32.mrf.mxu0 }
  0xa7   :  { %4949 = vmatpush.bf16.msrb.mxu1 %v8068_v60  ;;  %v4711_v18 = vadd.f32 %v4710_v16, %v4698_v11  ;;  %v4723_v22 = vpop.f32.mrf.mxu3  ;;  %v4699_v23 = vpop.f32.mrf.mxu1  ;;  %v8089_v60 = vld [vmem:[%s10294_s1 + $0x618] sm:$0xff]  ;;  %v8087_v11 = vld [vmem:[%s10294_s1 + $0x608] sm:$0xff]  ;;  %v8086_v16 = vld [vmem:[%s10294_s1 + $0x600] sm:$0xff] }
  0xa8   :  { %4962 = vmatpush.bf16.msrb.mxu2 %v8076_v61  ;;  %v8110_v23 = vld [vmem:[%s10294_s1 + $0x6c0] sm:$0xff] }
  0xa9   :  { %4975 = vmatpush.bf16.msrb.mxu3 %v8084_v62  ;;  %v4724_v25 = vadd.f32 %v4723_v22, %v4711_v18  ;;  %v8097_v62 = vld [vmem:[%s10294_s1 + $0x658] sm:$0xff]  ;;  %v8102_v18 = vld [vmem:[%s10294_s1 + $0x680] sm:$0xff] }
  0xaa   :  { %4937 = vmatpush.bf16.msrb.mxu0 %v8059_v63  ;;  %v8105_v63 = vld [vmem:[%s10294_s1 + $0x698] sm:$0xff] }
  0xab   :  { %4950 = vmatpush.bf16.msrb.mxu1 %v8067_v0  ;;  %v8141_v22 = vld [vmem:[%s10294_s1 + $0x7b8] sm:$0xff] }
  0xac   :  { %4963 = vmatpush.bf16.msrb.mxu2 %v8075_v1  ;;  %v8113_v1 = vld [vmem:[%s10294_s1 + $0x6d8] sm:$0xff] }
  0xad   :  { %4976 = vmatpush.bf16.msrb.mxu3 %v8083_v3  ;;  %v8088_v3 = vld [vmem:[%s10294_s1 + $0x610] sm:$0xff] }
  0xae   :  { %4938 = vmatpush.bf16.msrb.mxu0 %v8058_v4  ;;  %v4712_v35 = vpop.f32.mrf.mxu2  ;;  %v8096_v4 = vld [vmem:[%s10294_s1 + $0x650] sm:$0xff] }
  0xaf   :  { %4951 = vmatpush.bf16.msrb.mxu1 %v8066_v6  ;;  %v4725_v41 = vpop.f32.mrf.mxu3  ;;  %v8139_v35 = vld [vmem:[%s10294_s1 + $0x7a8] sm:$0xff] }
  0xb0   :  { %4964 = vmatpush.bf16.msrb.mxu2 %v8074_v7  ;;  %v8138_v41 = vld [vmem:[%s10294_s1 + $0x7a0] sm:$0xff] }
  0xb1   :  { %4977 = vmatpush.bf16.msrb.mxu3 %v8082_v10  ;;  %v8112_v10 = vld [vmem:[%s10294_s1 + $0x6d0] sm:$0xff] }
  0xb2   :  { %4939 = vmatpush.bf16.msrb.mxu0 %v8057_v12  ;;  %v8095_v12 = vld [vmem:[%s10294_s1 + $0x648] sm:$0xff] }
  0xb3   :  { %4952 = vmatpush.bf16.msrb.mxu1 %v8065_v13  ;;  %v8103_v13 = vld [vmem:[%s10294_s1 + $0x688] sm:$0xff] }
  0xb4   :  { %4965 = vmatpush.bf16.msrb.mxu2 %v8073_v14 }
  0xb5   :  { %4978 = vmatpush.bf16.msrb.mxu3 %v8081_v15  ;;  %v8111_v15 = vld [vmem:[%s10294_s1 + $0x6c8] sm:$0xff] }
  0xb6   :  { %4940 = vmatpush.bf16.msrb.mxu0 %v8056_v17  ;;  %v8094_v17 = vld [vmem:[%s10294_s1 + $0x640] sm:$0xff] }
  0xb7   :  { %4953 = vmatpush.bf16.msrb.mxu1 %v8064_v20  ;;  %v8125_v20 = vld [vmem:[%s10294_s1 + $0x738] sm:$0xff] }
  0xb8   :  { %4966 = vmatpush.bf16.msrb.mxu2 %v8072_v21  ;;  %v8133_v21 = vld [vmem:[%s10294_s1 + $0x778] sm:$0xff] }
  0xb9   :  { %4979 = vmatpush.bf16.msrb.mxu3 %v8080_v24  ;;  %v1189_v24 = vld [vmem:[#allocation1] sm:$0xff] }
  0xba   :  { %4941 = vmatpush.bf16.msrb.mxu0 %v8055_v26  ;;  %v8149_v26 = vld [vmem:[%s10294_s1 + $0x7f8] sm:$0xff] }
  0xbb   :  { %4954 = vmatpush.bf16.msrb.mxu1 %v8063_v27  ;;  %v1190_v27 = vld [vmem:[#allocation1 + $0x9] sm:$0xff] }
  0xbc   :  { %4967 = vmatpush.bf16.msrb.mxu2 %v8071_v28  ;;  %v8124_v28 = vld [vmem:[%s10294_s1 + $0x730] sm:$0xff] }
  0xbd   :  { %4980 = vmatpush.bf16.msrb.mxu3 %v8079_v34  ;;  %v8131_v34 = vld [vmem:[%s10294_s1 + $0x768] sm:$0xff] }
  0xbe   :  { %4942 = vmatpush.bf16.msrb.mxu0 %v8054_v36  ;;  %v4736_v56 = vpop.f32.mrf.mxu0  ;;  %v8147_v36 = vld [vmem:[%s10294_s1 + $0x7e8] sm:$0xff] }
  0xbf   :  { %4955 = vmatpush.bf16.msrb.mxu1 %v8062_v37  ;;  %v4749_v57 = vpop.f32.mrf.mxu1  ;;  %v4737_v58 = vadd.f32 %v4736_v56, %v4724_v25  ;;  %v1191_v25 = vld [vmem:[#allocation1 + $0x12] sm:$0xff] }
  0xc0   :  { %4968 = vmatpush.bf16.msrb.mxu2 %v8070_v38  ;;  %v8136_v56 = vld [vmem:[%s10294_s1 + $0x790] sm:$0xff] }
  0xc1   :  { %4981 = vmatpush.bf16.msrb.mxu3 %v8078_v43  ;;  %4943 = vmatmul.bf16.vlgmr.msrb.gmra.mxu0 %v1183_v29  ;;  %v4750_v61 = vadd.f32 %v4749_v57, %v4737_v58  ;;  %v1192_v29 = vld [vmem:[#allocation1 + $0x1b] sm:$0xff]  ;;  %v8144_v58 = vld [vmem:[%s10294_s1 + $0x7d0] sm:$0xff] }
  0xc2   :  { %4987 = vmatpush.bf16.msra.mxu0 %v8093_v39  ;;  %4956 = vmatmul.bf16.vlgmr.msrb.gmra.mxu1 %v1184_v31  ;;  %v8140_v31 = vld [vmem:[%s10294_s1 + $0x7b0] sm:$0xff]  ;;  %v8122_v39 = vld [vmem:[%s10294_s1 + $0x720] sm:$0xff] }
  0xc3   :  { %5000 = vmatpush.bf16.msra.mxu1 %v8101_v40  ;;  %4969 = vmatmul.bf16.vlgmr.msrb.gmra.mxu2 %v1185_v30  ;;  %v8132_v30 = vld [vmem:[%s10294_s1 + $0x770] sm:$0xff]  ;;  %v8130_v40 = vld [vmem:[%s10294_s1 + $0x760] sm:$0xff] }
  0xc4   :  { %5013 = vmatpush.bf16.msra.mxu2 %v8109_v42  ;;  %4982 = vmatmul.bf16.vlgmr.msrb.gmra.mxu3 %v1186_v32  ;;  %v8148_v32 = vld [vmem:[%s10294_s1 + $0x7f0] sm:$0xff] }
  0xc5   :  { %5026 = vmatpush.bf16.msra.mxu3 %v8117_v44  ;;  %v8146_v44 = vld [vmem:[%s10294_s1 + $0x7e0] sm:$0xff] }
  0xc6   :  { %4988 = vmatpush.bf16.msra.mxu0 %v8092_v45  ;;  %v4762_v0 = vpop.f32.mrf.mxu2  ;;  %v4738_v7 = vpop.f32.mrf.mxu0  ;;  %v8121_v45 = vld [vmem:[%s10294_s1 + $0x718] sm:$0xff] }
  0xc7   :  { %5001 = vmatpush.bf16.msra.mxu1 %v8100_v46  ;;  %v4763_v2 = vadd.f32 %v4762_v0, %v4750_v61  ;;  %v4775_v6 = vpop.f32.mrf.mxu3  ;;  %v4751_v9 = vpop.f32.mrf.mxu1  ;;  %v8129_v46 = vld [vmem:[%s10294_s1 + $0x758] sm:$0xff]  ;;  %v8135_v61 = vld [vmem:[%s10294_s1 + $0x788] sm:$0xff]  ;;  %v8126_v7 = vld [vmem:[%s10294_s1 + $0x740] sm:$0xff] }
  0xc8   :  { %5014 = vmatpush.bf16.msra.mxu2 %v8108_v47  ;;  %v8137_v47 = vld [vmem:[%s10294_s1 + $0x798] sm:$0xff]  ;;  %v1194_v0 = vld [vmem:[#allocation1 + $0x2d] sm:$0xff] }
  0xc9   :  { %5027 = vmatpush.bf16.msra.mxu3 %v8116_v48  ;;  %v4776_v8 = vadd.f32 %v4775_v6, %v4763_v2  ;;  %v8157_v9 = vld [vmem:[%s10294_s1 + $0x838] sm:$0xff] }
  0xca   :  { %4989 = vmatpush.bf16.msra.mxu0 %v8091_v49 }
  0xcb   :  { %5002 = vmatpush.bf16.msra.mxu1 %v8099_v50  ;;  %v8145_v50 = vld [vmem:[%s10294_s1 + $0x7d8] sm:$0xff] }
  0xcc   :  { %5015 = vmatpush.bf16.msra.mxu2 %v8107_v51 }
  0xcd   :  { %5028 = vmatpush.bf16.msra.mxu3 %v8115_v52 }
  0xce   :  { %4990 = vmatpush.bf16.msra.mxu0 %v8090_v53  ;;  %v4764_v14 = vpop.f32.mrf.mxu2  ;;  %v8120_v53 = vld [vmem:[%s10294_s1 + $0x710] sm:$0xff] }
  0xcf   :  { %5003 = vmatpush.bf16.msra.mxu1 %v8098_v54  ;;  %v4777_v19 = vpop.f32.mrf.mxu3  ;;  %v8156_v14 = vld [vmem:[%s10294_s1 + $0x830] sm:$0xff] }
  0xd0   :  { %5016 = vmatpush.bf16.msra.mxu2 %v8106_v55  ;;  %v8128_v55 = vld [vmem:[%s10294_s1 + $0x750] sm:$0xff]  ;;  %v8163_v19 = vld [vmem:[%s10294_s1 + $0x868] sm:$0xff] }
  0xd1   :  { %5029 = vmatpush.bf16.msra.mxu3 %v8114_v59  ;;  %v8119_v59 = vld [vmem:[%s10294_s1 + $0x708] sm:$0xff] }
  0xd2   :  { %4991 = vmatpush.bf16.msra.mxu0 %v8089_v60  ;;  %v8127_v60 = vld [vmem:[%s10294_s1 + $0x748] sm:$0xff] }
  0xd3   :  { %5004 = vmatpush.bf16.msra.mxu1 %v8097_v62  ;;  %v1193_v62 = vld [vmem:[#allocation1 + $0x24] sm:$0xff] }
  0xd4   :  { %5017 = vmatpush.bf16.msra.mxu2 %v8105_v63  ;;  %v1195_v63 = vld [vmem:[#allocation1 + $0x36] sm:$0xff] }
  0xd5   :  { %5030 = vmatpush.bf16.msra.mxu3 %v8113_v1  ;;  %v1196_v1 = vld [vmem:[#allocation1 + $0x3f] sm:$0xff] }
  0xd6   :  { %4992 = vmatpush.bf16.msra.mxu0 %v8088_v3  ;;  %v28_v3 = vld [vmem:[%s10293_s0 + $0x20] sm:$0xff] }
  0xd7   :  { %5005 = vmatpush.bf16.msra.mxu1 %v8096_v4  ;;  %v8143_v4 = vld [vmem:[%s10294_s1 + $0x7c8] sm:$0xff]  ;;  %1198 = vst [vmem:[#allocation1] ss:$9 sm:$0xff] %v28_v3 }
  0xd8   :  { %5018 = vmatpush.bf16.msra.mxu2 %v8104_v5  ;;  %v8118_v5 = vld [vmem:[%s10294_s1 + $0x700] sm:$0xff]  ;;  %v8195_v3 = vld [vmem:[%s10294_s1 + $0x968] sm:$0xff] }
  0xd9   :  { %5031 = vmatpush.bf16.msra.mxu3 %v8112_v10  ;;  %v8165_v10 = vld [vmem:[%s10294_s1 + $0x878] sm:$0xff] }
  0xda   :  { %4993 = vmatpush.bf16.msra.mxu0 %v8087_v11  ;;  %v8173_v11 = vld [vmem:[%s10294_s1 + $0x8b8] sm:$0xff] }
  0xdb   :  { %5006 = vmatpush.bf16.msra.mxu1 %v8095_v12  ;;  %v8142_v12 = vld [vmem:[%s10294_s1 + $0x7c0] sm:$0xff] }
  0xdc   :  { %5019 = vmatpush.bf16.msra.mxu2 %v8103_v13  ;;  %v8181_v13 = vld [vmem:[%s10294_s1 + $0x8f8] sm:$0xff] }
  0xdd   :  { %5032 = vmatpush.bf16.msra.mxu3 %v8111_v15  ;;  %v8164_v15 = vld [vmem:[%s10294_s1 + $0x870] sm:$0xff] }
  0xde   :  { %4994 = vmatpush.bf16.msra.mxu0 %v8086_v16  ;;  %v4788_v37 = vpop.f32.mrf.mxu0  ;;  %v8172_v16 = vld [vmem:[%s10294_s1 + $0x8b0] sm:$0xff] }
  0xdf   :  { %5007 = vmatpush.bf16.msra.mxu1 %v8094_v17  ;;  %v4789_v38 = vadd.f32 %v4788_v37, %v4776_v8  ;;  %v4801_v42 = vpop.f32.mrf.mxu1  ;;  %v8134_v8 = vld [vmem:[%s10294_s1 + $0x780] sm:$0xff]  ;;  %v8180_v17 = vld [vmem:[%s10294_s1 + $0x8f0] sm:$0xff] }
  0xe0   :  { %5020 = vmatpush.bf16.msra.mxu2 %v8102_v18  ;;  %v8155_v18 = vld [vmem:[%s10294_s1 + $0x828] sm:$0xff] }
  0xe1   :  { %5033 = vmatpush.bf16.msra.mxu3 %v8110_v23  ;;  %4995 = vmatmul.bf16.vlgmr.msra.gmra.mxu0 %v1189_v24  ;;  %v4802_v43 = vadd.f32 %v4801_v42, %v4789_v38  ;;  %v8154_v24 = vld [vmem:[%s10294_s1 + $0x820] sm:$0xff]  ;;  %v8152_v38 = vld [vmem:[%s10294_s1 + $0x810] sm:$0xff] }
  0xe2   :  { %5039 = vmatpush.bf16.msrb.mxu0 %v8125_v20  ;;  %5008 = vmatmul.bf16.vlgmr.msra.gmra.mxu1 %v1190_v27  ;;  %v8171_v20 = vld [vmem:[%s10294_s1 + $0x8a8] sm:$0xff]  ;;  %v8170_v27 = vld [vmem:[%s10294_s1 + $0x8a0] sm:$0xff]  ;;  %v8168_v42 = vld [vmem:[%s10294_s1 + $0x890] sm:$0xff] }
  0xe3   :  { %5052 = vmatpush.bf16.msrb.mxu1 %v8133_v21  ;;  %5021 = vmatmul.bf16.vlgmr.msra.gmra.mxu2 %v1191_v25  ;;  %v8179_v21 = vld [vmem:[%s10294_s1 + $0x8e8] sm:$0xff] }
  0xe4   :  { %5065 = vmatpush.bf16.msrb.mxu2 %v8141_v22  ;;  %5034 = vmatmul.bf16.vlgmr.msra.gmra.mxu3 %v1192_v29  ;;  %v8178_v29 = vld [vmem:[%s10294_s1 + $0x8e0] sm:$0xff] }
  0xe5   :  { %5078 = vmatpush.bf16.msrb.mxu3 %v8149_v26  ;;  %v8162_v26 = vld [vmem:[%s10294_s1 + $0x860] sm:$0xff] }
  0xe6   :  { %5040 = vmatpush.bf16.msrb.mxu0 %v8124_v28  ;;  %v4814_v48 = vpop.f32.mrf.mxu2  ;;  %v4790_v51 = vpop.f32.mrf.mxu0 }
  0xe7   :  { %5053 = vmatpush.bf16.msrb.mxu1 %v8132_v30  ;;  %v4815_v49 = vadd.f32 %v4814_v48, %v4802_v43  ;;  %v4827_v52 = vpop.f32.mrf.mxu3  ;;  %v4803_v57 = vpop.f32.mrf.mxu1  ;;  %v8153_v30 = vld [vmem:[%s10294_s1 + $0x818] sm:$0xff]  ;;  %v8176_v43 = vld [vmem:[%s10294_s1 + $0x8d0] sm:$0xff]  ;;  %v8175_v48 = vld [vmem:[%s10294_s1 + $0x8c8] sm:$0xff] }
  0xe8   :  { %5066 = vmatpush.bf16.msrb.mxu2 %v8140_v31  ;;  %v8161_v31 = vld [vmem:[%s10294_s1 + $0x858] sm:$0xff]  ;;  %v8158_v51 = vld [vmem:[%s10294_s1 + $0x840] sm:$0xff] }
  0xe9   :  { %5079 = vmatpush.bf16.msrb.mxu3 %v8148_v32  ;;  %v4828_v54 = vadd.f32 %v4827_v52, %v4815_v49  ;;  %v8169_v32 = vld [vmem:[%s10294_s1 + $0x898] sm:$0xff]  ;;  %v8166_v52 = vld [vmem:[%s10294_s1 + $0x880] sm:$0xff] }
  0xea   :  { %5041 = vmatpush.bf16.msrb.mxu0 %v8123_v33  ;;  %v1199_v57 = vld [vmem:[#allocation1] sm:$0xff] }
  0xeb   :  { %5054 = vmatpush.bf16.msrb.mxu1 %v8131_v34 }
  0xec   :  { %5067 = vmatpush.bf16.msrb.mxu2 %v8139_v35  ;;  %v8177_v35 = vld [vmem:[%s10294_s1 + $0x8d8] sm:$0xff] }
  0xed   :  { %5080 = vmatpush.bf16.msrb.mxu3 %v8147_v36 }
  0xee   :  { %5042 = vmatpush.bf16.msrb.mxu0 %v8122_v39  ;;  %v4816_v2 = vpop.f32.mrf.mxu2 }
  0xef   :  { %5055 = vmatpush.bf16.msrb.mxu1 %v8130_v40  ;;  %v4829_v6 = vpop.f32.mrf.mxu3  ;;  %v8187_v2 = vld [vmem:[%s10294_s1 + $0x928] sm:$0xff] }
  0xf0   :  { %5068 = vmatpush.bf16.msrb.mxu2 %v8138_v41  ;;  %v8160_v41 = vld [vmem:[%s10294_s1 + $0x850] sm:$0xff] }
  0xf1   :  { %5081 = vmatpush.bf16.msrb.mxu3 %v8146_v44  ;;  %v8151_v44 = vld [vmem:[%s10294_s1 + $0x808] sm:$0xff] }
  0xf2   :  { %5043 = vmatpush.bf16.msrb.mxu0 %v8121_v45  ;;  %v8159_v45 = vld [vmem:[%s10294_s1 + $0x848] sm:$0xff] }
  0xf3   :  { %5056 = vmatpush.bf16.msrb.mxu1 %v8129_v46  ;;  %v8167_v46 = vld [vmem:[%s10294_s1 + $0x888] sm:$0xff] }
  0xf4   :  { %5069 = vmatpush.bf16.msrb.mxu2 %v8137_v47 }
  0xf5   :  { %5082 = vmatpush.bf16.msrb.mxu3 %v8145_v50  ;;  %v8150_v50 = vld [vmem:[%s10294_s1 + $0x800] sm:$0xff] }
  0xf6   :  { %5044 = vmatpush.bf16.msrb.mxu0 %v8120_v53  ;;  %v8189_v53 = vld [vmem:[%s10294_s1 + $0x938] sm:$0xff] }
  0xf7   :  { %5057 = vmatpush.bf16.msrb.mxu1 %v8128_v55  ;;  %v8205_v55 = vld [vmem:[%s10294_s1 + $0x9b8] sm:$0xff] }
  0xf8   :  { %5070 = vmatpush.bf16.msrb.mxu2 %v8136_v56  ;;  %v8174_v56 = vld [vmem:[%s10294_s1 + $0x8c0] sm:$0xff] }
  0xf9   :  { %5083 = vmatpush.bf16.msrb.mxu3 %v8144_v58  ;;  %v1201_v58 = vld [vmem:[#allocation1 + $0x12] sm:$0xff] }
  0xfa   :  { %5045 = vmatpush.bf16.msrb.mxu0 %v8119_v59  ;;  %v8213_v59 = vld [vmem:[%s10294_s1 + $0x9f8] sm:$0xff] }
  0xfb   :  { %5058 = vmatpush.bf16.msrb.mxu1 %v8127_v60  ;;  %v1200_v60 = vld [vmem:[#allocation1 + $0x9] sm:$0xff] }
  0xfc   :  { %5071 = vmatpush.bf16.msrb.mxu2 %v8135_v61  ;;  %v8188_v61 = vld [vmem:[%s10294_s1 + $0x930] sm:$0xff] }
  0xfd   :  { %5084 = vmatpush.bf16.msrb.mxu3 %v8143_v4  ;;  %v8203_v4 = vld [vmem:[%s10294_s1 + $0x9a8] sm:$0xff] }
  0xfe   :  { %5046 = vmatpush.bf16.msrb.mxu0 %v8118_v5  ;;  %v4840_v22 = vpop.f32.mrf.mxu0  ;;  %v8211_v5 = vld [vmem:[%s10294_s1 + $0x9e8] sm:$0xff] }
  0xff   :  { %5059 = vmatpush.bf16.msrb.mxu1 %v8126_v7  ;;  %v4841_v23 = vadd.f32 %v4840_v22, %v4828_v54  ;;  %v4853_v25 = vpop.f32.mrf.mxu1  ;;  %v8197_v54 = vld [vmem:[%s10294_s1 + $0x978] sm:$0xff] }
 0x100   :  { %5072 = vmatpush.bf16.msrb.mxu2 %v8134_v8  ;;  %v8186_v8 = vld [vmem:[%s10294_s1 + $0x920] sm:$0xff] }
 0x101   :  { %5085 = vmatpush.bf16.msrb.mxu3 %v8142_v12  ;;  %5047 = vmatmul.bf16.vlgmr.msrb.gmra.mxu0 %v1193_v62  ;;  %v4854_v28 = vadd.f32 %v4853_v25, %v4841_v23  ;;  %v1202_v62 = vld [vmem:[#allocation1 + $0x1b] sm:$0xff]  ;;  %v8184_v23 = vld [vmem:[%s10294_s1 + $0x910] sm:$0xff] }
 0x102   :  { %5091 = vmatpush.bf16.msra.mxu0 %v8157_v9  ;;  %5060 = vmatmul.bf16.vlgmr.msrb.gmra.mxu1 %v1194_v0  ;;  %v8204_v0 = vld [vmem:[%s10294_s1 + $0x9b0] sm:$0xff] }
 0x103   :  { %5104 = vmatpush.bf16.msra.mxu1 %v8165_v10  ;;  %5073 = vmatmul.bf16.vlgmr.msrb.gmra.mxu2 %v1195_v63  ;;  %v8196_v63 = vld [vmem:[%s10294_s1 + $0x970] sm:$0xff]  ;;  %v8194_v10 = vld [vmem:[%s10294_s1 + $0x960] sm:$0xff] }
 0x104   :  { %5117 = vmatpush.bf16.msra.mxu2 %v8173_v11  ;;  %5086 = vmatmul.bf16.vlgmr.msrb.gmra.mxu3 %v1196_v1  ;;  %v8212_v1 = vld [vmem:[%s10294_s1 + $0x9f0] sm:$0xff]  ;;  %v8202_v11 = vld [vmem:[%s10294_s1 + $0x9a0] sm:$0xff] }
 0x105   :  { %5130 = vmatpush.bf16.msra.mxu3 %v8181_v13  ;;  %v8210_v13 = vld [vmem:[%s10294_s1 + $0x9e0] sm:$0xff]  ;;  %v8192_v25 = vld [vmem:[%s10294_s1 + $0x950] sm:$0xff] }
 0x106   :  { %5092 = vmatpush.bf16.msra.mxu0 %v8156_v14  ;;  %v4866_v33 = vpop.f32.mrf.mxu2  ;;  %v4842_v37 = vpop.f32.mrf.mxu0  ;;  %v8185_v14 = vld [vmem:[%s10294_s1 + $0x918] sm:$0xff] }
 0x107   :  { %5105 = vmatpush.bf16.msra.mxu1 %v8164_v15  ;;  %v4867_v34 = vadd.f32 %v4866_v33, %v4854_v28  ;;  %v4879_v36 = vpop.f32.mrf.mxu3  ;;  %v4855_v39 = vpop.f32.mrf.mxu1  ;;  %v8193_v15 = vld [vmem:[%s10294_s1 + $0x958] sm:$0xff]  ;;  %v8183_v28 = vld [vmem:[%s10294_s1 + $0x908] sm:$0xff] }
 0x108   :  { %5118 = vmatpush.bf16.msra.mxu2 %v8172_v16  ;;  %v8201_v16 = vld [vmem:[%s10294_s1 + $0x998] sm:$0xff]  ;;  %v8207_v37 = vld [vmem:[%s10294_s1 + $0x9c8] sm:$0xff]  ;;  %v8182_v39 = vld [vmem:[%s10294_s1 + $0x900] sm:$0xff] }
 0x109   :  { %5131 = vmatpush.bf16.msra.mxu3 %v8180_v17  ;;  %v4880_v40 = vadd.f32 %v4879_v36, %v4867_v34  ;;  %v1204_v34 = vld [vmem:[#allocation1 + $0x2d] sm:$0xff] }
 0x10a   :  { %5093 = vmatpush.bf16.msra.mxu0 %v8155_v18  ;;  %v29_v36 = vld [vmem:[%s10293_s0 + $0x28] sm:$0xff] }
 0x10b   :  { %5106 = vmatpush.bf16.msra.mxu1 %v8163_v19  ;;  %v8209_v19 = vld [vmem:[%s10294_s1 + $0x9d8] sm:$0xff] }
 0x10c   :  { %5119 = vmatpush.bf16.msra.mxu2 %v8171_v20 }
 0x10d   :  { %5132 = vmatpush.bf16.msra.mxu3 %v8179_v21 }
 0x10e   :  { %5094 = vmatpush.bf16.msra.mxu0 %v8154_v24  ;;  %v4868_v47 = vpop.f32.mrf.mxu2 }
 0x10f   :  { %5107 = vmatpush.bf16.msra.mxu1 %v8162_v26  ;;  %v4881_v49 = vpop.f32.mrf.mxu3  ;;  %v8200_v26 = vld [vmem:[%s10294_s1 + $0x990] sm:$0xff] }
 0x110   :  { %5120 = vmatpush.bf16.msra.mxu2 %v8170_v27  ;;  %v8208_v27 = vld [vmem:[%s10294_s1 + $0x9d0] sm:$0xff] }
 0x111   :  { %5133 = vmatpush.bf16.msra.mxu3 %v8178_v29  ;;  %v8191_v29 = vld [vmem:[%s10294_s1 + $0x948] sm:$0xff]  ;;  %v8220_v47 = vld [vmem:[%s10294_s1 + $0xa30] sm:$0xff] }
 0x112   :  { %5095 = vmatpush.bf16.msra.mxu0 %v8153_v30  ;;  %v8199_v30 = vld [vmem:[%s10294_s1 + $0x988] sm:$0xff]  ;;  %v8236_v49 = vld [vmem:[%s10294_s1 + $0xab0] sm:$0xff] }
 0x113   :  { %5108 = vmatpush.bf16.msra.mxu1 %v8161_v31  ;;  %v1203_v31 = vld [vmem:[#allocation1 + $0x24] sm:$0xff] }
 0x114   :  { %5121 = vmatpush.bf16.msra.mxu2 %v8169_v32  ;;  %v1205_v32 = vld [vmem:[#allocation1 + $0x36] sm:$0xff] }
 0x115   :  { %5134 = vmatpush.bf16.msra.mxu3 %v8177_v35  ;;  %v1206_v35 = vld [vmem:[#allocation1 + $0x3f] sm:$0xff] }
 0x116   :  { %5096 = vmatpush.bf16.msra.mxu0 %v8152_v38  ;;  %1208 = vst [vmem:[#allocation1] ss:$9 sm:$0xff] %v29_v36  ;;  %v8259_v36 = vld [vmem:[%s10294_s1 + $0xb68] sm:$0xff] }
 0x117   :  { %5109 = vmatpush.bf16.msra.mxu1 %v8160_v41  ;;  %v8198_v41 = vld [vmem:[%s10294_s1 + $0x980] sm:$0xff] }
 0x118   :  { %5122 = vmatpush.bf16.msra.mxu2 %v8168_v42  ;;  %v8221_v42 = vld [vmem:[%s10294_s1 + $0xa38] sm:$0xff] }
 0x119   :  { %5135 = vmatpush.bf16.msra.mxu3 %v8176_v43  ;;  %v8229_v43 = vld [vmem:[%s10294_s1 + $0xa78] sm:$0xff] }
 0x11a   :  { %5097 = vmatpush.bf16.msra.mxu0 %v8151_v44  ;;  %v8237_v44 = vld [vmem:[%s10294_s1 + $0xab8] sm:$0xff] }
 0x11b   :  { %5110 = vmatpush.bf16.msra.mxu1 %v8159_v45  ;;  %v8206_v45 = vld [vmem:[%s10294_s1 + $0x9c0] sm:$0xff] }
 0x11c   :  { %5123 = vmatpush.bf16.msra.mxu2 %v8167_v46  ;;  %v8245_v46 = vld [vmem:[%s10294_s1 + $0xaf8] sm:$0xff] }
 0x11d   :  { %5136 = vmatpush.bf16.msra.mxu3 %v8175_v48  ;;  %v8228_v48 = vld [vmem:[%s10294_s1 + $0xa70] sm:$0xff] }
 0x11e   :  { %5098 = vmatpush.bf16.msra.mxu0 %v8150_v50  ;;  %v4892_v6 = vpop.f32.mrf.mxu0  ;;  %v8244_v50 = vld [vmem:[%s10294_s1 + $0xaf0] sm:$0xff] }
 0x11f   :  { %5111 = vmatpush.bf16.msra.mxu1 %v8158_v51  ;;  %v4893_v7 = vadd.f32 %v4892_v6, %v4880_v40  ;;  %v4905_v9 = vpop.f32.mrf.mxu1  ;;  %v8190_v40 = vld [vmem:[%s10294_s1 + $0x940] sm:$0xff]  ;;  %v8219_v51 = vld [vmem:[%s10294_s1 + $0xa28] sm:$0xff] }
 0x120   :  { %5124 = vmatpush.bf16.msra.mxu2 %v8166_v52  ;;  %v8227_v52 = vld [vmem:[%s10294_s1 + $0xa68] sm:$0xff] }
 0x121   :  { %5137 = vmatpush.bf16.msra.mxu3 %v8174_v56  ;;  %5099 = vmatmul.bf16.vlgmr.msra.gmra.mxu0 %v1199_v57  ;;  %v4906_v12 = vadd.f32 %v4905_v9, %v4893_v7  ;;  %v8218_v57 = vld [vmem:[%s10294_s1 + $0xa20] sm:$0xff] }
 0x122   :  { %5143 = vmatpush.bf16.msrb.mxu0 %v8189_v53  ;;  %5112 = vmatmul.bf16.vlgmr.msra.gmra.mxu1 %v1200_v60  ;;  %v8235_v53 = vld [vmem:[%s10294_s1 + $0xaa8] sm:$0xff]  ;;  %v8234_v60 = vld [vmem:[%s10294_s1 + $0xaa0] sm:$0xff] }
 0x123   :  { %5156 = vmatpush.bf16.msrb.mxu1 %v8197_v54  ;;  %5125 = vmatmul.bf16.vlgmr.msra.gmra.mxu2 %v1201_v58  ;;  %v8243_v54 = vld [vmem:[%s10294_s1 + $0xae8] sm:$0xff] }
 0x124   :  { %5169 = vmatpush.bf16.msrb.mxu2 %v8205_v55  ;;  %5138 = vmatmul.bf16.vlgmr.msra.gmra.mxu3 %v1202_v62  ;;  %v8242_v62 = vld [vmem:[%s10294_s1 + $0xae0] sm:$0xff] }
 0x125   :  { %5182 = vmatpush.bf16.msrb.mxu3 %v8213_v59  ;;  %v8226_v59 = vld [vmem:[%s10294_s1 + $0xa60] sm:$0xff] }
 0x126   :  { %5144 = vmatpush.bf16.msrb.mxu0 %v8188_v61  ;;  %v4918_v17 = vpop.f32.mrf.mxu2  ;;  %v4894_v21 = vpop.f32.mrf.mxu0 }
 0x127   :  { %5157 = vmatpush.bf16.msrb.mxu1 %v8196_v63  ;;  %v4919_v18 = vadd.f32 %v4918_v17, %v4906_v12  ;;  %v4931_v20 = vpop.f32.mrf.mxu3  ;;  %v4907_v24 = vpop.f32.mrf.mxu1  ;;  %v8217_v63 = vld [vmem:[%s10294_s1 + $0xa18] sm:$0xff]  ;;  %v8240_v12 = vld [vmem:[%s10294_s1 + $0xad0] sm:$0xff]  ;;  %v8239_v17 = vld [vmem:[%s10294_s1 + $0xac8] sm:$0xff] }
 0x128   :  { %5170 = vmatpush.bf16.msrb.mxu2 %v8204_v0  ;;  %v8225_v0 = vld [vmem:[%s10294_s1 + $0xa58] sm:$0xff]  ;;  %v8230_v21 = vld [vmem:[%s10294_s1 + $0xa80] sm:$0xff] }
 0x129   :  { %5183 = vmatpush.bf16.msrb.mxu3 %v8212_v1  ;;  %v9492_v22 = vadd.f32 %v4931_v20, %v4919_v18  ;;  %v8233_v1 = vld [vmem:[%s10294_s1 + $0xa98] sm:$0xff]  ;;  %v8222_v20 = vld [vmem:[%s10294_s1 + $0xa40] sm:$0xff] }
 0x12a   :  { %5145 = vmatpush.bf16.msrb.mxu0 %v8187_v2  ;;  %v8269_v24 = vld [vmem:[%s10294_s1 + $0xbb8] sm:$0xff] }
 0x12b   :  { %5158 = vmatpush.bf16.msrb.mxu1 %v8195_v3 }
 0x12c   :  { %5171 = vmatpush.bf16.msrb.mxu2 %v8203_v4  ;;  %v8241_v4 = vld [vmem:[%s10294_s1 + $0xad8] sm:$0xff] }
 0x12d   :  { %5184 = vmatpush.bf16.msrb.mxu3 %v8211_v5 }
 0x12e   :  { %5146 = vmatpush.bf16.msrb.mxu0 %v8186_v8  ;;  %v4920_v33 = vpop.f32.mrf.mxu2  ;;  %v8216_v8 = vld [vmem:[%s10294_s1 + $0xa10] sm:$0xff] }
 0x12f   :  { %5159 = vmatpush.bf16.msrb.mxu1 %v8194_v10  ;;  %v4933_v38 = vpop.f32.mrf.mxu3  ;;  %v8224_v10 = vld [vmem:[%s10294_s1 + $0xa50] sm:$0xff] }
 0x130   :  { %5172 = vmatpush.bf16.msrb.mxu2 %v8202_v11  ;;  %v8232_v11 = vld [vmem:[%s10294_s1 + $0xa90] sm:$0xff]  ;;  %v8275_v38 = vld [vmem:[%s10294_s1 + $0xbe8] sm:$0xff] }
 0x131   :  { %5185 = vmatpush.bf16.msrb.mxu3 %v8210_v13  ;;  %v8215_v13 = vld [vmem:[%s10294_s1 + $0xa08] sm:$0xff]  ;;  %v8268_v33 = vld [vmem:[%s10294_s1 + $0xbb0] sm:$0xff] }
 0x132   :  { %5147 = vmatpush.bf16.msrb.mxu0 %v8185_v14  ;;  %v8223_v14 = vld [vmem:[%s10294_s1 + $0xa48] sm:$0xff] }
 0x133   :  { %5160 = vmatpush.bf16.msrb.mxu1 %v8193_v15  ;;  %v8231_v15 = vld [vmem:[%s10294_s1 + $0xa88] sm:$0xff] }
 0x134   :  { %5173 = vmatpush.bf16.msrb.mxu2 %v8201_v16 }
 0x135   :  { %5186 = vmatpush.bf16.msrb.mxu3 %v8209_v19  ;;  %v8214_v19 = vld [vmem:[%s10294_s1 + $0xa00] sm:$0xff] }
 0x136   :  { %5148 = vmatpush.bf16.msrb.mxu0 %v8184_v23  ;;  %v8261_v23 = vld [vmem:[%s10294_s1 + $0xb78] sm:$0xff] }
 0x137   :  { %5161 = vmatpush.bf16.msrb.mxu1 %v8192_v25  ;;  %v8238_v25 = vld [vmem:[%s10294_s1 + $0xac0] sm:$0xff] }
 0x138   :  { %5174 = vmatpush.bf16.msrb.mxu2 %v8200_v26  ;;  %v1209_v26 = vld [vmem:[#allocation1] sm:$0xff] }
 0x139   :  { %5187 = vmatpush.bf16.msrb.mxu3 %v8208_v27  ;;  %v1211_v27 = vld [vmem:[#allocation1 + $0x12] sm:$0xff] }
 0x13a   :  { %5149 = vmatpush.bf16.msrb.mxu0 %v8183_v28  ;;  %v8277_v28 = vld [vmem:[%s10294_s1 + $0xbf8] sm:$0xff] }
 0x13b   :  { %5162 = vmatpush.bf16.msrb.mxu1 %v8191_v29  ;;  %v1210_v29 = vld [vmem:[#allocation1 + $0x9] sm:$0xff] }
 0x13c   :  { %5175 = vmatpush.bf16.msrb.mxu2 %v8199_v30  ;;  %v8252_v30 = vld [vmem:[%s10294_s1 + $0xb30] sm:$0xff] }
 0x13d   :  { %5188 = vmatpush.bf16.msrb.mxu3 %v8207_v37  ;;  %v8267_v37 = vld [vmem:[%s10294_s1 + $0xba8] sm:$0xff] }
 0x13e   :  { %5150 = vmatpush.bf16.msrb.mxu0 %v8182_v39  ;;  %v4944_v55 = vpop.f32.mrf.mxu0 }
 0x13f   :  { %5163 = vmatpush.bf16.msrb.mxu1 %v8190_v40  ;;  %v4945_v56 = vadd.f32 %v4944_v55, %v9492_v22  ;;  %v4957_v58 = vpop.f32.mrf.mxu1  ;;  %v8253_v22 = vld [vmem:[%s10294_s1 + $0xb38] sm:$0xff] }
 0x140   :  { %5176 = vmatpush.bf16.msrb.mxu2 %v8198_v41  ;;  %v8250_v41 = vld [vmem:[%s10294_s1 + $0xb20] sm:$0xff] }
 0x141   :  { %5189 = vmatpush.bf16.msrb.mxu3 %v8206_v45  ;;  %5151 = vmatmul.bf16.vlgmr.msrb.gmra.mxu0 %v1203_v31  ;;  %v4958_v61 = vadd.f32 %v4957_v58, %v4945_v56  ;;  %v1212_v31 = vld [vmem:[#allocation1 + $0x1b] sm:$0xff]  ;;  %v8248_v56 = vld [vmem:[%s10294_s1 + $0xb10] sm:$0xff] }
 0x142   :  { %5195 = vmatpush.bf16.msra.mxu0 %v8221_v42  ;;  %5164 = vmatmul.bf16.vlgmr.msrb.gmra.mxu1 %v1204_v34  ;;  %v8276_v34 = vld [vmem:[%s10294_s1 + $0xbf0] sm:$0xff] }
 0x143   :  { %5208 = vmatpush.bf16.msra.mxu1 %v8229_v43  ;;  %5177 = vmatmul.bf16.vlgmr.msrb.gmra.mxu2 %v1205_v32  ;;  %v8260_v32 = vld [vmem:[%s10294_s1 + $0xb70] sm:$0xff]  ;;  %v8258_v43 = vld [vmem:[%s10294_s1 + $0xb60] sm:$0xff] }
 0x144   :  { %5221 = vmatpush.bf16.msra.mxu2 %v8237_v44  ;;  %5190 = vmatmul.bf16.vlgmr.msrb.gmra.mxu3 %v1206_v35  ;;  %v8251_v35 = vld [vmem:[%s10294_s1 + $0xb28] sm:$0xff]  ;;  %v8266_v44 = vld [vmem:[%s10294_s1 + $0xba0] sm:$0xff]  ;;  %v8256_v58 = vld [vmem:[%s10294_s1 + $0xb50] sm:$0xff] }
 0x145   :  { %5234 = vmatpush.bf16.msra.mxu3 %v8245_v46  ;;  %v8274_v46 = vld [vmem:[%s10294_s1 + $0xbe0] sm:$0xff] }
 0x146   :  { %5196 = vmatpush.bf16.msra.mxu0 %v8220_v47  ;;  %v4970_v2 = vpop.f32.mrf.mxu2  ;;  %v4946_v6 = vpop.f32.mrf.mxu0  ;;  %v8249_v47 = vld [vmem:[%s10294_s1 + $0xb18] sm:$0xff] }
 0x147   :  { %5209 = vmatpush.bf16.msra.mxu1 %v8228_v48  ;;  %v4971_v3 = vadd.f32 %v4970_v2, %v4958_v61  ;;  %v4983_v5 = vpop.f32.mrf.mxu3  ;;  %v4959_v9 = vpop.f32.mrf.mxu1  ;;  %v8257_v48 = vld [vmem:[%s10294_s1 + $0xb58] sm:$0xff]  ;;  %v8247_v61 = vld [vmem:[%s10294_s1 + $0xb08] sm:$0xff] }
 0x148   :  { %5222 = vmatpush.bf16.msra.mxu2 %v8236_v49  ;;  %v8265_v49 = vld [vmem:[%s10294_s1 + $0xb98] sm:$0xff]  ;;  %v8271_v6 = vld [vmem:[%s10294_s1 + $0xbc8] sm:$0xff]  ;;  %v8254_v9 = vld [vmem:[%s10294_s1 + $0xb40] sm:$0xff] }
 0x149   :  { %5235 = vmatpush.bf16.msra.mxu3 %v8244_v50  ;;  %v4984_v7 = vadd.f32 %v4983_v5, %v4971_v3  ;;  %v1214_v3 = vld [vmem:[#allocation1 + $0x2d] sm:$0xff] }
 0x14a   :  { %5197 = vmatpush.bf16.msra.mxu0 %v8219_v51  ;;  %v30_v5 = vld [vmem:[%s10293_s0 + $0x30] sm:$0xff] }
 0x14b   :  { %5210 = vmatpush.bf16.msra.mxu1 %v8227_v52  ;;  %v8273_v52 = vld [vmem:[%s10294_s1 + $0xbd8] sm:$0xff] }
 0x14c   :  { %5223 = vmatpush.bf16.msra.mxu2 %v8235_v53 }
 0x14d   :  { %5236 = vmatpush.bf16.msra.mxu3 %v8243_v54 }
 0x14e   :  { %5198 = vmatpush.bf16.msra.mxu0 %v8218_v57  ;;  %v4972_v16 = vpop.f32.mrf.mxu2 }
 0x14f   :  { %5211 = vmatpush.bf16.msra.mxu1 %v8226_v59  ;;  %v4985_v18 = vpop.f32.mrf.mxu3  ;;  %v8264_v59 = vld [vmem:[%s10294_s1 + $0xb90] sm:$0xff] }
 0x150   :  { %5224 = vmatpush.bf16.msra.mxu2 %v8234_v60  ;;  %v8272_v60 = vld [vmem:[%s10294_s1 + $0xbd0] sm:$0xff] }
 0x151   :  { %5237 = vmatpush.bf16.msra.mxu3 %v8242_v62  ;;  %v8255_v62 = vld [vmem:[%s10294_s1 + $0xb48] sm:$0xff]  ;;  %v8284_v16 = vld [vmem:[%s10294_s1 + $0xc30] sm:$0xff] }
 0x152   :  { %5199 = vmatpush.bf16.msra.mxu0 %v8217_v63  ;;  %v8263_v63 = vld [vmem:[%s10294_s1 + $0xb88] sm:$0xff]  ;;  %v8300_v18 = vld [vmem:[%s10294_s1 + $0xcb0] sm:$0xff] }
 0x153   :  { %5212 = vmatpush.bf16.msra.mxu1 %v8225_v0  ;;  %v1213_v0 = vld [vmem:[#allocation1 + $0x24] sm:$0xff] }
 0x154   :  { %5225 = vmatpush.bf16.msra.mxu2 %v8233_v1  ;;  %v1215_v1 = vld [vmem:[#allocation1 + $0x36] sm:$0xff] }
 0x155   :  { %5238 = vmatpush.bf16.msra.mxu3 %v8241_v4  ;;  %v1216_v4 = vld [vmem:[#allocation1 + $0x3f] sm:$0xff] }
 0x156   :  { %5200 = vmatpush.bf16.msra.mxu0 %v8216_v8  ;;  %1218 = vst [vmem:[#allocation1] ss:$9 sm:$0xff] %v30_v5  ;;  %v8246_v8 = vld [vmem:[%s10294_s1 + $0xb00] sm:$0xff]  ;;  %v8323_v5 = vld [vmem:[%s10294_s1 + $0xd68] sm:$0xff] }
 0x157   :  { %5213 = vmatpush.bf16.msra.mxu1 %v8224_v10  ;;  %v8262_v10 = vld [vmem:[%s10294_s1 + $0xb80] sm:$0xff] }
 0x158   :  { %5226 = vmatpush.bf16.msra.mxu2 %v8232_v11  ;;  %v8285_v11 = vld [vmem:[%s10294_s1 + $0xc38] sm:$0xff] }
 0x159   :  { %5239 = vmatpush.bf16.msra.mxu3 %v8240_v12  ;;  %v8293_v12 = vld [vmem:[%s10294_s1 + $0xc78] sm:$0xff] }
 0x15a   :  { %5201 = vmatpush.bf16.msra.mxu0 %v8215_v13  ;;  %v8301_v13 = vld [vmem:[%s10294_s1 + $0xcb8] sm:$0xff] }
 0x15b   :  { %5214 = vmatpush.bf16.msra.mxu1 %v8223_v14  ;;  %v8270_v14 = vld [vmem:[%s10294_s1 + $0xbc0] sm:$0xff] }
 0x15c   :  { %5227 = vmatpush.bf16.msra.mxu2 %v8231_v15  ;;  %v8309_v15 = vld [vmem:[%s10294_s1 + $0xcf8] sm:$0xff] }
 0x15d   :  { %5240 = vmatpush.bf16.msra.mxu3 %v8239_v17  ;;  %v8292_v17 = vld [vmem:[%s10294_s1 + $0xc70] sm:$0xff] }
 0x15e   :  { %5202 = vmatpush.bf16.msra.mxu0 %v8214_v19  ;;  %v4996_v39 = vpop.f32.mrf.mxu0  ;;  %v8308_v19 = vld [vmem:[%s10294_s1 + $0xcf0] sm:$0xff] }
 0x15f   :  { %5215 = vmatpush.bf16.msra.mxu1 %v8222_v20  ;;  %v4997_v40 = vadd.f32 %v4996_v39, %v4984_v7  ;;  %v5009_v42 = vpop.f32.mrf.mxu1  ;;  %v8283_v20 = vld [vmem:[%s10294_s1 + $0xc28] sm:$0xff] }
 0x160   :  { %5228 = vmatpush.bf16.msra.mxu2 %v8230_v21  ;;  %v8291_v21 = vld [vmem:[%s10294_s1 + $0xc68] sm:$0xff] }
 0x161   :  { %5241 = vmatpush.bf16.msra.mxu3 %v8238_v25  ;;  %5203 = vmatmul.bf16.vlgmr.msra.gmra.mxu0 %v1209_v26  ;;  %v5010_v45 = vadd.f32 %v5009_v42, %v4997_v40  ;;  %v8282_v26 = vld [vmem:[%s10294_s1 + $0xc20] sm:$0xff] }
 0x162   :  { %5247 = vmatpush.bf16.msrb.mxu0 %v8253_v22  ;;  %5216 = vmatmul.bf16.vlgmr.msra.gmra.mxu1 %v1210_v29  ;;  %v8299_v22 = vld [vmem:[%s10294_s1 + $0xca8] sm:$0xff]  ;;  %v8298_v29 = vld [vmem:[%s10294_s1 + $0xca0] sm:$0xff] }
 0x163   :  { %5260 = vmatpush.bf16.msrb.mxu1 %v8261_v23  ;;  %5229 = vmatmul.bf16.vlgmr.msra.gmra.mxu2 %v1211_v27  ;;  %v8307_v23 = vld [vmem:[%s10294_s1 + $0xce8] sm:$0xff] }
 0x164   :  { %5273 = vmatpush.bf16.msrb.mxu2 %v8269_v24  ;;  %5242 = vmatmul.bf16.vlgmr.msra.gmra.mxu3 %v1212_v31  ;;  %v8306_v31 = vld [vmem:[%s10294_s1 + $0xce0] sm:$0xff] }
 0x165   :  { %5286 = vmatpush.bf16.msrb.mxu3 %v8277_v28  ;;  %v8290_v28 = vld [vmem:[%s10294_s1 + $0xc60] sm:$0xff] }
 0x166   :  { %5248 = vmatpush.bf16.msrb.mxu0 %v8252_v30  ;;  %v5022_v50 = vpop.f32.mrf.mxu2  ;;  %v4998_v54 = vpop.f32.mrf.mxu0 }
 0x167   :  { %5261 = vmatpush.bf16.msrb.mxu1 %v8260_v32  ;;  %v5023_v51 = vadd.f32 %v5022_v50, %v5010_v45  ;;  %v5035_v53 = vpop.f32.mrf.mxu3  ;;  %v5011_v57 = vpop.f32.mrf.mxu1  ;;  %v8281_v32 = vld [vmem:[%s10294_s1 + $0xc18] sm:$0xff]  ;;  %v8304_v45 = vld [vmem:[%s10294_s1 + $0xcd0] sm:$0xff]  ;;  %v8303_v50 = vld [vmem:[%s10294_s1 + $0xcc8] sm:$0xff] }
 0x168   :  { %5274 = vmatpush.bf16.msrb.mxu2 %v8268_v33  ;;  %v8289_v33 = vld [vmem:[%s10294_s1 + $0xc58] sm:$0xff]  ;;  %v8294_v54 = vld [vmem:[%s10294_s1 + $0xc80] sm:$0xff] }
 0x169   :  { %5287 = vmatpush.bf16.msrb.mxu3 %v8276_v34  ;;  %v9690_v55 = vadd.f32 %v5035_v53, %v5023_v51  ;;  %v8297_v34 = vld [vmem:[%s10294_s1 + $0xc98] sm:$0xff]  ;;  %v8286_v53 = vld [vmem:[%s10294_s1 + $0xc40] sm:$0xff] }
 0x16a   :  { %5249 = vmatpush.bf16.msrb.mxu0 %v8251_v35  ;;  %v8333_v57 = vld [vmem:[%s10294_s1 + $0xdb8] sm:$0xff] }
 0x16b   :  { %5262 = vmatpush.bf16.msrb.mxu1 %v8259_v36 }
 0x16c   :  { %5275 = vmatpush.bf16.msrb.mxu2 %v8267_v37  ;;  %v8305_v37 = vld [vmem:[%s10294_s1 + $0xcd8] sm:$0xff] }
 0x16d   :  { %5288 = vmatpush.bf16.msrb.mxu3 %v8275_v38 }
 0x16e   :  { %5250 = vmatpush.bf16.msrb.mxu0 %v8250_v41  ;;  %v5024_v2 = vpop.f32.mrf.mxu2  ;;  %v8280_v41 = vld [vmem:[%s10294_s1 + $0xc10] sm:$0xff] }
 0x16f   :  { %5263 = vmatpush.bf16.msrb.mxu1 %v8258_v43  ;;  %v5037_v7 = vpop.f32.mrf.mxu3  ;;  %v8288_v43 = vld [vmem:[%s10294_s1 + $0xc50] sm:$0xff] }
 0x170   :  { %5276 = vmatpush.bf16.msrb.mxu2 %v8266_v44  ;;  %v8296_v44 = vld [vmem:[%s10294_s1 + $0xc90] sm:$0xff]  ;;  %v8339_v7 = vld [vmem:[%s10294_s1 + $0xde8] sm:$0xff] }
 0x171   :  { %5289 = vmatpush.bf16.msrb.mxu3 %v8274_v46  ;;  %v8279_v46 = vld [vmem:[%s10294_s1 + $0xc08] sm:$0xff]  ;;  %v8332_v2 = vld [vmem:[%s10294_s1 + $0xdb0] sm:$0xff] }
 0x172   :  { %5251 = vmatpush.bf16.msrb.mxu0 %v8249_v47  ;;  %v8287_v47 = vld [vmem:[%s10294_s1 + $0xc48] sm:$0xff] }
 0x173   :  { %5264 = vmatpush.bf16.msrb.mxu1 %v8257_v48  ;;  %v8295_v48 = vld [vmem:[%s10294_s1 + $0xc88] sm:$0xff] }
 0x174   :  { %5277 = vmatpush.bf16.msrb.mxu2 %v8265_v49 }
 0x175   :  { %5290 = vmatpush.bf16.msrb.mxu3 %v8273_v52  ;;  %v8278_v52 = vld [vmem:[%s10294_s1 + $0xc00] sm:$0xff] }
 0x176   :  { %5252 = vmatpush.bf16.msrb.mxu0 %v8248_v56  ;;  %v8325_v56 = vld [vmem:[%s10294_s1 + $0xd78] sm:$0xff] }
 0x177   :  { %5265 = vmatpush.bf16.msrb.mxu1 %v8256_v58  ;;  %v8302_v58 = vld [vmem:[%s10294_s1 + $0xcc0] sm:$0xff] }
 0x178   :  { %5278 = vmatpush.bf16.msrb.mxu2 %v8264_v59  ;;  %v1219_v59 = vld [vmem:[#allocation1] sm:$0xff] }
 0x179   :  { %5291 = vmatpush.bf16.msrb.mxu3 %v8272_v60  ;;  %v1221_v60 = vld [vmem:[#allocation1 + $0x12] sm:$0xff] }
 0x17a   :  { %5253 = vmatpush.bf16.msrb.mxu0 %v8247_v61  ;;  %v8341_v61 = vld [vmem:[%s10294_s1 + $0xdf8] sm:$0xff] }
 0x17b   :  { %5266 = vmatpush.bf16.msrb.mxu1 %v8255_v62  ;;  %v1220_v62 = vld [vmem:[#allocation1 + $0x9] sm:$0xff] }
 0x17c   :  { %5279 = vmatpush.bf16.msrb.mxu2 %v8263_v63  ;;  %v8316_v63 = vld [vmem:[%s10294_s1 + $0xd30] sm:$0xff] }
 0x17d   :  { %5292 = vmatpush.bf16.msrb.mxu3 %v8271_v6  ;;  %v8331_v6 = vld [vmem:[%s10294_s1 + $0xda8] sm:$0xff] }
 0x17e   :  { %5254 = vmatpush.bf16.msrb.mxu0 %v8246_v8  ;;  %v5048_v24 = vpop.f32.mrf.mxu0 }
 0x17f   :  { %5267 = vmatpush.bf16.msrb.mxu1 %v8254_v9  ;;  %v5049_v25 = vadd.f32 %v5048_v24, %v9690_v55  ;;  %v5061_v27 = vpop.f32.mrf.mxu1  ;;  %v8317_v55 = vld [vmem:[%s10294_s1 + $0xd38] sm:$0xff] }
 0x180   :  { %5280 = vmatpush.bf16.msrb.mxu2 %v8262_v10  ;;  %v8314_v10 = vld [vmem:[%s10294_s1 + $0xd20] sm:$0xff] }
 0x181   :  { %5293 = vmatpush.bf16.msrb.mxu3 %v8270_v14  ;;  %5255 = vmatmul.bf16.vlgmr.msrb.gmra.mxu0 %v1213_v0  ;;  %v5062_v30 = vadd.f32 %v5061_v27, %v5049_v25  ;;  %v1222_v0 = vld [vmem:[#allocation1 + $0x1b] sm:$0xff]  ;;  %v8312_v25 = vld [vmem:[%s10294_s1 + $0xd10] sm:$0xff] }
 0x182   :  { %5299 = vmatpush.bf16.msra.mxu0 %v8285_v11  ;;  %5268 = vmatmul.bf16.vlgmr.msrb.gmra.mxu1 %v1214_v3  ;;  %v8340_v3 = vld [vmem:[%s10294_s1 + $0xdf0] sm:$0xff] }
 0x183   :  { %5312 = vmatpush.bf16.msra.mxu1 %v8293_v12  ;;  %5281 = vmatmul.bf16.vlgmr.msrb.gmra.mxu2 %v1215_v1  ;;  %v8324_v1 = vld [vmem:[%s10294_s1 + $0xd70] sm:$0xff]  ;;  %v8322_v12 = vld [vmem:[%s10294_s1 + $0xd60] sm:$0xff] }
 0x184   :  { %5325 = vmatpush.bf16.msra.mxu2 %v8301_v13  ;;  %5294 = vmatmul.bf16.vlgmr.msrb.gmra.mxu3 %v1216_v4  ;;  %v8315_v4 = vld [vmem:[%s10294_s1 + $0xd28] sm:$0xff]  ;;  %v8330_v13 = vld [vmem:[%s10294_s1 + $0xda0] sm:$0xff]  ;;  %v8320_v27 = vld [vmem:[%s10294_s1 + $0xd50] sm:$0xff] }
 0x185   :  { %5338 = vmatpush.bf16.msra.mxu3 %v8309_v15  ;;  %v8338_v15 = vld [vmem:[%s10294_s1 + $0xde0] sm:$0xff] }
 0x186   :  { %5300 = vmatpush.bf16.msra.mxu0 %v8284_v16  ;;  %v5074_v35 = vpop.f32.mrf.mxu2  ;;  %v5050_v39 = vpop.f32.mrf.mxu0  ;;  %v8313_v16 = vld [vmem:[%s10294_s1 + $0xd18] sm:$0xff] }
 0x187   :  { %5313 = vmatpush.bf16.msra.mxu1 %v8292_v17  ;;  %v5075_v36 = vadd.f32 %v5074_v35, %v5062_v30  ;;  %v5087_v38 = vpop.f32.mrf.mxu3  ;;  %v5063_v42 = vpop.f32.mrf.mxu1  ;;  %v8321_v17 = vld [vmem:[%s10294_s1 + $0xd58] sm:$0xff]  ;;  %v8311_v30 = vld [vmem:[%s10294_s1 + $0xd08] sm:$0xff] }
 0x188   :  { %5326 = vmatpush.bf16.msra.mxu2 %v8300_v18  ;;  %v8329_v18 = vld [vmem:[%s10294_s1 + $0xd98] sm:$0xff]  ;;  %v8335_v39 = vld [vmem:[%s10294_s1 + $0xdc8] sm:$0xff]  ;;  %v8318_v42 = vld [vmem:[%s10294_s1 + $0xd40] sm:$0xff] }
 0x189   :  { %5339 = vmatpush.bf16.msra.mxu3 %v8308_v19  ;;  %v5088_v40 = vadd.f32 %v5087_v38, %v5075_v36  ;;  %v1224_v36 = vld [vmem:[#allocation1 + $0x2d] sm:$0xff]  ;;  %v31_v38 = vld [vmem:[%s10293_s0 + $0x38] sm:$0xff] }
 0x18a   :  { %5301 = vmatpush.bf16.msra.mxu0 %v8283_v20 }
 0x18b   :  { %5314 = vmatpush.bf16.msra.mxu1 %v8291_v21  ;;  %v8337_v21 = vld [vmem:[%s10294_s1 + $0xdd8] sm:$0xff] }
 0x18c   :  { %5327 = vmatpush.bf16.msra.mxu2 %v8299_v22 }
 0x18d   :  { %5340 = vmatpush.bf16.msra.mxu3 %v8307_v23 }
 0x18e   :  { %5302 = vmatpush.bf16.msra.mxu0 %v8282_v26  ;;  %v5076_v49 = vpop.f32.mrf.mxu2 }
 0x18f   :  { %5315 = vmatpush.bf16.msra.mxu1 %v8290_v28  ;;  %v5089_v51 = vpop.f32.mrf.mxu3  ;;  %v8328_v28 = vld [vmem:[%s10294_s1 + $0xd90] sm:$0xff] }
 0x190   :  { %5328 = vmatpush.bf16.msra.mxu2 %v8298_v29  ;;  %v8336_v29 = vld [vmem:[%s10294_s1 + $0xdd0] sm:$0xff] }
 0x191   :  { %5341 = vmatpush.bf16.msra.mxu3 %v8306_v31  ;;  %v8319_v31 = vld [vmem:[%s10294_s1 + $0xd48] sm:$0xff]  ;;  %v8348_v49 = vld [vmem:[%s10294_s1 + $0xe30] sm:$0xff] }
 0x192   :  { %5303 = vmatpush.bf16.msra.mxu0 %v8281_v32  ;;  %v8327_v32 = vld [vmem:[%s10294_s1 + $0xd88] sm:$0xff]  ;;  %v8364_v51 = vld [vmem:[%s10294_s1 + $0xeb0] sm:$0xff] }
 0x193   :  { %5316 = vmatpush.bf16.msra.mxu1 %v8289_v33  ;;  %v1223_v33 = vld [vmem:[#allocation1 + $0x24] sm:$0xff] }
 0x194   :  { %5329 = vmatpush.bf16.msra.mxu2 %v8297_v34  ;;  %v1225_v34 = vld [vmem:[#allocation1 + $0x36] sm:$0xff] }
 0x195   :  { %5342 = vmatpush.bf16.msra.mxu3 %v8305_v37  ;;  %v1226_v37 = vld [vmem:[#allocation1 + $0x3f] sm:$0xff] }
 0x196   :  { %5304 = vmatpush.bf16.msra.mxu0 %v8280_v41  ;;  %1228 = vst [vmem:[#allocation1] ss:$9 sm:$0xff] %v31_v38  ;;  %v8310_v41 = vld [vmem:[%s10294_s1 + $0xd00] sm:$0xff]  ;;  %v8387_v38 = vld [vmem:[%s10294_s1 + $0xf68] sm:$0xff] }
 0x197   :  { %5317 = vmatpush.bf16.msra.mxu1 %v8288_v43  ;;  %v8326_v43 = vld [vmem:[%s10294_s1 + $0xd80] sm:$0xff] }
 0x198   :  { %5330 = vmatpush.bf16.msra.mxu2 %v8296_v44  ;;  %v8349_v44 = vld [vmem:[%s10294_s1 + $0xe38] sm:$0xff] }
 0x199   :  { %5343 = vmatpush.bf16.msra.mxu3 %v8304_v45  ;;  %v8357_v45 = vld [vmem:[%s10294_s1 + $0xe78] sm:$0xff] }
 0x19a   :  { %5305 = vmatpush.bf16.msra.mxu0 %v8279_v46  ;;  %v8365_v46 = vld [vmem:[%s10294_s1 + $0xeb8] sm:$0xff] }
 0x19b   :  { %5318 = vmatpush.bf16.msra.mxu1 %v8287_v47  ;;  %v8334_v47 = vld [vmem:[%s10294_s1 + $0xdc0] sm:$0xff] }
 0x19c   :  { %5331 = vmatpush.bf16.msra.mxu2 %v8295_v48  ;;  %v8373_v48 = vld [vmem:[%s10294_s1 + $0xef8] sm:$0xff] }
 0x19d   :  { %5344 = vmatpush.bf16.msra.mxu3 %v8303_v50  ;;  %v8356_v50 = vld [vmem:[%s10294_s1 + $0xe70] sm:$0xff] }
 0x19e   :  { %5306 = vmatpush.bf16.msra.mxu0 %v8278_v52  ;;  %v5100_v8 = vpop.f32.mrf.mxu0  ;;  %v8372_v52 = vld [vmem:[%s10294_s1 + $0xef0] sm:$0xff] }
 0x19f   :  { %5319 = vmatpush.bf16.msra.mxu1 %v8286_v53  ;;  %v5101_v9 = vadd.f32 %v5100_v8, %v5088_v40  ;;  %v5113_v11 = vpop.f32.mrf.mxu1  ;;  %v8347_v53 = vld [vmem:[%s10294_s1 + $0xe28] sm:$0xff] }
 0x1a0   :  { %5332 = vmatpush.bf16.msra.mxu2 %v8294_v54  ;;  %v8355_v54 = vld [vmem:[%s10294_s1 + $0xe68] sm:$0xff] }
 0x1a1   :  { %5345 = vmatpush.bf16.msra.mxu3 %v8302_v58  ;;  %5307 = vmatmul.bf16.vlgmr.msra.gmra.mxu0 %v1219_v59  ;;  %v5114_v14 = vadd.f32 %v5113_v11, %v5101_v9  ;;  %v8346_v59 = vld [vmem:[%s10294_s1 + $0xe20] sm:$0xff] }
 0x1a2   :  { %5351 = vmatpush.bf16.msrb.mxu0 %v8317_v55  ;;  %5320 = vmatmul.bf16.vlgmr.msra.gmra.mxu1 %v1220_v62  ;;  %v8363_v55 = vld [vmem:[%s10294_s1 + $0xea8] sm:$0xff]  ;;  %v8362_v62 = vld [vmem:[%s10294_s1 + $0xea0] sm:$0xff] }
 0x1a3   :  { %5364 = vmatpush.bf16.msrb.mxu1 %v8325_v56  ;;  %5333 = vmatmul.bf16.vlgmr.msra.gmra.mxu2 %v1221_v60  ;;  %v8371_v56 = vld [vmem:[%s10294_s1 + $0xee8] sm:$0xff] }
 0x1a4   :  { %5377 = vmatpush.bf16.msrb.mxu2 %v8333_v57  ;;  %5346 = vmatmul.bf16.vlgmr.msra.gmra.mxu3 %v1222_v0  ;;  %v8370_v0 = vld [vmem:[%s10294_s1 + $0xee0] sm:$0xff] }
 0x1a5   :  { %5390 = vmatpush.bf16.msrb.mxu3 %v8341_v61  ;;  %v8354_v61 = vld [vmem:[%s10294_s1 + $0xe60] sm:$0xff] }
 0x1a6   :  { %5352 = vmatpush.bf16.msrb.mxu0 %v8316_v63  ;;  %v5126_v19 = vpop.f32.mrf.mxu2  ;;  %v5102_v23 = vpop.f32.mrf.mxu0 }
 0x1a7   :  { %5365 = vmatpush.bf16.msrb.mxu1 %v8324_v1  ;;  %v5127_v20 = vadd.f32 %v5126_v19, %v5114_v14  ;;  %v5139_v22 = vpop.f32.mrf.mxu3  ;;  %v5115_v26 = vpop.f32.mrf.mxu1  ;;  %v8345_v1 = vld [vmem:[%s10294_s1 + $0xe18] sm:$0xff]  ;;  %v8368_v14 = vld [vmem:[%s10294_s1 + $0xed0] sm:$0xff]  ;;  %v8367_v19 = vld [vmem:[%s10294_s1 + $0xec8] sm:$0xff] }
 0x1a8   :  { %5378 = vmatpush.bf16.msrb.mxu2 %v8332_v2  ;;  %v8353_v2 = vld [vmem:[%s10294_s1 + $0xe58] sm:$0xff]  ;;  %v8358_v23 = vld [vmem:[%s10294_s1 + $0xe80] sm:$0xff] }
 0x1a9   :  { %5391 = vmatpush.bf16.msrb.mxu3 %v8340_v3  ;;  %v9888_v24 = vadd.f32 %v5139_v22, %v5127_v20  ;;  %v8361_v3 = vld [vmem:[%s10294_s1 + $0xe98] sm:$0xff]  ;;  %v8350_v22 = vld [vmem:[%s10294_s1 + $0xe40] sm:$0xff] }
 0x1aa   :  { %5353 = vmatpush.bf16.msrb.mxu0 %v8315_v4  ;;  %v8397_v26 = vld [vmem:[%s10294_s1 + $0xfb8] sm:$0xff] }
 0x1ab   :  { %5366 = vmatpush.bf16.msrb.mxu1 %v8323_v5 }
 0x1ac   :  { %5379 = vmatpush.bf16.msrb.mxu2 %v8331_v6  ;;  %v8369_v6 = vld [vmem:[%s10294_s1 + $0xed8] sm:$0xff] }
 0x1ad   :  { %5392 = vmatpush.bf16.msrb.mxu3 %v8339_v7 }
 0x1ae   :  { %5354 = vmatpush.bf16.msrb.mxu0 %v8314_v10  ;;  %v5128_v35 = vpop.f32.mrf.mxu2  ;;  %v8344_v10 = vld [vmem:[%s10294_s1 + $0xe10] sm:$0xff] }
 0x1af   :  { %5367 = vmatpush.bf16.msrb.mxu1 %v8322_v12  ;;  %v5141_v40 = vpop.f32.mrf.mxu3  ;;  %v8352_v12 = vld [vmem:[%s10294_s1 + $0xe50] sm:$0xff] }
 0x1b0   :  { %5380 = vmatpush.bf16.msrb.mxu2 %v8330_v13  ;;  %v8360_v13 = vld [vmem:[%s10294_s1 + $0xe90] sm:$0xff]  ;;  %v8403_v40 = vld [vmem:[%s10294_s1 + $0xfe8] sm:$0xff] }
 0x1b1   :  { %5393 = vmatpush.bf16.msrb.mxu3 %v8338_v15  ;;  %v8343_v15 = vld [vmem:[%s10294_s1 + $0xe08] sm:$0xff]  ;;  %v8396_v35 = vld [vmem:[%s10294_s1 + $0xfb0] sm:$0xff] }
 0x1b2   :  { %5355 = vmatpush.bf16.msrb.mxu0 %v8313_v16  ;;  %v8351_v16 = vld [vmem:[%s10294_s1 + $0xe48] sm:$0xff] }
 0x1b3   :  { %5368 = vmatpush.bf16.msrb.mxu1 %v8321_v17  ;;  %v8359_v17 = vld [vmem:[%s10294_s1 + $0xe88] sm:$0xff] }
 0x1b4   :  { %5381 = vmatpush.bf16.msrb.mxu2 %v8329_v18 }
 0x1b5   :  { %5394 = vmatpush.bf16.msrb.mxu3 %v8337_v21  ;;  %v8342_v21 = vld [vmem:[%s10294_s1 + $0xe00] sm:$0xff] }
 0x1b6   :  { %5356 = vmatpush.bf16.msrb.mxu0 %v8312_v25  ;;  %v8389_v25 = vld [vmem:[%s10294_s1 + $0xf78] sm:$0xff] }
 0x1b7   :  { %5369 = vmatpush.bf16.msrb.mxu1 %v8320_v27  ;;  %v8366_v27 = vld [vmem:[%s10294_s1 + $0xec0] sm:$0xff] }
 0x1b8   :  { %5382 = vmatpush.bf16.msrb.mxu2 %v8328_v28  ;;  %v1229_v28 = vld [vmem:[#allocation1] sm:$0xff] }
 0x1b9   :  { %5395 = vmatpush.bf16.msrb.mxu3 %v8336_v29  ;;  %v1231_v29 = vld [vmem:[#allocation1 + $0x12] sm:$0xff] }
 0x1ba   :  { %5357 = vmatpush.bf16.msrb.mxu0 %v8311_v30  ;;  %v8405_v30 = vld [vmem:[%s10294_s1 + $0xff8] sm:$0xff] }
 0x1bb   :  { %5370 = vmatpush.bf16.msrb.mxu1 %v8319_v31  ;;  %v1230_v31 = vld [vmem:[#allocation1 + $0x9] sm:$0xff] }
 0x1bc   :  { %5383 = vmatpush.bf16.msrb.mxu2 %v8327_v32  ;;  %v8380_v32 = vld [vmem:[%s10294_s1 + $0xf30] sm:$0xff] }
 0x1bd   :  { %5396 = vmatpush.bf16.msrb.mxu3 %v8335_v39  ;;  %v8395_v39 = vld [vmem:[%s10294_s1 + $0xfa8] sm:$0xff] }
 0x1be   :  { %5358 = vmatpush.bf16.msrb.mxu0 %v8310_v41  ;;  %v5152_v57 = vpop.f32.mrf.mxu0 }
 0x1bf   :  { %5371 = vmatpush.bf16.msrb.mxu1 %v8318_v42  ;;  %v5153_v58 = vadd.f32 %v5152_v57, %v9888_v24  ;;  %v5165_v60 = vpop.f32.mrf.mxu1  ;;  %v8381_v24 = vld [vmem:[%s10294_s1 + $0xf38] sm:$0xff] }
 0x1c0   :  { %5384 = vmatpush.bf16.msrb.mxu2 %v8326_v43  ;;  %v8378_v43 = vld [vmem:[%s10294_s1 + $0xf20] sm:$0xff] }
 0x1c1   :  { %5397 = vmatpush.bf16.msrb.mxu3 %v8334_v47  ;;  %5359 = vmatmul.bf16.vlgmr.msrb.gmra.mxu0 %v1223_v33  ;;  %v5166_v63 = vadd.f32 %v5165_v60, %v5153_v58  ;;  %v1232_v33 = vld [vmem:[#allocation1 + $0x1b] sm:$0xff]  ;;  %v8376_v58 = vld [vmem:[%s10294_s1 + $0xf10] sm:$0xff] }
 0x1c2   :  { %5403 = vmatpush.bf16.msra.mxu0 %v8349_v44  ;;  %5372 = vmatmul.bf16.vlgmr.msrb.gmra.mxu1 %v1224_v36  ;;  %v8404_v36 = vld [vmem:[%s10294_s1 + $0xff0] sm:$0xff] }
 0x1c3   :  { %5416 = vmatpush.bf16.msra.mxu1 %v8357_v45  ;;  %5385 = vmatmul.bf16.vlgmr.msrb.gmra.mxu2 %v1225_v34  ;;  %v8388_v34 = vld [vmem:[%s10294_s1 + $0xf70] sm:$0xff]  ;;  %v8386_v45 = vld [vmem:[%s10294_s1 + $0xf60] sm:$0xff] }
 0x1c4   :  { %5429 = vmatpush.bf16.msra.mxu2 %v8365_v46  ;;  %5398 = vmatmul.bf16.vlgmr.msrb.gmra.mxu3 %v1226_v37  ;;  %v8379_v37 = vld [vmem:[%s10294_s1 + $0xf28] sm:$0xff]  ;;  %v8394_v46 = vld [vmem:[%s10294_s1 + $0xfa0] sm:$0xff]  ;;  %v8384_v60 = vld [vmem:[%s10294_s1 + $0xf50] sm:$0xff] }
 0x1c5   :  { %5442 = vmatpush.bf16.msra.mxu3 %v8373_v48  ;;  %v8402_v48 = vld [vmem:[%s10294_s1 + $0xfe0] sm:$0xff] }
 0x1c6   :  { %5404 = vmatpush.bf16.msra.mxu0 %v8348_v49  ;;  %v5178_v4 = vpop.f32.mrf.mxu2  ;;  %v5154_v8 = vpop.f32.mrf.mxu0  ;;  %v8377_v49 = vld [vmem:[%s10294_s1 + $0xf18] sm:$0xff] }
 0x1c7   :  { %5417 = vmatpush.bf16.msra.mxu1 %v8356_v50  ;;  %v5179_v5 = vadd.f32 %v5178_v4, %v5166_v63  ;;  %v5191_v7 = vpop.f32.mrf.mxu3  ;;  %v5167_v11 = vpop.f32.mrf.mxu1  ;;  %v8385_v50 = vld [vmem:[%s10294_s1 + $0xf58] sm:$0xff]  ;;  %v8375_v63 = vld [vmem:[%s10294_s1 + $0xf08] sm:$0xff] }
 0x1c8   :  { %5430 = vmatpush.bf16.msra.mxu2 %v8364_v51  ;;  %v8393_v51 = vld [vmem:[%s10294_s1 + $0xf98] sm:$0xff]  ;;  %v8399_v8 = vld [vmem:[%s10294_s1 + $0xfc8] sm:$0xff]  ;;  %v8382_v11 = vld [vmem:[%s10294_s1 + $0xf40] sm:$0xff] }
 0x1c9   :  { %5443 = vmatpush.bf16.msra.mxu3 %v8372_v52  ;;  %v5192_v9 = vadd.f32 %v5191_v7, %v5179_v5  ;;  %v1234_v5 = vld [vmem:[#allocation1 + $0x2d] sm:$0xff]  ;;  %v32_v7 = vld [vmem:[%s10293_s0 + $0x40] sm:$0x3f] }
 0x1ca   :  { %5405 = vmatpush.bf16.msra.mxu0 %v8347_v53 }
 0x1cb   :  { %5418 = vmatpush.bf16.msra.mxu1 %v8355_v54  ;;  %v8401_v54 = vld [vmem:[%s10294_s1 + $0xfd8] sm:$0xff] }
 0x1cc   :  { %5431 = vmatpush.bf16.msra.mxu2 %v8363_v55 }
 0x1cd   :  { %5444 = vmatpush.bf16.msra.mxu3 %v8371_v56 }
 0x1ce   :  { %5406 = vmatpush.bf16.msra.mxu0 %v8346_v59  ;;  %v5180_v18 = vpop.f32.mrf.mxu2 }
 0x1cf   :  { %5419 = vmatpush.bf16.msra.mxu1 %v8354_v61  ;;  %v5193_v20 = vpop.f32.mrf.mxu3  ;;  %v8392_v61 = vld [vmem:[%s10294_s1 + $0xf90] sm:$0xff] }
 0x1d0   :  { %5432 = vmatpush.bf16.msra.mxu2 %v8362_v62  ;;  %v8400_v62 = vld [vmem:[%s10294_s1 + $0xfd0] sm:$0xff] }
 0x1d1   :  { %5445 = vmatpush.bf16.msra.mxu3 %v8370_v0  ;;  %v8383_v0 = vld [vmem:[%s10294_s1 + $0xf48] sm:$0xff]  ;;  %v8412_v18 = vld [vmem:[%s10294_s1 + $0x1030] sm:$0xff] }
 0x1d2   :  { %5407 = vmatpush.bf16.msra.mxu0 %v8345_v1  ;;  %v8391_v1 = vld [vmem:[%s10294_s1 + $0xf88] sm:$0xff]  ;;  %v8428_v20 = vld [vmem:[%s10294_s1 + $0x10b0] sm:$0xff] }
 0x1d3   :  { %5420 = vmatpush.bf16.msra.mxu1 %v8353_v2  ;;  %v1233_v2 = vld [vmem:[#allocation1 + $0x24] sm:$0xff] }
 0x1d4   :  { %5433 = vmatpush.bf16.msra.mxu2 %v8361_v3  ;;  %v1235_v3 = vld [vmem:[#allocation1 + $0x36] sm:$0xff] }
 0x1d5   :  { %5446 = vmatpush.bf16.msra.mxu3 %v8369_v6  ;;  %v1236_v6 = vld [vmem:[#allocation1 + $0x3f] sm:$0xff] }
 0x1d6   :  { %5408 = vmatpush.bf16.msra.mxu0 %v8344_v10  ;;  %1238 = vst [vmem:[#allocation1] ss:$9 sm:$0xff] %v32_v7  ;;  %v8374_v10 = vld [vmem:[%s10294_s1 + $0xf00] sm:$0xff] }
 0x1d7   :  { %5421 = vmatpush.bf16.msra.mxu1 %v8352_v12  ;;  %v8390_v12 = vld [vmem:[%s10294_s1 + $0xf80] sm:$0xff] }
 0x1d8   :  { %5434 = vmatpush.bf16.msra.mxu2 %v8360_v13  ;;  %v8413_v13 = vld [vmem:[%s10294_s1 + $0x1038] sm:$0xff] }
 0x1d9   :  { %5447 = vmatpush.bf16.msra.mxu3 %v8368_v14  ;;  %v8421_v14 = vld [vmem:[%s10294_s1 + $0x1078] sm:$0xff] }
 0x1da   :  { %5409 = vmatpush.bf16.msra.mxu0 %v8343_v15  ;;  %v8429_v15 = vld [vmem:[%s10294_s1 + $0x10b8] sm:$0xff] }
 0x1db   :  { %5422 = vmatpush.bf16.msra.mxu1 %v8351_v16  ;;  %v8398_v16 = vld [vmem:[%s10294_s1 + $0xfc0] sm:$0xff] }
 0x1dc   :  { %5435 = vmatpush.bf16.msra.mxu2 %v8359_v17  ;;  %v8437_v17 = vld [vmem:[%s10294_s1 + $0x10f8] sm:$0xff] }
 0x1dd   :  { %5448 = vmatpush.bf16.msra.mxu3 %v8367_v19  ;;  %v8420_v19 = vld [vmem:[%s10294_s1 + $0x1070] sm:$0xff] }
 0x1de   :  { %5410 = vmatpush.bf16.msra.mxu0 %v8342_v21  ;;  %v5204_v41 = vpop.f32.mrf.mxu0  ;;  %v8436_v21 = vld [vmem:[%s10294_s1 + $0x10f0] sm:$0xff] }
 0x1df   :  { %5423 = vmatpush.bf16.msra.mxu1 %v8350_v22  ;;  %v5205_v42 = vadd.f32 %v5204_v41, %v5192_v9  ;;  %v5217_v44 = vpop.f32.mrf.mxu1  ;;  %v8411_v22 = vld [vmem:[%s10294_s1 + $0x1028] sm:$0xff] }
 0x1e0   :  { %5436 = vmatpush.bf16.msra.mxu2 %v8358_v23  ;;  %v8419_v23 = vld [vmem:[%s10294_s1 + $0x1068] sm:$0xff] }
 0x1e1   :  { %5449 = vmatpush.bf16.msra.mxu3 %v8366_v27  ;;  %5411 = vmatmul.bf16.vlgmr.msra.gmra.mxu0 %v1229_v28  ;;  %v5218_v47 = vadd.f32 %v5217_v44, %v5205_v42  ;;  %v8410_v28 = vld [vmem:[%s10294_s1 + $0x1020] sm:$0xff] }
 0x1e2   :  { %5455 = vmatpush.bf16.msrb.mxu0 %v8381_v24  ;;  %5424 = vmatmul.bf16.vlgmr.msra.gmra.mxu1 %v1230_v31  ;;  %v8427_v24 = vld [vmem:[%s10294_s1 + $0x10a8] sm:$0xff]  ;;  %v8426_v31 = vld [vmem:[%s10294_s1 + $0x10a0] sm:$0xff] }
 0x1e3   :  { %5468 = vmatpush.bf16.msrb.mxu1 %v8389_v25  ;;  %5437 = vmatmul.bf16.vlgmr.msra.gmra.mxu2 %v1231_v29  ;;  %v8435_v25 = vld [vmem:[%s10294_s1 + $0x10e8] sm:$0xff] }
 0x1e4   :  { %5481 = vmatpush.bf16.msrb.mxu2 %v8397_v26  ;;  %5450 = vmatmul.bf16.vlgmr.msra.gmra.mxu3 %v1232_v33  ;;  %v8434_v33 = vld [vmem:[%s10294_s1 + $0x10e0] sm:$0xff] }
 0x1e5   :  { %5494 = vmatpush.bf16.msrb.mxu3 %v8405_v30  ;;  %v8418_v30 = vld [vmem:[%s10294_s1 + $0x1060] sm:$0xff] }
 0x1e6   :  { %5456 = vmatpush.bf16.msrb.mxu0 %v8380_v32  ;;  %v5230_v52 = vpop.f32.mrf.mxu2  ;;  %v5206_v56 = vpop.f32.mrf.mxu0 }
 0x1e7   :  { %5469 = vmatpush.bf16.msrb.mxu1 %v8388_v34  ;;  %v5231_v53 = vadd.f32 %v5230_v52, %v5218_v47  ;;  %v5243_v55 = vpop.f32.mrf.mxu3  ;;  %v5219_v59 = vpop.f32.mrf.mxu1  ;;  %v8409_v34 = vld [vmem:[%s10294_s1 + $0x1018] sm:$0xff]  ;;  %v8432_v47 = vld [vmem:[%s10294_s1 + $0x10d0] sm:$0xff]  ;;  %v8431_v52 = vld [vmem:[%s10294_s1 + $0x10c8] sm:$0xff] }
 0x1e8   :  { %5482 = vmatpush.bf16.msrb.mxu2 %v8396_v35  ;;  %v8417_v35 = vld [vmem:[%s10294_s1 + $0x1058] sm:$0xff]  ;;  %v8422_v56 = vld [vmem:[%s10294_s1 + $0x1080] sm:$0xff] }
 0x1e9   :  { %5495 = vmatpush.bf16.msrb.mxu3 %v8404_v36  ;;  %v10086_v57 = vadd.f32 %v5243_v55, %v5231_v53  ;;  %v8425_v36 = vld [vmem:[%s10294_s1 + $0x1098] sm:$0xff]  ;;  %v8414_v55 = vld [vmem:[%s10294_s1 + $0x1040] sm:$0xff] }
 0x1ea   :  { %5457 = vmatpush.bf16.msrb.mxu0 %v8379_v37  ;;  %v8430_v59 = vld [vmem:[%s10294_s1 + $0x10c0] sm:$0xff] }
 0x1eb   :  { %5470 = vmatpush.bf16.msrb.mxu1 %v8387_v38 }
 0x1ec   :  { %5483 = vmatpush.bf16.msrb.mxu2 %v8395_v39  ;;  %v8433_v39 = vld [vmem:[%s10294_s1 + $0x10d8] sm:$0xff] }
 0x1ed   :  { %5496 = vmatpush.bf16.msrb.mxu3 %v8403_v40 }
 0x1ee   :  { %5458 = vmatpush.bf16.msrb.mxu0 %v8378_v43  ;;  %v5232_v4 = vpop.f32.mrf.mxu2  ;;  %v8408_v43 = vld [vmem:[%s10294_s1 + $0x1010] sm:$0xff] }
 0x1ef   :  { %5471 = vmatpush.bf16.msrb.mxu1 %v8386_v45  ;;  %v5245_v9 = vpop.f32.mrf.mxu3  ;;  %v8416_v45 = vld [vmem:[%s10294_s1 + $0x1050] sm:$0xff] }
 0x1f0   :  { %5484 = vmatpush.bf16.msrb.mxu2 %v8394_v46  ;;  %v8424_v46 = vld [vmem:[%s10294_s1 + $0x1090] sm:$0xff] }
 0x1f1   :  { %5497 = vmatpush.bf16.msrb.mxu3 %v8402_v48  ;;  %v8407_v48 = vld [vmem:[%s10294_s1 + $0x1008] sm:$0xff] }
 0x1f2   :  { %5459 = vmatpush.bf16.msrb.mxu0 %v8377_v49  ;;  %v8415_v49 = vld [vmem:[%s10294_s1 + $0x1048] sm:$0xff] }
 0x1f3   :  { %5472 = vmatpush.bf16.msrb.mxu1 %v8385_v50  ;;  %v8423_v50 = vld [vmem:[%s10294_s1 + $0x1088] sm:$0xff] }
 0x1f4   :  { %5485 = vmatpush.bf16.msrb.mxu2 %v8393_v51 }
 0x1f5   :  { %5498 = vmatpush.bf16.msrb.mxu3 %v8401_v54  ;;  %v8406_v54 = vld [vmem:[%s10294_s1 + $0x1000] sm:$0xff] }
 0x1f6   :  { %5460 = vmatpush.bf16.msrb.mxu0 %v8376_v58  ;;  %v8453_v58 = vld [vmem:[%s10294_s1 + $0x1178] sm:$0xff] }
 0x1f7   :  { %5473 = vmatpush.bf16.msrb.mxu1 %v8384_v60  ;;  %v1239_v60 = vld [vmem:[#allocation1] sm:$0xff] }
 0x1f8   :  { %5486 = vmatpush.bf16.msrb.mxu2 %v8392_v61  ;;  %v1241_v61 = vld [vmem:[#allocation1 + $0x12] sm:$0xff] }
 0x1f9   :  { %5499 = vmatpush.bf16.msrb.mxu3 %v8400_v62  ;;  %v1240_v62 = vld [vmem:[#allocation1 + $0x9] sm:$0xff] }
 0x1fa   :  { %5461 = vmatpush.bf16.msrb.mxu0 %v8375_v63  ;;  %v8444_v63 = vld [vmem:[%s10294_s1 + $0x1130] sm:$0xff] }
 0x1fb   :  { %5474 = vmatpush.bf16.msrb.mxu1 %v8383_v0  ;;  %v1242_v0 = vld [vmem:[#allocation1 + $0x1b] sm:$0xff] }
 0x1fc   :  { %5487 = vmatpush.bf16.msrb.mxu2 %v8391_v1  ;;  %v8452_v1 = vld [vmem:[%s10294_s1 + $0x1170] sm:$0xff] }
 0x1fd   :  { %5500 = vmatpush.bf16.msrb.mxu3 %v8399_v8  ;;  %v8450_v8 = vld [vmem:[%s10294_s1 + $0x1160] sm:$0xff] }
 0x1fe   :  { %5462 = vmatpush.bf16.msrb.mxu0 %v8374_v10  ;;  %v5256_v26 = vpop.f32.mrf.mxu0  ;;  %v8441_v10 = vld [vmem:[%s10294_s1 + $0x1118] sm:$0xff] }
 0x1ff   :  { %5475 = vmatpush.bf16.msrb.mxu1 %v8382_v11  ;;  %v5257_v27 = vadd.f32 %v5256_v26, %v10086_v57  ;;  %v5269_v29 = vpop.f32.mrf.mxu1  ;;  %v8445_v57 = vld [vmem:[%s10294_s1 + $0x1138] sm:$0xff]  ;;  %v1243_v26 = vld [vmem:[#allocation1 + $0x24] sm:$0xff] }
 0x200   :  { %5488 = vmatpush.bf16.msrb.mxu2 %v8390_v12  ;;  %v8449_v11 = vld [vmem:[%s10294_s1 + $0x1158] sm:$0xff] }
 0x201   :  { %5501 = vmatpush.bf16.msrb.mxu3 %v8398_v16  ;;  %5463 = vmatmul.bf16.vlgmr.msrb.gmra.mxu0 %v1233_v2  ;;  %v5270_v32 = vadd.f32 %v5269_v29, %v5257_v27  ;;  %v8443_v2 = vld [vmem:[%s10294_s1 + $0x1128] sm:$0xff] }
 0x202   :  { %5507 = vmatpush.bf16.msra.mxu0 %v8413_v13  ;;  %5476 = vmatmul.bf16.vlgmr.msrb.gmra.mxu1 %v1234_v5  ;;  %v1244_v27 = vld [vmem:[#allocation1 + $0x2d] sm:$0xff] }
 0x203   :  { %5520 = vmatpush.bf16.msra.mxu1 %v8421_v14  ;;  %5489 = vmatmul.bf16.vlgmr.msrb.gmra.mxu2 %v1235_v3  ;;  %v8451_v3 = vld [vmem:[%s10294_s1 + $0x1168] sm:$0xff] }
 0x204   :  { %5533 = vmatpush.bf16.msra.mxu2 %v8429_v15  ;;  %5502 = vmatmul.bf16.vlgmr.msrb.gmra.mxu3 %v1236_v6  ;;  %v8442_v6 = vld [vmem:[%s10294_s1 + $0x1120] sm:$0xff] }
 0x205   :  { %5546 = vmatpush.bf16.msra.mxu3 %v8437_v17  ;;  %v8440_v17 = vld [vmem:[%s10294_s1 + $0x1110] sm:$0xff] }
 0x206   :  { %5508 = vmatpush.bf16.msra.mxu0 %v8412_v18  ;;  %v5282_v37 = vpop.f32.mrf.mxu2  ;;  %v5258_v41 = vpop.f32.mrf.mxu0 }
 0x207   :  { %5521 = vmatpush.bf16.msra.mxu1 %v8420_v19  ;;  %v5283_v38 = vadd.f32 %v5282_v37, %v5270_v32  ;;  %v5295_v40 = vpop.f32.mrf.mxu3  ;;  %v5271_v44 = vpop.f32.mrf.mxu1  ;;  %v8448_v19 = vld [vmem:[%s10294_s1 + $0x1150] sm:$0xff] }
 0x208   :  { %5534 = vmatpush.bf16.msra.mxu2 %v8428_v20  ;;  %v8439_v20 = vld [vmem:[%s10294_s1 + $0x1108] sm:$0xff] }
 0x209   :  { %5547 = vmatpush.bf16.msra.mxu3 %v8436_v21  ;;  %v5296_v42 = vadd.f32 %v5295_v40, %v5283_v38  ;;  %v8447_v21 = vld [vmem:[%s10294_s1 + $0x1148] sm:$0xff] }
 0x20a   :  { %5509 = vmatpush.bf16.msra.mxu0 %v8411_v22 }
 0x20b   :  { %5522 = vmatpush.bf16.msra.mxu1 %v8419_v23 }
 0x20c   :  { %5535 = vmatpush.bf16.msra.mxu2 %v8427_v24  ;;  %v8438_v24 = vld [vmem:[%s10294_s1 + $0x1100] sm:$0xff] }
 0x20d   :  { %5548 = vmatpush.bf16.msra.mxu3 %v8435_v25  ;;  %v8446_v25 = vld [vmem:[%s10294_s1 + $0x1140] sm:$0xff] }
 0x20e   :  { %5510 = vmatpush.bf16.msra.mxu0 %v8410_v28  ;;  %v5284_v51 = vpop.f32.mrf.mxu2 }
 0x20f   :  { %5523 = vmatpush.bf16.msra.mxu1 %v8418_v30  ;;  %v5297_v53 = vpop.f32.mrf.mxu3 }
 0x210   :  { %5536 = vmatpush.bf16.msra.mxu2 %v8426_v31  ;;  %v5590_v53 = vld [vmem:[%s10296_s3 + $0x18] sm:$0xff] }
 0x211   :  { %5549 = vmatpush.bf16.msra.mxu3 %v8434_v33 }
 0x212   :  { %5511 = vmatpush.bf16.msra.mxu0 %v8409_v34 }
 0x213   :  { %5524 = vmatpush.bf16.msra.mxu1 %v8417_v35 }
 0x214   :  { %5537 = vmatpush.bf16.msra.mxu2 %v8425_v36 }
 0x215   :  { %5550 = vmatpush.bf16.msra.mxu3 %v8433_v39 }
 0x216   :  { %5512 = vmatpush.bf16.msra.mxu0 %v8408_v43 }
 0x217   :  { %5525 = vmatpush.bf16.msra.mxu1 %v8416_v45 }
 0x218   :  { %5538 = vmatpush.bf16.msra.mxu2 %v8424_v46 }
 0x219   :  { %5551 = vmatpush.bf16.msra.mxu3 %v8432_v47 }
 0x21a   :  { %5513 = vmatpush.bf16.msra.mxu0 %v8407_v48 }
 0x21b   :  { %5526 = vmatpush.bf16.msra.mxu1 %v8415_v49 }
 0x21c   :  { %5539 = vmatpush.bf16.msra.mxu2 %v8423_v50 }
 0x21d   :  { %5552 = vmatpush.bf16.msra.mxu3 %v8431_v52 }
 0x21e   :  { %5514 = vmatpush.bf16.msra.mxu0 %v8406_v54  ;;  %v5308_v4 = vpop.f32.mrf.mxu0  ;;  %v5589_v54 = vld [vmem:[%s10296_s3 + $0x10] sm:$0xff] }
 0x21f   :  { %5527 = vmatpush.bf16.msra.mxu1 %v8414_v55  ;;  %v5309_v5 = vadd.f32 %v5308_v4, %v5296_v42  ;;  %v5321_v7 = vpop.f32.mrf.mxu1 }
 0x220   :  { %5540 = vmatpush.bf16.msra.mxu2 %v8422_v56 }
 0x221   :  { %5553 = vmatpush.bf16.msra.mxu3 %v8430_v59  ;;  %5515 = vmatmul.bf16.vlgmr.msra.gmra.mxu0 %v1239_v60  ;;  %v5322_v9 = vadd.f32 %v5321_v7, %v5309_v5 }
 0x222   :  { %5559 = vmatpush.bf16.msrb.mxu0 %v8445_v57  ;;  %5528 = vmatmul.bf16.vlgmr.msra.gmra.mxu1 %v1240_v62 }
 0x223   :  { %5572 = vmatpush.bf16.msrb.mxu1 %v8453_v58  ;;  %5541 = vmatmul.bf16.vlgmr.msra.gmra.mxu2 %v1241_v61  ;;  %v5588_v58 = vld [vmem:[%s10296_s3 + $0x8] sm:$0xff] }
 0x224   :  { %5554 = vmatmul.bf16.vlgmr.msra.gmra.mxu3 %v1242_v0  ;;  %5611 = vmatpush.msrb.mxu2 %v5590_v53  ;;  %v5587_v0 = vld [vmem:[%s10296_s3] sm:$0xff]  ;;  %s8510_s3 = smov [#allocation2]  }
 0x225   :  { %s5626_s27 = sshll.u32 %s8510_s3, 4  ;;  %s5627_s27 = int_to_ptr.vmem [resolvable:$true] %s5626_s27 }
 0x226   :  { %5560 = vmatpush.bf16.msrb.mxu0 %v8444_v63  ;;  %v5334_v12 = vpop.f32.mrf.mxu2  ;;  %v5310_v15 = vpop.f32.mrf.mxu0  ;;  %5612 = vmatpush.msrb.mxu2 %v5589_v54 }
 0x227   :  { %5573 = vmatpush.bf16.msrb.mxu1 %v8452_v1  ;;  %v5335_v13 = vadd.f32 %v5334_v12, %v5322_v9  ;;  %v5347_v14 = vpop.f32.mrf.mxu3  ;;  %v5323_v18 = vpop.f32.mrf.mxu1 }
 0x228   :  { %5613 = vmatpush.msrb.mxu2 %v5588_v58 }
 0x229   :  { %v5348_v16 = vadd.f32 %v5347_v14, %v5335_v13 }
 0x22a   :  { %5561 = vmatpush.bf16.msrb.mxu0 %v8443_v2  ;;  %5614 = vmatpush.msrb.mxu2 %v5587_v0 }
 0x22b   :  { %5574 = vmatpush.bf16.msrb.mxu1 %v8451_v3 }
 0x22e   :  { %5562 = vmatpush.bf16.msrb.mxu0 %v8442_v6  ;;  %v5336_v22 = vpop.f32.mrf.mxu2 }
 0x22f   :  { %5575 = vmatpush.bf16.msrb.mxu1 %v8450_v8  ;;  %v5349_v23 = vpop.f32.mrf.mxu3  ;;  %v8457_v22 = vld [vmem:[%s10297_s4] ss:$0 sm:$0xff] }
 0x232   :  { %5563 = vmatpush.bf16.msrb.mxu0 %v8441_v10 }
 0x233   :  { %5576 = vmatpush.bf16.msrb.mxu1 %v8449_v11 }
 0x236   :  { %5564 = vmatpush.bf16.msrb.mxu0 %v8440_v17 }
 0x237   :  { %5577 = vmatpush.bf16.msrb.mxu1 %v8448_v19 }
 0x23a   :  { %5565 = vmatpush.bf16.msrb.mxu0 %v8439_v20 }
 0x23b   :  { %5578 = vmatpush.bf16.msrb.mxu1 %v8447_v21 }
 0x23e   :  { %5566 = vmatpush.bf16.msrb.mxu0 %v8438_v24  ;;  %v5360_v28 = vpop.f32.mrf.mxu0 }
 0x23f   :  { %5579 = vmatpush.bf16.msrb.mxu1 %v8446_v25  ;;  %v5361_v29 = vadd.f32 %v5360_v28, %v5348_v16  ;;  %v5373_v30 = vpop.f32.mrf.mxu1 }
 0x241   :  { %5567 = vmatmul.bf16.vlgmr.msrb.gmra.mxu0 %v1243_v26  ;;  %v5374_v31 = vadd.f32 %v5373_v30, %v5361_v29 }
 0x242   :  { %5580 = vmatmul.bf16.vlgmr.msrb.gmra.mxu1 %v1244_v27 }
 0x246   :  { %v5386_v32 = vpop.f32.mrf.mxu2  ;;  %v5362_v35 = vpop.f32.mrf.mxu0 }
 0x247   :  { %v5387_v33 = vadd.f32 %v5386_v32, %v5374_v31  ;;  %v5399_v34 = vpop.f32.mrf.mxu3  ;;  %v5375_v37 = vpop.f32.mrf.mxu1 }
 0x249   :  { %v5400_v36 = vadd.f32 %v5399_v34, %v5387_v33 }
 0x24e   :  { %v5388_v38 = vpop.f32.mrf.mxu2 }
 0x24f   :  { %v5401_v39 = vpop.f32.mrf.mxu3 }
 0x25e   :  { %v5412_v40 = vpop.f32.mrf.mxu0 }
 0x25f   :  { %v5413_v41 = vadd.f32 %v5412_v40, %v5400_v36  ;;  %v5425_v42 = vpop.f32.mrf.mxu1 }
 0x261   :  { %v5426_v43 = vadd.f32 %v5425_v42, %v5413_v41 }
 0x266   :  { %v5438_v44 = vpop.f32.mrf.mxu2  ;;  %v5414_v46 = vpop.f32.mrf.mxu0 }
 0x267   :  { %v5451_v45 = vpop.f32.mrf.mxu3  ;;  %v5427_v47 = vpop.f32.mrf.mxu1  ;;  %v5439_v62 = vadd.f32 %v5438_v44, %v5426_v43 }
 0x269   :  { %v5452_v1 = vadd.f32 %v5451_v45, %v5439_v62 }
 0x26e   :  { %v5440_v48 = vpop.f32.mrf.mxu2 }
 0x26f   :  { %v5453_v49 = vpop.f32.mrf.mxu3 }
 0x27e   :  { %v5464_v50 = vpop.f32.mrf.mxu0 }
 0x27f   :  { %v5477_v51 = vpop.f32.mrf.mxu1  ;;  %v5465_v2 = vadd.f32 %v5464_v50, %v5452_v1 }
 0x281   :  { %v5478_v7 = vadd.f32 %v5477_v51, %v5465_v2 }
 0x286   :  { %v5490_v52 = vpop.f32.mrf.mxu2  ;;  %v5466_v56 = vpop.f32.mrf.mxu0 }
 0x287   :  { %v5503_v55 = vpop.f32.mrf.mxu3  ;;  %v5479_v57 = vpop.f32.mrf.mxu1  ;;  %v5491_v8 = vadd.f32 %v5490_v52, %v5478_v7 }
 0x289   :  { %v5504_v10 = vadd.f32 %v5503_v55, %v5491_v8 }
 0x28e   :  { %v5492_v59 = vpop.f32.mrf.mxu2 }
 0x28f   :  { %v5505_v60 = vpop.f32.mrf.mxu3 }
 0x29e   :  { %v5516_v61 = vpop.f32.mrf.mxu0 }
 0x29f   :  { %v5529_v63 = vpop.f32.mrf.mxu1  ;;  %v5517_v12 = vadd.f32 %v5516_v61, %v5504_v10 }
 0x2a1   :  { %v5530_v13 = vadd.f32 %v5529_v63, %v5517_v12 }
 0x2a6   :  { %v5542_v3 = vpop.f32.mrf.mxu2  ;;  %v5518_v4 = vpop.f32.mrf.mxu0 }
 0x2a7   :  { %v5555_v5 = vpop.f32.mrf.mxu3  ;;  %v5531_v6 = vpop.f32.mrf.mxu1  ;;  %v5543_v14 = vadd.f32 %v5542_v3, %v5530_v13 }
 0x2a9   :  { %v5556_v15 = vadd.f32 %v5555_v5, %v5543_v14 }
 0x2ae   :  { %v5544_v9 = vpop.f32.mrf.mxu2 }
 0x2af   :  { %v5557_v11 = vpop.f32.mrf.mxu3 }
 0x2be   :  { %v5568_v16 = vpop.f32.mrf.mxu0 }
 0x2bf   :  { %v5569_v17 = vadd.f32 %v5568_v16, %v5556_v15  ;;  %v5581_v18 = vpop.f32.mrf.mxu1 }
 0x2c1   :  { %v5582_v19 = vadd.f32 %v5581_v18, %v5569_v17 }
 0x2c3   :  { %7893 = vmatmul.msk.f32.vlgmr.msrb.gmra.mxu2 %vm5595_vm0, %v5582_v19  ;;  %5586 = vst.msk [vmem:[#allocation2] sm:$0x3] %vm5585_vm1, %v5582_v19 }
 0x2c4   :  { %5631 = dma.vmem_to_hbm [thread:$0]  %s5627_s27, 32, %s5629_s30, [#allocation3]  }
 0x2c6   :  { %v5570_v20 = vpop.f32.mrf.mxu0 }
 0x2c7   :  { %v5583_v21 = vpop.f32.mrf.mxu1 }
 0x346   :  { %v5616_v23 = vpop.f32.mrf.mxu2 }
 0x347   :  { %v5617_v24 = vadd.f32 %v8457_v22, %v5616_v23 }
 0x349   :  { %5620 = vst.msk [vmem:[#allocation4] sm:$0x3] %vm5619_vm2, %v5617_v24 }
 0x34a   :  { %5642 = dma.vmem_to_hbm [thread:$0]  %s5638_s10, 32, %s5640_s13, [#allocation5]  }
 0x34b   :  { %8506 = dma.done.wait [#allocation3], 32  }
 0x34c   :  { %8507 = vsyncadd [#allocation3], 4294967264 }
 0x34d   :  { %8508 = dma.done.wait [#allocation5], 32  }
 0x34e   :  { %8509 = vsyncadd [#allocation5], 4294967264 }
 0x34f   :  { %5651 = vsyncpa [#allocation3], 1 }
 0x350   :  { %5652 = vsyncpa [#allocation5], 1 }

// kernel: net_forward.2
= control target key start
LH: loop header
LB: loop body
LE: loop exit
PB: predicated region body
PF: predicated region fallthrough
CT: control target
= control target key end

     0   :  { %s7398_s22 = smov 96   ;;  %s7399_s23 = smov 64   ;;  %vm10673_vm0 = vcmask 1041408   ;;  %vm162_vm1 = vsmask.f32 1280  ;;  %vm10671_vm2 = vcmask 1045508   ;;  %s10664_s0 = inlined_call_operand.vmem [shape: bf16[2,3,1056], index: 0, kind: input, shape index: {}]   ;;  %s10665_s1 = inlined_call_operand.vmem [shape: bf16[5,10,15], index: 1, kind: input, shape index: {}]   ;;  %s10666_s4 = inlined_call_operand.vmem [shape: f32[10,3], index: 4, kind: input, shape index: {}]   ;;  %s10667_s2 = inlined_call_operand.vmem [shape: bf16[3,10,30], index: 2, kind: input, shape index: {}]   ;;  %s10668_s3 = inlined_call_operand.vmem [shape: bf16[3,10,30], index: 3, kind: input, shape index: {}]   ;;  %s10669_s5 = inlined_call_operand.vmem [shape: bf16[2,10,896], index: 5, kind: output, shape index: {}]  }
   0x1   :  { %v147_v0 = vld [vmem:[%s10664_s0 + $0x8] sm:$0xff]  ;;  %v146_v1 = vld [vmem:[%s10664_s0] sm:$0xff]  ;;  %v6848_v51 = vld [vmem:[%s10664_s0 + $0x12] sm:$0xff]  ;;  %s7400_s7 = smov 32   ;;  %vm165_vm3 = vsmask.f32 5376 }
   0x2   :  { %152 = vst [vmem:[#allocation1 + $0x10] ss:$2 sm:$0xff] %v147_v0  ;;  %v447_v32 = vld [vmem:[%s10664_s0 + $0xa] sm:$0xff]  ;;  %v446_v39 = vld [vmem:[%s10664_s0 + $0x2] sm:$0xff]  ;;  %v6849_v43 = vld [vmem:[%s10664_s0 + $0x1a] sm:$0xff]  ;;  %vm10672_vm4 = vcmask 29700  }
   0x3   :  { %149 = vst [vmem:[#allocation1] ss:$2 sm:$0xff] %v146_v1  ;;  %vm7508_vm5 = vmand %vm10673_vm0, %vm162_vm1  ;;  %vm247_vm10 = vcmask 1042433   ;;  %vm248_vm11 = vsmask.f32 7942  ;;  %vm250_vm12 = vcmask 1046533  }
   0x4   :  { %vm166_vm6 = vmand %vm10671_vm2, %vm165_vm3  ;;  %vm251_vm13 = vsmask.f32 7958  ;;  %vm10675_vm1 = vcmask 1043456   ;;  %vm478_vm2 = vcmask 31750   ;;  %s7401_s8 = smov 127   ;;  %s7402_s9 = smov 126  }
   0x5   :  { %vm7514_vm7 = vmand %vm10672_vm4, %vm165_vm3  ;;  %vm10674_vm3 = vcmask 785408   ;;  %s7403_s10 = smov 125   ;;  %s7404_s11 = smov 124  }
   0x6   :  { %vm10670_vm8 = vmor %vm7514_vm7, %vm7508_vm5  ;;  %s7408_s18 = smov 33  }
   0x7   :  { %vm7524_vm9 = vmor %vm166_vm6, %vm7508_vm5 }
   0x8   :  { %vm7542_vm14 = vmand %vm247_vm10, %vm248_vm11  ;;  %vm10677_vm10 = vcmask 1043458   ;;  %vm463_vm11 = vsmask.f32 3328 }
   0x9   :  { %v7448_v2 = vld.sshfl [vmem:[#allocation1 + $0x10] sm:$0xff pattern:$0x75643120]  ;;  %v7450_v3 = vld.sshfl [vmem:[#allocation1 + $0x18] sm:$0xff pattern:$0x75643120]  ;;  %vm252_vm15 = vmand %vm250_vm12, %vm251_vm13 }
   0xa   :  { %189 = vst [vmem:[#allocation1 + $0x10] ss:$2 sm:$0xff] %v147_v0  ;;  %v7452_v4 = vld.sshfl [vmem:[#allocation1] sm:$0xff pattern:$0x75643120]  ;;  %vm7550_vm6 = vmor %vm252_vm15, %vm7542_vm14  ;;  %vm465_vm12 = vcmask 1047558  }
   0xb   :  { %v7454_v5 = vld.sshfl [vmem:[#allocation1 + $0x8] sm:$0xff pattern:$0x75643120]  ;;  %vm7562_vm15 = vmand %vm10677_vm10, %vm463_vm11  ;;  %vm362_vm10 = vcmask 28676  }
   0xc   :  { %186 = vst [vmem:[#allocation1] ss:$2 sm:$0xff] %v146_v1 }
  0x11   :  { %v193_v6 = vld.sshfl [vmem:[#allocation1 + $0x18] sm:$0xff pattern:$0x75643120]  ;;  %v192_v7 = vld.sshfl [vmem:[#allocation1 + $0x10] sm:$0xff pattern:$0x75643120] }
  0x12   :  { %v215_v8 = vshrl.u32 %v193_v6, 16  ;;  %v218_v9 = vshll.u32 %v193_v6, 16  ;;  %275 = vst [vmem:[#allocation1 + $0x10] ss:$2 sm:$0xff] %v147_v0  ;;  %v208_v16 = vshrl.u32 %v192_v7, 16  ;;  %v211_v20 = vshll.u32 %v192_v7, 16 }
  0x13   :  { %v191_v10 = vld.sshfl [vmem:[#allocation1 + $0x8] sm:$0xff pattern:$0x75643120]  ;;  %v7456_v11 = vld.sshfl [vmem:[#allocation1] sm:$0xff pattern:$0x75643120] }
  0x14   :  { %v217_v12 = vrot.slane %v215_v8, 6  ;;  %v220_v13 = vrot.slane %v218_v9, 7  ;;  %v201_v14 = vshrl.u32 %v191_v10, 16  ;;  %v204_v15 = vshll.u32 %v191_v10, 16  ;;  %272 = vst [vmem:[#allocation1] ss:$2 sm:$0xff] %v146_v1 }
  0x15   :  { %v210_v26 = vrot.slane %v208_v16, 6  ;;  %v213_v27 = vrot.slane %v211_v20, 7  ;;  %v194_v53 = vshrl.u32 %v7456_v11, 16  ;;  %v197_v54 = vshll.u32 %v7456_v11, 16  ;;  %v174_v20 = vld [vmem:[#allocation4 + $0x10] sm:$0x33] }
  0x16   :  { %v221_v17 = vor.u32 %v220_v13, %v217_v12  ;;  %v203_v18 = vrot.slane %v201_v14, 6  ;;  %v206_v19 = vrot.slane %v204_v15, 7  ;;  %v10800_v14 = vmov 0  ;;  %v180_v15 = vld [vmem:[#allocation4 + $0x18] sm:$0x33] }
  0x17   :  { %v214_v31 = vor.u32 %v213_v27, %v210_v26  ;;  %v196_v60 = vrot.slane %v194_v53, 6  ;;  %v199_v61 = vrot.slane %v197_v54, 7  ;;  %v10801_v14 = vsel %vm7508_vm5, 4294967295, %v10800_v14 }
  0x18   :  { %228 = vrot.lane.b32.xlu1 %v221_v17, %s7398_s22  ;;  %v207_v21 = vor.u32 %v206_v19, %v203_v18  ;;  %10802 = vst [vmem:[#allocation9_spill] sm:$0xff] %v10801_v14  ;;  %v10803_v16 = vmov 0  ;;  %v10806_v17 = vmov 0  ;;  %v171_v18 = vld [vmem:[#allocation4 + $0x8] sm:$0x33]  ;;  %v181_v19 = vsel %vm10670_vm8, %v7450_v3, %v180_v15 }
  0x19   :  { %v280_v22 = vld.sshfl [vmem:[#allocation1 + $0x10] sm:$0xff pattern:$0x75643120]  ;;  %v282_v23 = vld.sshfl [vmem:[#allocation1 + $0x18] sm:$0xff pattern:$0x75643120]  ;;  %v200_v7 = vor.u32 %v199_v61, %v196_v60 }
  0x1a   :  { %v286_v24 = vrot.slane %v280_v22, 5  ;;  %v287_v25 = vrot.slane %v282_v23, 5  ;;  %374 = vst [vmem:[#allocation1 + $0x10] ss:$2 sm:$0xff] %v147_v0  ;;  %224 = vrot.lane.b32.xlu2 %v207_v21, %s7398_s22  ;;  %v10804_v16 = vsel %vm7514_vm7, 4294967295, %v10803_v16  ;;  %v10807_v17 = vsel %vm7524_vm9, 4294967295, %v10806_v17 }
  0x1b   :  { %v7460_v28 = vld.sshfl [vmem:[#allocation1] sm:$0xff pattern:$0x75643120]  ;;  %v278_v29 = vld.sshfl [vmem:[#allocation1 + $0x8] sm:$0xff pattern:$0x75643120]  ;;  %v172_v21 = vsel %vm7524_vm9, %v7454_v5, %v171_v18  ;;  %v175_v22 = vsel %vm7524_vm9, %v7448_v2, %v174_v20 }
  0x1c   :  { %296 = vrot.lane.b32.xlu0 %v286_v24, %s7399_s23  ;;  %v291_v30 = vrot.slane %v287_v25, 4  ;;  %371 = vst [vmem:[#allocation1] ss:$2 sm:$0xff] %v146_v1  ;;  %v284_v33 = vrot.slane %v7460_v28, 5  ;;  %v285_v37 = vrot.slane %v278_v29, 5  ;;  %v290_v59 = vrot.slane %v286_v24, 4 }
  0x1d   :  { %10805 = vst [vmem:[#allocation10_spill] sm:$0xff] %v10804_v16  ;;  %v10809_v3 = vmov 0  ;;  %v10812_v2 = vmov 0  ;;  %vm466_vm8 = vsmask.f32 7424  ;;  %v10833_v53 = vmov 0 }
  0x1e   :  { %v288_v36 = vrot.slane %v284_v33, 4  ;;  %v289_v44 = vrot.slane %v285_v37, 4  ;;  %10808 = vst [vmem:[#allocation11_spill] sm:$0xff] %v10807_v17  ;;  %v10810_v3 = vsel %vm7542_vm14, 4294967295, %v10809_v3  ;;  %v10813_v2 = vsel %vm7550_vm6, 4294967295, %v10812_v2  ;;  %vm467_vm4 = vmand %vm465_vm12, %vm466_vm8 }
  0x1f   :  { %182 = vst [vmem:[#allocation4 + $0x18] sm:$0x33] %v181_v19  ;;  %vm7568_vm0 = vmor %vm467_vm4, %vm7562_vm15  ;;  %vm10827_vm12 = vcmask 1043456   ;;  %v469_v61 = vld [vmem:[#allocation4 + $0x20] sm:$0xcc] }
  0x20   :  { %306 = vrot.lane.b32.xlu1 %v291_v30, %s7399_s23  ;;  %173 = vst [vmem:[#allocation4 + $0x8] sm:$0x33] %v172_v21  ;;  %v10815_v30 = vmov 0 }
  0x21   :  { %v377_v34 = vld.sshfl [vmem:[#allocation1 + $0x10] sm:$0xff pattern:$0x75643120]  ;;  %v378_v35 = vld.sshfl [vmem:[#allocation1 + $0x18] sm:$0xff pattern:$0x75643120] }
  0x22   :  { %226 = vrot.lane.b32.xlu2 %v214_v31, %s7398_s22  ;;  %453 = vst [vmem:[#allocation1 + $0x11] ss:$2 sm:$0xff] %v447_v32  ;;  %v391_v38 = vshrl.u32 %v377_v34, 16  ;;  %v397_v42 = vshrl.u32 %v378_v35, 16  ;;  %v394_v46 = vshll.u32 %v377_v34, 16  ;;  %v400_v50 = vshll.u32 %v378_v35, 16 }
  0x23   :  { %v376_v40 = vld.sshfl [vmem:[#allocation1 + $0x8] sm:$0xff pattern:$0x75643120]  ;;  %v375_v41 = vld.sshfl [vmem:[#allocation1] sm:$0xff pattern:$0x75643120] }
  0x24   :  { %298 = vrot.lane.b32.xlu0 %v287_v25, %s7399_s23  ;;  %450 = vst [vmem:[#allocation1 + $0x1] ss:$2 sm:$0xff] %v446_v39  ;;  %v393_v45 = vrot.slane %v391_v38, 7  ;;  %v399_v49 = vrot.slane %v397_v42, 7  ;;  %v379_v58 = vshrl.u32 %v375_v41, 16  ;;  %v385_v62 = vshrl.u32 %v376_v40, 16 }
  0x25   :  { %v382_v6 = vshll.u32 %v375_v41, 16  ;;  %v388_v9 = vshll.u32 %v376_v40, 16  ;;  %176 = vst [vmem:[#allocation4 + $0x10] sm:$0x33] %v175_v22  ;;  %v10816_v30 = vsel %vm7562_vm15, 4294967295, %v10815_v30  ;;  %v10818_v31 = vmov 0 }
  0x26   :  { %v396_v52 = vor.u32 %v394_v46, %v393_v45  ;;  %v402_v57 = vor.u32 %v400_v50, %v399_v49  ;;  %v381_v1 = vrot.slane %v379_v58, 7  ;;  %v387_v8 = vrot.slane %v385_v62, 7  ;;  %10811 = vst [vmem:[#allocation12_spill] sm:$0xff] %v10810_v3  ;;  %v481_v32 = vld [vmem:[#allocation4 + $0x38] sm:$0xcc] }
  0x27   :  { %10814 = vst [vmem:[#allocation13_spill] sm:$0xff] %v10813_v2  ;;  %v257_v26 = vld [vmem:[#allocation4 + $0x8] sm:$0x66]  ;;  %v10819_v31 = vsel %vm7568_vm0, 4294967295, %v10818_v31  ;;  %v475_v35 = vld [vmem:[#allocation4 + $0x30] sm:$0xcc] }
  0x28   :  { %300 = vrot.lane.b32.xlu1 %v288_v36, %s7399_s23  ;;  %v384_v12 = vor.u32 %v382_v6, %v381_v1  ;;  %v390_v13 = vor.u32 %v388_v9, %v387_v8  ;;  %10817 = vst [vmem:[#allocation14_spill] sm:$0xff] %v10816_v30  ;;  %v10824_v36 = vmov 0  ;;  %v168_v38 = vld [vmem:[#allocation4] sm:$0x33]  ;;  %v266_v42 = vld [vmem:[#allocation4 + $0x18] sm:$0x66] }
  0x29   :  { %v7477_v47 = vld.sshfl [vmem:[#allocation1 + $0x10] sm:$0xff pattern:$0x75643120]  ;;  %v7479_v48 = vld.sshfl [vmem:[#allocation1 + $0x18] sm:$0xff pattern:$0x75643120]  ;;  %v169_v39 = vsel %vm7524_vm9, %v7452_v4, %v168_v38 }
  0x2a   :  { %294 = vrot.lane.b32.xlu2 %v285_v37, %s7399_s23  ;;  %3391 = vst [vmem:[#allocation1 + $0x10] ss:$2 sm:$0xff] %v6849_v43  ;;  %v476_v37 = vsel %vm7568_vm0, %v7477_v47, %v475_v35  ;;  %v472_v6 = vld [vmem:[#allocation4 + $0x28] sm:$0xcc] }
  0x2b   :  { %v7488_v55 = vld.sshfl [vmem:[#allocation1] sm:$0xff pattern:$0x75643120]  ;;  %v7490_v56 = vld.sshfl [vmem:[#allocation1 + $0x8] sm:$0xff pattern:$0x75643120] }
  0x2c   :  { %302 = vrot.lane.b32.xlu0 %v289_v44, %s7399_s23  ;;  %3388 = vst [vmem:[#allocation1] ss:$2 sm:$0xff] %v6848_v51  ;;  %v260_v44 = vld [vmem:[#allocation4 + $0x10] sm:$0x66] }
  0x2d   :  { %10820 = vst [vmem:[#allocation15_spill] sm:$0xff] %v10819_v31 }
  0x2e   :  { %477 = vst [vmem:[#allocation4 + $0x30] sm:$0xcc] %v476_v37 }
  0x2f   :  { %170 = vst [vmem:[#allocation4] sm:$0x33] %v169_v39 }
  0x30   :  { %407 = vrot.lane.b32.xlu1 %v396_v52, %s7400_s7  ;;  %v10830_v52 = vmov 0 }
  0x31   :  { %v7493_v63 = vld.sshfl [vmem:[#allocation1 + $0x10] sm:$0xff pattern:$0x75643120]  ;;  %v7495_v0 = vld.sshfl [vmem:[#allocation1 + $0x18] sm:$0xff pattern:$0x75643120] }
  0x32   :  { %10796 = vst [vmem:[#allocation5_spill] sm:$0xff] %v7493_v63  ;;  %409 = vrot.lane.b32.xlu2 %v402_v57, %s7400_s7 }
  0x33   :  { %10797 = vst [vmem:[#allocation6_spill] sm:$0xff] %v7495_v0  ;;  %v7499_v10 = vld.sshfl [vmem:[#allocation1] sm:$0xff pattern:$0x75643120] }
  0x34   :  { %3418 = vst [vmem:[#allocation1 + $0x10] ss:$2 sm:$0xff] %v6849_v43  ;;  %304 = vrot.lane.b32.xlu0 %v290_v59, %s7399_s23  ;;  %v7501_v11 = vld.sshfl [vmem:[#allocation1 + $0x8] sm:$0xff pattern:$0x75643120] }
  0x35   :  { %10798 = vst [vmem:[#allocation7_spill] sm:$0xff] %v7499_v10  ;;  %v365_v59 = vld [vmem:[#allocation4 + $0x38] sm:$0x11] }
  0x36   :  { %10799 = vst [vmem:[#allocation8_spill] sm:$0xff] %v7501_v11 }
  0x37   :  { %3415 = vst [vmem:[#allocation1] ss:$2 sm:$0xff] %v6848_v51 }
  0x38   :  { %222 = vrot.lane.b32.xlu1 %v200_v7, %s7398_s22  ;;  %v470_v7 = vsel %vm7568_vm0, %v7488_v55, %v469_v61  ;;  %v10841_v55 = vmov 0 }
  0x39   :  { %471 = vst [vmem:[#allocation4 + $0x20] sm:$0xcc] %v470_v7 }
  0x3a   :  { %403 = vrot.lane.b32.xlu2 %v384_v12, %s7400_s7  ;;  %v473_v12 = vsel %vm7568_vm0, %v7490_v56, %v472_v6  ;;  %vm10847_vm0 = vcmask 29700   ;;  %v10848_v56 = vmov 0 }
  0x3b   :  { %474 = vst [vmem:[#allocation4 + $0x28] sm:$0xcc] %v473_v12 }
  0x3c   :  { %405 = vrot.lane.b32.xlu0 %v390_v13, %s7400_s7  ;;  %v10837_v13 = vmov 0 }
  0x44   :  { %292 = vrot.lane.b32.xlu0 %v284_v33, %s7399_s23  ;;  %v10821_v33 = vmov 0 }
  0x74   :  { %v7540_v23 = vpop.permute.xlu2 %224 }
  0x75   :  { %v231_v24 = vrot.slane %v7540_v23, 4 }
  0x7c   :  { %v227_v5 = vpop.permute.xlu2 %226 }
  0x7d   :  { %v232_v25 = vrot.slane %v227_v5, 4 }
  0x7f   :  { %v238_v27 = vsel %vm10675_vm1, %v231_v24, %v232_v25  ;;  %vm7572_vm1 = vmand %vm478_vm2, %vm466_vm8  ;;  %vm10680_vm8 = vcmask 1040384  }
  0x80   :  { %v239_v28 = vsel %vm10674_vm3, %v7540_v23, %v238_v27  ;;  %vm263_vm3 = vcmask 30725   ;;  %v10822_v33 = vsel %vm7572_vm1, 4294967295, %v10821_v33  ;;  %vm10676_vm11 = vmor %vm7572_vm1, %vm7562_vm15  ;;  %vm10846_vm1 = vsmask.f32 7954 }
  0x81   :  { %v258_v29 = vsel %vm7550_vm6, %v239_v28, %v257_v26  ;;  %10823 = vst [vmem:[#allocation16_spill] sm:$0xff] %v10822_v33  ;;  %v482_v34 = vsel %vm10676_vm11, %v7479_v48, %v481_v32  ;;  %vm7587_vm4 = vmand %vm263_vm3, %vm251_vm13  ;;  %vm347_vm13 = vsmask.f32 256  ;;  %vm10681_vm3 = vsmask.f32 4352 }
  0x82   :  { %259 = vst [vmem:[#allocation4 + $0x8] sm:$0x66] %v258_v29  ;;  %v10825_v36 = vsel %vm7587_vm4, 4294967295, %v10824_v36  ;;  %vm10679_vm2 = vmor %vm7587_vm4, %vm7542_vm14  ;;  %vm10828_vm11 = vcmask 785408   ;;  %vm10840_vm14 = vcmask 1041408   ;;  %v10853_v32 = vmov 0 }
  0x83   :  { %10826 = vst [vmem:[#allocation17_spill] sm:$0xff] %v10825_v36  ;;  %vm10829_vm15 = vmmov %vm10828_vm11 }
  0x84   :  { %483 = vst [vmem:[#allocation4 + $0x38] sm:$0xcc] %v482_v34  ;;  %v7597_v41 = vpop.permute.xlu2 %294  ;;  %v353_v34 = vld [vmem:[#allocation4 + $0x20] sm:$0x11] }
  0x85   :  { %v309_v4 = vrot.slane %v7597_v41, 4 }
  0x8a   :  { %v229_v40 = vpop.permute.xlu1 %228 }
  0x8b   :  { %v233_v43 = vrot.slane %v229_v40, 4 }
  0x8c   :  { %v7634_v1 = vpop.permute.xlu2 %409 }
  0x8d   :  { %v240_v45 = vsel %vm10827_vm12, %v232_v25, %v233_v43  ;;  %v242_v46 = vsel %vm10828_vm11, %v229_v40, %v233_v43  ;;  %vm10682_vm12 = vcmask 523264   ;;  %vm7615_vm11 = vmand %vm10680_vm8, %vm347_vm13  ;;  %vm343_vm8 = vcmask 31751   ;;  %v356_v43 = vld [vmem:[#allocation4 + $0x28] sm:$0x11] }
  0x8e   :  { %v241_v47 = vsel %vm10829_vm15, %v227_v5, %v240_v45  ;;  %v267_v48 = vsel %vm10679_vm2, %v242_v46, %v266_v42  ;;  %v297_v49 = vpop.permute.xlu0 %296  ;;  %v10831_v52 = vsel %vm7615_vm11, 4294967295, %v10830_v52  ;;  %vm7620_vm15 = vmand %vm362_vm10, %vm10681_vm3  ;;  %vm10836_vm2 = vcmask 1043456  }
  0x8f   :  { %v261_v50 = vsel %vm7550_vm6, %v241_v47, %v260_v44  ;;  %268 = vst [vmem:[#allocation4 + $0x18] sm:$0x66] %v267_v48  ;;  %v310_v51 = vrot.slane %v297_v49, 4  ;;  %v10834_v53 = vsel %vm7620_vm15, 4294967295, %v10833_v53  ;;  %vm10685_vm13 = vmor %vm7620_vm15, %vm7615_vm11  ;;  %vm342_vm10 = vcmask 1043459  }
  0x90   :  { %10832 = vst [vmem:[#allocation18_spill] sm:$0xff] %v10831_v52  ;;  %vm427_vm3 = vsmask.f32 7938  ;;  %v414_v18 = vrot.slane %v7634_v1, 4  ;;  %vm10721_vm15 = vcmask 261120  }
  0x91   :  { %262 = vst [vmem:[#allocation4 + $0x10] sm:$0x66] %v261_v50  ;;  %v319_v54 = vsel %vm10836_vm2, %v309_v4, %v310_v51  ;;  %vm7652_vm4 = vmand %vm10840_vm14, %vm427_vm3  ;;  %v359_v44 = vld [vmem:[#allocation4 + $0x30] sm:$0x11] }
  0x92   :  { %10835 = vst [vmem:[#allocation19_spill] sm:$0xff] %v10834_v53  ;;  %v320_v57 = vsel %vm10682_vm12, %v7597_v41, %v319_v54  ;;  %v307_v58 = vpop.permute.xlu1 %306  ;;  %v10842_v55 = vsel %vm7652_vm4, 4294967295, %v10841_v55  ;;  %v422_v5 = vsel %vm10721_vm15, %v7634_v1, %v414_v18 }
  0x93   :  { %340 = vst [vmem:[#allocation4 + $0x8] sm:$0x88] %v320_v57  ;;  %v315_v60 = vrot.slane %v307_v58, 4 }
  0x94   :  { %10843 = vst [vmem:[#allocation21_spill] sm:$0xff] %v10842_v55  ;;  %v404_v48 = vpop.permute.xlu2 %403  ;;  %v21_v55 = vlaneseq }
  0x95   :  { %v330_v62 = vsel %vm10682_vm12, %v307_v58, %v315_v60  ;;  %vm7647_vm12 = vmor %vm343_vm8, %vm342_vm10  ;;  %vm10692_vm10 = vcmask 1044484   ;;  %v254_v58 = vld [vmem:[#allocation4] sm:$0x66] }
  0x96   :  { %v366_v8 = vsel %vm10685_vm13, %v330_v62, %v365_v59  ;;  %v299_v9 = vpop.permute.xlu0 %298  ;;  %v10838_v13 = vsel %vm7647_vm12, 4294967295, %v10837_v13  ;;  %vm10844_vm13 = vmmov %vm10836_vm2  ;;  %vm10845_vm2 = vcmask 523264  }
  0x97   :  { %367 = vst [vmem:[#allocation4 + $0x38] sm:$0x11] %v366_v8  ;;  %v311_v15 = vrot.slane %v299_v9, 4  ;;  %vm7661_vm8 = vmand %vm10847_vm0, %vm10846_vm1  ;;  %vm10852_vm0 = vsmask.f32 4352  ;;  %v10866_v8 = vmov 0 }
  0x98   :  { %10839 = vst [vmem:[#allocation20_spill] sm:$0xff] %v10838_v13  ;;  %v10849_v56 = vsel %vm7661_vm8, 4294967295, %v10848_v56  ;;  %vm10851_vm5 = vmmov %vm10845_vm2 }
  0x99   :  { %v321_v19 = vsel %vm10844_vm13, %v310_v51, %v311_v15  ;;  %v323_v20 = vsel %vm10845_vm2, %v299_v9, %v311_v15  ;;  %10850 = vst [vmem:[#allocation22_spill] sm:$0xff] %v10849_v56  ;;  %vm10691_vm14 = vmor %vm7661_vm8, %vm7652_vm4  ;;  %v8005_v56 = vand.u32 127, %v21_v55  ;;  %vm10903_vm8 = vcmask 1043456  }
  0x9a   :  { %v322_v21 = vsel %vm10851_vm5, %v297_v49, %v321_v19  ;;  %345 = vst.msk [vmem:[#allocation4 + $0x18] sm:$0x88] %vm7647_vm12, %v323_v20  ;;  %v301_v22 = vpop.permute.xlu1 %300  ;;  %vm351_vm1 = vmand %vm10692_vm10, %vm10852_vm0 }
  0x9b   :  { %341 = vst [vmem:[#allocation4 + $0x10] sm:$0x88] %v322_v21  ;;  %v312_v25 = vrot.slane %v301_v22, 4  ;;  %vm7683_vm5 = vmor %vm351_vm1, %vm7615_vm11  ;;  %v24_v53 = vadd.s32 256, %v8005_v56  ;;  %v25_v2 = vadd.s32 384, %v8005_v56  ;;  %v23_v31 = vadd.s32 128, %v8005_v56 }
  0x9c   :  { %v10854_v32 = vsel %vm7683_vm5, 4294967295, %v10853_v32  ;;  %vm10856_vm3 = vmmov %vm10844_vm13  ;;  %vm10918_vm11 = vcmask 269312  }
  0x9d   :  { %10855 = vst [vmem:[#allocation23_spill] sm:$0xff] %v10854_v32  ;;  %vm10857_vm13 = vmmov %vm10845_vm2  ;;  %v40_v11 = vand.u32 31, %v23_v31 }
  0x9e   :  { %v443_v26 = vld [vmem:[#allocation4 + $0x38] sm:$0x33]  ;;  %v303_v27 = vpop.permute.xlu0 %302  ;;  %vm10858_vm2 = vmmov %vm10856_vm3 }
  0x9f   :  { %v444_v28 = vsel %vm10691_vm14, %v422_v5, %v443_v26  ;;  %v313_v29 = vrot.slane %v303_v27, 4  ;;  %vm10859_vm0 = vmmov %vm10858_vm2  ;;  %vm10863_vm14 = vcmask 1045508  }
  0xa0   :  { %445 = vst [vmem:[#allocation4 + $0x38] sm:$0x33] %v444_v28  ;;  %vm10860_vm1 = vmmov %vm10857_vm13 }
  0xa1   :  { %v324_v35 = vsel %vm10856_vm3, %v312_v25, %v313_v29  ;;  %vm10861_vm3 = vmmov %vm10860_vm1 }
  0xa2   :  { %v325_v37 = vsel %vm10857_vm13, %v301_v22, %v324_v35  ;;  %v408_v38 = vpop.permute.xlu1 %407  ;;  %vm10862_vm13 = vsmask.f32 7954 }
  0xa3   :  { %v354_v39 = vsel %vm7683_vm5, %v325_v37, %v353_v34  ;;  %vm430_vm10 = vmand %vm10863_vm14, %vm10862_vm13  ;;  %v413_v61 = vrot.slane %v408_v38, 4  ;;  %v7185_v34 = vld [vmem:[#allocation4 + $0xc] sm:$0xf] }
  0xa4   :  { %355 = vst [vmem:[#allocation4 + $0x20] sm:$0x11] %v354_v39 }
  0xa6   :  { %v305_v40 = vpop.permute.xlu0 %304 }
  0xa7   :  { %v314_v42 = vrot.slane %v305_v40, 4 }
  0xa9   :  { %v326_v45 = vsel %vm10858_vm2, %v313_v29, %v314_v42  ;;  %v328_v46 = vsel %vm10859_vm0, %v314_v42, %v315_v60  ;;  %vm10864_vm2 = vmmov %vm10859_vm0  ;;  %v411_v60 = vrot.slane %v404_v48, 4  ;;  %vm10865_vm0 = vcmask 785408  }
  0xaa   :  { %v223_v47 = vpop.permute.xlu1 %222  ;;  %v327_v49 = vsel %vm10860_vm1, %v303_v27, %v326_v45  ;;  %v329_v50 = vsel %vm10861_vm3, %v305_v40, %v328_v46  ;;  %vm7709_vm1 = vmor %vm430_vm10, %vm7652_vm4  ;;  %v6555_v40 = vld [vmem:[#allocation4 + $0x10] sm:$0xf]  ;;  %v7193_v45 = vld [vmem:[#allocation4 + $0x34] sm:$0xf0] }
  0xab   :  { %v230_v51 = vrot.slane %v223_v47, 4  ;;  %v357_v54 = vsel %vm7683_vm5, %v327_v49, %v356_v43  ;;  %v360_v57 = vsel %vm7683_vm5, %v329_v50, %v359_v44  ;;  %v10867_v8 = vsel %vm7709_vm1, 4294967295, %v10866_v8  ;;  %vm10869_vm14 = vmmov %vm10864_vm2  ;;  %v432_v19 = vld [vmem:[#allocation4 + $0x20] sm:$0x33] }
  0xac   :  { %358 = vst [vmem:[#allocation4 + $0x28] sm:$0x11] %v357_v54  ;;  %vm10870_vm3 = vmmov %vm10864_vm2  ;;  %v6565_v54 = vld [vmem:[#allocation4 + $0x38] sm:$0xf0] }
  0xad   :  { %v235_v59 = vsel %vm10864_vm2, %v230_v51, %v231_v24  ;;  %361 = vst [vmem:[#allocation4 + $0x30] sm:$0x11] %v360_v57  ;;  %vm10871_vm13 = vmmov %vm10864_vm2 }
  0xae   :  { %v237_v62 = vsel %vm10865_vm0, %v223_v47, %v235_v59  ;;  %v406_v1 = vpop.permute.xlu0 %405  ;;  %10868 = vst [vmem:[#allocation24_spill] sm:$0xff] %v10867_v8  ;;  %v420_v9 = vsel %vm10871_vm13, %v413_v61, %v414_v18  ;;  %vm10872_vm10 = vmmov %vm10864_vm2  ;;  %vm10873_vm2 = vcmask 523264   ;;  %v7186_v59 = vld [vmem:[#allocation4 + $0x14] sm:$0xf]  ;;  %vm10723_vm0 = vcmask 1046528  }
  0xaf   :  { %v255_v6 = vsel %vm7550_vm6, %v237_v62, %v254_v58  ;;  %v412_v7 = vrot.slane %v406_v1, 4  ;;  %v421_v22 = vsel %vm10721_vm15, %v408_v38, %v420_v9  ;;  %v6547_v38 = vld [vmem:[#allocation4 + $0x8] sm:$0xf]  ;;  %v7192_v58 = vld [vmem:[#allocation4 + $0x1c] sm:$0xf]  ;;  %vm10720_vm13 = vcmask 121856   ;;  %vm10919_vm6 = vmmov %vm10918_vm11 }
  0xb0   :  { %256 = vst [vmem:[#allocation4] sm:$0x66] %v255_v6  ;;  %v7405_v6 = vmov 65535   ;;  %v7191_v9 = vld [vmem:[%s10665_s1 + $0x8] sm:$0x10] }
  0xb1   :  { %v418_v23 = vsel %vm10869_vm14, %v412_v7, %v413_v61  ;;  %v415_v24 = vsel %vm10870_vm3, %v411_v60, %v412_v7  ;;  %v6568_v60 = vor.u32 %v7192_v58, %v6565_v54  ;;  %vm10724_vm14 = vcmask 1039360  }
  0xb2   :  { %v419_v12 = vsel %vm10721_vm15, %v406_v1, %v418_v23  ;;  %v417_v15 = vsel %vm10721_vm15, %v404_v48, %v415_v24  ;;  %v6563_v48 = vld [vmem:[#allocation4 + $0x18] sm:$0xf]  ;;  %vm565_vm3 = vcmask 1047552   ;;  %v566_v7 = vsel %vm10723_vm0, 4294967295, %v7405_v6  ;;  %v6535_v24 = vld [vmem:[%s10665_s1 + $0x8] sm:$0xf] }
  0xb3   :  { %v433_v20 = vsel %vm7709_vm1, %v417_v15, %v432_v19  ;;  %v435_v21 = vld [vmem:[#allocation4 + $0x28] sm:$0x33]  ;;  %v6564_v51 = vor.u32 %v7193_v45, %v6563_v48  ;;  %v7805_v19 = vsel %vm565_vm3, %v566_v7, 0  ;;  %v7190_v45 = vld [vmem:[#allocation4 + $0x34] sm:$0xf0]  ;;  %vm10718_vm3 = vcmask 1014784  }
  0xb4   :  { %434 = vst [vmem:[#allocation4 + $0x20] sm:$0x33] %v433_v20  ;;  %v438_v5 = vld [vmem:[#allocation4 + $0x30] sm:$0x33]  ;;  %v436_v25 = vsel %vm7709_vm1, %v419_v12, %v435_v21  ;;  %vm1450_vm0 = vcmask 1040648  }
  0xb5   :  { %v439_v26 = vsel %vm7709_vm1, %v421_v22, %v438_v5  ;;  %437 = vst [vmem:[#allocation4 + $0x28] sm:$0x33] %v436_v25  ;;  %vm10904_vm1 = vcmask 269312  }
  0xb6   :  { %v293_v18 = vpop.permute.xlu0 %292  ;;  %440 = vst [vmem:[#allocation4 + $0x30] sm:$0x33] %v439_v26  ;;  %v6536_v26 = vor.u32 %v7191_v9, %v6535_v24 }
  0xb7   :  { %v308_v27 = vrot.slane %v293_v18, 4  ;;  %10874 = vst [vmem:[#allocation25_spill] sm:$0xff] %v7805_v19 }
  0xb9   :  { %v316_v28 = vsel %vm10872_vm10, %v308_v27, %v309_v4  ;;  %vm10722_vm10 = vcmask 1031168  }
  0xba   :  { %v318_v29 = vsel %vm10873_vm2, %v293_v18, %v316_v28  ;;  %vm10719_vm2 = vcmask 1022976  }
  0xbb   :  { %339 = vst [vmem:[#allocation4] sm:$0x88] %v318_v29  ;;  %v6541_v46 = vld [vmem:[#allocation4 + $0x20] sm:$0xf0]  ;;  %v7187_v47 = vld [vmem:[#allocation4 + $0x1c] sm:$0xf0] }
  0xbc   :  { %v6549_v35 = vld [vmem:[#allocation4 + $0x28] sm:$0xf0]  ;;  %v7188_v37 = vld [vmem:[#allocation4 + $0x24] sm:$0xf0] }
  0xbd   :  { %v7189_v39 = vld [vmem:[#allocation4 + $0x2c] sm:$0xf0]  ;;  %v7729_v42 = vor.u32 %v7185_v34, %v6549_v35  ;;  %v7731_v43 = vor.u32 %v7188_v37, %v6547_v38  ;;  %v6557_v57 = vld [vmem:[#allocation4 + $0x30] sm:$0xf0] }
  0xbe   :  { %v7733_v44 = vor.u32 %v7189_v39, %v6555_v40  ;;  %v7750_v61 = vor.u32 %v7186_v59, %v6557_v57 }
  0xbf   :  { %542 = vrot.lane.b32.xlu2 %v7729_v42, %s7401_s8  ;;  %540 = vrot.lane.b32.xlu1 %v7731_v43, %s7401_s8  ;;  %v710_v57 = vand.u32 %v7729_v42, %v7805_v19 }
  0xc0   :  { %544 = vrot.lane.b32.xlu0 %v7733_v44, %s7401_s8  ;;  %v713_v28 = vand.u32 %v7733_v44, %v7805_v19  ;;  %v716_v9 = vand.u32 %v7750_v61, %v7805_v19 }
  0xc2   :  { %v6539_v41 = vld [vmem:[#allocation4] sm:$0xf]  ;;  %v7184_v4 = vld [vmem:[#allocation4 + $0x4] sm:$0xf] }
  0xc3   :  { %v7741_v49 = vor.u32 %v7187_v47, %v6539_v41  ;;  %v7743_v50 = vor.u32 %v7184_v4, %v6541_v46 }
  0xc5   :  { %v701_v18 = vand.u32 %v7741_v49, %v7805_v19  ;;  %v704_v4 = vand.u32 %v7743_v50, %v7805_v19 }
  0xc7   :  { %536 = vrot.lane.b32.xlu1 %v7741_v49, %s7401_s8  ;;  %538 = vrot.lane.b32.xlu2 %v7743_v50, %s7401_s8 }
  0xc8   :  { %548 = vrot.lane.b32.xlu0 %v6564_v51, %s7401_s8 }
  0xcf   :  { %550 = vrot.lane.b32.xlu1 %v6568_v60, %s7401_s8  ;;  %546 = vrot.lane.b32.xlu2 %v7750_v61, %s7401_s8 }
  0xd0   :  { %827 = vrot.lane.b32.xlu0 %v7741_v49, %s7402_s9 }
  0xd7   :  { %829 = vrot.lane.b32.xlu1 %v7743_v50, %s7402_s9  ;;  %831 = vrot.lane.b32.xlu2 %v7731_v43, %s7402_s9 }
  0xd8   :  { %835 = vrot.lane.b32.xlu0 %v7733_v44, %s7402_s9 }
  0xdf   :  { %837 = vrot.lane.b32.xlu1 %v7750_v61, %s7402_s9  ;;  %839 = vrot.lane.b32.xlu2 %v6564_v51, %s7402_s9 }
  0xe0   :  { %833 = vrot.lane.b32.xlu0 %v7729_v42, %s7402_s9 }
  0xe7   :  { %997 = vrot.lane.b32.xlu1 %v7743_v50, %s7403_s10  ;;  %999 = vrot.lane.b32.xlu2 %v7731_v43, %s7403_s10 }
  0xe8   :  { %1001 = vrot.lane.b32.xlu0 %v7729_v42, %s7403_s10 }
  0xef   :  { %841 = vrot.lane.b32.xlu1 %v6568_v60, %s7402_s9  ;;  %995 = vrot.lane.b32.xlu2 %v7741_v49, %s7403_s10 }
  0xf0   :  { %1005 = vrot.lane.b32.xlu0 %v7750_v61, %s7403_s10 }
  0xf7   :  { %1007 = vrot.lane.b32.xlu1 %v6564_v51, %s7403_s10  ;;  %1009 = vrot.lane.b32.xlu2 %v6568_v60, %s7403_s10 }
  0xf8   :  { %1003 = vrot.lane.b32.xlu0 %v7733_v44, %s7403_s10 }
  0xff   :  { %1167 = vrot.lane.b32.xlu1 %v7731_v43, %s7404_s11  ;;  %1169 = vrot.lane.b32.xlu2 %v7729_v42, %s7404_s11 }
 0x100   :  { %1171 = vrot.lane.b32.xlu0 %v7733_v44, %s7404_s11  ;;  %v707_v44 = vand.u32 %v7731_v43, %v7805_v19  ;;  %v7183_v43 = vld [vmem:[%s10665_s1] sm:$0x10] }
 0x107   :  { %1163 = vrot.lane.b32.xlu1 %v7741_v49, %s7404_s11  ;;  %1165 = vrot.lane.b32.xlu2 %v7743_v50, %s7404_s11  ;;  %v6578_v49 = vld [vmem:[%s10665_s1] sm:$0xf] }
 0x108   :  { %1175 = vrot.lane.b32.xlu0 %v6564_v51, %s7404_s11  ;;  %v6582_v51 = vld [vmem:[#allocation4 + $0x18] sm:$0xf]  ;;  %v7840_v59 = vor.u32 %v7183_v43, %v6578_v49 }
 0x109   :  { %v6583_v50 = vor.u32 %v7190_v45, %v6582_v51 }
 0x10f   :  { %1177 = vrot.lane.b32.xlu1 %v6568_v60, %s7404_s11  ;;  %1173 = vrot.lane.b32.xlu2 %v7750_v61, %s7404_s11  ;;  %v719_v60 = vand.u32 %v6583_v50, %v7805_v19 }
 0x119   :  { %v543_v62 = vpop.permute.xlu2 %542 }
 0x121   :  { %v539_v1 = vpop.permute.xlu2 %538 }
 0x129   :  { %v547_v27 = vpop.permute.xlu2 %546 }
 0x131   :  { %v541_v23 = vpop.permute.xlu1 %540  ;;  %v832_v58 = vpop.permute.xlu2 %831 }
 0x132   :  { %v545_v12 = vpop.permute.xlu0 %544  ;;  %v554_v15 = vsel %vm10724_vm14, %v539_v1, %v541_v23  ;;  %v555_v20 = vsel %vm10724_vm14, %v541_v23, %v543_v62 }
 0x133   :  { %v572_v21 = vand.u32 %v7805_v19, %v554_v15  ;;  %v575_v22 = vand.u32 %v7805_v19, %v555_v20  ;;  %v556_v5 = vsel %vm10724_vm14, %v543_v62, %v545_v12  ;;  %v557_v34 = vsel %vm10724_vm14, %v545_v12, %v547_v27 }
 0x134   :  { %v578_v25 = vand.u32 %v7805_v19, %v556_v5  ;;  %v581_v41 = vand.u32 %v7805_v19, %v557_v34  ;;  %v6595_v34 = vld [vmem:[%s10665_s1 + $0x10] sm:$0xf] }
 0x135   :  { %610 = vmatpush.bf16.msra.mxu1 %v572_v21  ;;  %624 = vmatpush.bf16.msra.mxu2 %v575_v22 }
 0x136   :  { %638 = vmatpush.bf16.msra.mxu3 %v578_v25 }
 0x138   :  { %6570 = vmatmul.msk.bf16.vlgmr.msra.gmra.mxu1 %vm10720_vm13, %v6536_v26  ;;  %6571 = vmatmul.msk.bf16.vlgmr.msra.gmra.mxu2 %vm10720_vm13, %v6536_v26 }
 0x139   :  { %6572 = vmatmul.msk.bf16.vlgmr.msra.gmra.mxu3 %vm10720_vm13, %v6536_v26  ;;  %v537_v29 = vpop.permute.xlu1 %536  ;;  %v840_v24 = vpop.permute.xlu2 %839 }
 0x13a   :  { %728 = vmatpush.bf16.msrb.mxu3 %v701_v18  ;;  %v549_v35 = vpop.permute.xlu0 %548  ;;  %v553_v37 = vsel %vm10724_vm14, %v537_v29, %v539_v1 }
 0x13b   :  { %v569_v38 = vand.u32 %v7805_v19, %v553_v37  ;;  %v558_v39 = vsel %vm10724_vm14, %v547_v27, %v549_v35 }
 0x13c   :  { %v584_v40 = vand.u32 %v7805_v19, %v558_v39 }
 0x13d   :  { %596 = vmatpush.bf16.msra.mxu0 %v569_v38 }
 0x13e   :  { %784 = vmatpush.bf16.msra.mxu3 %v713_v28  ;;  %666 = vmatpush.bf16.msrb.mxu1 %v584_v40 }
 0x140   :  { %6569 = vmatmul.msk.bf16.vlgmr.msra.gmra.mxu0 %vm10720_vm13, %v6536_v26 }
 0x141   :  { %652 = vmatpush.bf16.msrb.mxu0 %v581_v41  ;;  %v551_v46 = vpop.permute.xlu1 %550  ;;  %v1000_v61 = vpop.permute.xlu2 %999 }
 0x142   :  { %756 = vmatpush.bf16.msra.mxu1 %v707_v44  ;;  %v828_v47 = vpop.permute.xlu0 %827  ;;  %v559_v48 = vsel %vm10724_vm14, %v549_v35, %v551_v46  ;;  %v7194_v35 = vld [vmem:[%s10665_s1 + $0x10] sm:$0x10]  ;;  %vm10888_vm14 = vcmask 1044484  }
 0x143   :  { %v587_v54 = vand.u32 %v7805_v19, %v559_v48  ;;  %v6596_v39 = vor.u32 %v7194_v35, %v6595_v34  ;;  %v10693_v34 = vmov 0   ;;  %vm8138_vm4 = vmor %vm10888_vm14, %vm1450_vm0  ;;  %vm140_vm0 = vcmask 778504  }
 0x144   :  { %7309 = vset.pattern.permute.xlu0 %v10693_v34  ;;  %7310 = vset.pattern.permute.xlu1 %v10693_v34  ;;  %vm10892_vm14 = vcmask 1043456  }
 0x145   :  { %742 = vmatpush.bf16.msra.mxu0 %v704_v4  ;;  %680 = vmatpush.bf16.msrb.mxu2 %v587_v54 }
 0x148   :  { %6574 = vmatmul.msk.bf16.vlgmr.msrb.gmra.mxu1 %vm10720_vm13, %v6536_v26  ;;  %6575 = vmatmul.msk.bf16.vlgmr.msrb.gmra.mxu2 %vm10720_vm13, %v6536_v26 }
 0x149   :  { %770 = vmatpush.bf16.msra.mxu2 %v710_v57  ;;  %6584 = vmatmul.msk.bf16.vlgmr.msrb.gmra.mxu3 %vm10720_vm13, %v7840_v59  ;;  %v830_v62 = vpop.permute.xlu1 %829  ;;  %v996_v37 = vpop.permute.xlu2 %995 }
 0x14a   :  { %812 = vmatpush.bf16.msrb.mxu1 %v719_v60  ;;  %v836_v1 = vpop.permute.xlu0 %835  ;;  %v844_v42 = vsel %vm10722_vm10, %v828_v47, %v830_v62  ;;  %v845_v6 = vsel %vm10722_vm10, %v830_v62, %v832_v58 }
 0x14b   :  { %v855_v7 = vand.u32 %v844_v42, %v7805_v19  ;;  %v858_v23 = vand.u32 %v845_v6, %v7805_v19 }
 0x14d   :  { %882 = vmatpush.bf16.msrb.mxu2 %v855_v7  ;;  %896 = vmatpush.bf16.msrb.mxu3 %v858_v23  ;;  %v6608_v23 = vld [vmem:[%s10665_s1 + $0x18] sm:$0xf] }
 0x150   :  { %6573 = vmatmul.msk.bf16.vlgmr.msrb.gmra.mxu0 %vm10720_vm13, %v6536_v26 }
 0x151   :  { %798 = vmatpush.bf16.msrb.mxu0 %v716_v9  ;;  %v838_v15 = vpop.permute.xlu1 %837  ;;  %v1010_v49 = vpop.permute.xlu2 %1009 }
 0x152   :  { %v834_v12 = vpop.permute.xlu0 %833  ;;  %v848_v21 = vsel %vm10722_vm10, %v836_v1, %v838_v15  ;;  %v849_v22 = vsel %vm10722_vm10, %v838_v15, %v840_v24 }
 0x153   :  { %v847_v20 = vsel %vm10722_vm10, %v834_v12, %v836_v1  ;;  %v867_v25 = vand.u32 %v848_v21, %v7805_v19  ;;  %v870_v18 = vand.u32 %v849_v22, %v7805_v19  ;;  %v846_v26 = vsel %vm10722_vm10, %v832_v58, %v834_v12 }
 0x154   :  { %v864_v5 = vand.u32 %v847_v20, %v7805_v19  ;;  %v861_v29 = vand.u32 %v846_v26, %v7805_v19 }
 0x158   :  { %6586 = vmatmul.msk.bf16.vlgmr.msra.gmra.mxu1 %vm10720_vm13, %v7840_v59  ;;  %6587 = vmatmul.msk.bf16.vlgmr.msra.gmra.mxu2 %vm10720_vm13, %v7840_v59 }
 0x159   :  { %6588 = vmatmul.msk.bf16.vlgmr.msra.gmra.mxu3 %vm10720_vm13, %v7840_v59  ;;  %924 = vmatpush.bf16.msra.mxu1 %v864_v5  ;;  %v998_v28 = vpop.permute.xlu1 %997 }
 0x15a   :  { %938 = vmatpush.bf16.msra.mxu2 %v867_v25  ;;  %952 = vmatpush.bf16.msra.mxu3 %v870_v18  ;;  %v1002_v27 = vpop.permute.xlu0 %1001  ;;  %v1012_v38 = vsel %vm10719_vm2, %v996_v37, %v998_v28  ;;  %v1013_v41 = vsel %vm10719_vm2, %v998_v28, %v1000_v61  ;;  %v1323_v28 = vld [vmem:[%s10666_s4] sm:$0xff] }
 0x15b   :  { %v1014_v40 = vsel %vm10719_vm2, %v1000_v61, %v1002_v27  ;;  %v1023_v44 = vand.u32 %v1012_v38, %v7805_v19  ;;  %v1026_v46 = vand.u32 %v1013_v41, %v7805_v19  ;;  %1327 = vperm.xlu0 %7309, %v1323_v28  }
 0x15c   :  { %v1029_v45 = vand.u32 %v1014_v40, %v7805_v19 }
 0x160   :  { %6585 = vmatmul.msk.bf16.vlgmr.msra.gmra.mxu0 %vm10720_vm13, %v7840_v59 }
 0x161   :  { %910 = vmatpush.bf16.msra.mxu0 %v861_v29  ;;  %v842_v47 = vpop.permute.xlu1 %841 }
 0x162   :  { %v1006_v4 = vpop.permute.xlu0 %1005  ;;  %v850_v48 = vsel %vm10722_vm10, %v840_v24, %v842_v47  ;;  %v7195_v24 = vld [vmem:[%s10665_s1 + $0x18] sm:$0x10]  ;;  %v7196_v47 = vld [vmem:[%s10665_s1 + $0x20] sm:$0x10]  ;;  %vm134_vm10 = vcmask 265216  }
 0x163   :  { %v873_v43 = vand.u32 %v850_v48, %v7805_v19  ;;  %v6609_v20 = vor.u32 %v7195_v24, %v6608_v23 }
 0x168   :  { %6590 = vmatmul.msk.bf16.vlgmr.msrb.gmra.mxu1 %vm10720_vm13, %v7840_v59  ;;  %6597 = vmatmul.msk.bf16.vlgmr.msrb.gmra.mxu2 %vm10720_vm13, %v6596_v39 }
 0x169   :  { %6598 = vmatmul.msk.bf16.vlgmr.msrb.gmra.mxu3 %vm10720_vm13, %v6596_v39  ;;  %1050 = vmatpush.bf16.msrb.mxu1 %v1023_v44  ;;  %v1008_v54 = vpop.permute.xlu1 %1007 }
 0x16a   :  { %1064 = vmatpush.bf16.msrb.mxu2 %v1026_v46  ;;  %1078 = vmatpush.bf16.msrb.mxu3 %v1029_v45  ;;  %v1004_v51 = vpop.permute.xlu0 %1003  ;;  %v1017_v57 = vsel %vm10719_vm2, %v1006_v4, %v1008_v54  ;;  %v1018_v58 = vsel %vm10719_vm2, %v1008_v54, %v1010_v49  ;;  %v6621_v46 = vld [vmem:[%s10665_s1 + $0x20] sm:$0xf] }
 0x16b   :  { %v1016_v50 = vsel %vm10719_vm2, %v1004_v51, %v1006_v4  ;;  %v1038_v62 = vand.u32 %v1017_v57, %v7805_v19  ;;  %v1041_v1 = vand.u32 %v1018_v58, %v7805_v19  ;;  %v1015_v42 = vsel %vm10719_vm2, %v1002_v27, %v1004_v51  ;;  %v1324_v4 = vld [vmem:[%s10666_s4 + $0x8] sm:$0x3] }
 0x16c   :  { %v1035_v60 = vand.u32 %v1016_v50, %v7805_v19  ;;  %v1032_v7 = vand.u32 %v1015_v42, %v7805_v19  ;;  %1332 = vperm.xlu1 %7310, %v1324_v4   ;;  %v6622_v48 = vor.u32 %v7196_v47, %v6621_v46 }
 0x170   :  { %6589 = vmatmul.msk.bf16.vlgmr.msrb.gmra.mxu0 %vm10720_vm13, %v7840_v59  ;;  %v1170_v59 = vpop.permute.xlu2 %1169 }
 0x171   :  { %966 = vmatpush.bf16.msrb.mxu0 %v873_v43  ;;  %v1168_v6 = vpop.permute.xlu1 %1167 }
 0x172   :  { %v1172_v9 = vpop.permute.xlu0 %1171  ;;  %v1182_v22 = vsel %vm10718_vm3, %v1168_v6, %v1170_v59 }
 0x173   :  { %v1183_v21 = vsel %vm10718_vm3, %v1170_v59, %v1172_v9  ;;  %v1197_v18 = vand.u32 %v1182_v22, %v7805_v19 }
 0x174   :  { %v1200_v25 = vand.u32 %v1183_v21, %v7805_v19 }
 0x178   :  { %6600 = vmatmul.msk.bf16.vlgmr.msra.gmra.mxu1 %vm10720_vm13, %v6596_v39  ;;  %6601 = vmatmul.msk.bf16.vlgmr.msra.gmra.mxu2 %vm10720_vm13, %v6596_v39  ;;  %v1166_v12 = vpop.permute.xlu2 %1165 }
 0x179   :  { %6602 = vmatmul.msk.bf16.vlgmr.msra.gmra.mxu3 %vm10720_vm13, %v6596_v39  ;;  %1106 = vmatpush.bf16.msra.mxu1 %v1035_v60  ;;  %v1181_v15 = vsel %vm10718_vm3, %v1166_v12, %v1168_v6  ;;  %v1164_v61 = vpop.permute.xlu1 %1163 }
 0x17a   :  { %1120 = vmatpush.bf16.msra.mxu2 %v1038_v62  ;;  %1134 = vmatpush.bf16.msra.mxu3 %v1041_v1  ;;  %v1194_v5 = vand.u32 %v1181_v15, %v7805_v19  ;;  %v1180_v26 = vsel %vm10718_vm3, %v1164_v61, %v1166_v12  ;;  %v1176_v29 = vpop.permute.xlu0 %1175 }
 0x17b   :  { %v1191_v27 = vand.u32 %v1180_v26, %v7805_v19 }
 0x180   :  { %6599 = vmatmul.msk.bf16.vlgmr.msra.gmra.mxu0 %vm10720_vm13, %v6596_v39  ;;  %v1174_v37 = vpop.permute.xlu2 %1173 }
 0x181   :  { %1092 = vmatpush.bf16.msra.mxu0 %v1032_v7  ;;  %v1178_v35 = vpop.permute.xlu1 %1177  ;;  %v1185_v38 = vsel %vm10718_vm3, %v1174_v37, %v1176_v29  ;;  %v1184_v44 = vsel %vm10718_vm3, %v1172_v9, %v1174_v37 }
 0x182   :  { %v1186_v40 = vsel %vm10718_vm3, %v1176_v29, %v1178_v35  ;;  %v1203_v45 = vand.u32 %v1184_v44, %v7805_v19 }
 0x183   :  { %v1209_v41 = vand.u32 %v1186_v40, %v7805_v19 }
 0x188   :  { %6610 = vmatmul.msk.bf16.vlgmr.msrb.gmra.mxu1 %vm10720_vm13, %v6609_v20  ;;  %6611 = vmatmul.msk.bf16.vlgmr.msrb.gmra.mxu2 %vm10720_vm13, %v6609_v20 }
 0x189   :  { %6612 = vmatmul.msk.bf16.vlgmr.msrb.gmra.mxu3 %vm10720_vm13, %v6609_v20  ;;  %1232 = vmatpush.bf16.msrb.mxu1 %v1194_v5 }
 0x18a   :  { %1246 = vmatpush.bf16.msrb.mxu2 %v1197_v18  ;;  %1260 = vmatpush.bf16.msrb.mxu3 %v1200_v25 }
 0x190   :  { %6603 = vmatmul.msk.bf16.vlgmr.msrb.gmra.mxu0 %vm10720_vm13, %v6596_v39  ;;  %v1206_v39 = vand.u32 %v1185_v38, %v7805_v19 }
 0x191   :  { %1218 = vmatpush.bf16.msrb.mxu0 %v1191_v27 }
 0x198   :  { %6614 = vmatmul.msk.bf16.vlgmr.msra.gmra.mxu1 %vm10720_vm13, %v6609_v20  ;;  %6615 = vmatmul.msk.bf16.vlgmr.msra.gmra.mxu2 %vm10720_vm13, %v6609_v20 }
 0x199   :  { %6616 = vmatmul.msk.bf16.vlgmr.msra.gmra.mxu3 %vm10720_vm13, %v6609_v20  ;;  %1288 = vmatpush.bf16.msra.mxu1 %v1206_v39 }
 0x19a   :  { %1302 = vmatpush.bf16.msra.mxu2 %v1209_v41 }
 0x1a0   :  { %6613 = vmatmul.msk.bf16.vlgmr.msra.gmra.mxu0 %vm10720_vm13, %v6609_v20 }
 0x1a1   :  { %1274 = vmatpush.bf16.msra.mxu0 %v1203_v45 }
 0x1a8   :  { %6624 = vmatmul.msk.bf16.vlgmr.msrb.gmra.mxu1 %vm10720_vm13, %v6622_v48  ;;  %6625 = vmatmul.msk.bf16.vlgmr.msrb.gmra.mxu2 %vm10720_vm13, %v6622_v48 }
 0x1a9   :  { %6626 = vmatmul.msk.bf16.vlgmr.msrb.gmra.mxu3 %vm10720_vm13, %v6622_v48 }
 0x1b0   :  { %6623 = vmatmul.msk.bf16.vlgmr.msrb.gmra.mxu0 %vm10720_vm13, %v6622_v48 }
 0x1b5   :  { %v612_v49 = vpop.f32.mrf.mxu1 }
 0x1b8   :  { %6628 = vmatmul.msk.bf16.vlgmr.msra.gmra.mxu1 %vm10720_vm13, %v6622_v48  ;;  %6629 = vmatmul.msk.bf16.vlgmr.msra.gmra.mxu2 %vm10720_vm13, %v6622_v48 }
 0x1bb   :  { %v626_v43 = vpop.f32.mrf.mxu2 }
 0x1bc   :  { %v640_v51 = vpop.f32.mrf.mxu3 }
 0x1bd   :  { %v598_v54 = vpop.f32.mrf.mxu0  ;;  %v7950_v50 = vpop.f32.mrf.mxu1 }
 0x1c0   :  { %6627 = vmatmul.msk.bf16.vlgmr.msra.gmra.mxu0 %vm10720_vm13, %v6622_v48  ;;  %vm8023_vm13 = vcmp.lt.s32.totalorder %v40_v11, 28 }
 0x1c3   :  { %v7953_v57 = vpop.f32.mrf.mxu2 }
 0x1c4   :  { %v7955_v58 = vpop.f32.mrf.mxu3 }
 0x1c5   :  { %v7957_v60 = vpop.f32.mrf.mxu0  ;;  %v668_v62 = vpop.f32.mrf.mxu1 }
 0x1cb   :  { %v682_v1 = vpop.f32.mrf.mxu2 }
 0x1cc   :  { %v730_v59 = vpop.f32.mrf.mxu3 }
 0x1cd   :  { %v7959_v42 = vadd.f32 %v730_v59, %v598_v54  ;;  %v654_v6 = vpop.f32.mrf.mxu0  ;;  %v7961_v7 = vpop.f32.mrf.mxu1 }
 0x1ce   :  { %v8015_v55 = vpop.permute.xlu0 %1327 }
 0x1d3   :  { %v7963_v23 = vpop.f32.mrf.mxu2 }
 0x1d4   :  { %v732_v24 = vpop.f32.mrf.mxu3 }
 0x1d5   :  { %v7965_v9 = vpop.f32.mrf.mxu0  ;;  %v758_v12 = vpop.f32.mrf.mxu1  ;;  %v733_v16 = vadd.f32 %v732_v24, %v7957_v60 }
 0x1d6   :  { %v759_v15 = vadd.f32 %v758_v12, %v626_v43 }
 0x1db   :  { %v772_v20 = vpop.f32.mrf.mxu2 }
 0x1dc   :  { %v773_v21 = vadd.f32 %v772_v20, %v640_v51  ;;  %v786_v22 = vpop.f32.mrf.mxu3 }
 0x1dd   :  { %v7967_v5 = vadd.f32 %v786_v22, %v654_v6  ;;  %v744_v25 = vpop.f32.mrf.mxu0  ;;  %v760_v18 = vpop.f32.mrf.mxu1 }
 0x1de   :  { %v745_v61 = vadd.f32 %v744_v25, %v612_v49  ;;  %v761_v63 = vadd.f32 %v760_v18, %v7953_v57 }
 0x1e3   :  { %v774_v26 = vpop.f32.mrf.mxu2 }
 0x1e4   :  { %v7969_v27 = vpop.f32.mrf.mxu3 }
 0x1e5   :  { %v746_v28 = vpop.f32.mrf.mxu0  ;;  %v814_v29 = vpop.f32.mrf.mxu1 }
 0x1e6   :  { %v7971_v35 = vadd.f32 %v814_v29, %v682_v1  ;;  %v747_v10 = vadd.f32 %v746_v28, %v7950_v50 }
 0x1eb   :  { %v884_v37 = vpop.f32.mrf.mxu2 }
 0x1ec   :  { %v898_v38 = vpop.f32.mrf.mxu3 }
 0x1ed   :  { %v800_v40 = vpop.f32.mrf.mxu0  ;;  %v7973_v39 = vpop.f32.mrf.mxu1  ;;  %v974_v8 = vadd.f32 %v898_v38, %v745_v61  ;;  %v47_v61 = vand.u32 31, %v24_v53  ;;  %v54_v38 = vand.u32 31, %v25_v2 }
 0x1ee   :  { %v7975_v41 = vadd.f32 %v800_v40, %v668_v62 }
 0x1ef   :  { %vm115_vm3 = vcmp.lt.s32.totalorder %v47_v61, 28  ;;  %vm116_vm2 = vcmp.lt.s32.totalorder %v54_v38, 28 }
 0x1f3   :  { %v886_v44 = vpop.f32.mrf.mxu2 }
 0x1f4   :  { %v900_v4 = vpop.f32.mrf.mxu3 }
 0x1f5   :  { %v7977_v45 = vpop.f32.mrf.mxu0  ;;  %v926_v46 = vpop.f32.mrf.mxu1  ;;  %v981_v60 = vadd.f32 %v900_v4, %v747_v10 }
 0x1f6   :  { %v976_v17 = vadd.f32 %v926_v46, %v773_v21  ;;  %v8040_v46 = vpop.permute.xlu1 %1332 }
 0x1fb   :  { %v7979_v47 = vpop.f32.mrf.mxu2 }
 0x1fc   :  { %v7981_v48 = vpop.f32.mrf.mxu3 }
 0x1fd   :  { %v912_v49 = vpop.f32.mrf.mxu0  ;;  %v7983_v43 = vpop.f32.mrf.mxu1 }
 0x1fe   :  { %v975_v0 = vadd.f32 %v912_v49, %v759_v15 }
 0x203   :  { %v7985_v51 = vpop.f32.mrf.mxu2 }
 0x204   :  { %v7987_v54 = vpop.f32.mrf.mxu3 }
 0x205   :  { %v914_v1 = vpop.f32.mrf.mxu0  ;;  %v1052_v59 = vpop.f32.mrf.mxu1 }
 0x206   :  { %v982_v21 = vadd.f32 %v914_v1, %v761_v63  ;;  %v10878_v1 = vmov 0  }
 0x207   :  { %135 = vst.msk [vmem:[#allocation2] sm:$0xf] %vm134_vm10, %v10878_v1 }
 0x208   :  { %142 = vst.msk [vmem:[#allocation3] sm:$0xf] %vm134_vm10, %v10878_v1 }
 0x209   :  { %141 = vst.msk [vmem:[#allocation2 + $0x3c] sm:$0x1] %vm140_vm0, %v10878_v1 }
 0x20a   :  { %145 = vst.msk [vmem:[#allocation3 + $0x3c] sm:$0x1] %vm140_vm0, %v10878_v1  ;;  %vm10898_vm0 = vcmask 1044484  }
 0x20b   :  { %v1066_v62 = vpop.f32.mrf.mxu2 }
 0x20c   :  { %v1080_v6 = vpop.f32.mrf.mxu3  ;;  %v1142_v32 = vadd.f32 %v1066_v62, %v974_v8  ;;  %v775_v8 = vadd.f32 %v774_v26, %v7955_v58  ;;  %v973_v62 = vadd.f32 %v884_v37, %v7959_v42 }
 0x20d   :  { %v7989_v12 = vpop.f32.mrf.mxu0  ;;  %v7991_v20 = vpop.f32.mrf.mxu1 }
 0x20e   :  { %v1141_v2 = vadd.f32 %v1052_v59, %v973_v62  ;;  %v983_v37 = vadd.f32 %v7983_v43, %v775_v8  ;;  %v978_v59 = vadd.f32 %v7981_v48, %v7975_v41 }
 0x213   :  { %v1068_v22 = vpop.f32.mrf.mxu2 }
 0x214   :  { %v7993_v25 = vpop.f32.mrf.mxu3 }
 0x215   :  { %v7995_v29 = vpop.f32.mrf.mxu0  ;;  %v7997_v40 = vpop.f32.mrf.mxu1 }
 0x21b   :  { %v7999_v34 = vpop.f32.mrf.mxu2 }
 0x21c   :  { %v8001_v19 = vpop.f32.mrf.mxu3 }
 0x21d   :  { %v1094_v3 = vpop.f32.mrf.mxu0  ;;  %v8003_v36 = vpop.f32.mrf.mxu1 }
 0x21e   :  { %10875 = vst [vmem:[#allocation26_spill] sm:$0xff] %v8003_v36  ;;  %v1143_v36 = vadd.f32 %v1080_v6, %v975_v0  ;;  %v1144_v24 = vadd.f32 %v1094_v3, %v976_v17  ;;  %v1149_v0 = vadd.f32 %v1068_v22, %v981_v60  ;;  %v7407_v17 = vmov 0.0  }
 0x21f   :  { %v8032_v3 = vsel %vm116_vm2, 1.0, %v7407_v17  ;;  %v8045_v49 = vsel %vm8023_vm13, 1.0, %v7407_v17  ;;  %v1150_v6 = vadd.f32 %v7993_v25, %v982_v21  ;;  %v1146_v25 = vadd.f32 %v7999_v34, %v978_v59 }
 0x220   :  { %vm136_vm2 = vcmask 262144  }
 0x221   :  { %137 = vst.msk [vmem:[#allocation2 + $0x20] sm:$0x1] %vm136_vm2, %v10878_v1 }
 0x222   :  { %143 = vst.msk [vmem:[#allocation3 + $0x20] sm:$0x1] %vm136_vm2, %v10878_v1  ;;  %vm138_vm2 = vcmask 781576  }
 0x223   :  { %v8007_v13 = vpop.f32.mrf.mxu2  ;;  %139 = vst.msk [vmem:[#allocation2 + $0x1c] sm:$0xf] %vm138_vm2, %v10878_v1 }
 0x224   :  { %v8009_v52 = vpop.f32.mrf.mxu3  ;;  %144 = vst.msk [vmem:[#allocation3 + $0x1c] sm:$0xf] %vm138_vm2, %v10878_v1 }
 0x225   :  { %v1096_v30 = vpop.f32.mrf.mxu0  ;;  %v1234_v33 = vpop.f32.mrf.mxu1 }
 0x226   :  { %v1310_v14 = vadd.f32 %v1234_v33, %v1142_v32  ;;  %v33_v33 = vand.u32 31, %v8005_v56  ;;  %v980_v32 = vadd.f32 %v886_v44, %v733_v16  ;;  %v1151_v38 = vadd.f32 %v1096_v30, %v983_v37 }
 0x228   :  { %v1336_v53 = vadd.f32 %v8015_v55, %v1310_v14  ;;  %vm113_vm15 = vcmp.lt.s32.totalorder %v33_v33, 28  ;;  %v8029_v14 = vsel %vm115_vm3, 1.0, %v7407_v17  ;;  %v1148_v61 = vadd.f32 %v7991_v20, %v980_v32 }
 0x229   :  { %v8038_v4 = vsel %vm113_vm15, 1.0, %v7407_v17  ;;  %v28_v33 = vadd.s32 768, %v8005_v56  ;;  %v27_v20 = vadd.s32 640, %v8005_v56  ;;  %vm1440_vm3 = vcmask 1043720  }
 0x22b   :  { %v1248_v15 = vpop.f32.mrf.mxu2  ;;  %v75_v34 = vand.u32 31, %v28_v33 }
 0x22c   :  { %v1311_v57 = vadd.f32 %v1248_v15, %v1143_v36  ;;  %v1262_v50 = vpop.f32.mrf.mxu3  ;;  %v1350_v36 = vmax.f32 %v1336_v53, 0.0 }
 0x22d   :  { %v1312_v31 = vadd.f32 %v1262_v50, %v1144_v24  ;;  %v1220_v18 = vpop.f32.mrf.mxu0  ;;  %v1236_v58 = vpop.f32.mrf.mxu1  ;;  %vm8078_vm15 = vcmp.lt.s32.totalorder %v75_v34, 28 }
 0x22e   :  { %v1337_v10 = vadd.f32 %v8015_v55, %v1311_v57  ;;  %v1309_v16 = vadd.f32 %v1220_v18, %v1141_v2  ;;  %v1317_v28 = vadd.f32 %v1236_v58, %v1149_v0  ;;  %v1364_v41 = vmul.f32 %v8045_v49, %v1350_v36 }
 0x22f   :  { %v1338_v63 = vadd.f32 %v8015_v55, %v1312_v31  ;;  %v26_v31 = vadd.s32 512, %v8005_v56  ;;  %v979_v18 = vadd.f32 %v7989_v12, %v7971_v35  ;;  %v977_v56 = vadd.f32 %v7979_v47, %v7967_v5 }
 0x230   :  { %v1351_v26 = vmax.f32 %v1337_v10, 0.0  ;;  %v1335_v11 = vadd.f32 %v8015_v55, %v1309_v16  ;;  %v1343_v48 = vadd.f32 %v8040_v46, %v1317_v28  ;;  %v68_v12 = vand.u32 31, %v27_v20 }
 0x231   :  { %v1352_v44 = vmax.f32 %v1338_v63, 0.0  ;;  %v803_v63 = vadd.f32 %v7977_v45, %v7961_v7  ;;  %v1147_v36 = vadd.f32 %v8001_v19, %v979_v18 }
 0x232   :  { %v1365_v43 = vmul.f32 %v8029_v14, %v1351_v26  ;;  %v1349_v22 = vmax.f32 %v1335_v11, 0.0  ;;  %v1357_v16 = vmax.f32 %v1343_v48, 0.0  ;;  %v61_v11 = vand.u32 31, %v26_v31 }
 0x233   :  { %v1366_v8 = vmul.f32 %v8032_v3, %v1352_v44  ;;  %v1250_v62 = vpop.f32.mrf.mxu2  ;;  %v985_v37 = vadd.f32 %v7987_v54, %v803_v63  ;;  %v1145_v44 = vadd.f32 %v7997_v40, %v977_v56  ;;  %vm8088_vm13 = vcmp.lt.s32.totalorder %v68_v12, 28 }
 0x234   :  { %v1363_v60 = vmul.f32 %v8038_v4, %v1349_v22  ;;  %v1318_v24 = vadd.f32 %v1250_v62, %v1150_v6  ;;  %v1264_v15 = vpop.f32.mrf.mxu3  ;;  %v1371_v47 = vmul.f32 %v8045_v49, %v1357_v16  ;;  %vm117_vm10 = vcmp.lt.s32.totalorder %v61_v11, 28 }
 0x235   :  { %v1319_v53 = vadd.f32 %v1264_v15, %v1151_v38  ;;  %v1222_v2 = vpop.f32.mrf.mxu0  ;;  %v1290_v30 = vpop.f32.mrf.mxu1  ;;  %v1378_v32 = vpack.c.bf16 %v1366_v8, %v1365_v43  ;;  %v817_v43 = vadd.f32 %v7973_v39, %v7963_v23  ;;  %v1153_v54 = vadd.f32 %v8007_v13, %v985_v37 }
 0x236   :  { %v1344_v57 = vadd.f32 %v8040_v46, %v1318_v24  ;;  %v1316_v50 = vadd.f32 %v1222_v2, %v1148_v61  ;;  %v1377_v21 = vpack.c.bf16 %v1364_v41, %v1363_v60  ;;  %v1314_v10 = vadd.f32 %v1290_v30, %v1146_v25  ;;  %v10884_v2 = vld [vmem:[#allocation26_spill] sm:$0xff] }
 0x237   :  { %v1345_v58 = vadd.f32 %v8040_v46, %v1319_v53  ;;  %1395 = vrot.lane.b32.xlu1 %v1378_v32, %s7408_s18  ;;  %v789_v60 = vadd.f32 %v7969_v27, %v7965_v9  ;;  %v986_v24 = vadd.f32 %v7995_v29, %v817_v43  ;;  %v8100_v13 = vsel %vm8078_vm15, 1.0, %v7407_v17 }
 0x238   :  { %v1358_v42 = vmax.f32 %v1344_v57, 0.0  ;;  %v1342_v0 = vadd.f32 %v8040_v46, %v1316_v50  ;;  %1393 = vrot.lane.b32.xlu2 %v1377_v21, %s7408_s18  ;;  %v1340_v5 = vadd.f32 %v8015_v55, %v1314_v10  ;;  %10883 = vst [vmem:[#allocation27_spill] sm:$0xff] %v8100_v13  ;;  %v8108_v9 = vsel %vm8088_vm13, 1.0, %v7407_v17 }
 0x239   :  { %v1359_v35 = vmax.f32 %v1345_v58, 0.0  ;;  %v984_v48 = vadd.f32 %v7985_v51, %v789_v60  ;;  %v8111_v27 = vsel %vm117_vm10, 1.0, %v7407_v17  ;;  %v1154_v29 = vadd.f32 %v8009_v52, %v986_v24 }
 0x23a   :  { %v1356_v26 = vmax.f32 %v1342_v0, 0.0  ;;  %v1372_v28 = vmul.f32 %v8029_v14, %v1358_v42  ;;  %v1354_v23 = vmax.f32 %v1340_v5, 0.0  ;;  %vm1441_vm15 = vcmask 1047556  }
 0x23b   :  { %v1304_v59 = vpop.f32.mrf.mxu2  ;;  %v1373_v6 = vmul.f32 %v8032_v3, %v1359_v35  ;;  %vm10726_vm13 = vcmask 269312   ;;  %vm8130_vm10 = vmor %vm1441_vm15, %vm1440_vm3  ;;  %v10885_v35 = vmov 0  ;;  %vm10893_vm3 = vcmask 1045508  }
 0x23c   :  { %v1315_v45 = vadd.f32 %v1304_v59, %v1147_v36  ;;  %v1370_v19 = vmul.f32 %v8038_v4, %v1356_v26  ;;  %v1368_v30 = vmul.f32 %v8108_v9, %v1354_v23  ;;  %v10886_v35 = vsel %vm8130_vm10, 4294967295, %v10885_v35 }
 0x23d   :  { %v1276_v22 = vpop.f32.mrf.mxu0  ;;  %v1292_v61 = vpop.f32.mrf.mxu1  ;;  %v1382_v38 = vpack.c.bf16 %v1373_v6, %v1372_v28  ;;  %10887 = vst [vmem:[#allocation26_spill] sm:$0xff] %v10886_v35  ;;  %v10889_v28 = vmov 0  ;;  %vm10894_vm15 = vcmask 1041408   ;;  %v10900_v60 = vmov 0 }
 0x23e   :  { %v1341_v8 = vadd.f32 %v8015_v55, %v1315_v45  ;;  %v1313_v62 = vadd.f32 %v1276_v22, %v1145_v44  ;;  %v1381_v33 = vpack.c.bf16 %v1371_v47, %v1370_v19  ;;  %v1321_v41 = vadd.f32 %v1292_v61, %v1153_v54  ;;  %vm8157_vm2 = vmor %vm10894_vm15, %vm10893_vm3 }
 0x23f   :  { %1403 = vrot.lane.b32.xlu0 %v1382_v38, %s7408_s18  ;;  %v10890_v28 = vsel %vm8138_vm4, 4294967295, %v10889_v28  ;;  %vm1447_vm3 = vcmask 269316   ;;  %vm10908_vm15 = vmmov %vm10903_vm8 }
 0x240   :  { %v1355_v39 = vmax.f32 %v1341_v8, 0.0  ;;  %v1339_v15 = vadd.f32 %v8015_v55, %v1313_v62  ;;  %1401 = vrot.lane.b32.xlu2 %v1381_v33, %s7408_s18  ;;  %v1152_v55 = vadd.f32 %v10884_v2, %v984_v48  ;;  %v1347_v32 = vadd.f32 %v8040_v46, %v1321_v41  ;;  %10891 = vst [vmem:[#allocation28_spill] sm:$0xff] %v10890_v28 }
 0x241   :  { %v10895_v8 = vmov 0 }
 0x242   :  { %v1353_v25 = vmax.f32 %v1339_v15, 0.0  ;;  %v1369_v53 = vmul.f32 %v8100_v13, %v1355_v39  ;;  %v1361_v52 = vmax.f32 %v1347_v32, 0.0  ;;  %v10896_v8 = vsel %vm8157_vm2, 4294967295, %v10895_v8 }
 0x243   :  { %v1306_v20 = vpop.f32.mrf.mxu2  ;;  %10897 = vst [vmem:[#allocation29_spill] sm:$0xff] %v10896_v8 }
 0x244   :  { %v1367_v51 = vmul.f32 %v8111_v27, %v1353_v25  ;;  %v1322_v57 = vadd.f32 %v1306_v20, %v1154_v29  ;;  %v1380_v18 = vpack.c.bf16 %v1369_v53, %v1369_v53  ;;  %v1375_v16 = vmul.f32 %v8108_v9, %v1361_v52 }
 0x245   :  { %v1278_v50 = vpop.f32.mrf.mxu0 }
 0x246   :  { %v1348_v21 = vadd.f32 %v8040_v46, %v1322_v57  ;;  %v1320_v17 = vadd.f32 %v1278_v50, %v1152_v55  ;;  %v1379_v31 = vpack.c.bf16 %v1368_v30, %v1367_v51  ;;  %v10905_v30 = vmov 0 }
 0x248   :  { %v1362_v58 = vmax.f32 %v1348_v21, 0.0  ;;  %v1346_v34 = vadd.f32 %v8040_v46, %v1320_v17  ;;  %1397 = vrot.lane.b32.xlu1 %v1379_v31, %s7408_s18  ;;  %1399 = vrot.lane.b32.xlu2 %v1380_v18, %s7408_s18 }
 0x24a   :  { %v1360_v42 = vmax.f32 %v1346_v34, 0.0  ;;  %v1376_v0 = vmul.f32 %v8100_v13, %v1362_v58 }
 0x24c   :  { %v1374_v10 = vmul.f32 %v8111_v27, %v1360_v42  ;;  %v1384_v56 = vpack.c.bf16 %v1376_v0, %v1376_v0 }
 0x24e   :  { %v1383_v63 = vpack.c.bf16 %v1375_v16, %v1374_v10 }
 0x250   :  { %1405 = vrot.lane.b32.xlu0 %v1383_v63, %s7408_s18  ;;  %1407 = vrot.lane.b32.xlu1 %v1384_v56, %s7408_s18  ;;  %v10914_v56 = vmov 0 }
 0x292   :  { %v1394_v46 = vpop.permute.xlu2 %1393 }
 0x293   :  { %v1409_v12 = vrot.slane %v1394_v46, 4 }
 0x295   :  { %v1418_v36 = vsel %vm10726_vm13, %v1409_v12, %v1394_v46 }
 0x296   :  { %1443 = vst.msk [vmem:[#allocation2] sm:$0xff] %vm8130_vm10, %v1418_v36 }
 0x29a   :  { %v1402_v26 = vpop.permute.xlu2 %1401 }
 0x29b   :  { %v1413_v11 = vrot.slane %v1402_v26, 4 }
 0x29d   :  { %v1460_v37 = vld [vmem:[#allocation2] sm:$0xff]  ;;  %v1425_v44 = vsel %vm10726_vm13, %v1413_v11, %v1402_v26  ;;  %v10921_v26 = vmov 0 }
 0x29e   :  { %1468 = vst [vmem:[#allocation4] sm:$0xff] %v1460_v37  ;;  %v1590_v59 = vrot.slane %v1460_v37, 6  ;;  %v1497_v6 = vrot.slane %v1460_v37, 7 }
 0x29f   :  { %1453 = vst.msk [vmem:[#allocation2 + $0x20] sm:$0x11] %vm8138_vm4, %v1425_v44 }
 0x2a0   :  { %1606 = vrot.lane.b32.xlu1 %v1590_v59, %s7399_s23  ;;  %1513 = vrot.lane.b32.xlu2 %v1497_v6, %s7398_s22  ;;  %v1594_v23 = vrot.slane %v1590_v59, 4  ;;  %v1501_v39 = vrot.slane %v1497_v6, 4  ;;  %v10925_v6 = vmov 0 }
 0x2a2   :  { %v1400_v29 = vpop.permute.xlu2 %1399 }
 0x2a3   :  { %v1412_v53 = vrot.slane %v1400_v29, 4 }
 0x2a6   :  { %v1464_v7 = vld [vmem:[#allocation2 + $0x20] sm:$0x11] }
 0x2a7   :  { %1474 = vst [vmem:[#allocation4 + $0x20] sm:$0x11] %v1464_v7  ;;  %v1577_v40 = vld [vmem:[#allocation2 + $0x20] sm:$0x11] }
 0x2a8   :  { %v1484_v22 = vld [vmem:[#allocation2 + $0x20] sm:$0x11]  ;;  %v1595_v62 = vrot.slane %v1577_v40, 6 }
 0x2a9   :  { %v1396_v5 = vpop.permute.xlu1 %1395  ;;  %v1502_v33 = vrot.slane %v1484_v22, 7 }
 0x2aa   :  { %v1410_v45 = vrot.slane %v1396_v5, 4  ;;  %v1596_v41 = vsel %vm8157_vm2, %v1594_v23, %v1595_v62 }
 0x2ac   :  { %v1419_v19 = vsel %vm10892_vm14, %v1409_v12, %v1410_v45  ;;  %vm10899_vm14 = vcmask 1040384  }
 0x2ad   :  { %v1420_v47 = vsel %vm10726_vm13, %v1419_v19, %v1396_v5  ;;  %vm8163_vm13 = vmor %vm10899_vm14, %vm10898_vm0  ;;  %vm10910_vm14 = vcmask 269312  }
 0x2ae   :  { %1444 = vst [vmem:[#allocation2 + $0x8] sm:$0xff] %v1420_v47  ;;  %v1498_v43 = vrot.slane %v1420_v47, 7  ;;  %v1591_v54 = vrot.slane %v1420_v47, 6  ;;  %v10901_v60 = vsel %vm8163_vm13, 4294967295, %v10900_v60  ;;  %v1503_v48 = vsel %vm8163_vm13, %v1501_v39, %v1502_v33  ;;  %vm10909_vm0 = vmmov %vm10903_vm8 }
 0x2af   :  { %1469 = vst [vmem:[#allocation4 + $0x8] sm:$0xff] %v1420_v47  ;;  %vm10911_vm12 = vmmov %vm10910_vm14 }
 0x2b0   :  { %1515 = vrot.lane.b32.xlu0 %v1498_v43, %s7398_s22  ;;  %1608 = vrot.lane.b32.xlu2 %v1591_v54, %s7399_s23  ;;  %10902 = vst [vmem:[#allocation30_spill] sm:$0xff] %v10901_v60  ;;  %v1504_v55 = vrot.slane %v1498_v43, 4  ;;  %v1597_v20 = vrot.slane %v1591_v54, 4 }
 0x2b1   :  { %v1404_v61 = vpop.permute.xlu0 %1403 }
 0x2b2   :  { %v1414_v38 = vrot.slane %v1404_v61, 4 }
 0x2b4   :  { %v1426_v24 = vsel %vm10903_vm8, %v1413_v11, %v1414_v38 }
 0x2b5   :  { %v1427_v15 = vsel %vm10904_vm1, %v1426_v24, %v1404_v61  ;;  %vm8176_vm1 = vmor %vm1447_vm3, %vm10903_vm8  ;;  %vm1457_vm3 = vcmask 266244  }
 0x2b6   :  { %1454 = vst [vmem:[#allocation2 + $0x28] sm:$0x11] %v1427_v15  ;;  %v10906_v30 = vsel %vm8176_vm1, 4294967295, %v10905_v30  ;;  %vm10912_vm8 = vmmov %vm10909_vm0 }
 0x2b7   :  { %10907 = vst [vmem:[#allocation31_spill] sm:$0xff] %v10906_v30  ;;  %vm10920_vm5 = vmmov %vm10912_vm8 }
 0x2b8   :  { %1614 = vrot.lane.b32.xlu0 %v1596_v41, %s7399_s23  ;;  %1521 = vrot.lane.b32.xlu2 %v1503_v48, %s7398_s22 }
 0x2ba   :  { %v1398_v25 = vpop.permute.xlu1 %1397 }
 0x2bb   :  { %v1411_v2 = vrot.slane %v1398_v25, 4 }
 0x2bd   :  { %v1465_v51 = vld [vmem:[#allocation2 + $0x28] sm:$0x11]  ;;  %v1421_v32 = vsel %vm10908_vm15, %v1410_v45, %v1411_v2  ;;  %v1423_v57 = vsel %vm10909_vm0, %v1411_v2, %v1412_v53  ;;  %vm10913_vm15 = vcmask 1040384  }
 0x2be   :  { %v1578_v50 = vld [vmem:[#allocation2 + $0x28] sm:$0x11]  ;;  %1475 = vst [vmem:[#allocation4 + $0x28] sm:$0x11] %v1465_v51  ;;  %v1422_v17 = vsel %vm10910_vm14, %v1421_v32, %v1398_v25  ;;  %v1424_v31 = vsel %vm10911_vm12, %v1423_v57, %v1400_v29  ;;  %vm1471_vm12 = vcmask 15364   ;;  %vm8194_vm0 = vmor %vm1457_vm3, %vm10913_vm15 }
 0x2bf   :  { %v1485_v21 = vld [vmem:[#allocation2 + $0x28] sm:$0x11]  ;;  %v1598_v18 = vrot.slane %v1578_v50, 6  ;;  %1445 = vst [vmem:[#allocation2 + $0x10] sm:$0xff] %v1422_v17  ;;  %v10915_v56 = vsel %vm8194_vm0, 4294967295, %v10914_v56  ;;  %vm10917_vm14 = vmmov %vm10912_vm8  ;;  %v1592_v37 = vrot.slane %v1422_v17, 6 }
 0x2c0   :  { %v1505_v52 = vrot.slane %v1485_v21, 7  ;;  %1449 = vst.msk [vmem:[#allocation2 + $0x18] sm:$0xff] %vm8176_vm1, %v1424_v31  ;;  %vm8202_vm7 = vmor %vm1471_vm12, %vm10920_vm5  ;;  %v1499_v59 = vrot.slane %v1422_v17, 7  ;;  %vm10929_vm12 = vcmask 523264  }
 0x2c1   :  { %v1599_v58 = vsel %vm8157_vm2, %v1597_v20, %v1598_v18  ;;  %1470 = vst [vmem:[#allocation4 + $0x10] sm:$0xff] %v1422_v17  ;;  %v10922_v26 = vsel %vm8202_vm7, 4294967295, %v10921_v26  ;;  %v1600_v7 = vrot.slane %v1592_v37, 4  ;;  %vm10928_vm3 = vmmov %vm10912_vm8 }
 0x2c2   :  { %v1506_v34 = vsel %vm8163_vm13, %v1504_v55, %v1505_v52  ;;  %1616 = vrot.lane.b32.xlu1 %v1599_v58, %s7399_s23  ;;  %v1406_v42 = vpop.permute.xlu0 %1405  ;;  %v1408_v0 = vpop.permute.xlu1 %1407  ;;  %10916 = vst [vmem:[#allocation32_spill] sm:$0xff] %v10915_v56  ;;  %v1507_v5 = vrot.slane %v1499_v59, 4  ;;  %v6638_v58 = vld [vmem:[#allocation4] sm:$0xf] }
 0x2c3   :  { %1523 = vrot.lane.b32.xlu0 %v1506_v34, %s7398_s22  ;;  %v1415_v10 = vrot.slane %v1406_v42, 4  ;;  %v1416_v16 = vrot.slane %v1408_v0, 4  ;;  %10923 = vst [vmem:[#allocation33_spill] sm:$0xff] %v10922_v26 }
 0x2c5   :  { %v1428_v63 = vsel %vm10912_vm8, %v1414_v38, %v1415_v10  ;;  %v1430_v46 = vsel %vm10917_vm14, %v1415_v10, %v1416_v16  ;;  %vm10930_vm8 = vmmov %vm10928_vm3  ;;  %vm1570_vm14 = vcmask 13316  }
 0x2c6   :  { %v1429_v12 = vsel %vm10918_vm11, %v1428_v63, %v1406_v42  ;;  %v1431_v36 = vsel %vm10919_vm6, %v1430_v46, %v1408_v0  ;;  %vm1477_vm11 = vcmask 12292   ;;  %vm10924_vm6 = vmmov %vm10913_vm15  ;;  %vm10931_vm15 = vcmask 785408  }
 0x2c7   :  { %v1463_v11 = vld [vmem:[#allocation2 + $0x18] sm:$0xff]  ;;  %1455 = vst [vmem:[#allocation2 + $0x30] sm:$0x11] %v1429_v12  ;;  %vm8213_vm5 = vmor %vm1477_vm11, %vm10924_vm6 }
 0x2c8   :  { %1459 = vst.msk [vmem:[#allocation2 + $0x38] sm:$0x11] %vm8194_vm0, %v1431_v36  ;;  %v1593_v44 = vrot.slane %v1463_v11, 6  ;;  %v10926_v6 = vsel %vm8213_vm5, 4294967295, %v10925_v6  ;;  %v1500_v39 = vrot.slane %v1463_v11, 7  ;;  %vm10932_vm11 = vmmov %vm10928_vm3  ;;  %vm10939_vm0 = vcmask 785408  }
 0x2c9   :  { %1473 = vst.msk [vmem:[#allocation4 + $0x18] sm:$0xff] %vm8202_vm7, %v1463_v11  ;;  %vm10933_vm6 = vmmov %vm10928_vm3 }
 0x2ca   :  { %1612 = vrot.lane.b32.xlu1 %v1593_v44, %s7399_s23  ;;  %10927 = vst [vmem:[#allocation34_spill] sm:$0xff] %v10926_v6  ;;  %v1603_v61 = vrot.slane %v1593_v44, 4  ;;  %v1510_v41 = vrot.slane %v1500_v39, 4  ;;  %vm10940_vm7 = vmmov %vm10939_vm0 }
 0x2cb   :  { %1610 = vrot.lane.b32.xlu0 %v1592_v37, %s7399_s23 }
 0x2ce   :  { %v1466_v45 = vld [vmem:[#allocation2 + $0x30] sm:$0x11] }
 0x2cf   :  { %v1579_v19 = vld [vmem:[#allocation2 + $0x30] sm:$0x11]  ;;  %1476 = vst [vmem:[#allocation4 + $0x30] sm:$0x11] %v1466_v45  ;;  %v1467_v43 = vld [vmem:[#allocation2 + $0x38] sm:$0x11] }
 0x2d0   :  { %v1486_v47 = vld [vmem:[#allocation2 + $0x30] sm:$0x11]  ;;  %v1601_v54 = vrot.slane %v1579_v19, 6  ;;  %1479 = vst.msk [vmem:[#allocation4 + $0x38] sm:$0x11] %vm8213_vm5, %v1467_v43  ;;  %v10936_v19 = vmov 0 }
 0x2d1   :  { %v1508_v40 = vrot.slane %v1486_v47, 7  ;;  %v1580_v22 = vld [vmem:[#allocation2 + $0x38] sm:$0x11] }
 0x2d2   :  { %v1602_v38 = vsel %vm8157_vm2, %v1600_v7, %v1601_v54  ;;  %v1604_v33 = vrot.slane %v1580_v22, 6  ;;  %v1487_v24 = vld [vmem:[#allocation2 + $0x38] sm:$0x11] }
 0x2d3   :  { %v1509_v62 = vsel %vm8163_vm13, %v1507_v5, %v1508_v40  ;;  %1618 = vrot.lane.b32.xlu2 %v1602_v38, %s7399_s23  ;;  %v1511_v15 = vrot.slane %v1487_v24, 7  ;;  %v10942_v38 = vmov 0  ;;  %v10945_v24 = vmov 0 }
 0x2d4   :  { %1525 = vrot.lane.b32.xlu1 %v1509_v62, %s7398_s22  ;;  %v1605_v23 = vsel %vm8157_vm2, %v1603_v61, %v1604_v33 }
 0x2d5   :  { %1620 = vrot.lane.b32.xlu0 %v1605_v23, %s7399_s23  ;;  %v1512_v48 = vsel %vm8163_vm13, %v1510_v41, %v1511_v15 }
 0x2db   :  { %1527 = vrot.lane.b32.xlu2 %v1512_v48, %s7398_s22 }
 0x2dc   :  { %1517 = vrot.lane.b32.xlu1 %v1499_v59, %s7398_s22 }
 0x2e3   :  { %1519 = vrot.lane.b32.xlu2 %v1500_v39, %s7398_s22 }
 0x2fa   :  { %v1514_v29 = vpop.permute.xlu2 %1513 }
 0x2fb   :  { %v1529_v57 = vrot.slane %v1514_v29, 4 }
 0x30a   :  { %v1609_v25 = vpop.permute.xlu2 %1608 }
 0x30b   :  { %v1623_v2 = vrot.slane %v1609_v25, 4 }
 0x312   :  { %v1607_v53 = vpop.permute.xlu1 %1606  ;;  %v1522_v21 = vpop.permute.xlu2 %1521 }
 0x313   :  { %v1622_v55 = vrot.slane %v1607_v53, 4  ;;  %v1533_v0 = vrot.slane %v1522_v21, 4 }
 0x315   :  { %v1630_v20 = vsel %vm10928_vm3, %v1622_v55, %v1623_v2 }
 0x316   :  { %v1631_v51 = vsel %vm10929_vm12, %v1607_v53, %v1630_v20 }
 0x317   :  { %1652 = vst [vmem:[#allocation4 + $0x40] sm:$0xcc] %v1631_v51 }
 0x322   :  { %v8235_v32 = vpop.permute.xlu0 %1515 }
 0x323   :  { %v1530_v50 = vrot.slane %v8235_v32, 4 }
 0x325   :  { %v1537_v17 = vsel %vm10930_vm8, %v1529_v57, %v1530_v50  ;;  %vm10934_vm8 = vmmov %vm10929_vm12 }
 0x326   :  { %v1538_v31 = vsel %vm10931_vm15, %v1514_v29, %v1537_v17  ;;  %vm10935_vm15 = vcmask 1041408  }
 0x327   :  { %1559 = vst [vmem:[#allocation4 + $0x20] sm:$0xee] %v1538_v31  ;;  %vm8255_vm5 = vmor %vm1570_vm14, %vm10935_vm15  ;;  %vm10941_vm14 = vcmask 1043458   ;;  %vm10949_vm15 = vcmask 785408  }
 0x328   :  { %v10937_v19 = vsel %vm8255_vm5, 4294967295, %v10936_v19 }
 0x329   :  { %10938 = vst [vmem:[#allocation35_spill] sm:$0xff] %v10937_v19 }
 0x32a   :  { %v1615_v18 = vpop.permute.xlu0 %1614 }
 0x32b   :  { %v1626_v46 = vrot.slane %v1615_v18, 4 }
 0x32d   :  { %v8242_v52 = vpop.permute.xlu2 %1618 }
 0x32e   :  { %v7201_v34 = vld [vmem:[#allocation4 + $0x1c] sm:$0xf0]  ;;  %v1628_v63 = vrot.slane %v8242_v52, 4 }
 0x32f   :  { %v8244_v42 = vor.u32 %v7201_v34, %v6638_v58 }
 0x331   :  { %1760 = vrot.lane.b32.xlu2 %v8244_v42, %s7401_s8 }
 0x334   :  { %v1617_v10 = vpop.permute.xlu1 %1616 }
 0x335   :  { %v1524_v16 = vpop.permute.xlu0 %1523  ;;  %v1627_v12 = vrot.slane %v1617_v10, 4  ;;  %v1528_v36 = vpop.permute.xlu2 %1527 }
 0x336   :  { %v1534_v11 = vrot.slane %v1524_v16, 4  ;;  %v1536_v37 = vrot.slane %v1528_v36, 4 }
 0x337   :  { %v1637_v44 = vsel %vm10932_vm11, %v1626_v46, %v1627_v12  ;;  %v1639_v59 = vsel %vm10933_vm6, %v1627_v12, %v1628_v63  ;;  %vm1656_vm11 = vcmask 15366   ;;  %vm1562_vm6 = vcmask 1043457  }
 0x338   :  { %v1544_v7 = vsel %vm10928_vm3, %v1533_v0, %v1534_v11  ;;  %v1638_v5 = vsel %vm10929_vm12, %v1615_v18, %v1637_v44  ;;  %v1640_v45 = vsel %vm10934_vm8, %v1617_v10, %v1639_v59  ;;  %v1550_v47 = vsel %vm10939_vm0, %v1528_v36, %v1536_v37  ;;  %vm8264_vm12 = vmor %vm1656_vm11, %vm10941_vm14  ;;  %v6640_v10 = vld [vmem:[#allocation4 + $0x20] sm:$0xf0] }
 0x339   :  { %1659 = vst [vmem:[#allocation4 + $0x60] sm:$0x77] %v1638_v5  ;;  %v1545_v43 = vsel %vm10940_vm7, %v1522_v21, %v1544_v7  ;;  %vm1563_vm3 = vcmask 15365   ;;  %v10943_v38 = vsel %vm8264_vm12, 4294967295, %v10942_v38  ;;  %vm10948_vm0 = vcmask 1043456   ;;  %vm10955_vm14 = vmmov %vm10949_vm15 }
 0x33a   :  { %1660 = vst [vmem:[#allocation4 + $0x68] sm:$0x77] %v1640_v45  ;;  %vm8268_vm7 = vmor %vm1563_vm3, %vm1562_vm6  ;;  %v10957_v46 = vmov 0 }
 0x33b   :  { %1572 = vst.msk [vmem:[#allocation4 + $0x58] sm:$0x33] %vm8255_vm5, %v1550_v47  ;;  %v10946_v24 = vsel %vm8268_vm7, 4294967295, %v10945_v24  ;;  %vm10950_vm5 = vmmov %vm10934_vm8 }
 0x33c   :  { %1566 = vst [vmem:[#allocation4 + $0x40] sm:$0x33] %v1545_v43  ;;  %v1613_v40 = vpop.permute.xlu1 %1612  ;;  %vm10951_vm1 = vmmov %vm10948_vm0 }
 0x33d   :  { %v1611_v54 = vpop.permute.xlu0 %1610  ;;  %v1520_v22 = vpop.permute.xlu2 %1519  ;;  %10944 = vst [vmem:[#allocation36_spill] sm:$0xff] %v10943_v38  ;;  %v1625_v62 = vrot.slane %v1613_v40, 4  ;;  %vm10952_vm11 = vmmov %vm10950_vm5 }
 0x33e   :  { %v1624_v61 = vrot.slane %v1611_v54, 4  ;;  %v1532_v33 = vrot.slane %v1520_v22, 4  ;;  %10947 = vst [vmem:[#allocation37_spill] sm:$0xff] %v10946_v24  ;;  %vm10953_vm6 = vmmov %vm10948_vm0 }
 0x33f   :  { %v1636_v39 = vsel %vm10934_vm8, %v1613_v40, %v1625_v62  ;;  %vm10954_vm3 = vmmov %vm10948_vm0 }
 0x340   :  { %v1632_v23 = vsel %vm10948_vm0, %v1623_v2, %v1624_v61  ;;  %v1543_v15 = vsel %vm10949_vm15, %v1520_v22, %v1532_v33  ;;  %v1634_v48 = vsel %vm10951_vm1, %v1624_v61, %v1625_v62  ;;  %1658 = vst.msk [vmem:[#allocation4 + $0x58] sm:$0xcc] %vm8264_vm12, %v1636_v39  ;;  %v7208_v53 = vld [vmem:[#allocation4 + $0x5c] sm:$0x70]  ;;  %v6672_v55 = vld [vmem:[#allocation4 + $0x60] sm:$0x70]  ;;  %vm10956_vm0 = vmmov %vm10955_vm14 }
 0x341   :  { %v1633_v41 = vsel %vm10950_vm5, %v1609_v25, %v1632_v23  ;;  %v1635_v29 = vsel %vm10952_vm11, %v1611_v54, %v1634_v48  ;;  %1565 = vst.msk [vmem:[#allocation4 + $0x38] sm:$0xee] %vm8268_vm7, %v1543_v15  ;;  %vm1662_vm1 = vcmask 1042432   ;;  %vm1663_vm5 = vcmask 14340   ;;  %vm10960_vm15 = vmmov %vm10954_vm3  ;;  %v6680_v47 = vld [vmem:[#allocation4 + $0x68] sm:$0x70] }
 0x342   :  { %1653 = vst [vmem:[#allocation4 + $0x48] sm:$0xcc] %v1633_v41  ;;  %vm8294_vm8 = vmor %vm1663_vm5, %vm1662_vm1  ;;  %v6654_v15 = vld [vmem:[#allocation4 + $0x10] sm:$0xf]  ;;  %v7209_v48 = vld [vmem:[#allocation4 + $0x64] sm:$0x70] }
 0x343   :  { %v6670_v2 = vld [vmem:[#allocation4 + $0x40] sm:$0xf]  ;;  %v7205_v20 = vld [vmem:[#allocation4 + $0x44] sm:$0xf]  ;;  %1654 = vst [vmem:[#allocation4 + $0x50] sm:$0xcc] %v1635_v29  ;;  %vm10962_vm1 = vmmov %vm10954_vm3 }
 0x344   :  { %v8282_v51 = vor.u32 %v7208_v53, %v6670_v2  ;;  %v8284_v57 = vor.u32 %v7205_v20, %v6672_v55  ;;  %v10958_v46 = vsel %vm8294_vm8, 4294967295, %v10957_v46  ;;  %vm10963_vm5 = vmmov %vm10962_vm1  ;;  %v7200_v2 = vld [vmem:[#allocation4 + $0x14] sm:$0xf] }
 0x345   :  { %10959 = vst [vmem:[#allocation38_spill] sm:$0xff] %v10958_v46 }
 0x346   :  { %v1526_v25 = vpop.permute.xlu1 %1525  ;;  %1776 = vrot.lane.b32.xlu0 %v8282_v51, %s7401_s8  ;;  %1778 = vrot.lane.b32.xlu1 %v8284_v57, %s7401_s8 }
 0x347   :  { %v1535_v21 = vrot.slane %v1526_v25, 4  ;;  %v1621_v17 = vpop.permute.xlu0 %1620 }
 0x348   :  { %v1629_v58 = vrot.slane %v1621_v17, 4 }
 0x349   :  { %v1546_v31 = vsel %vm10953_vm6, %v1534_v11, %v1535_v21  ;;  %v1548_v18 = vsel %vm10954_vm3, %v1535_v21, %v1536_v37  ;;  %vm10961_vm6 = vmmov %vm10952_vm11  ;;  %v7198_v37 = vld [vmem:[#allocation4 + $0x4] sm:$0xf] }
 0x34a   :  { %v1547_v34 = vsel %vm10955_vm14, %v1524_v16, %v1546_v31  ;;  %v1549_v0 = vsel %vm10956_vm0, %v1526_v25, %v1548_v18  ;;  %v1641_v12 = vsel %vm10960_vm15, %v1628_v63, %v1629_v58  ;;  %v1643_v36 = vsel %vm10952_vm11, %v1621_v17, %v1629_v58  ;;  %vm10964_vm3 = vmmov %vm10956_vm0  ;;  %v6694_v17 = vld [vmem:[#allocation4 + $0x58] sm:$0xf]  ;;  %v6646_v31 = vld [vmem:[#allocation4 + $0x8] sm:$0xf] }
 0x34b   :  { %1567 = vst [vmem:[#allocation4 + $0x48] sm:$0x33] %v1547_v34  ;;  %v1642_v11 = vsel %vm10961_vm6, %v8242_v52, %v1641_v12  ;;  %v8302_v44 = vor.u32 %v7198_v37, %v6640_v10  ;;  %vm10965_vm14 = vmmov %vm10956_vm0  ;;  %v6664_v10 = vld [vmem:[#allocation4 + $0x38] sm:$0xf0]  ;;  %v7214_v12 = vld [vmem:[#allocation4 + $0x34] sm:$0xf0] }
 0x34c   :  { %1568 = vst [vmem:[#allocation4 + $0x50] sm:$0x33] %v1549_v0  ;;  %v7215_v0 = vld [vmem:[#allocation4 + $0x5c] sm:$0xf]  ;;  %v6662_v37 = vld [vmem:[#allocation4 + $0x18] sm:$0xf] }
 0x34d   :  { %1661 = vst [vmem:[#allocation4 + $0x70] sm:$0x77] %v1642_v11  ;;  %v7213_v11 = vld [vmem:[#allocation4 + $0x1c] sm:$0xf]  ;;  %vm10966_vm0 = vcmask 1039360   ;;  %vm10967_vm15 = vcmask 1046528  }
 0x34e   :  { %1665 = vst.msk [vmem:[#allocation4 + $0x78] sm:$0x77] %vm8294_vm8, %v1643_v36  ;;  %v1518_v16 = vpop.permute.xlu1 %1517  ;;  %1762 = vrot.lane.b32.xlu0 %v8302_v44, %s7401_s8  ;;  %vm10968_vm11 = vmmov %vm10966_vm0  ;;  %vm10750_vm6 = vcmask 244736  }
 0x34f   :  { %v1531_v59 = vrot.slane %v1518_v16, 4 }
 0x351   :  { %v1539_v63 = vsel %vm10962_vm1, %v1530_v50, %v1531_v59  ;;  %v1541_v7 = vsel %vm10963_vm5, %v1531_v59, %v1532_v33  ;;  %v6663_v59 = vor.u32 %v7214_v12, %v6662_v37  ;;  %vm10969_vm1 = vmmov %vm10966_vm0 }
 0x352   :  { %v1540_v52 = vsel %vm10964_vm3, %v8235_v32, %v1539_v63  ;;  %v1542_v5 = vsel %vm10965_vm14, %v1518_v16, %v1541_v7  ;;  %v7206_v45 = vld [vmem:[#allocation4 + $0x4c] sm:$0xf]  ;;  %v6678_v23 = vld [vmem:[#allocation4 + $0x48] sm:$0xf]  ;;  %v6667_v16 = vor.u32 %v7213_v11, %v6664_v10  ;;  %vm10970_vm5 = vmmov %vm10967_vm15 }
 0x353   :  { %1560 = vst [vmem:[#allocation4 + $0x28] sm:$0xee] %v1540_v52  ;;  %v8315_v43 = vor.u32 %v7206_v45, %v6680_v47  ;;  %v6686_v54 = vld [vmem:[#allocation4 + $0x50] sm:$0xf]  ;;  %v7207_v40 = vld [vmem:[#allocation4 + $0x54] sm:$0xf]  ;;  %v8333_v53 = vor.u32 %v7209_v48, %v6678_v23  ;;  %vm10971_vm3 = vmmov %vm10966_vm0 }
 0x354   :  { %1561 = vst [vmem:[#allocation4 + $0x30] sm:$0xee] %v1542_v5  ;;  %v7210_v22 = vld [vmem:[#allocation4 + $0x6c] sm:$0x70]  ;;  %v6688_v61 = vld [vmem:[#allocation4 + $0x70] sm:$0x70]  ;;  %vm10972_vm14 = vmmov %vm10970_vm5 }
 0x355   :  { %1782 = vrot.lane.b32.xlu1 %v8315_v43, %s7401_s8  ;;  %v8319_v50 = vor.u32 %v7210_v22, %v6686_v54  ;;  %v8321_v62 = vor.u32 %v7207_v40, %v6688_v61  ;;  %v7199_v32 = vld [vmem:[#allocation4 + $0xc] sm:$0xf]  ;;  %v7216_v20 = vld [vmem:[#allocation4 + $0x74] sm:$0x70]  ;;  %v6696_v34 = vld [vmem:[#allocation4 + $0x78] sm:$0x70] }
 0x356   :  { %v6695_v18 = vor.u32 %v7216_v20, %v6694_v17  ;;  %v6699_v36 = vor.u32 %v7215_v0, %v6696_v34  ;;  %v6634_v40 = vld [vmem:[%s10667_s2 + $0x8] sm:$0xf]  ;;  %v7212_v22 = vld [vmem:[%s10667_s2 + $0x8] sm:$0x10] }
 0x357   :  { %1784 = vrot.lane.b32.xlu2 %v8319_v50, %s7401_s8  ;;  %1786 = vrot.lane.b32.xlu0 %v8321_v62, %s7401_s8  ;;  %v8388_v23 = vor.u32 %v7212_v22, %v6634_v40 }
 0x35a   :  { %v6648_v33 = vld [vmem:[#allocation4 + $0x28] sm:$0xf0]  ;;  %v7202_v25 = vld [vmem:[#allocation4 + $0x24] sm:$0xf0] }
 0x35b   :  { %v8327_v39 = vor.u32 %v7199_v32, %v6648_v33  ;;  %v7203_v41 = vld [vmem:[#allocation4 + $0x2c] sm:$0xf0]  ;;  %v6656_v55 = vld [vmem:[#allocation4 + $0x30] sm:$0xf0]  ;;  %v8343_v58 = vor.u32 %v7202_v25, %v6646_v31 }
 0x35c   :  { %v8329_v29 = vor.u32 %v7203_v41, %v6654_v15  ;;  %v8339_v21 = vor.u32 %v7200_v2, %v6656_v55 }
 0x35d   :  { %1766 = vrot.lane.b32.xlu1 %v8327_v39, %s7401_s8 }
 0x35f   :  { %1780 = vrot.lane.b32.xlu0 %v8333_v53, %s7401_s8  ;;  %1768 = vrot.lane.b32.xlu2 %v8329_v29, %s7401_s8 }
 0x365   :  { %1770 = vrot.lane.b32.xlu1 %v8339_v21, %s7401_s8 }
 0x367   :  { %1788 = vrot.lane.b32.xlu0 %v6695_v18, %s7401_s8  ;;  %1764 = vrot.lane.b32.xlu2 %v8343_v58, %s7401_s8 }
 0x36d   :  { %1790 = vrot.lane.b32.xlu1 %v6699_v36, %s7401_s8 }
 0x36f   :  { %1774 = vrot.lane.b32.xlu0 %v6667_v16, %s7401_s8  ;;  %1772 = vrot.lane.b32.xlu2 %v6663_v59, %s7401_s8 }
 0x375   :  { %2106 = vrot.lane.b32.xlu1 %v8284_v57, %s7402_s9 }
 0x377   :  { %2110 = vrot.lane.b32.xlu0 %v8315_v43, %s7402_s9  ;;  %2108 = vrot.lane.b32.xlu2 %v8333_v53, %s7402_s9 }
 0x37d   :  { %2090 = vrot.lane.b32.xlu1 %v8302_v44, %s7402_s9 }
 0x37f   :  { %2104 = vrot.lane.b32.xlu0 %v8282_v51, %s7402_s9  ;;  %2092 = vrot.lane.b32.xlu2 %v8343_v58, %s7402_s9 }
 0x385   :  { %2094 = vrot.lane.b32.xlu1 %v8327_v39, %s7402_s9 }
 0x387   :  { %2114 = vrot.lane.b32.xlu0 %v8321_v62, %s7402_s9  ;;  %2088 = vrot.lane.b32.xlu2 %v8244_v42, %s7402_s9 }
 0x38b   :  { %v1761_v63 = vpop.permute.xlu2 %1760 }
 0x38d   :  { %2116 = vrot.lane.b32.xlu1 %v6695_v18, %s7402_s9 }
 0x38f   :  { %2118 = vrot.lane.b32.xlu2 %v6699_v36, %s7402_s9  ;;  %2098 = vrot.lane.b32.xlu0 %v8339_v21, %s7402_s9 }
 0x395   :  { %2100 = vrot.lane.b32.xlu1 %v6663_v59, %s7402_s9 }
 0x397   :  { %2112 = vrot.lane.b32.xlu2 %v8319_v50, %s7402_s9  ;;  %2102 = vrot.lane.b32.xlu0 %v6667_v16, %s7402_s9 }
 0x39d   :  { %2096 = vrot.lane.b32.xlu1 %v8329_v29, %s7402_s9 }
 0x3b1   :  { %v1785_v7 = vpop.permute.xlu2 %1784 }
 0x3b8   :  { %v1777_v52 = vpop.permute.xlu0 %1776  ;;  %v1779_v5 = vpop.permute.xlu1 %1778 }
 0x3b9   :  { %v1799_v45 = vsel %vm10966_vm0, %v1777_v52, %v1779_v5  ;;  %v1769_v47 = vpop.permute.xlu2 %1768 }
 0x3ba   :  { %v1818_v54 = vsel %vm10967_vm15, %v1799_v45, 0  ;;  %vm10973_vm15 = vmmov %vm10970_vm5 }
 0x3bb   :  { %1844 = vmatpush.bf16.msra.mxu3 %v1818_v54  ;;  %v1962_v18 = vsel %vm10973_vm15, %v8282_v51, 0  ;;  %vm10978_vm15 = vmmov %vm10966_vm0 }
 0x3c0   :  { %v1763_v61 = vpop.permute.xlu0 %1762 }
 0x3c1   :  { %v1765_v32 = vpop.permute.xlu2 %1764  ;;  %v1792_v33 = vsel %vm10968_vm11, %v1761_v63, %v1763_v61  ;;  %vm10974_vm11 = vmmov %vm10966_vm0 }
 0x3c2   :  { %1845 = vmatpush.bf16.msra.mxu3 %v1792_v33  ;;  %v1793_v16 = vsel %vm10966_vm0, %v1763_v61, %v1765_v32 }
 0x3c5   :  { %6700 = vmatmul.msk.bf16.vlgmr.msra.gmra.mxu3 %vm10750_vm6, %v8388_v23 }
 0x3c7   :  { %v1783_v15 = vpop.permute.xlu1 %1782 }
 0x3c8   :  { %v1802_v41 = vsel %vm10969_vm1, %v1783_v15, %v1785_v7  ;;  %vm10975_vm1 = vmmov %vm10966_vm0 }
 0x3c9   :  { %v1827_v48 = vsel %vm10970_vm5, %v1802_v41, 0  ;;  %v1787_v55 = vpop.permute.xlu0 %1786  ;;  %v1773_v20 = vpop.permute.xlu2 %1772 }
 0x3ca   :  { %1886 = vmatpush.bf16.msrb.mxu2 %v1827_v48  ;;  %v1803_v2 = vsel %vm10971_vm3, %v1785_v7, %v1787_v55  ;;  %vm10976_vm3 = vmmov %vm10970_vm5 }
 0x3cb   :  { %v1830_v25 = vsel %vm10972_vm14, %v1803_v2, 0  ;;  %vm10977_vm14 = vmmov %vm10976_vm3 }
 0x3cc   :  { %1900 = vmatpush.bf16.msrb.mxu3 %v1830_v25  ;;  %v1974_v51 = vsel %vm10977_vm14, %v8319_v50, 0 }
 0x3cf   :  { %v1767_v17 = vpop.permute.xlu1 %1766 }
 0x3d0   :  { %v1795_v31 = vsel %vm10966_vm0, %v1767_v17, %v1769_v47 }
 0x3d1   :  { %1887 = vmatpush.bf16.msrb.mxu2 %v1795_v31  ;;  %v1781_v34 = vpop.permute.xlu0 %1780  ;;  %v2109_v12 = vpop.permute.xlu2 %2108  ;;  %v7204_v31 = vld [vmem:[#allocation4 + $0x34] sm:$0xf0] }
 0x3d2   :  { %v1800_v0 = vsel %vm10974_vm11, %v1779_v5, %v1781_v34  ;;  %v1801_v10 = vsel %vm10975_vm1, %v1781_v34, %v1783_v15  ;;  %vm10979_vm11 = vmmov %vm10966_vm0  ;;  %v7211_v15 = vld [vmem:[#allocation4 + $0x74] sm:$0x70] }
 0x3d3   :  { %v1821_v36 = vsel %vm10970_vm5, %v1800_v0, 0  ;;  %v1824_v11 = vsel %vm10976_vm3, %v1801_v10, 0  ;;  %v1794_v63 = vsel %vm10979_vm11, %v1765_v32, %v1767_v17  ;;  %vm10980_vm1 = vmmov %vm10976_vm3 }
 0x3d4   :  { %6703 = vmatmul.msk.bf16.vlgmr.msrb.gmra.mxu2 %vm10750_vm6, %v8388_v23  ;;  %1858 = vmatpush.bf16.msrb.mxu0 %v1821_v36  ;;  %v1965_v7 = vsel %vm10980_vm1, %v8284_v57, 0  ;;  %vm10981_vm5 = vmmov %vm10966_vm0  ;;  %v6709_v57 = vld [vmem:[%s10667_s2] sm:$0xf]  ;;  %v1968_v33 = vsel %vm10980_vm1, %v8333_v53, 0 }
 0x3d5   :  { %1988 = vmatpush.bf16.msra.mxu2 %v1962_v18  ;;  %1872 = vmatpush.bf16.msrb.mxu1 %v1824_v11  ;;  %vm10982_vm3 = vmmov %vm10980_vm1  ;;  %v6717_v53 = vld [vmem:[#allocation4 + $0x58] sm:$0xf] }
 0x3d6   :  { %vm10983_vm14 = vmmov %vm10980_vm1  ;;  %v6718_v2 = vor.u32 %v7211_v15, %v6717_v53  ;;  %v6713_v18 = vld [vmem:[#allocation4 + $0x18] sm:$0xf] }
 0x3d7   :  { %v1771_v37 = vpop.permute.xlu1 %1770  ;;  %v1977_v45 = vsel %vm10983_vm14, %v8321_v62, 0  ;;  %vm10985_vm11 = vmmov %vm10980_vm1  ;;  %vm10988_vm14 = vcmask 1031168  }
 0x3d8   :  { %v1796_v59 = vsel %vm10978_vm15, %v1769_v47, %v1771_v37  ;;  %1859 = vmatpush.bf16.msrb.mxu0 %v1793_v16  ;;  %vm10984_vm15 = vmmov %vm10966_vm0 }
 0x3d9   :  { %1989 = vmatpush.bf16.msra.mxu2 %v8244_v42  ;;  %1901 = vmatpush.bf16.msrb.mxu3 %v1796_v59  ;;  %v1789_v52 = vpop.permute.xlu0 %1788  ;;  %v8414_v5 = vpop.permute.xlu2 %2092  ;;  %v1797_v40 = vsel %vm10984_vm15, %v1771_v37, %v1773_v20  ;;  %vm10990_vm15 = vmmov %vm10988_vm14 }
 0x3da   :  { %1873 = vmatpush.bf16.msrb.mxu1 %v1794_v63  ;;  %v1804_v42 = vsel %vm10981_vm5, %v1787_v55, %v1789_v52  ;;  %vm10986_vm5 = vmmov %vm10966_vm0 }
 0x3db   :  { %6701 = vmatmul.msk.bf16.vlgmr.msrb.gmra.mxu0 %vm10750_vm6, %v8388_v23  ;;  %v1833_v50 = vsel %vm10982_vm3, %v1804_v42, 0  ;;  %vm10987_vm3 = vmmov %vm10980_vm1  ;;  %v2278_v42 = vld [vmem:[%s10666_s4 + $0x8] sm:$0x3] }
 0x3dc   :  { %6704 = vmatmul.msk.bf16.vlgmr.msrb.gmra.mxu3 %vm10750_vm6, %v8388_v23  ;;  %1914 = vmatpush.bf16.msra.mxu0 %v1833_v50  ;;  %v1971_v41 = vsel %vm10987_vm3, %v8315_v43, 0  ;;  %v6730_v50 = vld [vmem:[%s10667_s2 + $0x10] sm:$0xf] }
 0x3dd   :  { %2044 = vmatpush.bf16.msrb.mxu2 %v1974_v51  ;;  %2002 = vmatpush.bf16.msra.mxu3 %v1965_v7 }
 0x3de   :  { %6702 = vmatmul.msk.bf16.vlgmr.msrb.gmra.mxu1 %vm10750_vm6, %v8388_v23 }
 0x3df   :  { %v1791_v47 = vpop.permute.xlu1 %1790 }
 0x3e0   :  { %v1805_v54 = vsel %vm10966_vm0, %v1789_v52, %v1791_v47  ;;  %1915 = vmatpush.bf16.msra.mxu0 %v1797_v40  ;;  %vm10989_vm0 = vmmov %vm10980_vm1 }
 0x3e1   :  { %2045 = vmatpush.bf16.msrb.mxu2 %v8329_v29  ;;  %v7197_v29 = vld [vmem:[%s10667_s2] sm:$0x10]  ;;  %2003 = vmatpush.bf16.msra.mxu3 %v8302_v44  ;;  %v1836_v61 = vsel %vm10985_vm11, %v1805_v54, 0  ;;  %v1775_v32 = vpop.permute.xlu0 %1774  ;;  %v2089_v44 = vpop.permute.xlu2 %2088  ;;  %vm10991_vm11 = vmmov %vm10989_vm0 }
 0x3e2   :  { %v8435_v22 = vor.u32 %v7197_v29, %v6709_v57  ;;  %1928 = vmatpush.bf16.msra.mxu1 %v1836_v61  ;;  %v1798_v62 = vsel %vm10986_vm5, %v1773_v20, %v1775_v32  ;;  %vm10992_vm1 = vmmov %vm10989_vm0  ;;  %v7217_v57 = vld [vmem:[%s10667_s2 + $0x10] sm:$0x10]  ;;  %v10747_v29 = vmov 1  }
 0x3e3   :  { %vm10993_vm5 = vmmov %vm10988_vm14  ;;  %7312 = vset.pattern.permute.xlu0 %v10747_v29  ;;  %7311 = vset.pattern.permute.xlu2 %v10747_v29  ;;  %v6731_v40 = vor.u32 %v7217_v57, %v6730_v50 }
 0x3e4   :  { %2016 = vmatpush.bf16.msrb.mxu0 %v1968_v33  ;;  %6719 = vmatmul.msk.bf16.vlgmr.msra.gmra.mxu2 %vm10750_vm6, %v8435_v22  ;;  %vm10994_vm3 = vmmov %vm10993_vm5 }
 0x3e5   :  { %2058 = vmatpush.bf16.msrb.mxu3 %v1977_v45  ;;  %2286 = vperm.xlu0 %7312, %v2278_v42  }
 0x3e6   :  { %1929 = vmatpush.bf16.msra.mxu1 %v1798_v62 }
 0x3e7   :  { %v2107_v48 = vpop.permute.xlu1 %2106 }
 0x3e8   :  { %2017 = vmatpush.bf16.msrb.mxu0 %v8343_v58  ;;  %v2128_v55 = vsel %vm10988_vm14, %v2107_v48, %v2109_v12  ;;  %v1980_v58 = vsel %vm10991_vm11, %v6718_v2, 0  ;;  %vm10995_vm14 = vmmov %vm10989_vm0 }
 0x3e9   :  { %2059 = vmatpush.bf16.msrb.mxu3 %v8339_v21  ;;  %v2148_v21 = vsel %vm10989_vm0, %v2128_v55, 0  ;;  %v2111_v25 = vpop.permute.xlu0 %2110  ;;  %v2119_v43 = vpop.permute.xlu2 %2118  ;;  %vm10996_vm0 = vmmov %vm10994_vm3 }
 0x3ea   :  { %2030 = vmatpush.bf16.msrb.mxu1 %v1971_v41  ;;  %2185 = vmatpush.bf16.msra.mxu2 %v2148_v21  ;;  %v2129_v17 = vsel %vm10990_vm15, %v2109_v12, %v2111_v25  ;;  %vm10997_vm15 = vmmov %vm10996_vm0 }
 0x3eb   :  { %6705 = vmatmul.msk.bf16.vlgmr.msra.gmra.mxu0 %vm10750_vm6, %v8388_v23  ;;  %v2151_v20 = vsel %vm10992_vm1, %v2129_v17, 0  ;;  %vm10998_vm11 = vmmov %vm10996_vm0 }
 0x3ec   :  { %6720 = vmatmul.msk.bf16.vlgmr.msra.gmra.mxu3 %vm10750_vm6, %v8435_v22  ;;  %2072 = vmatpush.bf16.msra.mxu0 %v1980_v58  ;;  %vm10999_vm1 = vmmov %vm10996_vm0 }
 0x3ed   :  { %2199 = vmatpush.bf16.msra.mxu3 %v2151_v20 }
 0x3ee   :  { %2031 = vmatpush.bf16.msrb.mxu1 %v8327_v39  ;;  %v6714_v39 = vor.u32 %v7204_v31, %v6713_v18 }
 0x3ef   :  { %6706 = vmatmul.msk.bf16.vlgmr.msra.gmra.mxu1 %vm10750_vm6, %v8388_v23  ;;  %v2091_v34 = vpop.permute.xlu1 %2090 }
 0x3f0   :  { %v2121_v0 = vsel %vm10993_vm5, %v2091_v34, %v8414_v5  ;;  %2073 = vmatpush.bf16.msra.mxu0 %v6714_v39  ;;  %v2120_v51 = vsel %vm10996_vm0, %v2089_v44, %v2091_v34  ;;  %vm11000_vm5 = vmmov %vm10995_vm14 }
 0x3f1   :  { %2186 = vmatpush.bf16.msra.mxu2 %v2121_v0  ;;  %v2105_v10 = vpop.permute.xlu0 %2104  ;;  %v2113_v36 = vpop.permute.xlu2 %2112 }
 0x3f2   :  { %v2127_v12 = vsel %vm10994_vm3, %v2105_v10, %v2107_v48  ;;  %v2130_v16 = vsel %vm10998_vm11, %v2111_v25, %v2113_v36  ;;  %vm11001_vm3 = vmmov %vm11000_vm5 }
 0x3f3   :  { %v2145_v23 = vsel %vm10995_vm14, %v2127_v12, 0  ;;  %v2154_v52 = vsel %vm11001_vm3, %v2130_v16, 0  ;;  %vm11002_vm14 = vmmov %vm10996_vm0 }
 0x3f4   :  { %6723 = vmatmul.msk.bf16.vlgmr.msrb.gmra.mxu2 %vm10750_vm6, %v8435_v22  ;;  %2171 = vmatpush.bf16.msra.mxu1 %v2145_v23  ;;  %vm11004_vm11 = vmmov %vm11001_vm3 }
 0x3f7   :  { %v2095_v11 = vpop.permute.xlu1 %2094 }
 0x3f8   :  { %v2122_v37 = vsel %vm10997_vm15, %v8414_v5, %v2095_v11  ;;  %2172 = vmatpush.bf16.msra.mxu1 %v2120_v51  ;;  %v2277_v5 = vld [vmem:[%s10666_s4] sm:$0xff]  ;;  %vm11003_vm15 = vmmov %vm11001_vm3 }
 0x3f9   :  { %2200 = vmatpush.bf16.msra.mxu3 %v2122_v37  ;;  %v2115_v59 = vpop.permute.xlu0 %2114  ;;  %2281 = vperm.xlu2 %7311, %v2277_v5   ;;  %vm11007_vm3 = vmmov %vm10996_vm0 }
 0x3fa   :  { %v2131_v63 = vsel %vm10999_vm1, %v2113_v36, %v2115_v59  ;;  %vm11005_vm1 = vmmov %vm10996_vm0 }
 0x3fb   :  { %6721 = vmatmul.msk.bf16.vlgmr.msrb.gmra.mxu0 %vm10750_vm6, %v8435_v22  ;;  %v2157_v7 = vsel %vm11000_vm5, %v2131_v63, 0  ;;  %vm11006_vm5 = vmmov %vm10996_vm0 }
 0x3fc   :  { %6724 = vmatmul.msk.bf16.vlgmr.msrb.gmra.mxu3 %vm10750_vm6, %v8435_v22  ;;  %2213 = vmatpush.bf16.msrb.mxu0 %v2154_v52 }
 0x3ff   :  { %6722 = vmatmul.msk.bf16.vlgmr.msrb.gmra.mxu1 %vm10750_vm6, %v8435_v22  ;;  %v2117_v45 = vpop.permute.xlu1 %2116 }
 0x400   :  { %2227 = vmatpush.bf16.msrb.mxu1 %v2157_v7  ;;  %v2132_v47 = vsel %vm11002_vm14, %v2115_v59, %v2117_v45  ;;  %v2133_v54 = vsel %vm10996_vm0, %v2117_v45, %v2119_v43  ;;  %vm11008_vm14 = vmmov %vm10996_vm0  ;;  %vm11009_vm0 = vcmask 269312  }
 0x401   :  { %v2160_v61 = vsel %vm11003_vm15, %v2132_v47, 0  ;;  %v2163_v32 = vsel %vm11004_vm11, %v2133_v54, 0  ;;  %v2099_v33 = vpop.permute.xlu0 %2098  ;;  %7313 = vset.pattern.permute.xlu2 %v10878_v1  ;;  %vm11010_vm15 = vmmov %vm11009_vm0  ;;  %vm11011_vm11 = vcmask 1043456  }
 0x402   :  { %2241 = vmatpush.bf16.msrb.mxu2 %v2160_v61  ;;  %2255 = vmatpush.bf16.msrb.mxu3 %v2163_v32 }
 0x404   :  { %6733 = vmatmul.msk.bf16.vlgmr.msra.gmra.mxu2 %vm10750_vm6, %v6731_v40 }
 0x407   :  { %v2101_v44 = vpop.permute.xlu1 %2100 }
 0x408   :  { %v2125_v62 = vsel %vm11005_vm1, %v2099_v33, %v2101_v44  ;;  %vm11012_vm1 = vmmov %vm11009_vm0 }
 0x409   :  { %2242 = vmatpush.bf16.msrb.mxu2 %v2125_v62  ;;  %v2103_v15 = vpop.permute.xlu0 %2102 }
 0x40a   :  { %v2126_v41 = vsel %vm11006_vm5, %v2101_v44, %v2103_v15  ;;  %vm11015_vm5 = vmmov %vm11011_vm11 }
 0x40b   :  { %6725 = vmatmul.msk.bf16.vlgmr.msra.gmra.mxu0 %vm10750_vm6, %v8435_v22  ;;  %2256 = vmatpush.bf16.msrb.mxu3 %v2126_v41 }
 0x40c   :  { %6734 = vmatmul.msk.bf16.vlgmr.msra.gmra.mxu3 %vm10750_vm6, %v6731_v40 }
 0x40f   :  { %6732 = vmatmul.msk.bf16.vlgmr.msra.gmra.mxu1 %vm10750_vm6, %v6731_v40  ;;  %v2097_v48 = vpop.permute.xlu1 %2096 }
 0x410   :  { %v2123_v53 = vsel %vm11007_vm3, %v2095_v11, %v2097_v48  ;;  %v2124_v55 = vsel %vm11008_vm14, %v2097_v48, %v2099_v33  ;;  %vm11016_vm3 = vmmov %vm11015_vm5 }
 0x411   :  { %2214 = vmatpush.bf16.msrb.mxu0 %v2123_v53  ;;  %2228 = vmatpush.bf16.msrb.mxu1 %v2124_v55  ;;  %vm11017_vm14 = vmmov %vm11009_vm0 }
 0x414   :  { %6737 = vmatmul.msk.bf16.vlgmr.msrb.gmra.mxu2 %vm10750_vm6, %v6731_v40 }
 0x41b   :  { %6735 = vmatmul.msk.bf16.vlgmr.msrb.gmra.mxu0 %vm10750_vm6, %v6731_v40 }
 0x41c   :  { %6738 = vmatmul.msk.bf16.vlgmr.msrb.gmra.mxu3 %vm10750_vm6, %v6731_v40 }
 0x41f   :  { %6736 = vmatmul.msk.bf16.vlgmr.msrb.gmra.mxu1 %vm10750_vm6, %v6731_v40 }
 0x448   :  { %v1847_v1 = vpop.f32.mrf.mxu3 }
 0x450   :  { %v1849_v22 = vpop.f32.mrf.mxu3 }
 0x453   :  { %v8520_v42 = vpop.permute.xlu2 %2281 }
 0x457   :  { %v1889_v2 = vpop.f32.mrf.mxu2  ;;  %v2287_v19 = vpop.permute.xlu0 %2286 }
 0x458   :  { %v1861_v21 = vpop.f32.mrf.mxu0 }
 0x45b   :  { %v1875_v25 = vpop.f32.mrf.mxu1 }
 0x45f   :  { %v8510_v17 = vpop.f32.mrf.mxu2  ;;  %v1903_v43 = vpop.f32.mrf.mxu3 }
 0x460   :  { %v1863_v58 = vpop.f32.mrf.mxu0 }
 0x463   :  { %v1877_v20 = vpop.f32.mrf.mxu1 }
 0x467   :  { %v8512_v31 = vpop.f32.mrf.mxu3  ;;  %v1991_v18 = vpop.f32.mrf.mxu2 }
 0x468   :  { %v1917_v34 = vpop.f32.mrf.mxu0  ;;  %v1992_v57 = vadd.f32 %v1991_v18, %v1847_v1 }
 0x46c   :  { %v8514_v39 = vpop.f32.mrf.mxu1 }
 0x46f   :  { %v1993_v0 = vpop.f32.mrf.mxu2  ;;  %v2005_v10 = vpop.f32.mrf.mxu3 }
 0x470   :  { %v1919_v12 = vpop.f32.mrf.mxu0  ;;  %v2006_v52 = vadd.f32 %v2005_v10, %v1861_v21 }
 0x474   :  { %v8516_v23 = vpop.f32.mrf.mxu1 }
 0x477   :  { %v2007_v36 = vpop.f32.mrf.mxu3  ;;  %v2047_v11 = vpop.f32.mrf.mxu2 }
 0x478   :  { %v2019_v51 = vpop.f32.mrf.mxu0  ;;  %v2008_v10 = vadd.f32 %v2007_v36, %v1863_v58 }
 0x479   :  { %v2020_v55 = vadd.f32 %v2019_v51, %v1875_v25 }
 0x47c   :  { %v2033_v37 = vpop.f32.mrf.mxu1 }
 0x47f   :  { %v8518_v16 = vpop.f32.mrf.mxu2  ;;  %v2061_v59 = vpop.f32.mrf.mxu3 }
 0x480   :  { %v2021_v63 = vpop.f32.mrf.mxu0 }
 0x481   :  { %v2022_v29 = vadd.f32 %v2021_v63, %v1877_v20 }
 0x484   :  { %v2035_v7 = vpop.f32.mrf.mxu1 }
 0x487   :  { %v2063_v5 = vpop.f32.mrf.mxu3  ;;  %v2188_v50 = vpop.f32.mrf.mxu2 }
 0x488   :  { %v2264_v45 = vadd.f32 %v2188_v50, %v2006_v52  ;;  %v2075_v47 = vpop.f32.mrf.mxu0  ;;  %v2062_v52 = vadd.f32 %v2061_v59, %v1917_v34  ;;  %v1994_v50 = vadd.f32 %v1993_v0, %v1849_v22  ;;  %v2064_v20 = vadd.f32 %v2063_v5, %v1919_v12 }
 0x48a   :  { %v2290_v61 = vadd.f32 %v8520_v42, %v2264_v45 }
 0x48c   :  { %v2174_v54 = vpop.f32.mrf.mxu1  ;;  %v2304_v33 = vmax.f32 %v2290_v61, 0.0  ;;  %v2048_v61 = vadd.f32 %v2047_v11, %v1903_v43 }
 0x48d   :  { %v2263_v40 = vadd.f32 %v2174_v54, %v1992_v57  ;;  %v2034_v57 = vadd.f32 %v2033_v37, %v1889_v2  ;;  %v2036_v37 = vadd.f32 %v2035_v7, %v8510_v17 }
 0x48e   :  { %v2318_v62 = vmul.f32 %v8045_v49, %v2304_v33 }
 0x48f   :  { %v2289_v32 = vadd.f32 %v8520_v42, %v2263_v40  ;;  %v2190_v15 = vpop.f32.mrf.mxu2  ;;  %v2202_v41 = vpop.f32.mrf.mxu3 }
 0x490   :  { %v8526_v53 = vpop.f32.mrf.mxu0  ;;  %v2265_v18 = vadd.f32 %v2202_v41, %v2020_v55 }
 0x491   :  { %v2303_v44 = vmax.f32 %v2289_v32, 0.0  ;;  %v2271_v32 = vadd.f32 %v2190_v15, %v2008_v10  ;;  %v2076_v15 = vadd.f32 %v2075_v47, %v8514_v39  ;;  %v2050_v10 = vadd.f32 %v8518_v16, %v8512_v31 }
 0x492   :  { %v2291_v45 = vadd.f32 %v8520_v42, %v2265_v18 }
 0x493   :  { %v2317_v48 = vmul.f32 %v8038_v4, %v2303_v44  ;;  %v2297_v36 = vadd.f32 %v2287_v19, %v2271_v32 }
 0x494   :  { %v2176_v1 = vpop.f32.mrf.mxu1  ;;  %v2305_v58 = vmax.f32 %v2291_v45, 0.0 }
 0x495   :  { %v2331_v21 = vpack.c.bf16 %v2318_v62, %v2317_v48  ;;  %v2270_v25 = vadd.f32 %v2176_v1, %v1994_v50  ;;  %v2311_v12 = vmax.f32 %v2297_v36, 0.0 }
 0x496   :  { %v2319_v55 = vmul.f32 %v8029_v14, %v2305_v58 }
 0x497   :  { %2347 = vrot.lane.b32.xlu1 %v2331_v21, %s7408_s18  ;;  %v2204_v54 = vpop.f32.mrf.mxu3  ;;  %v2244_v40 = vpop.f32.mrf.mxu2  ;;  %v2296_v43 = vadd.f32 %v2287_v19, %v2270_v25 }
 0x498   :  { %v2268_v33 = vadd.f32 %v2244_v40, %v2062_v52  ;;  %v2216_v44 = vpop.f32.mrf.mxu0  ;;  %v2272_v34 = vadd.f32 %v2204_v54, %v2022_v29 }
 0x499   :  { %v2266_v51 = vadd.f32 %v2216_v44, %v2034_v57  ;;  %v2310_v7 = vmax.f32 %v2296_v43, 0.0 }
 0x49a   :  { %v2294_v41 = vadd.f32 %v8520_v42, %v2268_v33  ;;  %v2298_v1 = vadd.f32 %v2287_v19, %v2272_v34 }
 0x49b   :  { %v2292_v22 = vadd.f32 %v8520_v42, %v2266_v51  ;;  %v2324_v25 = vmul.f32 %v8038_v4, %v2310_v7  ;;  %v2325_v51 = vmul.f32 %v8045_v49, %v2311_v12  ;;  %v8578_v12 = vld.sshfl [vmem:[#allocation1] sm:$0xff pattern:$0x75643120]  ;;  %v8580_v7 = vld.sshfl [vmem:[#allocation1 + $0x8] sm:$0xff pattern:$0x75643120] }
 0x49c   :  { %v2230_v62 = vpop.f32.mrf.mxu1  ;;  %v2308_v2 = vmax.f32 %v2294_v41, 0.0 }
 0x49d   :  { %v2267_v48 = vadd.f32 %v2230_v62, %v2048_v61  ;;  %v2306_v11 = vmax.f32 %v2292_v22, 0.0  ;;  %v2312_v61 = vmax.f32 %v2298_v1, 0.0  ;;  %v2078_v62 = vadd.f32 %v8526_v53, %v8516_v23 }
 0x49e   :  { %v2322_v59 = vmul.f32 %v8108_v9, %v2308_v2  ;;  %v2335_v43 = vpack.c.bf16 %v2325_v51, %v2324_v25  ;;  %v8597_v51 = vld [vmem:[%s10664_s0 + $0x12] sm:$0xff] }
 0x49f   :  { %v2293_v0 = vadd.f32 %v8520_v42, %v2267_v48  ;;  %v2320_v29 = vmul.f32 %v8032_v3, %v2306_v11  ;;  %v2246_v21 = vpop.f32.mrf.mxu2  ;;  %v2258_v18 = vpop.f32.mrf.mxu3  ;;  %v2326_v34 = vmul.f32 %v8029_v14, %v2312_v61  ;;  %3489 = vst [vmem:[#allocation1] ss:$2 sm:$0xff] %v8597_v51 }
 0x4a0   :  { %v2275_v50 = vadd.f32 %v2246_v21, %v2064_v20  ;;  %v2218_v17 = vpop.f32.mrf.mxu0  ;;  %v2269_v5 = vadd.f32 %v2258_v18, %v2076_v15 }
 0x4a1   :  { %v2307_v63 = vmax.f32 %v2293_v0, 0.0  ;;  %v2273_v57 = vadd.f32 %v2218_v17, %v2036_v37  ;;  %v2332_v39 = vpack.c.bf16 %v2320_v29, %v2319_v55 }
 0x4a2   :  { %v2301_v47 = vadd.f32 %v2287_v19, %v2275_v50  ;;  %v2295_v31 = vadd.f32 %v8520_v42, %v2269_v5 }
 0x4a3   :  { %v2321_v52 = vmul.f32 %v8111_v27, %v2307_v63  ;;  %v2299_v32 = vadd.f32 %v2287_v19, %v2273_v57  ;;  %2349 = vrot.lane.b32.xlu2 %v2332_v39, %s7408_s18 }
 0x4a4   :  { %v2232_v45 = vpop.f32.mrf.mxu1  ;;  %v2315_v33 = vmax.f32 %v2301_v47, 0.0  ;;  %v2309_v42 = vmax.f32 %v2295_v31, 0.0 }
 0x4a5   :  { %v2274_v54 = vadd.f32 %v2232_v45, %v2050_v10  ;;  %v2333_v40 = vpack.c.bf16 %v2322_v59, %v2321_v52  ;;  %v2313_v16 = vmax.f32 %v2299_v32, 0.0 }
 0x4a6   :  { %v2329_v48 = vmul.f32 %v8108_v9, %v2315_v33  ;;  %v2323_v53 = vmul.f32 %v8100_v13, %v2309_v42 }
 0x4a7   :  { %v2300_v44 = vadd.f32 %v2287_v19, %v2274_v54  ;;  %2351 = vrot.lane.b32.xlu1 %v2333_v40, %s7408_s18  ;;  %v2260_v58 = vpop.f32.mrf.mxu3  ;;  %v2327_v22 = vmul.f32 %v8032_v3, %v2313_v16 }
 0x4a8   :  { %v2276_v2 = vadd.f32 %v2260_v58, %v2078_v62  ;;  %v2334_v63 = vpack.c.bf16 %v2323_v53, %v2323_v53  ;;  %v11013_v62 = vld [vmem:[#allocation8_spill] sm:$0xff] }
 0x4a9   :  { %v2314_v41 = vmax.f32 %v2300_v44, 0.0  ;;  %v2336_v36 = vpack.c.bf16 %v2327_v22, %v2326_v34 }
 0x4aa   :  { %v2302_v11 = vadd.f32 %v2287_v19, %v2276_v2 }
 0x4ab   :  { %v2328_v0 = vmul.f32 %v8111_v27, %v2314_v41  ;;  %2357 = vrot.lane.b32.xlu0 %v2336_v36, %s7408_s18  ;;  %2355 = vrot.lane.b32.xlu2 %v2335_v43, %s7408_s18 }
 0x4ac   :  { %v2316_v23 = vmax.f32 %v2302_v11, 0.0 }
 0x4ad   :  { %v2337_v37 = vpack.c.bf16 %v2329_v48, %v2328_v0 }
 0x4ae   :  { %v2330_v20 = vmul.f32 %v8100_v13, %v2316_v23 }
 0x4af   :  { %2359 = vrot.lane.b32.xlu1 %v2337_v37, %s7408_s18 }
 0x4b0   :  { %v2338_v59 = vpack.c.bf16 %v2330_v20, %v2330_v20 }
 0x4b3   :  { %2361 = vrot.lane.b32.xlu0 %v2338_v59, %s7408_s18  ;;  %2353 = vrot.lane.b32.xlu2 %v2334_v63, %s7408_s18  ;;  %v11018_v59 = vld [vmem:[#allocation7_spill] sm:$0xff] }
 0x4fd   :  { %v2350_v15 = vpop.permute.xlu2 %2349 }
 0x4fe   :  { %v2364_v29 = vrot.slane %v2350_v15, 4 }
 0x505   :  { %v8559_v19 = vpop.permute.xlu2 %2355 }
 0x506   :  { %v2367_v55 = vrot.slane %v8559_v19, 4 }
 0x508   :  { %v2378_v18 = vsel %vm11009_vm0, %v2367_v55, %v8559_v19 }
 0x509   :  { %v2348_v1 = vpop.permute.xlu1 %2347  ;;  %2397 = vst.msk [vmem:[#allocation3 + $0x20] sm:$0x11] %vm8138_vm4, %v2378_v18  ;;  %v8628_v18 = vld.sshfl [vmem:[#allocation1 + $0x10] sm:$0xff pattern:$0x75643120] }
 0x50a   :  { %v2363_v21 = vrot.slane %v2348_v1, 4 }
 0x50c   :  { %v2371_v10 = vsel %vm11010_vm15, %v2363_v21, %v2348_v1  ;;  %v2372_v52 = vsel %vm11011_vm11, %v2363_v21, %v2364_v29  ;;  %vm11019_vm15 = vnez %v10906_v30  ;;  %vm11020_vm11 = vmmov %vm11016_vm3 }
 0x50d   :  { %v8569_v50 = vsel %vm11012_vm1, %v2372_v52, %v2350_v15  ;;  %2393 = vst.msk [vmem:[#allocation3] sm:$0xff] %vm8130_vm10, %v2371_v10  ;;  %v2354_v44 = vpop.permute.xlu2 %2353  ;;  %vm11021_vm1 = vmmov %vm11009_vm0 }
 0x50e   :  { %2410 = vst [vmem:[#allocation4 + $0x8] sm:$0xff] %v8569_v50  ;;  %v2520_v17 = vrot.slane %v8569_v50, 6  ;;  %v2366_v2 = vrot.slane %v2354_v44, 4  ;;  %v2434_v23 = vrot.slane %v8569_v50, 7 }
 0x50f   :  { %v8662_v50 = vld.sshfl [vmem:[#allocation1 + $0x8] sm:$0xff pattern:$0x75643120] }
 0x510   :  { %2537 = vrot.lane.b32.xlu0 %v2520_v17, %s7399_s23  ;;  %v2405_v5 = vld [vmem:[#allocation3 + $0x20] sm:$0x11] }
 0x511   :  { %v2507_v57 = vld [vmem:[#allocation3 + $0x20] sm:$0x11]  ;;  %2413 = vst [vmem:[#allocation4 + $0x20] sm:$0x11] %v2405_v5 }
 0x512   :  { %v2421_v39 = vld [vmem:[#allocation3 + $0x20] sm:$0x11]  ;;  %v2524_v54 = vrot.slane %v2507_v57, 6  ;;  %v8632_v5 = vld.sshfl [vmem:[#allocation1 + $0x18] sm:$0xff pattern:$0x75643120] }
 0x513   :  { %v2438_v25 = vrot.slane %v2421_v39, 7 }
 0x514   :  { %v8582_v45 = vld [vmem:[#allocation3] sm:$0xff] }
 0x515   :  { %2409 = vst [vmem:[#allocation4] sm:$0xff] %v8582_v45  ;;  %v2519_v47 = vrot.slane %v8582_v45, 6  ;;  %v2433_v40 = vrot.slane %v8582_v45, 7  ;;  %v8587_v61 = vld [vmem:[#allocation4 + $0xc] sm:$0xf] }
 0x516   :  { %v8589_v32 = vld [vmem:[#allocation4 + $0x8] sm:$0xf] }
 0x517   :  { %v3403_v33 = vld [vmem:[#allocation4 + $0x8] sm:$0x33]  ;;  %2535 = vrot.lane.b32.xlu1 %v2519_v47, %s7399_s23  ;;  %v2523_v31 = vrot.slane %v2519_v47, 4  ;;  %v2437_v16 = vrot.slane %v2433_v40, 4 }
 0x518   :  { %v3404_v48 = vsel %vm7524_vm9, %v11013_v62, %v3403_v33 }
 0x519   :  { %v2352_v58 = vpop.permute.xlu1 %2351  ;;  %v2525_v34 = vsel %vm8157_vm2, %v2523_v31, %v2524_v54  ;;  %v2439_v22 = vsel %vm8163_vm13, %v2437_v16, %v2438_v25  ;;  %3405 = vst [vmem:[#allocation4 + $0x8] sm:$0x33] %v3404_v48  ;;  %v11025_v16 = vld [vmem:[#allocation5_spill] sm:$0xff] }
 0x51a   :  { %v2365_v0 = vrot.slane %v2352_v58, 4  ;;  %2543 = vrot.lane.b32.xlu2 %v2525_v34, %s7399_s23  ;;  %2457 = vrot.lane.b32.xlu0 %v2439_v22, %s7398_s22 }
 0x51c   :  { %v2374_v42 = vsel %vm11015_vm5, %v2364_v29, %v2365_v0  ;;  %v2376_v36 = vsel %vm11016_vm3, %v2365_v0, %v2366_v2  ;;  %v3400_v43 = vld [vmem:[#allocation4] sm:$0x33]  ;;  %vm11022_vm5 = vmmov %vm11016_vm3 }
 0x51d   :  { %v8612_v11 = vsel %vm11017_vm14, %v2374_v42, %v2352_v58  ;;  %v2377_v37 = vsel %vm11009_vm0, %v2376_v36, %v2354_v44  ;;  %v8616_v53 = vld [vmem:[#allocation4] sm:$0xf]  ;;  %v8618_v20 = vld [vmem:[#allocation4 + $0x4] sm:$0xf]  ;;  %v3401_v63 = vsel %vm7524_vm9, %v11018_v59, %v3400_v43  ;;  %v2358_v15 = vpop.permute.xlu0 %2357  ;;  %vm11023_vm3 = vmmov %vm11009_vm0  ;;  %vm11024_vm14 = vnez %v10922_v26 }
 0x51e   :  { %2396 = vst.msk [vmem:[#allocation3 + $0x18] sm:$0xff] %vm11019_vm15, %v2377_v37  ;;  %v2368_v19 = vrot.slane %v2358_v15, 4  ;;  %vm11026_vm0 = vmmov %vm11022_vm5  ;;  %v2521_v58 = vrot.slane %v8612_v11, 6  ;;  %v2526_v42 = vrot.slane %v2520_v17, 4  ;;  %v2440_v36 = vrot.slane %v2434_v23, 4 }
 0x51f   :  { %2411 = vst [vmem:[#allocation4 + $0x10] sm:$0xff] %v8612_v11  ;;  %2451 = vrot.lane.b32.xlu1 %v2434_v23, %s7398_s22 }
 0x520   :  { %3402 = vst [vmem:[#allocation4] sm:$0x33] %v3401_v63  ;;  %v2379_v21 = vsel %vm11020_vm11, %v2367_v55, %v2368_v19  ;;  %v8640_v55 = vld [vmem:[%s10664_s0 + $0x1a] sm:$0xff]  ;;  %vm11027_vm11 = vmmov %vm11021_vm1 }
 0x521   :  { %v2360_v1 = vpop.permute.xlu1 %2359  ;;  %v2380_v10 = vsel %vm11021_vm1, %v2379_v21, %v2358_v15  ;;  %3492 = vst [vmem:[#allocation1 + $0x10] ss:$2 sm:$0xff] %v8640_v55  ;;  %v8672_v21 = vld.sshfl [vmem:[#allocation1] sm:$0xff pattern:$0x75643120] }
 0x522   :  { %v2369_v29 = vrot.slane %v2360_v1, 4  ;;  %2398 = vst [vmem:[#allocation3 + $0x28] sm:$0x11] %v2380_v10 }
 0x523   :  { %3574 = vst [vmem:[#allocation1] ss:$2 sm:$0xff] %v8597_v51 }
 0x524   :  { %v2381_v52 = vsel %vm11022_vm5, %v2368_v19, %v2369_v29  ;;  %v2529_v19 = vrot.slane %v2521_v58, 4 }
 0x525   :  { %v2404_v57 = vld [vmem:[#allocation3 + $0x18] sm:$0xff]  ;;  %v2382_v39 = vsel %vm11023_vm3, %v2381_v52, %v2360_v1  ;;  %v2362_v31 = vpop.permute.xlu0 %2361 }
 0x526   :  { %2412 = vst.msk [vmem:[#allocation4 + $0x18] sm:$0xff] %vm11024_vm14, %v2404_v57  ;;  %v2436_v47 = vrot.slane %v2404_v57, 7  ;;  %v8642_v54 = vld [vmem:[#allocation4 + $0x10] sm:$0xf]  ;;  %v8644_v33 = vld [vmem:[#allocation4 + $0x14] sm:$0xf] }
 0x527   :  { %2399 = vst [vmem:[#allocation3 + $0x30] sm:$0x11] %v2382_v39  ;;  %v3406_v44 = vld [vmem:[#allocation4 + $0x10] sm:$0x33]  ;;  %v2370_v62 = vrot.slane %v2362_v31, 4  ;;  %v2522_v52 = vrot.slane %v2404_v57, 6 }
 0x528   :  { %2455 = vrot.lane.b32.xlu0 %v2436_v47, %s7398_s22  ;;  %v3407_v25 = vsel %vm7524_vm9, %v11025_v16, %v3406_v44  ;;  %vm11028_vm9 = vnez %v10915_v56  ;;  %v11029_v44 = vld [vmem:[#allocation6_spill] sm:$0xff]  ;;  %v11032_v16 = vld [vmem:[#allocation9_spill] sm:$0xff] }
 0x529   :  { %3408 = vst [vmem:[#allocation4 + $0x10] sm:$0x33] %v3407_v25  ;;  %v2383_v48 = vsel %vm11026_vm0, %v2369_v29, %v2370_v62  ;;  %v2406_v34 = vld [vmem:[#allocation3 + $0x28] sm:$0x11]  ;;  %vm11033_vm5 = vnez %v11032_v16  ;;  %vm11035_vm0 = vnez %v10926_v6  ;;  %v11050_v6 = vld [vmem:[#allocation15_spill] sm:$0xff] }
 0x52a   :  { %v2384_v22 = vsel %vm11027_vm11, %v2383_v48, %v2362_v31  ;;  %v2422_v2 = vld [vmem:[#allocation3 + $0x28] sm:$0x11]  ;;  %2414 = vst [vmem:[#allocation4 + $0x28] sm:$0x11] %v2406_v34  ;;  %v2532_v34 = vrot.slane %v2522_v52, 4  ;;  %vm11036_vm11 = vcmask 1043456  }
 0x52b   :  { %v2508_v0 = vld [vmem:[#allocation3 + $0x28] sm:$0x11]  ;;  %v2441_v43 = vrot.slane %v2422_v2, 7  ;;  %2400 = vst.msk [vmem:[#allocation3 + $0x38] sm:$0x11] %vm11028_vm9, %v2384_v22  ;;  %v10752_v2 = vrot.slane %v8662_v50, 5 }
 0x52c   :  { %v2527_v37 = vrot.slane %v2508_v0, 6  ;;  %v11030_v31 = vld [vmem:[#allocation10_spill] sm:$0xff] }
 0x52d   :  { %v2442_v63 = vsel %vm8163_vm13, %v2440_v36, %v2441_v43  ;;  %v8666_v17 = vld [vmem:[#allocation4 + $0x1c] sm:$0xf]  ;;  %v8668_v23 = vld [vmem:[#allocation4 + $0x18] sm:$0xf]  ;;  %vm11031_vm1 = vnez %v11030_v31  ;;  %v2435_v36 = vrot.slane %v8612_v11, 7  ;;  %v3506_v43 = vrot.slane %v10752_v2, 4 }
 0x52e   :  { %v2407_v41 = vld [vmem:[#allocation3 + $0x30] sm:$0x11]  ;;  %v2528_v15 = vsel %vm8157_vm2, %v2526_v42, %v2527_v37  ;;  %2459 = vrot.lane.b32.xlu1 %v2442_v63, %s7398_s22  ;;  %v8674_v10 = vld [vmem:[#allocation4 + $0x18] sm:$0xf]  ;;  %vm11034_vm3 = vmor %vm11031_vm1, %vm11033_vm5  ;;  %v2446_v42 = vrot.slane %v2436_v47, 4  ;;  %vm11037_vm1 = vcmask 523264  }
 0x52f   :  { %v2509_v59 = vld [vmem:[#allocation3 + $0x30] sm:$0x11]  ;;  %2415 = vst [vmem:[#allocation4 + $0x30] sm:$0x11] %v2407_v41  ;;  %2545 = vrot.lane.b32.xlu2 %v2528_v15, %s7399_s23  ;;  %v3409_v39 = vld [vmem:[#allocation4 + $0x18] sm:$0x33]  ;;  %vm11038_vm5 = vmmov %vm11036_vm11 }
 0x530   :  { %v2530_v1 = vrot.slane %v2509_v59, 6  ;;  %v3410_v25 = vsel %vm11034_vm3, %v11029_v44, %v3409_v39  ;;  %v2443_v59 = vrot.slane %v2435_v36, 4  ;;  %v8700_v63 = vld.sshfl [vmem:[#allocation1 + $0x10] sm:$0xff pattern:$0x75643120]  ;;  %v10753_v15 = vrot.slane %v8672_v21, 5  ;;  %vm11039_vm3 = vmmov %vm11037_vm1 }
 0x531   :  { %3411 = vst [vmem:[#allocation4 + $0x18] sm:$0x33] %v3410_v25  ;;  %v10751_v47 = vrot.slane %v8700_v63, 5  ;;  %v8725_v39 = vld.sshfl [vmem:[#allocation1 + $0x8] sm:$0xff pattern:$0x75643120]  ;;  %vm11040_vm6 = vmmov %vm11037_vm1 }
 0x532   :  { %v2531_v29 = vsel %vm8157_vm2, %v2529_v19, %v2530_v1  ;;  %v2408_v62 = vld [vmem:[#allocation3 + $0x38] sm:$0x11]  ;;  %v3505_v1 = vrot.slane %v10753_v15, 4  ;;  %v6856_v16 = vld [vmem:[%s10664_s0 + $0x14] sm:$0xff] }
 0x533   :  { %2547 = vrot.lane.b32.xlu0 %v2531_v29, %s7399_s23  ;;  %v2510_v48 = vld [vmem:[#allocation3 + $0x38] sm:$0x11]  ;;  %2416 = vst.msk [vmem:[#allocation4 + $0x38] sm:$0x11] %vm11035_vm0, %v2408_v62  ;;  %v3507_v19 = vrot.slane %v10751_v47, 4 }
 0x534   :  { %v2533_v22 = vrot.slane %v2510_v48, 6  ;;  %v2424_v57 = vld [vmem:[#allocation3 + $0x38] sm:$0x11]  ;;  %v8716_v29 = vld.sshfl [vmem:[#allocation1 + $0x18] sm:$0xff pattern:$0x75643120] }
 0x535   :  { %v2447_v0 = vrot.slane %v2424_v57, 7  ;;  %3577 = vst [vmem:[#allocation1 + $0x10] ss:$2 sm:$0xff] %v8640_v55  ;;  %v6857_v31 = vld [vmem:[%s10664_s0 + $0x1c] sm:$0xff] }
 0x536   :  { %2539 = vrot.lane.b32.xlu1 %v2521_v58, %s7399_s23  ;;  %v2534_v51 = vsel %vm8157_vm2, %v2532_v34, %v2533_v22  ;;  %v2423_v58 = vld [vmem:[#allocation3 + $0x30] sm:$0x11] }
 0x537   :  { %2541 = vrot.lane.b32.xlu2 %v2522_v52, %s7399_s23  ;;  %v2448_v37 = vsel %vm8163_vm13, %v2446_v42, %v2447_v0  ;;  %v2444_v41 = vrot.slane %v2423_v58, 7  ;;  %v8723_v52 = vld.sshfl [vmem:[#allocation1] sm:$0xff pattern:$0x75643120] }
 0x538   :  { %3645 = vst [vmem:[#allocation1 + $0x1] ss:$2 sm:$0xff] %v6856_v16 }
 0x539   :  { %v2445_v11 = vsel %vm8163_vm13, %v2443_v59, %v2444_v41 }
 0x53b   :  { %2549 = vrot.lane.b32.xlu0 %v2534_v51, %s7399_s23 }
 0x53c   :  { %v8719_v45 = vld.sshfl [vmem:[#allocation1 + $0x10] sm:$0xff pattern:$0x75643120] }
 0x53e   :  { %2463 = vrot.lane.b32.xlu1 %v2448_v37, %s7398_s22 }
 0x53f   :  { %2453 = vrot.lane.b32.xlu2 %v2435_v36, %s7398_s22  ;;  %v3650_v47 = vld.sshfl [vmem:[#allocation1 + $0x8] sm:$0xff pattern:$0x75643120] }
 0x543   :  { %3519 = vrot.lane.b32.xlu0 %v3506_v43, %s7399_s23 }
 0x546   :  { %2449 = vrot.lane.b32.xlu1 %v2433_v40, %s7398_s22  ;;  %v8721_v40 = vld.sshfl [vmem:[#allocation1 + $0x18] sm:$0xff pattern:$0x75643120] }
 0x547   :  { %2461 = vrot.lane.b32.xlu2 %v2445_v11, %s7398_s22  ;;  %3648 = vst [vmem:[#allocation1 + $0x11] ss:$2 sm:$0xff] %v6857_v31 }
 0x54e   :  { %3521 = vrot.lane.b32.xlu1 %v3507_v19, %s7399_s23  ;;  %v3652_v2 = vld.sshfl [vmem:[#allocation1 + $0x18] sm:$0xff pattern:$0x75643120] }
 0x54f   :  { %3517 = vrot.lane.b32.xlu2 %v3505_v1, %s7399_s23 }
 0x574   :  { %v2544_v44 = vpop.permute.xlu2 %2543 }
 0x575   :  { %v2555_v22 = vrot.slane %v2544_v44, 4 }
 0x582   :  { %v8733_v55 = vpop.permute.xlu0 %2537 }
 0x583   :  { %v10755_v48 = vrot.slane %v8733_v55, 4 }
 0x589   :  { %v2536_v25 = vpop.permute.xlu1 %2535  ;;  %v2546_v34 = vpop.permute.xlu2 %2545 }
 0x58a   :  { %v2551_v62 = vrot.slane %v2536_v25, 4  ;;  %v2556_v51 = vrot.slane %v2546_v34, 4 }
 0x58c   :  { %v2559_v57 = vsel %vm11036_vm11, %v2551_v62, %v10755_v48  ;;  %v2566_v42 = vsel %vm11038_vm5, %v2555_v22, %v2556_v51  ;;  %v2458_v43 = vpop.permute.xlu0 %2457  ;;  %vm11041_vm11 = vcmask 785408  }
 0x58d   :  { %v2560_v0 = vsel %vm11037_vm1, %v2536_v25, %v2559_v57  ;;  %v2567_v36 = vsel %vm11039_vm3, %v2544_v44, %v2566_v42  ;;  %vm11042_vm1 = vmmov %vm11038_vm5 }
 0x58e   :  { %2581 = vst [vmem:[#allocation4 + $0x40] sm:$0xcc] %v2560_v0  ;;  %vm11043_vm5 = vmmov %vm11042_vm1 }
 0x58f   :  { %2585 = vst [vmem:[#allocation4 + $0x60] sm:$0x77] %v2567_v36  ;;  %v2469_v36 = vrot.slane %v2458_v43, 4 }
 0x591   :  { %v2542_v37 = vpop.permute.xlu2 %2541  ;;  %v8745_v59 = vpop.permute.xlu1 %2451 }
 0x592   :  { %v2554_v58 = vrot.slane %v2542_v37, 4  ;;  %v10754_v1 = vrot.slane %v8745_v59, 4 }
 0x594   :  { %v2565_v41 = vsel %vm11040_vm6, %v2542_v37, %v2554_v58  ;;  %vm11044_vm6 = vmmov %vm11041_vm11 }
 0x595   :  { %2584 = vst.msk [vmem:[#allocation4 + $0x58] sm:$0xcc] %vm8264_vm12, %v2565_v41  ;;  %vm11045_vm3 = vmmov %vm11044_vm6 }
 0x599   :  { %v2454_v19 = vpop.permute.xlu2 %2453 }
 0x59a   :  { %v2456_v11 = vpop.permute.xlu0 %2455  ;;  %v2467_v16 = vrot.slane %v2454_v19, 4 }
 0x59b   :  { %v2468_v31 = vrot.slane %v2456_v11, 4 }
 0x59c   :  { %v2475_v44 = vsel %vm11042_vm1, %v10754_v1, %v2467_v16 }
 0x59d   :  { %v2479_v25 = vsel %vm11041_vm11, %v2456_v11, %v2468_v31  ;;  %v2477_v62 = vsel %vm11043_vm5, %v2467_v16, %v2468_v31  ;;  %v2476_v22 = vsel %vm11044_vm6, %v8745_v59, %v2475_v44  ;;  %vm11046_vm11 = vmmov %vm11042_vm1 }
 0x59e   :  { %2498 = vst.msk [vmem:[#allocation4 + $0x38] sm:$0xee] %vm8268_vm7, %v2479_v25  ;;  %v2478_v57 = vsel %vm11045_vm3, %v2454_v19, %v2477_v62  ;;  %v3651_v25 = vld.sshfl [vmem:[#allocation1 + $0x10] sm:$0xff pattern:$0x75643120]  ;;  %vm11047_vm5 = vmmov %vm11045_vm3 }
 0x59f   :  { %2496 = vst [vmem:[#allocation4 + $0x28] sm:$0xee] %v2476_v22  ;;  %vm11048_vm6 = vmmov %vm11045_vm3 }
 0x5a0   :  { %2497 = vst [vmem:[#allocation4 + $0x30] sm:$0xee] %v2478_v57  ;;  %v2460_v42 = vpop.permute.xlu1 %2459  ;;  %vm11049_vm3 = vmmov %vm11042_vm1 }
 0x5a1   :  { %v2462_v0 = vpop.permute.xlu2 %2461  ;;  %v2470_v41 = vrot.slane %v2460_v42, 4 }
 0x5a2   :  { %v2471_v37 = vrot.slane %v2462_v0, 4 }
 0x5a3   :  { %v2480_v31 = vsel %vm11046_vm11, %v2469_v36, %v2470_v41  ;;  %vm11051_vm11 = vnez %v11050_v6  ;;  %v7229_v6 = vld [vmem:[#allocation4 + $0x5c] sm:$0x70] }
 0x5a4   :  { %v2482_v16 = vsel %vm11042_vm1, %v2470_v41, %v2471_v37  ;;  %v2481_v19 = vsel %vm11047_vm5, %v2458_v43, %v2480_v31  ;;  %vm11052_vm1 = vcmask 523264  }
 0x5a5   :  { %v2548_v11 = vpop.permute.xlu0 %2547  ;;  %v3666_v1 = vld [vmem:[#allocation4 + $0x38] sm:$0xcc]  ;;  %v2483_v62 = vsel %vm11048_vm6, %v2460_v42, %v2482_v16  ;;  %2499 = vst [vmem:[#allocation4 + $0x40] sm:$0x33] %v2481_v19 }
 0x5a6   :  { %v2557_v15 = vrot.slane %v2548_v11, 4  ;;  %v3660_v44 = vld [vmem:[#allocation4 + $0x28] sm:$0xcc]  ;;  %v6773_v22 = vld [vmem:[#allocation4 + $0x38] sm:$0xf0] }
 0x5a7   :  { %v3663_v57 = vld [vmem:[#allocation4 + $0x30] sm:$0xcc]  ;;  %v8764_v38 = vor.u32 %v8666_v17, %v6773_v22  ;;  %v6757_v24 = vld [vmem:[#allocation4 + $0x28] sm:$0xf0]  ;;  %v3661_v36 = vsel %vm11051_vm11, %v3650_v47, %v3660_v44  ;;  %2500 = vst [vmem:[#allocation4 + $0x48] sm:$0x33] %v2483_v62 }
 0x5a8   :  { %v2568_v48 = vsel %vm11049_vm3, %v2556_v51, %v2557_v15  ;;  %v8769_v56 = vld [vmem:[#allocation4 + $0x24] sm:$0xf0]  ;;  %v8771_v43 = vld [vmem:[#allocation4 + $0x34] sm:$0xf0]  ;;  %v2540_v47 = vpop.permute.xlu1 %2539  ;;  %v7224_v16 = vld [vmem:[#allocation4 + $0x2c] sm:$0xf0] }
 0x5a9   :  { %v2569_v41 = vsel %vm11052_vm1, %v2546_v34, %v2568_v48  ;;  %2697 = vrot.lane.b32.xlu0 %v8764_v38, %s7401_s8  ;;  %v8775_v51 = vld [vmem:[#allocation4 + $0x34] sm:$0xf0]  ;;  %v11055_v17 = vld [vmem:[#allocation14_spill] sm:$0xff]  ;;  %v8782_v48 = vld [vmem:[#allocation4 + $0x30] sm:$0xf0]  ;;  %v3664_v34 = vsel %vm11051_vm11, %v3651_v25, %v3663_v57  ;;  %v2553_v44 = vrot.slane %v2540_v47, 4  ;;  %v8796_v57 = vor.u32 %v8587_v61, %v6757_v24 }
 0x5aa   :  { %2586 = vst [vmem:[#allocation4 + $0x68] sm:$0x77] %v2569_v41  ;;  %v11053_v42 = vld [vmem:[#allocation16_spill] sm:$0xff]  ;;  %vm11056_vm6 = vnez %v11055_v17  ;;  %v11058_v22 = vrot.slane %v8733_v55, 4  ;;  %vm11059_vm1 = vcmask 1043456   ;;  %v11069_v24 = vld [vmem:[#allocation35_spill] sm:$0xff]  ;;  %v8809_v61 = vor.u32 %v7224_v16, %v8642_v54 }
 0x5ab   :  { %vm11054_vm5 = vnez %v11053_v42  ;;  %3662 = vst [vmem:[#allocation4 + $0x28] sm:$0xcc] %v3661_v36  ;;  %vm11060_vm12 = vmmov %vm11059_vm1 }
 0x5ac   :  { %vm11057_vm3 = vmor %vm11054_vm5, %vm11056_vm6  ;;  %v2561_v41 = vsel %vm11059_vm1, %v11058_v22, %v2553_v44  ;;  %v2563_v42 = vsel %vm11060_vm12, %v2553_v44, %v2554_v58  ;;  %3665 = vst [vmem:[#allocation4 + $0x30] sm:$0xcc] %v3664_v34  ;;  %vm11061_vm5 = vcmask 523264   ;;  %v3518_v34 = vpop.permute.xlu2 %3517  ;;  %v11071_v22 = vrot.slane %v8745_v59, 4 }
 0x5ad   :  { %v3667_v31 = vsel %vm11057_vm3, %v3652_v2, %v3666_v1  ;;  %v2550_v19 = vpop.permute.xlu0 %2549  ;;  %v2562_v2 = vsel %vm11061_vm5, %v8733_v55, %v2561_v41  ;;  %vm11062_vm6 = vmmov %vm11059_vm1 }
 0x5ae   :  { %3668 = vst [vmem:[#allocation4 + $0x38] sm:$0xcc] %v3667_v31  ;;  %v2558_v62 = vrot.slane %v2550_v19, 4  ;;  %vm11063_vm3 = vmmov %vm11061_vm5  ;;  %vm11070_vm5 = vnez %v11069_v24 }
 0x5af   :  { %vm11064_vm7 = vmmov %vm11063_vm3  ;;  %2582 = vst [vmem:[#allocation4 + $0x48] sm:$0xcc] %v2562_v2 }
 0x5b0   :  { %v2570_v1 = vsel %vm11062_vm6, %v2557_v15, %v2558_v62  ;;  %v2572_v36 = vsel %vm11063_vm3, %v2550_v19, %v2558_v62  ;;  %v2564_v25 = vsel %vm11064_vm7, %v2540_v47, %v2563_v42  ;;  %vm11065_vm0 = vmmov %vm11063_vm3  ;;  %v2464_v55 = vpop.permute.xlu1 %2463 }
 0x5b1   :  { %v2571_v17 = vsel %vm11065_vm0, %v2548_v11, %v2570_v1  ;;  %2588 = vst.msk [vmem:[#allocation4 + $0x78] sm:$0x77] %vm8294_vm8, %v2572_v36  ;;  %2689 = vrot.lane.b32.xlu0 %v8796_v57, %s7401_s8  ;;  %v2472_v15 = vrot.slane %v2464_v55, 4  ;;  %vm11066_vm12 = vmmov %vm11059_vm1  ;;  %vm11067_vm1 = vcmask 785408  }
 0x5b2   :  { %2587 = vst [vmem:[#allocation4 + $0x70] sm:$0x77] %v2571_v17  ;;  %vm11068_vm7 = vmmov %vm11067_vm1  ;;  %v3559_v17 = vld [vmem:[#allocation4 + $0x20] sm:$0x11] }
 0x5b3   :  { %2583 = vst [vmem:[#allocation4 + $0x50] sm:$0xcc] %v2564_v25  ;;  %v2484_v58 = vsel %vm11066_vm12, %v2471_v37, %v2472_v15  ;;  %v2486_v31 = vsel %vm11067_vm1, %v2464_v55, %v2472_v15  ;;  %v3529_v37 = vrot.slane %v3518_v34, 4  ;;  %vm11072_vm0 = vmmov %vm11062_vm6  ;;  %vm11075_vm12 = vcmask 523264   ;;  %v3562_v15 = vld [vmem:[#allocation4 + $0x28] sm:$0x11] }
 0x5b4   :  { %v2485_v47 = vsel %vm11068_vm7, %v2462_v0, %v2484_v58  ;;  %2502 = vst.msk [vmem:[#allocation4 + $0x58] sm:$0x33] %vm11070_vm5, %v2486_v31  ;;  %vm11073_vm6 = vmmov %vm11067_vm1  ;;  %v3649_v55 = vld.sshfl [vmem:[#allocation1] sm:$0xff pattern:$0x75643120] }
 0x5b5   :  { %2501 = vst [vmem:[#allocation4 + $0x50] sm:$0x33] %v2485_v47  ;;  %v3520_v11 = vpop.permute.xlu0 %3519  ;;  %vm11074_vm3 = vmmov %vm11072_vm0  ;;  %v6789_v31 = vld [vmem:[#allocation4 + $0x68] sm:$0x70]  ;;  %v3423_v47 = vshrl.u32 %v8578_v12, 16 }
 0x5b6   :  { %v3530_v62 = vrot.slane %v3520_v11, 4  ;;  %v7227_v25 = vld [vmem:[#allocation4 + $0x4c] sm:$0xf]  ;;  %vm11076_vm1 = vmmov %vm11072_vm0 }
 0x5b8   :  { %v2450_v44 = vpop.permute.xlu1 %2449  ;;  %v7237_v42 = vld [vmem:[#allocation4 + $0x74] sm:$0x70]  ;;  %v3540_v54 = vsel %vm11074_vm3, %v3529_v37, %v3530_v62 }
 0x5b9   :  { %2691 = vrot.lane.b32.xlu0 %v8809_v61, %s7401_s8  ;;  %v2465_v19 = vrot.slane %v2450_v44, 4  ;;  %v3541_v36 = vsel %vm11075_vm12, %v3518_v34, %v3540_v54 }
 0x5bb   :  { %v2473_v0 = vsel %vm11072_vm0, %v2465_v19, %v11071_v22  ;;  %v6803_v41 = vld [vmem:[#allocation4 + $0x58] sm:$0xf]  ;;  %v11077_v19 = vld [vmem:[#allocation23_spill] sm:$0xff]  ;;  %vm11079_vm0 = vmmov %vm11075_vm12  ;;  %vm11086_vm12 = vcmask 1046528  }
 0x5bc   :  { %v2474_v2 = vsel %vm11073_vm6, %v2450_v44, %v2473_v0  ;;  %v8817_v1 = vor.u32 %v7237_v42, %v6803_v41  ;;  %v3426_v44 = vshll.u32 %v8578_v12, 16  ;;  %vm11078_vm7 = vnez %v11077_v19 }
 0x5bd   :  { %2495 = vst [vmem:[#allocation4 + $0x20] sm:$0xee] %v2474_v2  ;;  %v3560_v37 = vsel %vm11078_vm7, %v3541_v36, %v3559_v17  ;;  %v8834_v0 = vor.u32 %v7227_v25, %v6789_v31  ;;  %v7226_v25 = vld [vmem:[#allocation4 + $0x44] sm:$0xf]  ;;  %v3582_v17 = vshrl.u32 %v8723_v52, 16 }
 0x5be   :  { %v3428_v36 = vrot.slane %v3426_v44, 7  ;;  %v7236_v44 = vld [vmem:[#allocation4 + $0x5c] sm:$0xf] }
 0x5bf   :  { %v3584_v31 = vrot.slane %v3582_v17, 7  ;;  %v7231_v17 = vld [vmem:[#allocation4 + $0x6c] sm:$0x70] }
 0x5c0   :  { %v8822_v16 = vpop.permute.xlu1 %3521 }
 0x5c1   :  { %2711 = vrot.lane.b32.xlu0 %v8817_v1, %s7401_s8  ;;  %v3531_v59 = vrot.slane %v8822_v16, 4 }
 0x5c3   :  { %v3542_v58 = vsel %vm11076_vm1, %v3530_v62, %v3531_v59  ;;  %vm11087_vm1 = vmmov %vm11086_vm12 }
 0x5c4   :  { %v3657_v22 = vld [vmem:[#allocation4 + $0x20] sm:$0xcc]  ;;  %v3543_v34 = vsel %vm11079_vm0, %v3520_v11, %v3542_v58  ;;  %v3425_v11 = vrot.slane %v3423_v47, 6  ;;  %v3585_v47 = vshll.u32 %v8723_v52, 16  ;;  %vm11088_vm0 = vmmov %vm11087_vm1 }
 0x5c5   :  { %v7222_v41 = vld [vmem:[#allocation4 + $0x1c] sm:$0xf0]  ;;  %v6749_v42 = vld [vmem:[#allocation4 + $0x20] sm:$0xf0]  ;;  %v3563_v2 = vsel %vm11078_vm7, %v3543_v34, %v3562_v15  ;;  %v3658_v12 = vsel %vm11051_vm11, %v3649_v55, %v3657_v22  ;;  %v3430_v22 = vshrl.u32 %v8580_v7, 16  ;;  %v3433_v34 = vshll.u32 %v8580_v7, 16 }
 0x5c6   :  { %v8839_v62 = vor.u32 %v7222_v41, %v8616_v53  ;;  %v8842_v54 = vor.u32 %v8618_v20, %v6749_v42  ;;  %3561 = vst [vmem:[#allocation4 + $0x20] sm:$0x11] %v3560_v37  ;;  %v6779_v53 = vld [vmem:[#allocation4 + $0x40] sm:$0xf]  ;;  %v3429_v20 = vor.u32 %v3428_v36, %v3425_v11  ;;  %v6781_v15 = vld [vmem:[#allocation4 + $0x60] sm:$0x70]  ;;  %v3587_v37 = vor.u32 %v3585_v47, %v3584_v31 }
 0x5c7   :  { %3564 = vst [vmem:[#allocation4 + $0x28] sm:$0x11] %v3563_v2  ;;  %v8853_v55 = vor.u32 %v7229_v6, %v6779_v53  ;;  %v8855_v58 = vor.u32 %v7226_v25, %v6781_v15  ;;  %v6805_v41 = vld [vmem:[#allocation4 + $0x78] sm:$0x70]  ;;  %v8869_v2 = vor.u32 %v8775_v51, %v8668_v23  ;;  %v3432_v52 = vrot.slane %v3430_v22, 6 }
 0x5c8   :  { %2683 = vrot.lane.b32.xlu1 %v8839_v62, %s7401_s8  ;;  %3659 = vst [vmem:[#allocation4 + $0x20] sm:$0xcc] %v3658_v12  ;;  %2685 = vrot.lane.b32.xlu2 %v8842_v54, %s7401_s8  ;;  %v8865_v42 = vor.u32 %v7236_v44, %v6805_v41  ;;  %v3435_v12 = vrot.slane %v3433_v34, 7  ;;  %v8878_v7 = vor.u32 %v8769_v56, %v8589_v32  ;;  %v11080_v36 = vrot.slane %v8672_v21, 5  ;;  %v6795_v51 = vld [vmem:[#allocation4 + $0x50] sm:$0xf] }
 0x5c9   :  { %2705 = vrot.lane.b32.xlu0 %v8834_v0, %s7401_s8  ;;  %v3504_v23 = vrot.slane %v8716_v29, 5  ;;  %v3588_v25 = vshrl.u32 %v8725_v39, 16  ;;  %v8888_v6 = vor.u32 %v7231_v17, %v6795_v51  ;;  %v7230_v56 = vld [vmem:[#allocation4 + $0x64] sm:$0x70]  ;;  %v3591_v29 = vshll.u32 %v8725_v39, 16 }
 0x5ca   :  { %v3436_v11 = vor.u32 %v3435_v12, %v3432_v52  ;;  %v3437_v31 = vshrl.u32 %v8628_v18, 16  ;;  %v3440_v47 = vshll.u32 %v8628_v18, 16  ;;  %v8902_v44 = vor.u32 %v8644_v33, %v8782_v48  ;;  %v7228_v22 = vld [vmem:[#allocation4 + $0x54] sm:$0xf] }
 0x5cb   :  { %v3508_v53 = vrot.slane %v3504_v23, 4  ;;  %v3590_v21 = vrot.slane %v3588_v25, 7  ;;  %v6797_v34 = vld [vmem:[#allocation4 + $0x70] sm:$0x70]  ;;  %v3594_v52 = vshrl.u32 %v8719_v45, 16  ;;  %v3597_v33 = vshll.u32 %v8719_v45, 16 }
 0x5cc   :  { %v3439_v39 = vrot.slane %v3437_v31, 6  ;;  %v8909_v12 = vor.u32 %v7228_v22, %v6797_v34  ;;  %v3444_v48 = vshrl.u32 %v8632_v5, 16  ;;  %v3600_v25 = vshrl.u32 %v8721_v40, 16 }
 0x5cd   :  { %v3593_v15 = vor.u32 %v3591_v29, %v3590_v21  ;;  %v3596_v18 = vrot.slane %v3594_v52, 7  ;;  %vm11083_vm11 = vcmask 1039360  }
 0x5ce   :  { %v3446_v51 = vrot.slane %v3444_v48, 6  ;;  %v3602_v45 = vrot.slane %v3600_v25, 7  ;;  %vm11084_vm6 = vmmov %vm11083_vm11 }
 0x5cf   :  { %vm11085_vm3 = vmmov %vm11084_vm6 }
 0x5d0   :  { %2699 = vrot.lane.b32.xlu1 %v8853_v55, %s7401_s8  ;;  %2701 = vrot.lane.b32.xlu2 %v8855_v58, %s7401_s8 }
 0x5d1   :  { %3451 = vrot.lane.b32.xlu0 %v3429_v20, %s7398_s22  ;;  %v6787_v20 = vld [vmem:[#allocation4 + $0x48] sm:$0xf] }
 0x5d2   :  { %v8890_v32 = vor.u32 %v7230_v56, %v6787_v20 }
 0x5d8   :  { %2713 = vrot.lane.b32.xlu1 %v8865_v42, %s7401_s8  ;;  %2695 = vrot.lane.b32.xlu2 %v8869_v2, %s7401_s8 }
 0x5d9   :  { %3606 = vrot.lane.b32.xlu0 %v3587_v37, %s7400_s7  ;;  %v3442_v37 = vrot.slane %v3440_v47, 7 }
 0x5db   :  { %v3443_v41 = vor.u32 %v3442_v37, %v3439_v39 }
 0x5e0   :  { %3453 = vrot.lane.b32.xlu1 %v3436_v11, %s7398_s22  ;;  %2687 = vrot.lane.b32.xlu2 %v8878_v7, %s7401_s8  ;;  %v3447_v11 = vshll.u32 %v8632_v5, 16  ;;  %v11082_v5 = vrot.slane %v8700_v63, 5 }
 0x5e1   :  { %3509 = vrot.lane.b32.xlu0 %v11080_v36, %s7399_s23  ;;  %v3599_v36 = vor.u32 %v3597_v33, %v3596_v18 }
 0x5e8   :  { %2707 = vrot.lane.b32.xlu1 %v8888_v6, %s7401_s8  ;;  %2703 = vrot.lane.b32.xlu2 %v8890_v32, %s7401_s8 }
 0x5e9   :  { %3523 = vrot.lane.b32.xlu0 %v3508_v53, %s7399_s23  ;;  %v3449_v53 = vrot.slane %v3447_v11, 7  ;;  %v7233_v11 = vld [vmem:[%s10668_s3 + $0x8] sm:$0x10] }
 0x5eb   :  { %v3450_v20 = vor.u32 %v3449_v53, %v3446_v51 }
 0x5f0   :  { %3608 = vrot.lane.b32.xlu1 %v3593_v15, %s7400_s7  ;;  %2693 = vrot.lane.b32.xlu2 %v8902_v44, %s7401_s8 }
 0x5f1   :  { %3515 = vrot.lane.b32.xlu0 %v3504_v23, %s7399_s23  ;;  %v11081_v23 = vrot.slane %v8662_v50, 5  ;;  %v3603_v50 = vshll.u32 %v8721_v40, 16 }
 0x5f3   :  { %v3605_v17 = vor.u32 %v3603_v50, %v3602_v45 }
 0x5f8   :  { %2709 = vrot.lane.b32.xlu1 %v8909_v12, %s7401_s8  ;;  %3455 = vrot.lane.b32.xlu2 %v3443_v41, %s7398_s22 }
 0x5f9   :  { %3030 = vrot.lane.b32.xlu0 %v8890_v32, %s7402_s9 }
 0x600   :  { %3511 = vrot.lane.b32.xlu1 %v11081_v23, %s7399_s23  ;;  %3610 = vrot.lane.b32.xlu2 %v3599_v36, %s7400_s7 }
 0x601   :  { %3014 = vrot.lane.b32.xlu0 %v8878_v7, %s7402_s9 }
 0x608   :  { %3457 = vrot.lane.b32.xlu1 %v3450_v20, %s7398_s22  ;;  %3513 = vrot.lane.b32.xlu2 %v11082_v5, %s7399_s23 }
 0x609   :  { %3038 = vrot.lane.b32.xlu0 %v8817_v1, %s7402_s9 }
 0x610   :  { %3026 = vrot.lane.b32.xlu1 %v8853_v55, %s7402_s9  ;;  %3612 = vrot.lane.b32.xlu2 %v3605_v17, %s7400_s7 }
 0x611   :  { %3032 = vrot.lane.b32.xlu0 %v8834_v0, %s7402_s9 }
 0x618   :  { %3010 = vrot.lane.b32.xlu1 %v8839_v62, %s7402_s9  ;;  %3028 = vrot.lane.b32.xlu2 %v8855_v58, %s7402_s9 }
 0x61b   :  { %v2698_v63 = vpop.permute.xlu0 %2697 }
 0x620   :  { %3034 = vrot.lane.b32.xlu1 %v8888_v6, %s7402_s9  ;;  %3012 = vrot.lane.b32.xlu2 %v8842_v54, %s7402_s9 }
 0x622   :  { %v2686_v1 = vpop.permute.xlu2 %2685 }
 0x623   :  { %v8946_v40 = vpop.permute.xlu0 %2689 }
 0x628   :  { %3018 = vrot.lane.b32.xlu1 %v8809_v61, %s7402_s9  ;;  %3036 = vrot.lane.b32.xlu2 %v8909_v12, %s7402_s9 }
 0x62a   :  { %v2702_v21 = vpop.permute.xlu2 %2701 }
 0x62b   :  { %v8952_v56 = vpop.permute.xlu0 %2691 }
 0x630   :  { %3022 = vrot.lane.b32.xlu1 %v8869_v2, %s7402_s9  ;;  %3020 = vrot.lane.b32.xlu2 %v8902_v44, %s7402_s9 }
 0x632   :  { %v8960_v15 = vpop.permute.xlu2 %2695 }
 0x633   :  { %v8958_v29 = vpop.permute.xlu0 %2711  ;;  %v2721_v50 = vsel %vm11085_vm3, %v8960_v15, %v2698_v63 }
 0x638   :  { %3016 = vrot.lane.b32.xlu2 %v8796_v57, %s7402_s9 }
 0x63a   :  { %v2684_v47 = vpop.permute.xlu1 %2683  ;;  %v2688_v39 = vpop.permute.xlu2 %2687 }
 0x63b   :  { %v2706_v31 = vpop.permute.xlu0 %2705  ;;  %v2717_v51 = vsel %vm11085_vm3, %v2688_v39, %v8946_v40 }
 0x640   :  { %3040 = vrot.lane.b32.xlu2 %v8865_v42, %s7402_s9  ;;  %v6743_v42 = vld [vmem:[%s10668_s3 + $0x8] sm:$0xf] }
 0x641   :  { %v8986_v25 = vor.u32 %v7233_v11, %v6743_v42 }
 0x642   :  { %v2700_v22 = vpop.permute.xlu1 %2699  ;;  %v2704_v34 = vpop.permute.xlu2 %2703 }
 0x643   :  { %v3452_v37 = vpop.permute.xlu0 %3451  ;;  %v2722_v2 = vsel %vm11083_vm11, %v2700_v22, %v2702_v21  ;;  %v2723_v41 = vsel %vm11084_vm6, %v2702_v21, %v2704_v34  ;;  %v2724_v52 = vsel %vm11085_vm3, %v2704_v34, %v2706_v31  ;;  %vm11089_vm11 = vmmov %vm11085_vm3 }
 0x644   :  { %v2740_v18 = vsel %vm11086_vm12, %v2722_v2, 0  ;;  %v2743_v33 = vsel %vm11087_vm1, %v2723_v41, 0  ;;  %v2746_v48 = vsel %vm11088_vm0, %v2724_v52, 0  ;;  %v2715_v36 = vsel %vm11089_vm11, %v2684_v47, %v2686_v1  ;;  %vm11090_vm6 = vmmov %vm11085_vm3  ;;  %v3474_v41 = vld [vmem:[#allocation4] sm:$0x66] }
 0x645   :  { %2766 = vmatpush.bf16.msra.mxu0 %v2740_v18  ;;  %2780 = vmatpush.bf16.msra.mxu1 %v2743_v33  ;;  %v2716_v23 = vsel %vm11090_vm6, %v2686_v1, %v2688_v39  ;;  %vm11091_vm12 = vmmov %vm11085_vm3  ;;  %v3459_v17 = vrot.slane %v3452_v37, 4  ;;  %v11101_v33 = vld [vmem:[#allocation13_spill] sm:$0xff] }
 0x646   :  { %2794 = vmatpush.bf16.msra.mxu2 %v2746_v48  ;;  %vm11092_vm1 = vmmov %vm11088_vm0  ;;  %vm11093_vm0 = vcmask 244736  }
 0x647   :  { %vm11094_vm11 = vmmov %vm11093_vm0 }
 0x648   :  { %3024 = vrot.lane.b32.xlu2 %v8764_v38, %s7402_s9  ;;  %vm11095_vm6 = vmmov %vm11093_vm0 }
 0x649   :  { %2767 = vmatpush.bf16.msra.mxu0 %v2715_v36  ;;  %2781 = vmatpush.bf16.msra.mxu1 %v2716_v23  ;;  %vm11096_vm8 = vmmov %vm11092_vm1 }
 0x64a   :  { %2795 = vmatpush.bf16.msra.mxu2 %v2717_v51  ;;  %v2714_v20 = vpop.permute.xlu1 %2713  ;;  %v8988_v5 = vpop.permute.xlu2 %2693  ;;  %v2893_v1 = vsel %vm11096_vm8, %v8834_v0, 0  ;;  %v3477_v0 = vld [vmem:[#allocation4 + $0x8] sm:$0x66] }
 0x64b   :  { %v8984_v53 = vpop.permute.xlu0 %3606  ;;  %v2728_v45 = vsel %vm11091_vm12, %v8958_v29, %v2714_v20  ;;  %vm11097_vm12 = vcmask 1043456   ;;  %v3568_v20 = vld [vmem:[#allocation4 + $0x38] sm:$0x11] }
 0x64c   :  { %v2758_v38 = vsel %vm11092_vm1, %v2728_v45, 0  ;;  %6809 = vmatmul.msk.bf16.vlgmr.msra.gmra.mxu0 %vm11093_vm0, %v8986_v25  ;;  %6810 = vmatmul.msk.bf16.vlgmr.msra.gmra.mxu1 %vm11094_vm11, %v8986_v25  ;;  %vm11098_vm1 = vcmask 785408   ;;  %vm11099_vm0 = vmmov %vm11097_vm12  ;;  %vm11102_vm11 = vnez %v11101_v33 }
 0x64d   :  { %6811 = vmatmul.msk.bf16.vlgmr.msra.gmra.mxu2 %vm11095_vm6, %v8986_v25  ;;  %vm11100_vm8 = vmmov %vm11098_vm1 }
 0x64e   :  { %2850 = vmatpush.bf16.msrb.mxu2 %v2758_v38  ;;  %vm11103_vm6 = vmmov %vm11085_vm3  ;;  %vm11104_vm3 = vcmask 1046528  }
 0x652   :  { %2851 = vmatpush.bf16.msrb.mxu2 %v2721_v50  ;;  %v3454_v47 = vpop.permute.xlu1 %3453  ;;  %v9005_v39 = vpop.permute.xlu2 %3455  ;;  %v3565_v50 = vld [vmem:[#allocation4 + $0x30] sm:$0x11] }
 0x653   :  { %v9003_v21 = vpop.permute.xlu0 %3509  ;;  %v3460_v22 = vrot.slane %v3454_v47, 4  ;;  %v3461_v34 = vrot.slane %v9005_v39, 4 }
 0x655   :  { %v3463_v2 = vsel %vm11097_vm12, %v3459_v17, %v3460_v22  ;;  %v3465_v63 = vsel %vm11099_vm0, %v3460_v22, %v3461_v34  ;;  %vm11105_vm12 = vmmov %vm11099_vm0 }
 0x656   :  { %2952 = vmatpush.bf16.msra.mxu2 %v2893_v1  ;;  %v3464_v52 = vsel %vm11098_vm1, %v3452_v37, %v3463_v2  ;;  %v3466_v18 = vsel %vm11100_vm8, %v3454_v47, %v3465_v63  ;;  %vm11106_vm1 = vcmask 523264   ;;  %v11108_v1 = vld [vmem:[#allocation19_spill] sm:$0xff]  ;;  %v11110_v47 = vld [vmem:[#allocation18_spill] sm:$0xff] }
 0x657   :  { %v3475_v48 = vsel %vm11102_vm11, %v3464_v52, %v3474_v41  ;;  %v3478_v42 = vsel %vm11102_vm11, %v3466_v18, %v3477_v0  ;;  %vm11107_vm0 = vmmov %vm11106_vm1  ;;  %vm11109_vm8 = vnez %v11108_v1  ;;  %vm11111_vm5 = vnez %v11110_v47 }
 0x658   :  { %3476 = vst [vmem:[#allocation4] sm:$0x66] %v3475_v48  ;;  %vm11112_vm9 = vmor %vm11109_vm8, %vm11111_vm5  ;;  %vm11115_vm5 = vcmask 1046528  }
 0x659   :  { %3479 = vst [vmem:[#allocation4 + $0x8] sm:$0x66] %v3478_v42  ;;  %v2884_v41 = vsel %vm11115_vm5, %v8853_v55, 0 }
 0x65a   :  { %2953 = vmatpush.bf16.msra.mxu2 %v8796_v57  ;;  %v2708_v36 = vpop.permute.xlu1 %2707  ;;  %v9019_v23 = vpop.permute.xlu2 %3610 }
 0x65b   :  { %v3524_v11 = vpop.permute.xlu0 %3523  ;;  %v2725_v51 = vsel %vm11103_vm6, %v2706_v31, %v2708_v36  ;;  %vm11113_vm6 = vcmask 244736   ;;  %v3616_v2 = vrot.slane %v9019_v23, 4 }
 0x65c   :  { %v3532_v37 = vrot.slane %v3524_v11, 4  ;;  %v2749_v57 = vsel %vm11104_vm3, %v2725_v51, 0  ;;  %vm11114_vm3 = vcmask 1039360   ;;  %v3629_v51 = vld [vmem:[#allocation4 + $0x20] sm:$0x33] }
 0x65d   :  { %2808 = vmatpush.bf16.msra.mxu3 %v2749_v57  ;;  %6815 = vmatmul.msk.bf16.vlgmr.msrb.gmra.mxu2 %vm11113_vm6, %v8986_v25  ;;  %v3632_v57 = vld [vmem:[#allocation4 + $0x28] sm:$0x33] }
 0x65e   :  { %v3544_v45 = vsel %vm11105_vm12, %v3531_v59, %v3532_v37  ;;  %v3546_v38 = vsel %vm11106_vm1, %v3524_v11, %v3532_v37  ;;  %v2718_v59 = vsel %vm11114_vm3, %v8946_v40, %v8952_v56  ;;  %vm11118_vm1 = vmmov %vm11105_vm12 }
 0x65f   :  { %v3545_v17 = vsel %vm11107_vm0, %v8822_v16, %v3544_v45  ;;  %v3569_v31 = vsel %vm11112_vm9, %v3546_v38, %v3568_v20  ;;  %v3614_v16 = vrot.slane %v8984_v53, 4  ;;  %vm11116_vm9 = vmmov %vm11113_vm6  ;;  %vm11121_vm6 = vcmask 261120   ;;  %v11123_v38 = vld [vmem:[#allocation20_spill] sm:$0xff] }
 0x660   :  { %v3566_v22 = vsel %vm11078_vm7, %v3545_v17, %v3565_v50  ;;  %3570 = vst [vmem:[#allocation4 + $0x38] sm:$0x11] %v3569_v31  ;;  %vm11117_vm7 = vmmov %vm11107_vm0 }
 0x661   :  { %3567 = vst [vmem:[#allocation4 + $0x30] sm:$0x11] %v3566_v22  ;;  %2809 = vmatpush.bf16.msra.mxu3 %v2718_v59  ;;  %vm11119_vm0 = vmmov %vm11115_vm5  ;;  %vm11124_vm5 = vnez %v11123_v38 }
 0x662   :  { %v3609_v63 = vpop.permute.xlu1 %3608  ;;  %v9045_v19 = vpop.permute.xlu2 %3513  ;;  %v2896_v55 = vsel %vm11119_vm0, %v8888_v6, 0  ;;  %vm11120_vm8 = vmmov %vm11118_vm1  ;;  %v11126_v6 = vld [vmem:[#allocation24_spill] sm:$0xff] }
 0x663   :  { %v3516_v52 = vpop.permute.xlu0 %3515  ;;  %v3615_v18 = vrot.slane %v3609_v63, 4  ;;  %v3527_v48 = vrot.slane %v9045_v19, 4  ;;  %vm11122_vm3 = vmmov %vm11121_vm6 }
 0x664   :  { %v3528_v0 = vrot.slane %v3516_v52, 4  ;;  %6812 = vmatmul.msk.bf16.vlgmr.msra.gmra.mxu3 %vm11116_vm9, %v8986_v25  ;;  %vm11125_vm9 = vmmov %vm11117_vm7 }
 0x665   :  { %2910 = vmatpush.bf16.msrb.mxu3 %v2884_v41  ;;  %v3618_v42 = vsel %vm11105_vm12, %v3614_v16, %v3615_v18  ;;  %v3620_v11 = vsel %vm11118_vm1, %v3615_v18, %v3616_v2  ;;  %vm11128_vm12 = vcmask 1039360  }
 0x666   :  { %v3539_v40 = vsel %vm11117_vm7, %v3516_v52, %v3528_v0  ;;  %v3537_v37 = vsel %vm11120_vm8, %v3527_v48, %v3528_v0  ;;  %v3619_v20 = vsel %vm11121_vm6, %v8984_v53, %v3618_v42  ;;  %v3621_v45 = vsel %vm11122_vm3, %v3609_v63, %v3620_v11  ;;  %v6818_v53 = vld [vmem:[%s10668_s3] sm:$0xf]  ;;  %vm11129_vm1 = vmmov %vm11128_vm12  ;;  %v11136_v11 = vld [vmem:[#allocation21_spill] sm:$0xff] }
 0x667   :  { %3558 = vst.msk [vmem:[#allocation4 + $0x18] sm:$0x88] %vm11124_vm5, %v3539_v40  ;;  %v3538_v50 = vsel %vm11125_vm9, %v9045_v19, %v3537_v37  ;;  %vm11127_vm7 = vnez %v11126_v6  ;;  %vm11130_vm8 = vmmov %vm11119_vm0  ;;  %v3638_v18 = vld [vmem:[#allocation4 + $0x38] sm:$0x33]  ;;  %vm11131_vm6 = vcmask 1043456   ;;  %vm11132_vm5 = vcmask 244736  }
 0x668   :  { %v3630_v17 = vsel %vm11127_vm7, %v3619_v20, %v3629_v51  ;;  %v3633_v1 = vsel %vm11127_vm7, %v3621_v45, %v3632_v57  ;;  %3557 = vst [vmem:[#allocation4 + $0x10] sm:$0x88] %v3538_v50  ;;  %vm11133_vm9 = vmmov %vm11122_vm3  ;;  %v3525_v50 = vrot.slane %v9003_v21, 4 }
 0x669   :  { %2911 = vmatpush.bf16.msrb.mxu3 %v8839_v62  ;;  %3634 = vst [vmem:[#allocation4 + $0x28] sm:$0x33] %v3633_v1  ;;  %v7218_v62 = vld [vmem:[%s10668_s3] sm:$0x10] }
 0x66a   :  { %3631 = vst [vmem:[#allocation4 + $0x20] sm:$0x33] %v3630_v17  ;;  %v2710_v31 = vpop.permute.xlu1 %2709  ;;  %v3613_v22 = vpop.permute.xlu2 %3612  ;;  %v9084_v0 = vor.u32 %v7218_v62, %v6818_v53 }
 0x66b   :  { %v9076_v47 = vpop.permute.xlu0 %3030  ;;  %v2726_v59 = vsel %vm11128_vm12, %v2708_v36, %v2710_v31  ;;  %v2727_v16 = vsel %vm11129_vm1, %v2710_v31, %v8958_v29  ;;  %v3617_v41 = vrot.slane %v3613_v22, 4  ;;  %v3635_v29 = vld [vmem:[#allocation4 + $0x30] sm:$0x33]  ;;  %v11134_v36 = vld [vmem:[#allocation22_spill] sm:$0xff]  ;;  %vm11137_vm1 = vnez %v11136_v11 }
 0x66c   :  { %v2752_v52 = vsel %vm11119_vm0, %v2726_v59, 0  ;;  %v2755_v63 = vsel %vm11130_vm8, %v2727_v16, 0  ;;  %vm11135_vm12 = vnez %v11134_v36  ;;  %vm11139_vm8 = vcmask 1039360  }
 0x66d   :  { %2966 = vmatpush.bf16.msra.mxu3 %v2896_v55  ;;  %2822 = vmatpush.bf16.msrb.mxu0 %v2752_v52  ;;  %v3622_v40 = vsel %vm11131_vm6, %v3616_v2, %v3617_v41  ;;  %v3624_v42 = vsel %vm11122_vm3, %v3613_v22, %v3617_v41  ;;  %vm11138_vm0 = vmor %vm11135_vm12, %vm11137_vm1  ;;  %v2719_v2 = vsel %vm11139_vm8, %v8952_v56, %v8988_v5  ;;  %vm11141_vm3 = vcmask 1046528   ;;  %v7232_v56 = vld [vmem:[#allocation4 + $0x74] sm:$0x70]  ;;  %v3480_v41 = vld [vmem:[#allocation4 + $0x10] sm:$0x66] }
 0x66e   :  { %2836 = vmatpush.bf16.msrb.mxu1 %v2755_v63  ;;  %6831 = vmatmul.msk.bf16.vlgmr.msra.gmra.mxu2 %vm11132_vm5, %v9084_v0  ;;  %v3639_v55 = vsel %vm11138_vm0, %v3624_v42, %v3638_v18  ;;  %vm11140_vm6 = vmmov %vm11139_vm8  ;;  %v2887_v57 = vsel %vm11141_vm3, %v8855_v58, 0  ;;  %vm11146_vm1 = vcmask 1043456   ;;  %v11160_v52 = vld [vmem:[#allocation12_spill] sm:$0xff] }
 0x66f   :  { %3640 = vst [vmem:[#allocation4 + $0x38] sm:$0x33] %v3639_v55  ;;  %v2720_v51 = vsel %vm11140_vm6, %v8988_v5, %v8960_v15  ;;  %vm11142_vm5 = vmmov %vm11141_vm3 }
 0x670   :  { %v2890_v20 = vsel %vm11142_vm5, %v8890_v32, 0  ;;  %vm11147_vm0 = vmmov %vm11146_vm1  ;;  %v7244_v42 = vld [vmem:[#allocation4 + $0x24] sm:$0xf0] }
 0x671   :  { %2967 = vmatpush.bf16.msra.mxu3 %v8809_v61  ;;  %v3623_v61 = vsel %vm11133_vm9, %v9019_v23, %v3622_v40  ;;  %v6826_v23 = vld [vmem:[#allocation4 + $0x58] sm:$0xf]  ;;  %2823 = vmatpush.bf16.msrb.mxu0 %v2719_v2  ;;  %vm11144_vm9 = vcmask 244736   ;;  %vm11148_vm8 = vmmov %vm11141_vm3  ;;  %vm11150_vm3 = vcmask 523264   ;;  %v6868_v18 = vld [vmem:[#allocation4 + $0x20] sm:$0xf0] }
 0x672   :  { %v3636_v37 = vsel %vm11127_vm7, %v3623_v61, %v3635_v29  ;;  %2837 = vmatpush.bf16.msrb.mxu1 %v2720_v51  ;;  %v3512_v38 = vpop.permute.xlu1 %3511  ;;  %v3029_v6 = vpop.permute.xlu2 %3028  ;;  %v6827_v5 = vor.u32 %v7232_v56, %v6826_v23  ;;  %vm11143_vm7 = vcmask 1031168   ;;  %vm11145_vm12 = vmmov %vm11144_vm9 }
 0x673   :  { %3637 = vst [vmem:[#allocation4 + $0x30] sm:$0x33] %v3636_v37  ;;  %v9109_v45 = vpop.permute.xlu0 %3014  ;;  %v3526_v15 = vrot.slane %v3512_v38, 4  ;;  %v3050_v17 = vsel %vm11143_vm7, %v3029_v6, %v9076_v47  ;;  %vm11149_vm6 = vmmov %vm11144_vm9 }
 0x674   :  { %6813 = vmatmul.msk.bf16.vlgmr.msrb.gmra.mxu0 %vm11144_vm9, %v8986_v25  ;;  %6828 = vmatmul.msk.bf16.vlgmr.msrb.gmra.mxu3 %vm11145_vm12, %v9084_v0  ;;  %v3070_v1 = vsel %vm11148_vm8, %v3050_v17, 0  ;;  %vm11151_vm5 = vmmov %vm11150_vm3  ;;  %vm11154_vm12 = vcmask 1031168   ;;  %v6839_v17 = vld [vmem:[%s10668_s3 + $0x10] sm:$0xf] }
 0x675   :  { %2924 = vmatpush.bf16.msra.mxu0 %v2887_v57  ;;  %v3533_v58 = vsel %vm11146_vm1, %v3525_v50, %v3526_v15  ;;  %v3535_v32 = vsel %vm11147_vm0, %v3526_v15, %v3527_v48  ;;  %6814 = vmatmul.msk.bf16.vlgmr.msrb.gmra.mxu1 %vm11149_vm6, %v8986_v25  ;;  %vm11152_vm7 = vmmov %vm11148_vm8  ;;  %v7243_v50 = vld [vmem:[#allocation4 + $0x1c] sm:$0xf0] }
 0x676   :  { %2938 = vmatpush.bf16.msra.mxu1 %v2890_v20  ;;  %v3534_v53 = vsel %vm11150_vm3, %v9003_v21, %v3533_v58  ;;  %v3536_v62 = vsel %vm11151_vm5, %v3512_v38, %v3535_v32  ;;  %3107 = vmatpush.bf16.msrb.mxu3 %v3070_v1  ;;  %v2899_v31 = vsel %vm11152_vm7, %v8909_v12, 0  ;;  %vm11153_vm9 = vmmov %vm11152_vm7  ;;  %v6823_v21 = vor.u32 %v8771_v43, %v8674_v10  ;;  %v11158_v43 = vld [vmem:[#allocation17_spill] sm:$0xff]  ;;  %v6876_v20 = vld [vmem:[#allocation4 + $0x28] sm:$0xf0] }
 0x677   :  { %3555 = vst [vmem:[#allocation4] sm:$0x88] %v3534_v53  ;;  %v2902_v19 = vsel %vm11153_vm9, %v6827_v5, 0  ;;  %vm11155_vm1 = vmmov %vm11147_vm0  ;;  %vm11156_vm0 = vcmask 785408   ;;  %vm11159_vm6 = vnez %v11158_v43  ;;  %vm11161_vm3 = vnez %v11160_v52  ;;  %v6892_v56 = vld [vmem:[#allocation4 + $0x38] sm:$0xf0] }
 0x678   :  { %3556 = vst [vmem:[#allocation4 + $0x8] sm:$0x88] %v3536_v62  ;;  %vm11157_vm8 = vmmov %vm11156_vm0  ;;  %v7238_v58 = vld [vmem:[%s10668_s3 + $0x10] sm:$0x10] }
 0x679   :  { %2925 = vmatpush.bf16.msra.mxu0 %v8842_v54  ;;  %vm11162_vm5 = vmor %vm11159_vm6, %vm11161_vm3  ;;  %v6840_v62 = vor.u32 %v7238_v58, %v6839_v17  ;;  %v6862_v17 = vld [vmem:[%s10665_s1 + $0x8] sm:$0xf]  ;;  %v7247_v58 = vld [vmem:[%s10665_s1 + $0x8] sm:$0x10] }
 0x67a   :  { %2939 = vmatpush.bf16.msra.mxu1 %v8878_v7  ;;  %v3458_v48 = vpop.permute.xlu1 %3457  ;;  %v3013_v22 = vpop.permute.xlu2 %3012  ;;  %v3483_v7 = vld [vmem:[#allocation4 + $0x18] sm:$0x66]  ;;  %vm11163_vm7 = vmmov %vm11154_vm12 }
 0x67b   :  { %v9133_v25 = vpop.permute.xlu0 %3038  ;;  %v3462_v59 = vrot.slane %v3458_v48, 4  ;;  %v3043_v54 = vsel %vm11154_vm12, %v3013_v22, %v9109_v45  ;;  %vm11165_vm9 = vmmov %vm11163_vm7  ;;  %vm11166_vm12 = vcmask 1046528  }
 0x67c   :  { %3108 = vmatpush.bf16.msrb.mxu3 %v3043_v54 }
 0x67d   :  { %2980 = vmatpush.bf16.msrb.mxu0 %v2899_v31  ;;  %v3467_v12 = vsel %vm11155_vm1, %v3461_v34, %v3462_v59  ;;  %v3469_v16 = vsel %vm11156_vm0, %v3458_v48, %v3462_v59  ;;  %vm11167_vm1 = vcmask 244736   ;;  %vm11168_vm0 = vmmov %vm11166_vm12  ;;  %v6884_v48 = vld [vmem:[#allocation4 + $0x30] sm:$0xf0] }
 0x67e   :  { %2994 = vmatpush.bf16.msrb.mxu1 %v2902_v19  ;;  %v3468_v10 = vsel %vm11157_vm8, %v9005_v39, %v3467_v12  ;;  %v7240_v63 = vld [vmem:[#allocation4 + $0x4] sm:$0xf]  ;;  %vm11169_vm8 = vmmov %vm11167_vm1  ;;  %v6866_v57 = vld [vmem:[#allocation4] sm:$0xf] }
 0x67f   :  { %v3481_v40 = vsel %vm11102_vm11, %v3468_v10, %v3480_v41  ;;  %v6874_v34 = vld [vmem:[#allocation4 + $0x8] sm:$0xf]  ;;  %v9153_v61 = vor.u32 %v7240_v63, %v6868_v18  ;;  %vm11164_vm11 = vmmov %vm11163_vm7  ;;  %v7241_v23 = vld [vmem:[#allocation4 + $0xc] sm:$0xf]  ;;  %v9179_v5 = vor.u32 %v7243_v50, %v6866_v57 }
 0x680   :  { %3482 = vst [vmem:[#allocation4 + $0x10] sm:$0x66] %v3481_v40  ;;  %v9155_v29 = vor.u32 %v7244_v42, %v6874_v34  ;;  %vm11170_vm6 = vmmov %vm11168_vm0 }
 0x681   :  { %2981 = vmatpush.bf16.msrb.mxu0 %v8902_v44  ;;  %v3484_v44 = vsel %vm11162_vm5, %v3469_v16, %v3483_v7  ;;  %3722 = vrot.lane.b32.xlu0 %v9153_v61, %s7401_s8  ;;  %vm11171_vm3 = vmmov %vm11167_vm1 }
 0x682   :  { %2995 = vmatpush.bf16.msrb.mxu1 %v6823_v21  ;;  %3485 = vst [vmem:[#allocation4 + $0x18] sm:$0x66] %v3484_v44  ;;  %3724 = vrot.lane.b32.xlu1 %v9155_v29, %s7401_s8  ;;  %v3027_v36 = vpop.permute.xlu1 %3026  ;;  %v3037_v11 = vpop.permute.xlu2 %3036  ;;  %vm11172_vm5 = vmmov %vm11163_vm7  ;;  %v7249_v21 = vld [vmem:[#allocation4 + $0x34] sm:$0xf0]  ;;  %v7245_v44 = vld [vmem:[#allocation4 + $0x2c] sm:$0xf0] }
 0x683   :  { %v3033_v39 = vpop.permute.xlu0 %3032  ;;  %v3049_v55 = vsel %vm11164_vm11, %v3027_v36, %v3029_v6  ;;  %v3054_v37 = vsel %vm11165_vm9, %v3037_v11, %v9133_v25  ;;  %v9175_v6 = vor.u32 %v7241_v23, %v6876_v20  ;;  %vm11174_vm11 = vmmov %vm11172_vm5 }
 0x684   :  { %v3051_v33 = vsel %vm11163_vm7, %v9076_v47, %v3033_v39  ;;  %v3067_v2 = vsel %vm11166_vm12, %v3049_v55, 0  ;;  %6829 = vmatmul.msk.bf16.vlgmr.msra.gmra.mxu0 %vm11167_vm1, %v9084_v0  ;;  %6832 = vmatmul.msk.bf16.vlgmr.msra.gmra.mxu3 %vm11169_vm8, %v9084_v0  ;;  %v3082_v47 = vsel %vm11170_vm6, %v3054_v37, 0  ;;  %vm11173_vm7 = vmmov %vm11167_vm1 }
 0x685   :  { %v3073_v51 = vsel %vm11168_vm0, %v3051_v33, 0  ;;  %3093 = vmatpush.bf16.msrb.mxu2 %v3067_v2  ;;  %3163 = vmatpush.bf16.msra.mxu3 %v3082_v47  ;;  %vm11175_vm9 = vmmov %vm11172_vm5 }
 0x686   :  { %3121 = vmatpush.bf16.msra.mxu0 %v3073_v51  ;;  %6830 = vmatmul.msk.bf16.vlgmr.msra.gmra.mxu1 %vm11171_vm3, %v9084_v0  ;;  %vm11176_vm12 = vmmov %vm11172_vm5 }
 0x687   :  { %v7242_v31 = vld [vmem:[#allocation4 + $0x14] sm:$0xf]  ;;  %vm11177_vm1 = vmmov %vm11168_vm0  ;;  %v6882_v52 = vld [vmem:[#allocation4 + $0x10] sm:$0xf] }
 0x688   :  { %v9194_v59 = vor.u32 %v7242_v31, %v6884_v48  ;;  %vm11178_vm8 = vmmov %vm11171_vm3  ;;  %v9213_v63 = vor.u32 %v7245_v44, %v6882_v52  ;;  %v9297_v31 = vor.u32 %v7247_v58, %v6862_v17 }
 0x689   :  { %v7248_v38 = vld [vmem:[#allocation4 + $0x1c] sm:$0xf]  ;;  %3726 = vrot.lane.b32.xlu0 %v9175_v6, %s7401_s8  ;;  %v6890_v19 = vld [vmem:[#allocation4 + $0x18] sm:$0xf]  ;;  %vm11179_vm6 = vmmov %vm11171_vm3 }
 0x68a   :  { %v9177_v15 = vor.u32 %v7248_v38, %v6892_v56  ;;  %3720 = vrot.lane.b32.xlu1 %v9179_v5, %s7401_s8  ;;  %v3011_v32 = vpop.permute.xlu1 %3010  ;;  %v3021_v1 = vpop.permute.xlu2 %3020  ;;  %v6891_v54 = vor.u32 %v7249_v21, %v6890_v19 }
 0x68b   :  { %v3042_v53 = vsel %vm11172_vm5, %v3011_v32, %v3013_v22 }
 0x68c   :  { %3734 = vrot.lane.b32.xlu2 %v9177_v15, %s7401_s8  ;;  %3094 = vmatpush.bf16.msrb.mxu2 %v3042_v53 }
 0x68f   :  { %6841 = vmatmul.msk.bf16.vlgmr.msrb.gmra.mxu2 %vm11173_vm7, %v6840_v62  ;;  %vm11180_vm7 = vmmov %vm11172_vm5 }
 0x691   :  { %3730 = vrot.lane.b32.xlu0 %v9194_v59, %s7401_s8 }
 0x692   :  { %3732 = vrot.lane.b32.xlu1 %v6891_v54, %s7401_s8  ;;  %v3035_v22 = vpop.permute.xlu1 %3034  ;;  %v3017_v7 = vpop.permute.xlu2 %3016 }
 0x693   :  { %v3052_v12 = vsel %vm11174_vm11, %v3033_v39, %v3035_v22  ;;  %v3053_v16 = vsel %vm11175_vm9, %v3035_v22, %v3037_v11  ;;  %v3044_v41 = vsel %vm11176_vm12, %v9109_v45, %v3017_v7  ;;  %vm11181_vm11 = vmmov %vm11172_vm5  ;;  %v4495_v11 = vld [vmem:[%s10666_s4] sm:$0xff] }
 0x694   :  { %4006 = vrot.lane.b32.xlu2 %v9153_v61, %s7402_s9  ;;  %v3076_v10 = vsel %vm11177_vm1, %v3052_v12, 0  ;;  %v3079_v43 = vsel %vm11168_vm0, %v3053_v16, 0  ;;  %6833 = vmatmul.msk.bf16.vlgmr.msrb.gmra.mxu0 %vm11178_vm8, %v9084_v0  ;;  %vm11182_vm9 = vmmov %vm11168_vm0 }
 0x695   :  { %6842 = vmatmul.msk.bf16.vlgmr.msrb.gmra.mxu3 %vm11179_vm6, %v6840_v62  ;;  %3122 = vmatpush.bf16.msra.mxu0 %v3044_v41  ;;  %vm11183_vm12 = vmmov %vm11171_vm3 }
 0x696   :  { %3135 = vmatpush.bf16.msra.mxu1 %v3076_v10  ;;  %3149 = vmatpush.bf16.msra.mxu2 %v3079_v43  ;;  %vm11184_vm1 = vmmov %vm11172_vm5 }
 0x697   :  { %6834 = vmatmul.msk.bf16.vlgmr.msrb.gmra.mxu1 %vm11171_vm3, %v9084_v0  ;;  %vm11185_vm0 = vmmov %vm11184_vm1 }
 0x698   :  { %vm11186_vm8 = vmmov %vm11171_vm3 }
 0x699   :  { %3728 = vrot.lane.b32.xlu0 %v9213_v63, %s7401_s8  ;;  %vm11187_vm6 = vmmov %vm11171_vm3 }
 0x69a   :  { %4004 = vrot.lane.b32.xlu1 %v9179_v5, %s7402_s9  ;;  %v3019_v45 = vpop.permute.xlu1 %3018  ;;  %v3041_v18 = vpop.permute.xlu2 %3040 }
 0x69b   :  { %v3045_v40 = vsel %vm11172_vm5, %v3017_v7, %v3019_v45  ;;  %v3046_v34 = vsel %vm11180_vm7, %v3019_v45, %v3021_v1  ;;  %v3055_v0 = vsel %vm11181_vm11, %v9133_v25, %v3041_v18  ;;  %vm11188_vm5 = vmmov %vm11171_vm3  ;;  %vm11192_vm7 = vcmask 1039360  }
 0x69c   :  { %4014 = vrot.lane.b32.xlu2 %v9194_v59, %s7402_s9  ;;  %3136 = vmatpush.bf16.msra.mxu1 %v3045_v40  ;;  %v3085_v42 = vsel %vm11182_vm9, %v3055_v0, 0  ;;  %vm11198_vm11 = vcmask 121856   ;;  %vm11199_vm9 = vmmov %vm11192_vm7  ;;  %v6909_v0 = vld [vmem:[#allocation4 + $0x18] sm:$0xf] }
 0x69d   :  { %3150 = vmatpush.bf16.msra.mxu2 %v3046_v34  ;;  %3177 = vmatpush.bf16.msrb.mxu0 %v3085_v42 }
 0x6a0   :  { %6845 = vmatmul.msk.bf16.vlgmr.msra.gmra.mxu2 %vm11183_vm12, %v6840_v62  ;;  %vm11200_vm12 = vmmov %vm11192_vm7 }
 0x6a1   :  { %4010 = vrot.lane.b32.xlu0 %v9175_v6, %s7402_s9 }
 0x6a2   :  { %4012 = vrot.lane.b32.xlu1 %v9213_v63, %s7402_s9  ;;  %v3023_v39 = vpop.permute.xlu1 %3022  ;;  %v3025_v36 = vpop.permute.xlu2 %3024 }
 0x6a3   :  { %v3047_v25 = vsel %vm11184_vm1, %v3021_v1, %v3023_v39  ;;  %v3048_v33 = vsel %vm11185_vm0, %v3023_v39, %v3025_v36  ;;  %v11193_v1 = vld [vmem:[#allocation25_spill] sm:$0xff]  ;;  %vm11201_vm1 = vmmov %vm11198_vm11 }
 0x6a4   :  { %4172 = vrot.lane.b32.xlu2 %v9153_v61, %s7403_s10  ;;  %3164 = vmatpush.bf16.msra.mxu3 %v3047_v25  ;;  %vm11202_vm0 = vmmov %vm11201_vm1  ;;  %v3888_v17 = vand.u32 %v9175_v6, %v11193_v1 }
 0x6a5   :  { %6843 = vmatmul.msk.bf16.vlgmr.msra.gmra.mxu0 %vm11186_vm8, %v6840_v62  ;;  %vm11203_vm8 = vmmov %vm11192_vm7 }
 0x6a6   :  { %3178 = vmatpush.bf16.msrb.mxu0 %v3048_v33  ;;  %v7246_v33 = vld [vmem:[#allocation4 + $0x34] sm:$0xf0] }
 0x6a7   :  { %6844 = vmatmul.msk.bf16.vlgmr.msra.gmra.mxu1 %vm11187_vm6, %v6840_v62  ;;  %6846 = vmatmul.msk.bf16.vlgmr.msra.gmra.mxu3 %vm11171_vm3, %v6840_v62  ;;  %vm11204_vm6 = vmmov %vm11192_vm7 }
 0x6a8   :  { %vm11208_vm3 = vmmov %vm11202_vm0 }
 0x6a9   :  { %4008 = vrot.lane.b32.xlu0 %v9155_v29, %s7402_s9 }
 0x6aa   :  { %4170 = vrot.lane.b32.xlu1 %v9179_v5, %s7403_s10 }
 0x6ac   :  { %4018 = vrot.lane.b32.xlu2 %v9177_v15, %s7402_s9 }
 0x6b1   :  { %4174 = vrot.lane.b32.xlu0 %v9155_v29, %s7403_s10 }
 0x6b2   :  { %4016 = vrot.lane.b32.xlu1 %v6891_v54, %s7402_s9 }
 0x6b4   :  { %4182 = vrot.lane.b32.xlu2 %v6891_v54, %s7403_s10 }
 0x6b5   :  { %6847 = vmatmul.msk.bf16.vlgmr.msrb.gmra.mxu0 %vm11188_vm5, %v6840_v62  ;;  %vm11209_vm5 = vmmov %vm11204_vm6 }
 0x6b9   :  { %4178 = vrot.lane.b32.xlu0 %v9213_v63, %s7403_s10 }
 0x6ba   :  { %4180 = vrot.lane.b32.xlu1 %v9194_v59, %s7403_s10 }
 0x6bc   :  { %4340 = vrot.lane.b32.xlu2 %v9155_v29, %s7404_s11 }
 0x6c1   :  { %4176 = vrot.lane.b32.xlu0 %v9175_v6, %s7403_s10 }
 0x6c2   :  { %4338 = vrot.lane.b32.xlu1 %v9153_v61, %s7404_s11 }
 0x6c4   :  { %4336 = vrot.lane.b32.xlu2 %v9179_v5, %s7404_s11 }
 0x6c9   :  { %4342 = vrot.lane.b32.xlu0 %v9175_v6, %s7404_s11  ;;  %v2769_v55 = vpop.f32.mrf.mxu0  ;;  %v2783_v37 = vpop.f32.mrf.mxu1 }
 0x6ca   :  { %4184 = vrot.lane.b32.xlu1 %v9177_v15, %s7403_s10 }
 0x6cc   :  { %4350 = vrot.lane.b32.xlu2 %v9177_v15, %s7404_s11 }
 0x6d0   :  { %v2797_v2 = vpop.f32.mrf.mxu2 }
 0x6d1   :  { %4346 = vrot.lane.b32.xlu0 %v9194_v59, %s7404_s11  ;;  %v9275_v51 = vpop.f32.mrf.mxu0  ;;  %v9279_v47 = vpop.f32.mrf.mxu1 }
 0x6d2   :  { %4348 = vrot.lane.b32.xlu1 %v6891_v54, %s7404_s11  ;;  %11189 = vst [vmem:[#allocation8_spill] sm:$0xff] %v9275_v51 }
 0x6d3   :  { %11191 = vst [vmem:[#allocation7_spill] sm:$0xff] %v9279_v47 }
 0x6d8   :  { %v9277_v23 = vpop.f32.mrf.mxu2 }
 0x6d9   :  { %4344 = vrot.lane.b32.xlu0 %v9213_v63, %s7404_s11  ;;  %11190 = vst [vmem:[#allocation11_spill] sm:$0xff] %v9277_v23 }
 0x6da   :  { %4499 = vperm.xlu1 %7310, %v4495_v11  }
 0x6e0   :  { %v9281_v20 = vpop.f32.mrf.mxu2 }
 0x6e6   :  { %v3735_v40 = vpop.permute.xlu2 %3734 }
 0x6e7   :  { %v2811_v57 = vpop.f32.mrf.mxu3 }
 0x6e8   :  { %v9299_v19 = vpop.f32.mrf.mxu2 }
 0x6e9   :  { %11195 = vst [vmem:[#allocation6_spill] sm:$0xff] %v9299_v19 }
 0x6ef   :  { %v9295_v62 = vpop.f32.mrf.mxu3 }
 0x6f0   :  { %11194 = vst [vmem:[#allocation5_spill] sm:$0xff] %v9295_v62 }
 0x6f1   :  { %v9283_v38 = vpop.f32.mrf.mxu0  ;;  %v2955_v52 = vpop.f32.mrf.mxu2 }
 0x6f2   :  { %v9285_v56 = vpop.f32.mrf.mxu1  ;;  %v9311_v44 = vadd.f32 %v2955_v52, %v2811_v57  ;;  %v6910_v57 = vor.u32 %v7246_v33, %v6909_v0  ;;  %v3879_v52 = vand.u32 %v9179_v5, %v11193_v1  ;;  %v3891_v5 = vand.u32 %v9213_v63, %v11193_v1  ;;  %v6905_v63 = vld [vmem:[%s10665_s1] sm:$0xf] }
 0x6f3   :  { %v3723_v50 = vpop.permute.xlu0 %3722 }
 0x6f4   :  { %v3725_v15 = vpop.permute.xlu1 %3724 }
 0x6f5   :  { %v3737_v32 = vsel %vm11192_vm7, %v3723_v50, %v3725_v15  ;;  %vm11210_vm7 = vmmov %vm11209_vm5 }
 0x6f6   :  { %v3750_v53 = vand.u32 %v3737_v32, %v11193_v1  ;;  %v3897_v32 = vand.u32 %v6910_v57, %v11193_v1 }
 0x6f7   :  { %v2913_v10 = vpop.f32.mrf.mxu3 }
 0x6f8   :  { %3788 = vmatpush.bf16.msrb.mxu2 %v3750_v53  ;;  %v2914_v43 = vadd.f32 %v2913_v10, %v2769_v55 }
 0x6f9   :  { %v9301_v48 = vpop.f32.mrf.mxu0  ;;  %v9331_v58 = vpop.f32.mrf.mxu2 }
 0x6fa   :  { %11196 = vst [vmem:[#allocation10_spill] sm:$0xff] %v9301_v48  ;;  %v9303_v21 = vpop.f32.mrf.mxu1 }
 0x6fb   :  { %11197 = vst [vmem:[#allocation9_spill] sm:$0xff] %v9303_v21  ;;  %6897 = vmatmul.msk.bf16.vlgmr.msrb.gmra.mxu2 %vm11198_vm11, %v9297_v31  ;;  %v3727_v54 = vpop.permute.xlu0 %3726  ;;  %vm11212_vm11 = vcmask 1031168  }
 0x6fc   :  { %v3738_v22 = vsel %vm11199_vm9, %v3725_v15, %v3727_v54  ;;  %v3721_v7 = vpop.permute.xlu1 %3720  ;;  %v3885_v15 = vand.u32 %v9155_v29, %v11193_v1  ;;  %11206 = vst [vmem:[#allocation16_spill] sm:$0xff] %v9331_v58  ;;  %vm11213_vm9 = vmmov %vm11202_vm0 }
 0x6fd   :  { %v3753_v12 = vand.u32 %v3738_v22, %v11193_v1  ;;  %v3736_v16 = vsel %vm11200_vm12, %v3721_v7, %v3723_v50  ;;  %vm11214_vm12 = vmmov %vm11202_vm0 }
 0x6fe   :  { %v3747_v41 = vand.u32 %v3736_v16, %v11193_v1 }
 0x6ff   :  { %3802 = vmatpush.bf16.msrb.mxu3 %v3753_v12  ;;  %v9325_v50 = vpop.f32.mrf.mxu3  ;;  %v4007_v12 = vpop.permute.xlu2 %4006 }
 0x700   :  { %3774 = vmatpush.bf16.msrb.mxu1 %v3747_v41  ;;  %11205 = vst [vmem:[#allocation15_spill] sm:$0xff] %v9325_v50 }
 0x701   :  { %v2927_v45 = vpop.f32.mrf.mxu0 }
 0x702   :  { %6898 = vmatmul.msk.bf16.vlgmr.msrb.gmra.mxu3 %vm11201_vm1, %v9297_v31  ;;  %v9315_v18 = vadd.f32 %v2927_v45, %v2783_v37  ;;  %v3882_v45 = vand.u32 %v9153_v61, %v11193_v1  ;;  %v3894_v61 = vand.u32 %v9194_v59, %v11193_v1  ;;  %vm11215_vm1 = vmmov %vm11202_vm0  ;;  %v7239_v59 = vld [vmem:[%s10665_s1] sm:$0x10] }
 0x703   :  { %6896 = vmatmul.msk.bf16.vlgmr.msrb.gmra.mxu1 %vm11202_vm0, %v9297_v31  ;;  %v3731_v34 = vpop.permute.xlu0 %3730  ;;  %v2941_v39 = vpop.f32.mrf.mxu1  ;;  %vm11218_vm0 = vmmov %vm11212_vm11 }
 0x704   :  { %v3733_v42 = vpop.permute.xlu1 %3732  ;;  %v9321_v11 = vadd.f32 %v2941_v39, %v2797_v2 }
 0x705   :  { %v3741_v36 = vsel %vm11203_vm8, %v3731_v34, %v3733_v42  ;;  %v3742_v25 = vsel %vm11204_vm6, %v3733_v42, %v3735_v40  ;;  %vm11221_vm8 = vmmov %vm11215_vm1 }
 0x706   :  { %v3762_v55 = vand.u32 %v3741_v36, %v11193_v1  ;;  %v3765_v37 = vand.u32 %v3742_v25, %v11193_v1  ;;  %vm11223_vm6 = vmmov %vm11218_vm0 }
 0x707   :  { %v4015_v57 = vpop.permute.xlu2 %4014 }
 0x708   :  { %3844 = vmatpush.bf16.msra.mxu2 %v3762_v55  ;;  %3858 = vmatpush.bf16.msra.mxu3 %v3765_v37 }
 0x709   :  { %v9333_v2 = vpop.f32.mrf.mxu0 }
 0x70a   :  { %11207 = vst [vmem:[#allocation14_spill] sm:$0xff] %v9333_v2 }
 0x70b   :  { %6901 = vmatmul.msk.bf16.vlgmr.msra.gmra.mxu2 %vm11208_vm3, %v9297_v31  ;;  %v3729_v53 = vpop.permute.xlu0 %3728  ;;  %v9340_v7 = vpop.f32.mrf.mxu1  ;;  %vm11224_vm3 = vmmov %vm11218_vm0 }
 0x70c   :  { %3934 = vmatpush.bf16.msrb.mxu2 %v3885_v15  ;;  %3948 = vmatpush.bf16.msrb.mxu3 %v3888_v17  ;;  %v3739_v22 = vsel %vm11209_vm5, %v3727_v54, %v3729_v53  ;;  %v3740_v29 = vsel %vm11210_vm7, %v3729_v53, %v3731_v34  ;;  %v4005_v6 = vpop.permute.xlu1 %4004  ;;  %11211 = vst [vmem:[#allocation23_spill] sm:$0xff] %v9340_v7  ;;  %v2969_v54 = vpop.f32.mrf.mxu3  ;;  %vm11225_vm5 = vmmov %vm11218_vm0 }
 0x70d   :  { %v3756_v16 = vand.u32 %v3739_v22, %v11193_v1  ;;  %v3759_v41 = vand.u32 %v3740_v29, %v11193_v1  ;;  %v4020_v10 = vsel %vm11212_vm11, %v4005_v6, %v4007_v12  ;;  %v2970_v40 = vadd.f32 %v2969_v54, %v9283_v38  ;;  %vm11227_vm7 = vmmov %vm11215_vm1 }
 0x70e   :  { %v4031_v34 = vand.u32 %v4020_v10, %v11193_v1  ;;  %vm11228_vm11 = vmmov %vm11215_vm1 }
 0x70f   :  { %3816 = vmatpush.bf16.msra.mxu0 %v3756_v16  ;;  %3830 = vmatpush.bf16.msra.mxu1 %v3759_v41 }
 0x710   :  { %3990 = vmatpush.bf16.msra.mxu2 %v3897_v32 }
 0x711   :  { %v2983_v0 = vpop.f32.mrf.mxu0 }
 0x712   :  { %6899 = vmatmul.msk.bf16.vlgmr.msra.gmra.mxu0 %vm11213_vm9, %v9297_v31  ;;  %6902 = vmatmul.msk.bf16.vlgmr.msra.gmra.mxu3 %vm11214_vm12, %v9297_v31  ;;  %v9360_v42 = vadd.f32 %v2983_v0, %v9285_v56  ;;  %v3096_v38 = vpop.f32.mrf.mxu2  ;;  %vm11230_vm9 = vmmov %vm11215_vm1  ;;  %v4173_v0 = vpop.permute.xlu2 %4172  ;;  %vm11234_vm12 = vcmask 1022976  }
 0x713   :  { %3906 = vmatpush.bf16.msrb.mxu0 %v3879_v52  ;;  %3920 = vmatpush.bf16.msrb.mxu1 %v3882_v45  ;;  %v4011_v39 = vpop.permute.xlu0 %4010  ;;  %v9364_v36 = vadd.f32 %v3096_v38, %v2914_v43  ;;  %v6906_v43 = vor.u32 %v7239_v59, %v6905_v63 }
 0x714   :  { %6900 = vmatmul.msk.bf16.vlgmr.msra.gmra.mxu1 %vm11215_vm1, %v9297_v31  ;;  %4058 = vmatpush.bf16.msra.mxu3 %v4031_v34  ;;  %v4013_v25 = vpop.permute.xlu1 %4012  ;;  %v2997_v56 = vpop.f32.mrf.mxu1 }
 0x715   :  { %11216 = vst [vmem:[#allocation13_spill] sm:$0xff] %v9364_v36  ;;  %v2998_v33 = vadd.f32 %v2997_v56, %v9281_v20  ;;  %v9373_v55 = vpop.f32.mrf.mxu3  ;;  %v4023_v31 = vsel %vm11218_vm0, %v4011_v39, %v4013_v25  ;;  %v4024_v29 = vsel %vm11224_vm3, %v4013_v25, %v4015_v57  ;;  %vm11239_vm3 = vmmov %vm11215_vm1 }
 0x716   :  { %11217 = vst [vmem:[#allocation19_spill] sm:$0xff] %v9373_v55  ;;  %v4040_v15 = vand.u32 %v4023_v31, %v11193_v1  ;;  %v4043_v45 = vand.u32 %v4024_v29, %v11193_v1 }
 0x717   :  { %3962 = vmatpush.bf16.msra.mxu0 %v3891_v5  ;;  %3976 = vmatpush.bf16.msra.mxu1 %v3894_v61 }
 0x719   :  { %v9376_v37 = vpop.f32.mrf.mxu0 }
 0x71a   :  { %11219 = vst [vmem:[#allocation18_spill] sm:$0xff] %v9376_v37  ;;  %v9379_v17 = vpop.f32.mrf.mxu2  ;;  %v4019_v56 = vpop.permute.xlu2 %4018 }
 0x71b   :  { %11220 = vst [vmem:[#allocation20_spill] sm:$0xff] %v9379_v17  ;;  %6913 = vmatmul.msk.bf16.vlgmr.msrb.gmra.mxu2 %vm11221_vm8, %v6906_v43  ;;  %v4009_v32 = vpop.permute.xlu0 %4008  ;;  %vm11236_vm8 = vmmov %vm11234_vm12 }
 0x71c   :  { %4100 = vmatpush.bf16.msrb.mxu2 %v4040_v15  ;;  %v9382_v53 = vpop.f32.mrf.mxu1  ;;  %v4021_v20 = vsel %vm11223_vm6, %v4007_v12, %v4009_v32  ;;  %v4022_v6 = vsel %vm11225_vm5, %v4009_v32, %v4011_v39  ;;  %v4171_v41 = vpop.permute.xlu1 %4170  ;;  %vm11237_vm6 = vmmov %vm11218_vm0 }
 0x71d   :  { %11222 = vst [vmem:[#allocation24_spill] sm:$0xff] %v9382_v53  ;;  %v3110_v22 = vpop.f32.mrf.mxu3  ;;  %v4034_v10 = vand.u32 %v4021_v20, %v11193_v1  ;;  %v4037_v54 = vand.u32 %v4022_v6, %v11193_v1  ;;  %v4186_v39 = vsel %vm11234_vm12, %v4171_v41, %v4173_v0  ;;  %vm11240_vm5 = vmmov %vm11215_vm1 }
 0x71e   :  { %v9388_v16 = vadd.f32 %v3110_v22, %v9315_v18  ;;  %v4197_v63 = vand.u32 %v4186_v39, %v11193_v1  ;;  %vm11245_vm12 = vmmov %vm11236_vm8 }
 0x720   :  { %11226 = vst [vmem:[#allocation22_spill] sm:$0xff] %v9388_v16 }
 0x722   :  { %v3124_v52 = vpop.f32.mrf.mxu0  ;;  %6911 = vmatmul.msk.bf16.vlgmr.msrb.gmra.mxu0 %vm11227_vm7, %v6906_v43  ;;  %6914 = vmatmul.msk.bf16.vlgmr.msrb.gmra.mxu3 %vm11228_vm11, %v6906_v43  ;;  %vm11242_vm7 = vmmov %vm11215_vm1 }
 0x723   :  { %v9396_v12 = vadd.f32 %v3124_v52, %v9321_v11  ;;  %v3152_v34 = vpop.f32.mrf.mxu2  ;;  %4072 = vmatpush.bf16.msrb.mxu0 %v4034_v10  ;;  %4114 = vmatpush.bf16.msrb.mxu3 %v4043_v45  ;;  %v4175_v25 = vpop.permute.xlu0 %4174  ;;  %vm11243_vm11 = vmmov %vm11236_vm8 }
 0x724   :  { %6912 = vmatmul.msk.bf16.vlgmr.msrb.gmra.mxu1 %vm11230_vm9, %v6906_v43  ;;  %v9399_v18 = vadd.f32 %v3152_v34, %v2970_v40  ;;  %v3138_v5 = vpop.f32.mrf.mxu1  ;;  %v4017_v59 = vpop.permute.xlu1 %4016  ;;  %v6922_v40 = vld [vmem:[%s10665_s1 + $0x10] sm:$0xf]  ;;  %v4187_v20 = vsel %vm11236_vm8, %v4173_v0, %v4175_v25  ;;  %vm11244_vm9 = vmmov %vm11215_vm1 }
 0x725   :  { %11229 = vst [vmem:[#allocation21_spill] sm:$0xff] %v9396_v12  ;;  %4086 = vmatpush.bf16.msrb.mxu1 %v4037_v54  ;;  %v9402_v61 = vadd.f32 %v3138_v5, %v9311_v44  ;;  %v9404_v38 = vpop.f32.mrf.mxu3  ;;  %v7250_v44 = vld [vmem:[%s10665_s1 + $0x10] sm:$0x10]  ;;  %v4025_v31 = vsel %vm11218_vm0, %v4015_v57, %v4017_v59  ;;  %v4026_v22 = vsel %vm11237_vm6, %v4017_v59, %v4019_v56  ;;  %v4183_v34 = vpop.permute.xlu2 %4182  ;;  %vm11249_vm6 = vmmov %vm11239_vm3 }
 0x726   :  { %11231 = vst [vmem:[#allocation17_spill] sm:$0xff] %v9399_v18  ;;  %v6923_v15 = vor.u32 %v7250_v44, %v6922_v40  ;;  %v4046_v6 = vand.u32 %v4025_v31, %v11193_v1  ;;  %v4200_v52 = vand.u32 %v4187_v20, %v11193_v1  ;;  %v4049_v45 = vand.u32 %v4026_v22, %v11193_v1  ;;  %v7251_v31 = vld [vmem:[%s10665_s1 + $0x18] sm:$0x10] }
 0x727   :  { %11232 = vst [vmem:[#allocation12_spill] sm:$0xff] %v9402_v61 }
 0x728   :  { %11233 = vst [vmem:[#allocation25_spill] sm:$0xff] %v9404_v38 }
 0x72a   :  { %v9407_v11 = vpop.f32.mrf.mxu0 }
 0x72b   :  { %11235 = vst [vmem:[#allocation39_spill] sm:$0xff] %v9407_v11  ;;  %6917 = vmatmul.msk.bf16.vlgmr.msra.gmra.mxu2 %vm11215_vm1, %v6906_v43  ;;  %v4179_v41 = vpop.permute.xlu0 %4178  ;;  %vm11246_vm1 = vmmov %vm11236_vm8 }
 0x72c   :  { %4224 = vmatpush.bf16.msra.mxu2 %v4197_v63  ;;  %v4181_v54 = vpop.permute.xlu1 %4180  ;;  %vm11247_vm0 = vmmov %vm11246_vm1 }
 0x72d   :  { %v3166_v32 = vpop.f32.mrf.mxu3  ;;  %vm11248_vm8 = vmmov %vm11239_vm3  ;;  %v4341_v56 = vpop.permute.xlu2 %4340 }
 0x72e   :  { %v9421_v29 = vadd.f32 %v3166_v32, %v9360_v42  ;;  %v4190_v42 = vsel %vm11243_vm11, %v4179_v41, %v4181_v54  ;;  %vm11252_vm11 = vmmov %vm11247_vm0 }
 0x72f   :  { %v4209_v0 = vand.u32 %v4190_v42, %v11193_v1 }
 0x730   :  { %11238 = vst [vmem:[#allocation40_spill] sm:$0xff] %v9421_v29 }
 0x732   :  { %v3180_v10 = vpop.f32.mrf.mxu0  ;;  %6915 = vmatmul.msk.bf16.vlgmr.msra.gmra.mxu0 %vm11239_vm3, %v6906_v43  ;;  %6924 = vmatmul.msk.bf16.vlgmr.msra.gmra.mxu3 %vm11240_vm5, %v6923_v15  ;;  %vm11250_vm5 = vcmask 1014784  }
 0x733   :  { %v9428_v57 = vadd.f32 %v3180_v10, %v2998_v33  ;;  %4128 = vmatpush.bf16.msra.mxu0 %v4046_v6  ;;  %4238 = vmatpush.bf16.msra.mxu3 %v4200_v52  ;;  %v4177_v5 = vpop.permute.xlu0 %4176  ;;  %v4191_v33 = vsel %vm11246_vm1, %v4181_v54, %v4183_v34  ;;  %vm11255_vm1 = vmmov %vm11239_vm3 }
 0x734   :  { %6916 = vmatmul.msk.bf16.vlgmr.msra.gmra.mxu1 %vm11242_vm7, %v6906_v43  ;;  %v4188_v39 = vsel %vm11245_vm12, %v4175_v25, %v4177_v5  ;;  %v4189_v63 = vsel %vm11247_vm0, %v4177_v5, %v4179_v41  ;;  %v4339_v43 = vpop.permute.xlu1 %4338  ;;  %v4212_v40 = vand.u32 %v4191_v33, %v11193_v1  ;;  %v6935_v25 = vld [vmem:[%s10665_s1 + $0x18] sm:$0xf]  ;;  %vm11251_vm7 = vmmov %vm11239_vm3 }
 0x735   :  { %11241 = vst [vmem:[#allocation41_spill] sm:$0xff] %v9428_v57  ;;  %4142 = vmatpush.bf16.msra.mxu1 %v4049_v45  ;;  %v4203_v59 = vand.u32 %v4188_v39, %v11193_v1  ;;  %v4206_v44 = vand.u32 %v4189_v63, %v11193_v1  ;;  %v4353_v32 = vsel %vm11250_vm5, %v4339_v43, %v4341_v56  ;;  %v4337_v10 = vpop.permute.xlu2 %4336  ;;  %vm11254_vm12 = vmmov %vm11250_vm5 }
 0x736   :  { %v6936_v22 = vor.u32 %v7251_v31, %v6935_v25  ;;  %v4366_v6 = vand.u32 %v4353_v32, %v11193_v1  ;;  %vm11256_vm0 = vmmov %vm11255_vm1  ;;  %v6948_v32 = vld [vmem:[%s10665_s1 + $0x20] sm:$0xf] }
 0x73b   :  { %6927 = vmatmul.msk.bf16.vlgmr.msrb.gmra.mxu2 %vm11244_vm9, %v6923_v15  ;;  %v4343_v20 = vpop.permute.xlu0 %4342  ;;  %vm11253_vm9 = vmmov %vm11250_vm5 }
 0x73c   :  { %4280 = vmatpush.bf16.msrb.mxu2 %v4209_v0  ;;  %v4185_v41 = vpop.permute.xlu1 %4184  ;;  %v4352_v45 = vsel %vm11253_vm9, %v4337_v10, %v4339_v43  ;;  %v4354_v54 = vsel %vm11254_vm12, %v4341_v56, %v4343_v20  ;;  %vm11262_vm9 = vmmov %vm11256_vm0  ;;  %v4496_v10 = vld [vmem:[%s10666_s4 + $0x8] sm:$0x3] }
 0x73d   :  { %v4192_v52 = vsel %vm11252_vm11, %v4183_v34, %v4185_v41  ;;  %v4363_v5 = vand.u32 %v4352_v45, %v11193_v1  ;;  %v4369_v39 = vand.u32 %v4354_v54, %v11193_v1  ;;  %vm11261_vm11 = vmmov %vm11250_vm5  ;;  %v9485_v41 = vpop.f32.mrf.mxu1  ;;  %4504 = vperm.xlu2 %7313, %v4496_v10  }
 0x73e   :  { %v4215_v42 = vand.u32 %v4192_v52, %v11193_v1  ;;  %vm11263_vm12 = vmmov %vm11256_vm0  ;;  %11269 = vst [vmem:[#allocation43_spill] sm:$0xff] %v9485_v41  ;;  %v9491_v52 = vpop.f32.mrf.mxu3 }
 0x73f   :  { %11271 = vst [vmem:[#allocation44_spill] sm:$0xff] %v9491_v52 }
 0x742   :  { %6925 = vmatmul.msk.bf16.vlgmr.msrb.gmra.mxu0 %vm11248_vm8, %v6923_v15  ;;  %6928 = vmatmul.msk.bf16.vlgmr.msrb.gmra.mxu3 %vm11249_vm6, %v6923_v15  ;;  %vm11257_vm8 = vmmov %vm11256_vm0 }
 0x743   :  { %4252 = vmatpush.bf16.msrb.mxu0 %v4203_v59  ;;  %4294 = vmatpush.bf16.msrb.mxu3 %v4212_v40  ;;  %v4347_v0 = vpop.permute.xlu0 %4346  ;;  %vm11258_vm6 = vmmov %vm11250_vm5  ;;  %v4351_v59 = vpop.permute.xlu2 %4350 }
 0x744   :  { %6926 = vmatmul.msk.bf16.vlgmr.msrb.gmra.mxu1 %vm11239_vm3, %v6923_v15  ;;  %v4349_v33 = vpop.permute.xlu1 %4348  ;;  %vm11259_vm3 = vmmov %vm11256_vm0 }
 0x745   :  { %4266 = vmatpush.bf16.msrb.mxu1 %v4206_v44  ;;  %v4357_v34 = vsel %vm11258_vm6, %v4347_v0, %v4349_v33  ;;  %vm11266_vm6 = vmmov %vm11256_vm0 }
 0x746   :  { %v4378_v63 = vand.u32 %v4357_v34, %v11193_v1 }
 0x74b   :  { %6937 = vmatmul.msk.bf16.vlgmr.msra.gmra.mxu2 %vm11251_vm7, %v6936_v22  ;;  %v4345_v43 = vpop.permute.xlu0 %4344  ;;  %vm11260_vm7 = vmmov %vm11250_vm5 }
 0x74c   :  { %4404 = vmatpush.bf16.msra.mxu2 %v4366_v6  ;;  %v4355_v40 = vsel %vm11250_vm5, %v4343_v20, %v4345_v43  ;;  %v4358_v44 = vsel %vm11260_vm7, %v4349_v33, %v4351_v59  ;;  %v4356_v56 = vsel %vm11261_vm11, %v4345_v43, %v4347_v0  ;;  %v7252_v20 = vld [vmem:[%s10665_s1 + $0x20] sm:$0x10]  ;;  %vm11270_vm5 = vmmov %vm11256_vm0  ;;  %v9553_v30 = vpop.permute.xlu1 %4499 }
 0x74d   :  { %v4381_v25 = vand.u32 %v4358_v44, %v11193_v1  ;;  %v4375_v31 = vand.u32 %v4356_v56, %v11193_v1  ;;  %v6949_v6 = vor.u32 %v7252_v20, %v6948_v32  ;;  %vm11273_vm7 = vmmov %vm11256_vm0 }
 0x74e   :  { %vm11274_vm11 = vmmov %vm11256_vm0 }
 0x752   :  { %6929 = vmatmul.msk.bf16.vlgmr.msra.gmra.mxu0 %vm11255_vm1, %v6923_v15  ;;  %6938 = vmatmul.msk.bf16.vlgmr.msra.gmra.mxu3 %vm11256_vm0, %v6936_v22  ;;  %vm11264_vm1 = vmmov %vm11256_vm0 }
 0x753   :  { %4308 = vmatpush.bf16.msra.mxu0 %v4215_v42  ;;  %4418 = vmatpush.bf16.msra.mxu3 %v4369_v39 }
 0x754   :  { %6930 = vmatmul.msk.bf16.vlgmr.msra.gmra.mxu1 %vm11257_vm8, %v6923_v15  ;;  %v4372_v15 = vand.u32 %v4355_v40, %v11193_v1  ;;  %vm11265_vm8 = vmmov %vm11256_vm0  ;;  %v9483_v1 = vpop.f32.mrf.mxu2 }
 0x755   :  { %4390 = vmatpush.bf16.msra.mxu1 %v4363_v5  ;;  %11268 = vst [vmem:[#allocation42_spill] sm:$0xff] %v9483_v1  ;;  %v9499_v5 = vpop.f32.mrf.mxu0 }
 0x756   :  { %11276 = vst [vmem:[#allocation45_spill] sm:$0xff] %v9499_v5 }
 0x75b   :  { %6941 = vmatmul.msk.bf16.vlgmr.msrb.gmra.mxu2 %vm11259_vm3, %v6936_v22  ;;  %vm11267_vm3 = vmmov %vm11256_vm0 }
 0x75c   :  { %4460 = vmatpush.bf16.msrb.mxu2 %v4378_v63 }
 0x762   :  { %6939 = vmatmul.msk.bf16.vlgmr.msrb.gmra.mxu0 %vm11262_vm9, %v6936_v22  ;;  %6942 = vmatmul.msk.bf16.vlgmr.msrb.gmra.mxu3 %vm11263_vm12, %v6936_v22  ;;  %vm11275_vm9 = vmmov %vm11256_vm0  ;;  %vm11285_vm12 = vcmask 269312  }
 0x763   :  { %4432 = vmatpush.bf16.msrb.mxu0 %v4372_v15  ;;  %4474 = vmatpush.bf16.msrb.mxu3 %v4381_v25 }
 0x764   :  { %6940 = vmatmul.msk.bf16.vlgmr.msrb.gmra.mxu1 %vm11264_vm1, %v6936_v22  ;;  %vm11287_vm1 = vmmov %vm11285_vm12 }
 0x765   :  { %4446 = vmatpush.bf16.msrb.mxu1 %v4375_v31 }
 0x76b   :  { %6951 = vmatmul.msk.bf16.vlgmr.msra.gmra.mxu2 %vm11256_vm0, %v6949_v6  ;;  %vm11290_vm0 = vcmask 1043456  }
 0x772   :  { %6943 = vmatmul.msk.bf16.vlgmr.msra.gmra.mxu0 %vm11265_vm8, %v6936_v22  ;;  %6952 = vmatmul.msk.bf16.vlgmr.msra.gmra.mxu3 %vm11266_vm6, %v6949_v6  ;;  %v11272_v22 = vmov 1   ;;  %vm11291_vm8 = vmmov %vm11290_vm0 }
 0x773   :  { %7314 = vset.pattern.permute.xlu2 %v11272_v22  ;;  %vm11293_vm6 = vmmov %vm11287_vm1 }
 0x774   :  { %6950 = vmatmul.msk.bf16.vlgmr.msra.gmra.mxu1 %vm11267_vm3, %v6949_v6  ;;  %vm11294_vm3 = vmmov %vm11287_vm1 }
 0x77b   :  { %6955 = vmatmul.msk.bf16.vlgmr.msrb.gmra.mxu2 %vm11270_vm5, %v6949_v6  ;;  %vm11296_vm5 = vmmov %vm11290_vm0 }
 0x77e   :  { %v3790_v45 = vpop.f32.mrf.mxu2 }
 0x780   :  { %v3776_v54 = vpop.f32.mrf.mxu1 }
 0x782   :  { %6953 = vmatmul.msk.bf16.vlgmr.msrb.gmra.mxu0 %vm11273_vm7, %v6949_v6  ;;  %6956 = vmatmul.msk.bf16.vlgmr.msrb.gmra.mxu3 %vm11274_vm11, %v6949_v6  ;;  %vm11298_vm7 = vmmov %vm11287_vm1 }
 0x783   :  { %vm11300_vm11 = vmmov %vm11290_vm0 }
 0x784   :  { %6954 = vmatmul.msk.bf16.vlgmr.msrb.gmra.mxu1 %vm11275_vm9, %v6949_v6  ;;  %vm11301_vm9 = vmmov %vm11290_vm0 }
 0x785   :  { %v3804_v42 = vpop.f32.mrf.mxu3 }
 0x786   :  { %v9497_v0 = vpop.f32.mrf.mxu2 }
 0x788   :  { %v9501_v39 = vpop.f32.mrf.mxu1 }
 0x78d   :  { %v9503_v33 = vpop.f32.mrf.mxu3 }
 0x78e   :  { %v3846_v34 = vpop.f32.mrf.mxu2 }
 0x78f   :  { %v3818_v63 = vpop.f32.mrf.mxu0 }
 0x791   :  { %v3832_v43 = vpop.f32.mrf.mxu1 }
 0x795   :  { %v3860_v59 = vpop.f32.mrf.mxu3 }
 0x796   :  { %v9505_v40 = vpop.f32.mrf.mxu2 }
 0x797   :  { %v9507_v44 = vpop.f32.mrf.mxu0 }
 0x799   :  { %v9509_v56 = vpop.f32.mrf.mxu1 }
 0x79d   :  { %v9511_v15 = vpop.f32.mrf.mxu3 }
 0x79e   :  { %11277 = vst [vmem:[#allocation46_spill] sm:$0xff] %v9511_v15  ;;  %v3936_v25 = vpop.f32.mrf.mxu2 }
 0x79f   :  { %v9513_v31 = vadd.f32 %v3936_v25, %v3804_v42  ;;  %v3908_v32 = vpop.f32.mrf.mxu0 }
 0x7a0   :  { %v3909_v20 = vadd.f32 %v3908_v32, %v3776_v54 }
 0x7a1   :  { %v3922_v6 = vpop.f32.mrf.mxu1 }
 0x7a2   :  { %v3923_v10 = vadd.f32 %v3922_v6, %v3790_v45 }
 0x7a5   :  { %v3950_v22 = vpop.f32.mrf.mxu3 }
 0x7a6   :  { %v9515_v5 = vpop.f32.mrf.mxu2  ;;  %v9517_v52 = vadd.f32 %v3950_v22, %v3818_v63 }
 0x7a7   :  { %v3910_v1 = vpop.f32.mrf.mxu0 }
 0x7a9   :  { %v3924_v57 = vpop.f32.mrf.mxu1 }
 0x7aa   :  { %v3925_v35 = vadd.f32 %v3924_v57, %v9497_v0 }
 0x7ad   :  { %v9519_v29 = vpop.f32.mrf.mxu3 }
 0x7ae   :  { %v3992_v41 = vpop.f32.mrf.mxu2 }
 0x7af   :  { %v9521_v61 = vadd.f32 %v3992_v41, %v3860_v59  ;;  %v3964_v11 = vpop.f32.mrf.mxu0 }
 0x7b0   :  { %v9523_v38 = vadd.f32 %v3964_v11, %v3832_v43 }
 0x7b1   :  { %v3978_v42 = vpop.f32.mrf.mxu1 }
 0x7b2   :  { %v9525_v25 = vadd.f32 %v3978_v42, %v3846_v34 }
 0x7b5   :  { %v4060_v54 = vpop.f32.mrf.mxu3 }
 0x7b6   :  { %v9527_v45 = vpop.f32.mrf.mxu2  ;;  %v4149_v50 = vadd.f32 %v4060_v54, %v3909_v20 }
 0x7b7   :  { %11278 = vst [vmem:[#allocation47_spill] sm:$0xff] %v9527_v45  ;;  %v9529_v32 = vpop.f32.mrf.mxu0  ;;  %v3911_v45 = vadd.f32 %v3910_v1, %v9501_v39 }
 0x7b9   :  { %v9531_v63 = vpop.f32.mrf.mxu1 }
 0x7bd   :  { %v4062_v6 = vpop.f32.mrf.mxu3 }
 0x7be   :  { %v9533_v22 = vpop.f32.mrf.mxu2 }
 0x7bf   :  { %v4074_v12 = vpop.f32.mrf.mxu0 }
 0x7c0   :  { %v4150_v47 = vadd.f32 %v4074_v12, %v3923_v10 }
 0x7c1   :  { %v4088_v16 = vpop.f32.mrf.mxu1 }
 0x7c5   :  { %v4116_v41 = vpop.f32.mrf.mxu3 }
 0x7c6   :  { %v9535_v59 = vpop.f32.mrf.mxu2 }
 0x7c7   :  { %v4076_v11 = vpop.f32.mrf.mxu0 }
 0x7c8   :  { %v4157_v12 = vadd.f32 %v4076_v11, %v3925_v35 }
 0x7c9   :  { %v4090_v43 = vpop.f32.mrf.mxu1 }
 0x7cd   :  { %v9537_v17 = vpop.f32.mrf.mxu3 }
 0x7ce   :  { %v4226_v34 = vpop.f32.mrf.mxu2 }
 0x7cf   :  { %v4130_v42 = vpop.f32.mrf.mxu0  ;;  %v4315_v8 = vadd.f32 %v4226_v34, %v4149_v50  ;;  %v9560_v34 = vpop.permute.xlu2 %4504 }
 0x7d1   :  { %v9539_v53 = vpop.f32.mrf.mxu1 }
 0x7d5   :  { %v4240_v19 = vpop.f32.mrf.mxu3 }
 0x7d6   :  { %v4228_v37 = vpop.f32.mrf.mxu2  ;;  %v4316_v51 = vadd.f32 %v4240_v19, %v4150_v47  ;;  %v4156_v19 = vadd.f32 %v4062_v6, %v3911_v45  ;;  %v4152_v45 = vadd.f32 %v9533_v22, %v9517_v52  ;;  %v3953_v52 = vadd.f32 %v9519_v29, %v9507_v44 }
 0x7d7   :  { %v9541_v21 = vpop.f32.mrf.mxu0 }
 0x7d8   :  { %v4322_v15 = vadd.f32 %v4228_v37, %v4156_v19  ;;  %v4159_v44 = vadd.f32 %v9535_v59, %v3953_v52 }
 0x7d9   :  { %v9543_v18 = vpop.f32.mrf.mxu1 }
 0x7da   :  { %11279 = vst [vmem:[#allocation48_spill] sm:$0xff] %v9543_v18 }
 0x7dd   :  { %v4242_v36 = vpop.f32.mrf.mxu3 }
 0x7de   :  { %v4282_v55 = vpop.f32.mrf.mxu2  ;;  %v4323_v10 = vadd.f32 %v4242_v36, %v4157_v12 }
 0x7df   :  { %v4254_v48 = vpop.f32.mrf.mxu0 }
 0x7e1   :  { %v4268_v58 = vpop.f32.mrf.mxu1 }
 0x7e5   :  { %v4296_v62 = vpop.f32.mrf.mxu3 }
 0x7e6   :  { %v9545_v7 = vpop.f32.mrf.mxu2 }
 0x7e7   :  { %v4256_v23 = vpop.f32.mrf.mxu0 }
 0x7e9   :  { %v9547_v2 = vpop.f32.mrf.mxu1 }
 0x7ed   :  { %v9549_v46 = vpop.f32.mrf.mxu3 }
 0x7ee   :  { %v4406_v24 = vpop.f32.mrf.mxu2 }
 0x7ef   :  { %v4482_v26 = vadd.f32 %v4406_v24, %v4316_v51  ;;  %v9551_v60 = vpop.f32.mrf.mxu0  ;;  %v4151_v51 = vadd.f32 %v4088_v16, %v9513_v31  ;;  %v4154_v16 = vadd.f32 %v4130_v42, %v9525_v25  ;;  %v3939_v31 = vadd.f32 %v9515_v5, %v9503_v33 }
 0x7f1   :  { %v4392_v28 = vpop.f32.mrf.mxu1  ;;  %v4508_v13 = vadd.f32 %v9553_v30, %v4482_v26  ;;  %v4320_v6 = vadd.f32 %v4296_v62, %v4154_v16  ;;  %v4158_v12 = vadd.f32 %v4090_v43, %v3939_v31  ;;  %v3967_v62 = vadd.f32 %v9529_v32, %v9509_v56 }
 0x7f2   :  { %v4481_v18 = vadd.f32 %v4392_v28, %v4315_v8 }
 0x7f3   :  { %v4522_v20 = vmax.f32 %v4508_v13, 0.0  ;;  %v4317_v13 = vadd.f32 %v4254_v48, %v4151_v51  ;;  %v4153_v48 = vadd.f32 %v4116_v41, %v9523_v38  ;;  %v4324_v38 = vadd.f32 %v4256_v23, %v4158_v12 }
 0x7f4   :  { %v4507_v47 = vadd.f32 %v9553_v30, %v4481_v18 }
 0x7f5   :  { %v4420_v24 = vpop.f32.mrf.mxu3  ;;  %v4536_v57 = vmul.f32 %v8045_v49, %v4522_v20  ;;  %v4318_v20 = vadd.f32 %v4268_v58, %v4152_v45  ;;  %v3981_v58 = vadd.f32 %v9531_v63, %v9505_v40 }
 0x7f6   :  { %v4521_v50 = vmax.f32 %v4507_v47, 0.0  ;;  %v4408_v54 = vpop.f32.mrf.mxu2  ;;  %v4483_v0 = vadd.f32 %v4420_v24, %v4317_v13  ;;  %v4319_v47 = vadd.f32 %v4282_v55, %v4153_v48  ;;  %v4155_v24 = vadd.f32 %v9539_v53, %v9521_v61 }
 0x7f7   :  { %v4489_v8 = vadd.f32 %v4408_v54, %v4323_v10  ;;  %v9564_v26 = vpop.f32.mrf.mxu0  ;;  %v4161_v23 = vadd.f32 %v9541_v21, %v3981_v58  ;;  %v4325_v53 = vadd.f32 %v9547_v2, %v4159_v44 }
 0x7f8   :  { %v4535_v28 = vmul.f32 %v8038_v4, %v4521_v50  ;;  %v4509_v25 = vadd.f32 %v9553_v30, %v4483_v0  ;;  %v4321_v40 = vadd.f32 %v9551_v60, %v4155_v24  ;;  %v11280_v0 = vld [vmem:[#allocation46_spill] sm:$0xff] }
 0x7f9   :  { %v4394_v35 = vpop.f32.mrf.mxu1  ;;  %v4515_v36 = vadd.f32 %v9560_v34, %v4489_v8  ;;  %v4327_v61 = vadd.f32 %v9549_v46, %v4161_v23  ;;  %v11281_v46 = vld [vmem:[#allocation47_spill] sm:$0xff]  ;;  %v9623_v23 = vld [vmem:[#allocation2] sm:$0xff] }
 0x7fa   :  { %v4549_v18 = vpack.c.bf16 %v4536_v57, %v4535_v28  ;;  %v4488_v1 = vadd.f32 %v4394_v35, %v4322_v15  ;;  %v4523_v51 = vmax.f32 %v4509_v25, 0.0  ;;  %v4160_v57 = vadd.f32 %v9537_v17, %v3967_v62  ;;  %11284 = vst [vmem:[#allocation46_spill] sm:$0xff] %v9623_v23 }
 0x7fb   :  { %v4529_v37 = vmax.f32 %v4515_v36, 0.0  ;;  %v3995_v16 = vadd.f32 %v11281_v46, %v11280_v0 }
 0x7fc   :  { %v4514_v39 = vadd.f32 %v9560_v34, %v4488_v1  ;;  %4565 = vrot.lane.b32.xlu0 %v4549_v18, %s7408_s18  ;;  %v4537_v59 = vmul.f32 %v8029_v14, %v4523_v51  ;;  %v4326_v1 = vadd.f32 %v9545_v7, %v4160_v57 }
 0x7fd   :  { %v4422_v11 = vpop.f32.mrf.mxu3  ;;  %v4543_v5 = vmul.f32 %v8045_v49, %v4529_v37 }
 0x7fe   :  { %v4528_v15 = vmax.f32 %v4514_v39, 0.0  ;;  %v4462_v42 = vpop.f32.mrf.mxu2  ;;  %v4490_v54 = vadd.f32 %v4422_v11, %v4324_v38  ;;  %v11282_v11 = vld [vmem:[#allocation48_spill] sm:$0xff] }
 0x7ff   :  { %v4486_v10 = vadd.f32 %v4462_v42, %v4320_v6  ;;  %v4434_v50 = vpop.f32.mrf.mxu0  ;;  %v4162_v7 = vadd.f32 %v11282_v11, %v3995_v16  ;;  %v9646_v16 = vld [vmem:[#allocation2 + $0x10] sm:$0xff] }
 0x800   :  { %v4542_v19 = vmul.f32 %v8038_v4, %v4528_v15  ;;  %v4484_v33 = vadd.f32 %v4434_v50, %v4318_v20  ;;  %v4516_v21 = vadd.f32 %v9560_v34, %v4490_v54 }
 0x801   :  { %v4448_v22 = vpop.f32.mrf.mxu1  ;;  %v4512_v55 = vadd.f32 %v9553_v30, %v4486_v10 }
 0x802   :  { %v4485_v41 = vadd.f32 %v4448_v22, %v4319_v47  ;;  %v4553_v43 = vpack.c.bf16 %v4543_v5, %v4542_v19  ;;  %v4510_v29 = vadd.f32 %v9553_v30, %v4484_v33  ;;  %v4530_v12 = vmax.f32 %v4516_v21, 0.0  ;;  %v11283_v19 = vld [vmem:[#allocation27_spill] sm:$0xff] }
 0x803   :  { %v4526_v56 = vmax.f32 %v4512_v55, 0.0  ;;  %11295 = vst [vmem:[#allocation27_spill] sm:$0xff] %v9646_v16 }
 0x804   :  { %v4511_v32 = vadd.f32 %v9553_v30, %v4485_v41  ;;  %4573 = vrot.lane.b32.xlu0 %v4553_v43, %s7408_s18  ;;  %v4524_v63 = vmax.f32 %v4510_v29, 0.0  ;;  %v4544_v62 = vmul.f32 %v8029_v14, %v4530_v12 }
 0x805   :  { %v4476_v8 = vpop.f32.mrf.mxu3  ;;  %v4540_v60 = vmul.f32 %v8108_v9, %v4526_v56 }
 0x806   :  { %v4525_v28 = vmax.f32 %v4511_v32, 0.0  ;;  %v4538_v13 = vmul.f32 %v8032_v3, %v4524_v63  ;;  %v4464_v35 = vpop.f32.mrf.mxu2  ;;  %v4487_v18 = vadd.f32 %v4476_v8, %v4321_v40 }
 0x807   :  { %v4493_v36 = vadd.f32 %v4464_v35, %v4327_v61  ;;  %v4436_v2 = vpop.f32.mrf.mxu0  ;;  %v9629_v61 = vld [vmem:[#allocation2 + $0x20] sm:$0x11] }
 0x808   :  { %v4539_v17 = vmul.f32 %v8111_v27, %v4525_v28  ;;  %v4550_v39 = vpack.c.bf16 %v4538_v13, %v4537_v59  ;;  %v4513_v37 = vadd.f32 %v9553_v30, %v4487_v18  ;;  %v4491_v31 = vadd.f32 %v4436_v2, %v4325_v53  ;;  %11288 = vst [vmem:[#allocation47_spill] sm:$0xff] %v9629_v61 }
 0x809   :  { %v4450_v45 = vpop.f32.mrf.mxu1  ;;  %v4519_v6 = vadd.f32 %v9560_v34, %v4493_v36  ;;  %v4328_v30 = vadd.f32 %v9564_v26, %v4162_v7  ;;  %v9660_v7 = vld [vmem:[#allocation2 + $0x18] sm:$0xff] }
 0x80a   :  { %v4551_v48 = vpack.c.bf16 %v4540_v60, %v4539_v17  ;;  %v4492_v15 = vadd.f32 %v4450_v45, %v4326_v1  ;;  %v4527_v20 = vmax.f32 %v4513_v37, 0.0  ;;  %v4517_v25 = vadd.f32 %v9560_v34, %v4491_v31  ;;  %4567 = vrot.lane.b32.xlu1 %v4550_v39, %s7408_s18  ;;  %v9636_v1 = vld [vmem:[#allocation2 + $0x8] sm:$0xff]  ;;  %11297 = vst [vmem:[#allocation26_spill] sm:$0xff] %v9660_v7 }
 0x80b   :  { %v4533_v42 = vmax.f32 %v4519_v6, 0.0  ;;  %11292 = vst [vmem:[#allocation48_spill] sm:$0xff] %v9636_v1 }
 0x80c   :  { %v4518_v47 = vadd.f32 %v9560_v34, %v4492_v15  ;;  %4569 = vrot.lane.b32.xlu2 %v4551_v48, %s7408_s18  ;;  %v4541_v10 = vmul.f32 %v11283_v19, %v4527_v20  ;;  %v4531_v50 = vmax.f32 %v4517_v25, 0.0 }
 0x80d   :  { %v4478_v52 = vpop.f32.mrf.mxu3  ;;  %v4547_v58 = vmul.f32 %v8108_v9, %v4533_v42 }
 0x80e   :  { %v4532_v5 = vmax.f32 %v4518_v47, 0.0  ;;  %v4552_v38 = vpack.c.bf16 %v4541_v10, %v4541_v10  ;;  %v4545_v33 = vmul.f32 %v8032_v3, %v4531_v50  ;;  %v4494_v22 = vadd.f32 %v4478_v52, %v4328_v30  ;;  %v9667_v30 = vld [vmem:[#allocation2 + $0x28] sm:$0x11]  ;;  %v9671_v52 = vld [vmem:[#allocation2 + $0x30] sm:$0x11] }
 0x80f   :  { %11302 = vst [vmem:[#allocation28_spill] sm:$0xff] %v9667_v30 }
 0x810   :  { %v4546_v55 = vmul.f32 %v8111_v27, %v4532_v5  ;;  %v4554_v41 = vpack.c.bf16 %v4545_v33, %v4544_v62  ;;  %v4520_v43 = vadd.f32 %v9560_v34, %v4494_v22  ;;  %4571 = vrot.lane.b32.xlu0 %v4552_v38, %s7408_s18  ;;  %11304 = vst [vmem:[#allocation31_spill] sm:$0xff] %v9671_v52 }
 0x812   :  { %v4555_v26 = vpack.c.bf16 %v4547_v58, %v4546_v55  ;;  %v4534_v24 = vmax.f32 %v4520_v43, 0.0  ;;  %4575 = vrot.lane.b32.xlu1 %v4554_v41, %s7408_s18 }
 0x814   :  { %4577 = vrot.lane.b32.xlu2 %v4555_v26, %s7408_s18  ;;  %v4548_v51 = vmul.f32 %v11283_v19, %v4534_v24 }
 0x816   :  { %v4556_v54 = vpack.c.bf16 %v4548_v51, %v4548_v51 }
 0x81a   :  { %4579 = vrot.lane.b32.xlu1 %v4556_v54, %s7408_s18 }
 0x866   :  { %v4570_v63 = vpop.permute.xlu2 %4569 }
 0x867   :  { %v4583_v21 = vrot.slane %v4570_v63, 4 }
 0x86e   :  { %v4566_v29 = vpop.permute.xlu0 %4565  ;;  %v4578_v46 = vpop.permute.xlu2 %4577 }
 0x86f   :  { %v4581_v44 = vrot.slane %v4566_v29, 4  ;;  %v4587_v6 = vrot.slane %v4578_v46, 4 }
 0x871   :  { %v4589_v56 = vsel %vm11285_vm12, %v4581_v44, %v4566_v29  ;;  %vm11303_vm12 = vmmov %vm11287_vm1 }
 0x872   :  { %4611 = vst.msk [vmem:[#allocation2] sm:$0xff] %vm8130_vm10, %v4589_v56 }
 0x876   :  { %v4574_v32 = vpop.permute.xlu0 %4573 }
 0x877   :  { %v4585_v40 = vrot.slane %v4574_v32, 4 }
 0x879   :  { %v4619_v57 = vld [vmem:[#allocation2] sm:$0xff]  ;;  %v4596_v53 = vsel %vm11287_vm1, %v4585_v40, %v4574_v32 }
 0x87a   :  { %4627 = vst [vmem:[#allocation4] sm:$0xff] %v4619_v57  ;;  %v4737_v28 = vrot.slane %v4619_v57, 6  ;;  %v4651_v2 = vrot.slane %v4619_v57, 7 }
 0x87b   :  { %4615 = vst.msk [vmem:[#allocation2 + $0x20] sm:$0x11] %vm8138_vm4, %v4596_v53 }
 0x87c   :  { %4753 = vrot.lane.b32.xlu2 %v4737_v28, %s7399_s23  ;;  %v4568_v59 = vpop.permute.xlu1 %4567  ;;  %v4655_v5 = vrot.slane %v4651_v2, 4  ;;  %v4741_v54 = vrot.slane %v4737_v28, 4 }
 0x87d   :  { %v4582_v13 = vrot.slane %v4568_v59, 4 }
 0x87f   :  { %v4590_v35 = vsel %vm11290_vm0, %v4581_v44, %v4582_v13  ;;  %v4592_v18 = vsel %vm11291_vm8, %v4582_v13, %v4583_v21  ;;  %v9681_v44 = vld [vmem:[#allocation2 + $0x38] sm:$0x11]  ;;  %vm11308_vm8 = vmmov %vm11287_vm1 }
 0x880   :  { %v9639_v60 = vsel %vm11293_vm6, %v4590_v35, %v4568_v59  ;;  %v9642_v17 = vsel %vm11294_vm3, %v4592_v18, %v4570_v63  ;;  %11307 = vst [vmem:[#allocation30_spill] sm:$0xff] %v9681_v44  ;;  %v11310_v18 = vld [vmem:[#allocation32_spill] sm:$0xff] }
 0x881   :  { %4612 = vst [vmem:[#allocation2 + $0x8] sm:$0xff] %v9639_v60  ;;  %v4739_v0 = vrot.slane %v9642_v17, 6  ;;  %v4738_v37 = vrot.slane %v9639_v60, 6  ;;  %v4653_v43 = vrot.slane %v9642_v17, 7  ;;  %v4652_v26 = vrot.slane %v9639_v60, 7 }
 0x882   :  { %v4623_v36 = vld [vmem:[#allocation2 + $0x20] sm:$0x11]  ;;  %v4572_v39 = vpop.permute.xlu0 %4571  ;;  %4613 = vst [vmem:[#allocation2 + $0x10] sm:$0xff] %v9642_v17  ;;  %vm11311_vm6 = vnez %v11310_v18 }
 0x883   :  { %4631 = vst [vmem:[#allocation4 + $0x20] sm:$0x11] %v4623_v36  ;;  %v4584_v31 = vrot.slane %v4572_v39, 4  ;;  %v4639_v45 = vld [vmem:[#allocation2 + $0x20] sm:$0x11]  ;;  %4757 = vrot.lane.b32.xlu1 %v4739_v0, %s7399_s23  ;;  %4755 = vrot.lane.b32.xlu0 %v4738_v37, %s7399_s23  ;;  %v4661_v59 = vrot.slane %v4653_v43, 4 }
 0x884   :  { %4667 = vrot.lane.b32.xlu2 %v4651_v2, %s7398_s22  ;;  %4628 = vst [vmem:[#allocation4 + $0x8] sm:$0xff] %v9639_v60  ;;  %v4576_v48 = vpop.permute.xlu1 %4575  ;;  %v4656_v20 = vrot.slane %v4639_v45, 7  ;;  %v4725_v33 = vld [vmem:[#allocation2 + $0x20] sm:$0x11]  ;;  %v4658_v13 = vrot.slane %v4652_v26, 4 }
 0x885   :  { %4629 = vst [vmem:[#allocation4 + $0x10] sm:$0xff] %v9642_v17  ;;  %v4594_v15 = vsel %vm11296_vm5, %v4583_v21, %v4584_v31  ;;  %v4586_v11 = vrot.slane %v4576_v48, 4  ;;  %v4742_v55 = vrot.slane %v4725_v33, 6  ;;  %vm11314_vm5 = vmmov %vm11290_vm0 }
 0x886   :  { %v4595_v12 = vsel %vm11298_vm7, %v4594_v15, %v4572_v39  ;;  %v4657_v38 = vsel %vm8163_vm13, %v4655_v5, %v4656_v20  ;;  %v4744_v15 = vrot.slane %v4738_v37, 4  ;;  %vm11315_vm7 = vmmov %vm11290_vm0 }
 0x887   :  { %4614 = vst.msk [vmem:[#allocation2 + $0x18] sm:$0xff] %vm11019_vm15, %v4595_v12  ;;  %v4597_v42 = vsel %vm11300_vm11, %v4585_v40, %v4586_v11  ;;  %v4599_v47 = vsel %vm11301_vm9, %v4586_v11, %v4587_v6  ;;  %v4743_v57 = vsel %vm8157_vm2, %v4741_v54, %v4742_v55  ;;  %v11312_v12 = vld [vmem:[#allocation34_spill] sm:$0xff]  ;;  %vm11316_vm11 = vcmask 523264  }
 0x888   :  { %v4598_v10 = vsel %vm11303_vm12, %v4597_v42, %v4576_v48  ;;  %v4600_v50 = vsel %vm11287_vm1, %v4599_v47, %v4578_v46  ;;  %vm11313_vm3 = vnez %v11312_v12  ;;  %vm11317_vm9 = vmmov %vm11316_vm11  ;;  %vm11318_vm12 = vcmask 785408  }
 0x889   :  { %4616 = vst [vmem:[#allocation2 + $0x28] sm:$0x11] %v4598_v10 }
 0x88a   :  { %4617 = vst [vmem:[#allocation2 + $0x30] sm:$0x11] %v4600_v50 }
 0x88c   :  { %4675 = vrot.lane.b32.xlu2 %v4657_v38, %s7398_s22  ;;  %v4580_v22 = vpop.permute.xlu1 %4579 }
 0x88d   :  { %v4588_v58 = vrot.slane %v4580_v22, 4 }
 0x88e   :  { %v4622_v41 = vld [vmem:[#allocation2 + $0x18] sm:$0xff] }
 0x88f   :  { %4630 = vst.msk [vmem:[#allocation4 + $0x18] sm:$0xff] %vm11024_vm14, %v4622_v41  ;;  %v4601_v51 = vsel %vm11290_vm0, %v4587_v6, %v4588_v58  ;;  %v4654_v39 = vrot.slane %v4622_v41, 7  ;;  %v4747_v6 = vrot.slane %v4739_v0, 4  ;;  %v4740_v0 = vrot.slane %v4622_v41, 6  ;;  %vm11321_vm0 = vmmov %vm11318_vm12 }
 0x890   :  { %v4624_v29 = vld [vmem:[#allocation2 + $0x28] sm:$0x11]  ;;  %v4602_v56 = vsel %vm11308_vm8, %v4601_v51, %v4580_v22 }
 0x891   :  { %v4640_v32 = vld [vmem:[#allocation2 + $0x28] sm:$0x11]  ;;  %v4625_v40 = vld [vmem:[#allocation2 + $0x30] sm:$0x11]  ;;  %4632 = vst [vmem:[#allocation4 + $0x28] sm:$0x11] %v4624_v29 }
 0x892   :  { %v4641_v53 = vld [vmem:[#allocation2 + $0x30] sm:$0x11]  ;;  %4633 = vst [vmem:[#allocation4 + $0x30] sm:$0x11] %v4625_v40  ;;  %v4659_v35 = vrot.slane %v4640_v32, 7  ;;  %v4664_v20 = vrot.slane %v4654_v39, 4 }
 0x893   :  { %v4662_v21 = vrot.slane %v4641_v53, 7  ;;  %4618 = vst.msk [vmem:[#allocation2 + $0x38] sm:$0x11] %vm11311_vm6, %v4602_v56  ;;  %v4727_v2 = vld [vmem:[#allocation2 + $0x30] sm:$0x11]  ;;  %v4750_v50 = vrot.slane %v4740_v0, 4 }
 0x894   :  { %4761 = vrot.lane.b32.xlu2 %v4743_v57, %s7399_s23  ;;  %v4660_v36 = vsel %vm8163_vm13, %v4658_v13, %v4659_v35  ;;  %v4726_v46 = vld [vmem:[#allocation2 + $0x28] sm:$0x11]  ;;  %v4748_v31 = vrot.slane %v4727_v2, 6 }
 0x895   :  { %v4663_v28 = vsel %vm8163_vm13, %v4661_v59, %v4662_v21  ;;  %4677 = vrot.lane.b32.xlu0 %v4660_v36, %s7398_s22  ;;  %v4745_v45 = vrot.slane %v4726_v46, 6  ;;  %v11319_v59 = vld [vmem:[#allocation35_spill] sm:$0xff] }
 0x896   :  { %4679 = vrot.lane.b32.xlu1 %v4663_v28, %s7398_s22  ;;  %v4749_v47 = vsel %vm8157_vm2, %v4747_v6, %v4748_v31  ;;  %vm11320_vm1 = vnez %v11319_v59  ;;  %v11322_v28 = vld [vmem:[#allocation37_spill] sm:$0xff] }
 0x897   :  { %v4746_v10 = vsel %vm8157_vm2, %v4744_v15, %v4745_v45  ;;  %vm11323_vm8 = vnez %v11322_v28 }
 0x89a   :  { %v4626_v48 = vld [vmem:[#allocation2 + $0x38] sm:$0x11] }
 0x89b   :  { %v4642_v11 = vld [vmem:[#allocation2 + $0x38] sm:$0x11]  ;;  %4634 = vst.msk [vmem:[#allocation4 + $0x38] sm:$0x11] %vm11313_vm3, %v4626_v48 }
 0x89c   :  { %v4665_v42 = vrot.slane %v4642_v11, 7  ;;  %v4728_v17 = vld [vmem:[#allocation2 + $0x38] sm:$0x11] }
 0x89d   :  { %4763 = vrot.lane.b32.xlu0 %v4746_v10, %s7399_s23  ;;  %v4751_v37 = vrot.slane %v4728_v17, 6 }
 0x89e   :  { %4765 = vrot.lane.b32.xlu1 %v4749_v47, %s7399_s23  ;;  %v4666_v60 = vsel %vm8163_vm13, %v4664_v20, %v4665_v42 }
 0x89f   :  { %4681 = vrot.lane.b32.xlu2 %v4666_v60, %s7398_s22  ;;  %v4752_v5 = vsel %vm8157_vm2, %v4750_v50, %v4751_v37 }
 0x8a5   :  { %4759 = vrot.lane.b32.xlu0 %v4740_v0, %s7399_s23 }
 0x8a6   :  { %4767 = vrot.lane.b32.xlu1 %v4752_v5, %s7399_s23 }
 0x8a7   :  { %4673 = vrot.lane.b32.xlu2 %v4654_v39, %s7398_s22 }
 0x8ad   :  { %4669 = vrot.lane.b32.xlu0 %v4652_v26, %s7398_s22 }
 0x8ae   :  { %4671 = vrot.lane.b32.xlu1 %v4653_v43, %s7398_s22 }
 0x8d6   :  { %v4754_v38 = vpop.permute.xlu2 %4753 }
 0x8d7   :  { %v4769_v54 = vrot.slane %v4754_v38, 4 }
 0x8de   :  { %v9717_v33 = vpop.permute.xlu2 %4667 }
 0x8e6   :  { %v4676_v22 = vpop.permute.xlu2 %4675 }
 0x8e7   :  { %v4687_v46 = vrot.slane %v4676_v22, 4 }
 0x8ee   :  { %v4762_v58 = vpop.permute.xlu2 %4761 }
 0x8ef   :  { %v4773_v10 = vrot.slane %v4762_v58, 4 }
 0x8f5   :  { %v4758_v55 = vpop.permute.xlu1 %4757  ;;  %v4756_v51 = vpop.permute.xlu0 %4755 }
 0x8f6   :  { %v4771_v41 = vrot.slane %v4758_v55, 4  ;;  %v4770_v29 = vrot.slane %v4756_v51, 4 }
 0x8f8   :  { %v4777_v40 = vsel %vm11314_vm5, %v4769_v54, %v4770_v29  ;;  %v4779_v57 = vsel %vm11315_vm7, %v4770_v29, %v4771_v41  ;;  %vm11324_vm7 = vmmov %vm11314_vm5 }
 0x8f9   :  { %v4682_v56 = vpop.permute.xlu2 %4681  ;;  %v4778_v26 = vsel %vm11316_vm11, %v4754_v38, %v4777_v40  ;;  %v4780_v43 = vsel %vm11317_vm9, %v4756_v51, %v4779_v57  ;;  %vm11325_vm11 = vmmov %vm11314_vm5  ;;  %v11337_v57 = vld [vmem:[#allocation38_spill] sm:$0xff] }
 0x8fa   :  { %v4690_v32 = vrot.slane %v4682_v56, 4  ;;  %4799 = vst [vmem:[#allocation4 + $0x40] sm:$0xcc] %v4778_v26  ;;  %vm11326_vm9 = vmmov %vm11321_vm0 }
 0x8fb   :  { %4800 = vst [vmem:[#allocation4 + $0x48] sm:$0xcc] %v4780_v43 }
 0x8fc   :  { %v4704_v53 = vsel %vm11318_vm12, %v4682_v56, %v4690_v32  ;;  %vm11327_vm12 = vmmov %vm11321_vm0 }
 0x8fd   :  { %4720 = vst.msk [vmem:[#allocation4 + $0x58] sm:$0x33] %vm11320_vm1, %v4704_v53  ;;  %vm11328_vm1 = vmmov %vm11321_vm0 }
 0x901   :  { %v4674_v21 = vpop.permute.xlu2 %4673 }
 0x902   :  { %v4686_v13 = vrot.slane %v4674_v21, 4 }
 0x904   :  { %v4697_v35 = vsel %vm11321_vm0, %v4674_v21, %v4686_v13  ;;  %vm11329_vm0 = vmmov %vm11314_vm5 }
 0x905   :  { %4716 = vst.msk [vmem:[#allocation4 + $0x38] sm:$0xee] %vm11323_vm8, %v4697_v35  ;;  %v11341_v35 = vld [vmem:[#allocation36_spill] sm:$0xff] }
 0x907   :  { %v4678_v2 = vpop.permute.xlu0 %4677 }
 0x908   :  { %v4680_v36 = vpop.permute.xlu1 %4679  ;;  %v4688_v31 = vrot.slane %v4678_v2, 4 }
 0x909   :  { %v4689_v39 = vrot.slane %v4680_v36, 4 }
 0x90a   :  { %v4698_v48 = vsel %vm11324_vm7, %v4687_v46, %v4688_v31  ;;  %vm11331_vm7 = vcmask 523264  }
 0x90b   :  { %v4702_v45 = vsel %vm11314_vm5, %v4689_v39, %v4690_v32  ;;  %v4700_v6 = vsel %vm11325_vm11, %v4688_v31, %v4689_v39  ;;  %v4699_v11 = vsel %vm11327_vm12, %v4676_v22, %v4698_v48  ;;  %vm11330_vm5 = vmmov %vm11329_vm0 }
 0x90c   :  { %v4703_v15 = vsel %vm11326_vm9, %v4680_v36, %v4702_v45  ;;  %v4701_v20 = vsel %vm11328_vm1, %v4678_v2, %v4700_v6  ;;  %4717 = vst [vmem:[#allocation4 + $0x40] sm:$0x33] %v4699_v11  ;;  %vm11332_vm11 = vmmov %vm11331_vm7  ;;  %v4683_v2 = vrot.slane %v9717_v33, 4 }
 0x90d   :  { %4719 = vst [vmem:[#allocation4 + $0x50] sm:$0x33] %v4703_v15  ;;  %vm11333_vm1 = vmmov %vm11329_vm0 }
 0x90e   :  { %4718 = vst [vmem:[#allocation4 + $0x48] sm:$0x33] %v4701_v20  ;;  %vm11334_vm9 = vmmov %vm11331_vm7 }
 0x90f   :  { %v4764_v47 = vpop.permute.xlu0 %4763  ;;  %vm11335_vm12 = vmmov %vm11329_vm0 }
 0x910   :  { %v4766_v42 = vpop.permute.xlu1 %4765  ;;  %v4774_v17 = vrot.slane %v4764_v47, 4  ;;  %vm11336_vm8 = vmmov %vm11331_vm7 }
 0x911   :  { %v4775_v60 = vrot.slane %v4766_v42, 4 }
 0x912   :  { %v4784_v0 = vsel %vm11329_vm0, %v4773_v10, %v4774_v17  ;;  %vm11338_vm0 = vnez %v11337_v57  ;;  %v7254_v10 = vld [vmem:[#allocation4 + $0x4] sm:$0xf] }
 0x913   :  { %v4786_v37 = vsel %vm11330_vm5, %v4774_v17, %v4775_v60  ;;  %v4785_v50 = vsel %vm11331_vm7, %v4762_v58, %v4784_v0  ;;  %vm11339_vm5 = vmmov %vm11331_vm7  ;;  %v7261_v43 = vld [vmem:[#allocation4 + $0x44] sm:$0xf]  ;;  %v6973_v17 = vld [vmem:[#allocation4 + $0x8] sm:$0xf] }
 0x914   :  { %v4787_v5 = vsel %vm11332_vm11, %v4764_v47, %v4786_v37  ;;  %4803 = vst [vmem:[#allocation4 + $0x60] sm:$0x77] %v4785_v50  ;;  %vm11340_vm7 = vmmov %vm11339_vm5  ;;  %vm11342_vm11 = vnez %v11341_v35 }
 0x915   :  { %4804 = vst [vmem:[#allocation4 + $0x68] sm:$0x77] %v4787_v5 }
 0x917   :  { %v4760_v22 = vpop.permute.xlu0 %4759 }
 0x918   :  { %v4768_v38 = vpop.permute.xlu1 %4767  ;;  %v4772_v54 = vrot.slane %v4760_v22, 4 }
 0x919   :  { %v4776_v51 = vrot.slane %v4768_v38, 4 }
 0x91a   :  { %v4781_v32 = vsel %vm11335_vm12, %v4771_v41, %v4772_v54  ;;  %v4783_v26 = vsel %vm11340_vm7, %v4760_v22, %v4772_v54  ;;  %vm11345_vm12 = vcmask 785408   ;;  %v7005_v54 = vld [vmem:[#allocation4 + $0x48] sm:$0xf] }
 0x91b   :  { %v4788_v29 = vsel %vm11333_vm1, %v4775_v60, %v4776_v51  ;;  %v4790_v56 = vsel %vm11334_vm9, %v4768_v38, %v4776_v51  ;;  %v4782_v58 = vsel %vm11339_vm5, %v4758_v55, %v4781_v32  ;;  %v6999_v53 = vld [vmem:[#allocation4 + $0x60] sm:$0x70]  ;;  %4802 = vst.msk [vmem:[#allocation4 + $0x58] sm:$0xcc] %vm11342_vm11, %v4783_v26  ;;  %vm11344_vm9 = vmmov %vm11333_vm1  ;;  %v7264_v38 = vld [vmem:[#allocation4 + $0x5c] sm:$0x70] }
 0x91c   :  { %v4789_v40 = vsel %vm11336_vm8, %v4766_v42, %v4788_v29  ;;  %4806 = vst.msk [vmem:[#allocation4 + $0x78] sm:$0x77] %vm11338_vm0, %v4790_v56  ;;  %v9747_v21 = vor.u32 %v7261_v43, %v6999_v53  ;;  %vm11343_vm8 = vmmov %vm11333_vm1  ;;  %v7265_v5 = vld [vmem:[#allocation4 + $0x64] sm:$0x70]  ;;  %v6997_v29 = vld [vmem:[#allocation4 + $0x40] sm:$0xf] }
 0x91d   :  { %4805 = vst [vmem:[#allocation4 + $0x70] sm:$0x77] %v4789_v40  ;;  %vm11346_vm5 = vmmov %vm11345_vm12  ;;  %v9777_v56 = vor.u32 %v7265_v5, %v7005_v54  ;;  %v9779_v32 = vor.u32 %v7264_v38, %v6997_v29  ;;  %v7007_v26 = vld [vmem:[#allocation4 + $0x68] sm:$0x70]  ;;  %v5416_v38 = vld [vmem:[%s10666_s4 + $0x8] sm:$0x3] }
 0x91e   :  { %4801 = vst [vmem:[#allocation4 + $0x50] sm:$0xcc] %v4782_v58  ;;  %4918 = vrot.lane.b32.xlu1 %v9747_v21, %s7401_s8  ;;  %vm11347_vm7 = vmmov %vm11346_vm5  ;;  %v7255_v53 = vld [vmem:[#allocation4 + $0xc] sm:$0xf] }
 0x91f   :  { %v4670_v36 = vpop.permute.xlu0 %4669 }
 0x920   :  { %v4672_v41 = vpop.permute.xlu1 %4671  ;;  %v4684_v55 = vrot.slane %v4670_v36, 4 }
 0x921   :  { %v4685_v46 = vrot.slane %v4672_v41, 4 }
 0x922   :  { %v4691_v31 = vsel %vm11333_vm1, %v4683_v2, %v4684_v55  ;;  %vm11349_vm1 = vcmask 1046528  }
 0x923   :  { %v4695_v39 = vsel %vm11343_vm8, %v4685_v46, %v4686_v13  ;;  %v4693_v45 = vsel %vm11344_vm9, %v4684_v55, %v4685_v46  ;;  %v4692_v6 = vsel %vm11346_vm5, %v9717_v33, %v4691_v31  ;;  %v6965_v13 = vld [vmem:[#allocation4] sm:$0xf]  ;;  %v7272_v31 = vld [vmem:[#allocation4 + $0x74] sm:$0x70]  ;;  %vm11348_vm8 = vcmask 1039360  }
 0x924   :  { %v4696_v48 = vsel %vm11345_vm12, %v4672_v41, %v4695_v39  ;;  %v4694_v15 = vsel %vm11347_vm7, %v4670_v36, %v4693_v45  ;;  %v7266_v11 = vld [vmem:[#allocation4 + $0x6c] sm:$0x70]  ;;  %4713 = vst [vmem:[#allocation4 + $0x20] sm:$0xee] %v4692_v6  ;;  %v7015_v51 = vld [vmem:[#allocation4 + $0x70] sm:$0x70]  ;;  %vm11350_vm9 = vmmov %vm11348_vm8 }
 0x925   :  { %4715 = vst [vmem:[#allocation4 + $0x30] sm:$0xee] %v4696_v48  ;;  %v7013_v20 = vld [vmem:[#allocation4 + $0x50] sm:$0xf]  ;;  %v7263_v22 = vld [vmem:[#allocation4 + $0x54] sm:$0xf]  ;;  %vm11352_vm5 = vmmov %vm11348_vm8 }
 0x926   :  { %v9761_v42 = vor.u32 %v7266_v11, %v7013_v20  ;;  %4714 = vst [vmem:[#allocation4 + $0x28] sm:$0xee] %v4694_v15  ;;  %v9781_v40 = vor.u32 %v7263_v22, %v7015_v51  ;;  %v7262_v41 = vld [vmem:[#allocation4 + $0x4c] sm:$0xf]  ;;  %v7256_v36 = vld [vmem:[#allocation4 + $0x14] sm:$0xf]  ;;  %vm11353_vm7 = vmmov %vm11352_vm5 }
 0x927   :  { %v9791_v46 = vor.u32 %v7262_v41, %v7007_v26  ;;  %v7021_v39 = vld [vmem:[#allocation4 + $0x58] sm:$0xf]  ;;  %v6981_v48 = vld [vmem:[#allocation4 + $0x10] sm:$0xf]  ;;  %v7271_v20 = vld [vmem:[#allocation4 + $0x5c] sm:$0xf] }
 0x928   :  { %4924 = vrot.lane.b32.xlu1 %v9761_v42, %s7401_s8  ;;  %v7022_v6 = vor.u32 %v7272_v31, %v7021_v39  ;;  %v7270_v11 = vld [vmem:[#allocation4 + $0x34] sm:$0xf0]  ;;  %v7268_v41 = vld [vmem:[%s10667_s2 + $0x8] sm:$0x10]  ;;  %vm11351_vm12 = vcmask 244736   ;;  %vm11356_vm11 = vmmov %vm11352_vm5 }
 0x92b   :  { %v7257_v47 = vld [vmem:[#allocation4 + $0x1c] sm:$0xf0]  ;;  %v6967_v60 = vld [vmem:[#allocation4 + $0x20] sm:$0xf0] }
 0x92c   :  { %v9765_v37 = vor.u32 %v7257_v47, %v6965_v13  ;;  %v9767_v33 = vor.u32 %v7254_v10, %v6967_v60  ;;  %v6983_v43 = vld [vmem:[#allocation4 + $0x30] sm:$0xf0]  ;;  %v7259_v45 = vld [vmem:[#allocation4 + $0x2c] sm:$0xf0]  ;;  %v7023_v13 = vld [vmem:[#allocation4 + $0x78] sm:$0x70] }
 0x92d   :  { %v7258_v0 = vld [vmem:[#allocation4 + $0x24] sm:$0xf0]  ;;  %v6975_v58 = vld [vmem:[#allocation4 + $0x28] sm:$0xf0]  ;;  %v9793_v55 = vor.u32 %v7256_v36, %v6983_v43  ;;  %v9801_v15 = vor.u32 %v7259_v45, %v6981_v48  ;;  %v6989_v47 = vld [vmem:[#allocation4 + $0x18] sm:$0xf]  ;;  %v7026_v60 = vor.u32 %v7271_v20, %v7023_v13 }
 0x92e   :  { %v9769_v50 = vor.u32 %v7258_v0, %v6973_v17  ;;  %4900 = vrot.lane.b32.xlu2 %v9765_v37, %s7401_s8  ;;  %4902 = vrot.lane.b32.xlu0 %v9767_v33, %s7401_s8  ;;  %v9789_v2 = vor.u32 %v7255_v53, %v6975_v58  ;;  %v6990_v10 = vor.u32 %v7270_v11, %v6989_v47  ;;  %v6991_v17 = vld [vmem:[#allocation4 + $0x38] sm:$0xf0]  ;;  %v6961_v53 = vld [vmem:[%s10667_s2 + $0x8] sm:$0xf] }
 0x92f   :  { %v7269_v0 = vld [vmem:[#allocation4 + $0x1c] sm:$0xf]  ;;  %v9851_v48 = vor.u32 %v7268_v41, %v6961_v53  ;;  %v7044_v53 = vld [vmem:[#allocation4 + $0x58] sm:$0xf] }
 0x930   :  { %4904 = vrot.lane.b32.xlu1 %v9769_v50, %s7401_s8  ;;  %v6994_v5 = vor.u32 %v7269_v0, %v6991_v17  ;;  %v7267_v41 = vld [vmem:[#allocation4 + $0x74] sm:$0x70] }
 0x936   :  { %4920 = vrot.lane.b32.xlu2 %v9777_v56, %s7401_s8  ;;  %4916 = vrot.lane.b32.xlu0 %v9779_v32, %s7401_s8 }
 0x938   :  { %4926 = vrot.lane.b32.xlu1 %v9781_v40, %s7401_s8 }
 0x93e   :  { %4906 = vrot.lane.b32.xlu2 %v9789_v2, %s7401_s8  ;;  %4922 = vrot.lane.b32.xlu0 %v9791_v46, %s7401_s8 }
 0x940   :  { %4910 = vrot.lane.b32.xlu1 %v9793_v55, %s7401_s8 }
 0x946   :  { %4928 = vrot.lane.b32.xlu2 %v7022_v6, %s7401_s8  ;;  %4908 = vrot.lane.b32.xlu0 %v9801_v15, %s7401_s8 }
 0x948   :  { %5242 = vrot.lane.b32.xlu1 %v9779_v32, %s7402_s9 }
 0x94e   :  { %4912 = vrot.lane.b32.xlu2 %v6990_v10, %s7401_s8  ;;  %4930 = vrot.lane.b32.xlu0 %v7026_v60, %s7401_s8 }
 0x950   :  { %5226 = vrot.lane.b32.xlu1 %v9765_v37, %s7402_s9 }
 0x956   :  { %5244 = vrot.lane.b32.xlu2 %v9747_v21, %s7402_s9  ;;  %4914 = vrot.lane.b32.xlu0 %v6994_v5, %s7401_s8 }
 0x958   :  { %5248 = vrot.lane.b32.xlu1 %v9791_v46, %s7402_s9 }
 0x95e   :  { %5228 = vrot.lane.b32.xlu2 %v9767_v33, %s7402_s9  ;;  %5246 = vrot.lane.b32.xlu0 %v9777_v56, %s7402_s9 }
 0x960   :  { %5254 = vrot.lane.b32.xlu1 %v7022_v6, %s7402_s9 }
 0x966   :  { %5250 = vrot.lane.b32.xlu2 %v9761_v42, %s7402_s9  ;;  %5230 = vrot.lane.b32.xlu0 %v9769_v50, %s7402_s9 }
 0x968   :  { %5236 = vrot.lane.b32.xlu1 %v9793_v55, %s7402_s9 }
 0x96e   :  { %5232 = vrot.lane.b32.xlu2 %v9789_v2, %s7402_s9  ;;  %5252 = vrot.lane.b32.xlu0 %v9781_v40, %s7402_s9 }
 0x970   :  { %5240 = vrot.lane.b32.xlu1 %v6994_v5, %s7402_s9 }
 0x976   :  { %5238 = vrot.lane.b32.xlu2 %v6990_v10, %s7402_s9  ;;  %5234 = vrot.lane.b32.xlu0 %v9801_v15, %s7402_s9 }
 0x97e   :  { %5256 = vrot.lane.b32.xlu0 %v7026_v60, %s7402_s9 }
 0x986   :  { %5424 = vperm.xlu0 %7312, %v5416_v38  }
 0x988   :  { %v4901_v22 = vpop.permute.xlu2 %4900 }
 0x990   :  { %v4919_v51 = vpop.permute.xlu1 %4918  ;;  %v4921_v54 = vpop.permute.xlu2 %4920 }
 0x991   :  { %v4940_v29 = vsel %vm11348_vm8, %v4919_v51, %v4921_v54  ;;  %vm11354_vm8 = vmmov %vm11349_vm1 }
 0x992   :  { %v4960_v58 = vsel %vm11349_vm1, %v4940_v29, 0 }
 0x993   :  { %4997 = vmatpush.bf16.msra.mxu1 %v4960_v58 }
 0x998   :  { %v4907_v43 = vpop.permute.xlu2 %4906 }
 0x99a   :  { %v4925_v26 = vpop.permute.xlu1 %4924 }
 0x9a0   :  { %v4903_v36 = vpop.permute.xlu0 %4902  ;;  %v9848_v31 = vpop.permute.xlu2 %4928 }
 0x9a1   :  { %v4932_v0 = vsel %vm11356_vm11, %v4901_v22, %v4903_v36  ;;  %vm11361_vm11 = vmmov %vm11352_vm5 }
 0x9a2   :  { %v4905_v39 = vpop.permute.xlu1 %4904 }
 0x9a3   :  { %v4933_v45 = vsel %vm11350_vm9, %v4903_v36, %v4905_v39  ;;  %vm11355_vm9 = vmmov %vm11352_vm5 }
 0x9a4   :  { %4998 = vmatpush.bf16.msra.mxu1 %v4933_v45 }
 0x9a7   :  { %7028 = vmatmul.msk.bf16.vlgmr.msra.gmra.mxu1 %vm11351_vm12, %v9851_v48  ;;  %vm11357_vm12 = vmmov %vm11349_vm1 }
 0x9a8   :  { %v4917_v6 = vpop.permute.xlu0 %4916  ;;  %v9860_v60 = vpop.permute.xlu2 %4912 }
 0x9a9   :  { %v4939_v20 = vsel %vm11352_vm5, %v4917_v6, %v4919_v51 }
 0x9aa   :  { %v4927_v11 = vpop.permute.xlu1 %4926  ;;  %v4957_v47 = vsel %vm11354_vm8, %v4939_v20, 0  ;;  %vm11359_vm8 = vmmov %vm11349_vm1 }
 0x9ab   :  { %v4944_v13 = vsel %vm11353_vm7, %v4927_v11, %v9848_v31  ;;  %4983 = vmatpush.bf16.msra.mxu0 %v4957_v47  ;;  %v4943_v17 = vsel %vm11355_vm9, %v4925_v26, %v4927_v11  ;;  %vm11358_vm7 = vmmov %vm11352_vm5  ;;  %vm11360_vm9 = vcmask 244736   ;;  %v7260_v47 = vld [vmem:[#allocation4 + $0x34] sm:$0xf0] }
 0x9ac   :  { %v4972_v10 = vsel %vm11349_vm1, %v4944_v13, 0  ;;  %v4969_v5 = vsel %vm11357_vm12, %v4943_v17, 0  ;;  %vm11362_vm12 = vmmov %vm11349_vm1  ;;  %v4934_v11 = vsel %vm11358_vm7, %v4905_v39, %v4907_v43 }
 0x9ad   :  { %5053 = vmatpush.bf16.msrb.mxu1 %v4972_v10  ;;  %v5107_v36 = vsel %vm11362_vm12, %v9777_v56, 0 }
 0x9af   :  { %4984 = vmatpush.bf16.msra.mxu0 %v4932_v0 }
 0x9b0   :  { %v4923_v38 = vpop.permute.xlu0 %4922 }
 0x9b1   :  { %v4941_v29 = vsel %vm11352_vm5, %v4921_v54, %v4923_v38  ;;  %v4942_v58 = vsel %vm11358_vm7, %v4923_v38, %v4925_v26  ;;  %v7045_v54 = vor.u32 %v7267_v41, %v7044_v53  ;;  %v5245_v26 = vpop.permute.xlu2 %5244  ;;  %vm11363_vm5 = vmmov %vm11360_vm9  ;;  %v7253_v38 = vld [vmem:[%s10667_s2] sm:$0x10] }
 0x9b2   :  { %v4911_v51 = vpop.permute.xlu1 %4910  ;;  %v4963_v45 = vsel %vm11359_vm8, %v4941_v29, 0  ;;  %v4966_v6 = vsel %vm11349_vm1, %v4942_v58, 0  ;;  %7027 = vmatmul.msk.bf16.vlgmr.msra.gmra.mxu0 %vm11360_vm9, %v9851_v48  ;;  %vm11364_vm8 = vmmov %vm11349_vm1 }
 0x9b3   :  { %5039 = vmatpush.bf16.msrb.mxu0 %v4969_v5  ;;  %v4937_v22 = vsel %vm11361_vm11, %v4911_v51, %v9860_v60  ;;  %5011 = vmatpush.bf16.msra.mxu2 %v4963_v45  ;;  %v5119_v20 = vsel %vm11364_vm8, %v7045_v54, 0  ;;  %vm11365_vm1 = vmmov %vm11358_vm7  ;;  %v7040_v5 = vld [vmem:[#allocation4 + $0x18] sm:$0xf] }
 0x9b4   :  { %5054 = vmatpush.bf16.msrb.mxu1 %v4937_v22  ;;  %5025 = vmatpush.bf16.msra.mxu3 %v4966_v6  ;;  %vm11366_vm9 = vmmov %vm11365_vm1 }
 0x9b5   :  { %vm11367_vm11 = vmmov %vm11364_vm8 }
 0x9b6   :  { %v5101_v0 = vsel %vm11367_vm11, %v9779_v32, 0  ;;  %vm11368_vm12 = vmmov %vm11364_vm8  ;;  %v5113_v32 = vsel %vm11364_vm8, %v9761_v42, 0 }
 0x9b7   :  { %7032 = vmatmul.msk.bf16.vlgmr.msrb.gmra.mxu1 %vm11363_vm5, %v9851_v48  ;;  %5012 = vmatpush.bf16.msra.mxu2 %v4934_v11  ;;  %v5104_v39 = vsel %vm11368_vm12, %v9747_v21, 0  ;;  %vm11369_vm7 = vmmov %vm11363_vm5  ;;  %v7036_v21 = vld [vmem:[%s10667_s2] sm:$0xf] }
 0x9b8   :  { %5155 = vmatpush.bf16.msra.mxu1 %v5107_v36  ;;  %v4909_v13 = vpop.permute.xlu0 %4908  ;;  %vm11371_vm11 = vmmov %vm11363_vm5 }
 0x9b9   :  { %v4935_v56 = vsel %vm11365_vm1, %v4907_v43, %v4909_v13  ;;  %v4936_v17 = vsel %vm11366_vm9, %v4909_v13, %v4911_v51  ;;  %v5229_v43 = vpop.permute.xlu2 %5228  ;;  %vm11370_vm9 = vmmov %vm11364_vm8 }
 0x9ba   :  { %v5243_v10 = vpop.permute.xlu1 %5242  ;;  %5026 = vmatpush.bf16.msra.mxu3 %v4935_v56  ;;  %5040 = vmatpush.bf16.msrb.mxu0 %v4936_v17  ;;  %vm11372_vm12 = vmmov %vm11364_vm8  ;;  %vm11374_vm8 = vcmask 1031168  }
 0x9bb   :  { %7029 = vmatmul.msk.bf16.vlgmr.msra.gmra.mxu2 %vm11363_vm5, %v9851_v48  ;;  %v5116_v42 = vsel %vm11372_vm12, %v9781_v40, 0  ;;  %vm11378_vm12 = vmmov %vm11363_vm5 }
 0x9bc   :  { %5156 = vmatpush.bf16.msra.mxu1 %v9769_v50  ;;  %v7041_v50 = vor.u32 %v7260_v47, %v7040_v5  ;;  %v9941_v5 = vld [vmem:[%s10666_s4] sm:$0xff] }
 0x9bd   :  { %7030 = vmatmul.msk.bf16.vlgmr.msra.gmra.mxu3 %vm11369_vm7, %v9851_v48  ;;  %vm11373_vm7 = vmmov %vm11365_vm1  ;;  %11396 = vst [vmem:[#allocation33_spill] sm:$0xff] %v9941_v5  ;;  %5419 = vperm.xlu2 %7314, %v9941_v5  }
 0x9be   :  { %5127 = vmatpush.bf16.msrb.mxu3 %v5101_v0  ;;  %5141 = vmatpush.bf16.msra.mxu0 %v5104_v39 }
 0x9c0   :  { %5211 = vmatpush.bf16.msrb.mxu1 %v5119_v20  ;;  %v4931_v51 = vpop.permute.xlu0 %4930 }
 0x9c1   :  { %v4945_v58 = vsel %vm11365_vm1, %v9848_v31, %v4931_v51  ;;  %v5251_v41 = vpop.permute.xlu2 %5250  ;;  %vm11375_vm1 = vmmov %vm11370_vm9 }
 0x9c2   :  { %5128 = vmatpush.bf16.msrb.mxu3 %v9765_v37  ;;  %5142 = vmatpush.bf16.msra.mxu0 %v9767_v33  ;;  %v5227_v29 = vpop.permute.xlu1 %5226  ;;  %v4975_v37 = vsel %vm11370_vm9, %v4945_v58, 0  ;;  %v7037_v33 = vor.u32 %v7253_v38, %v7036_v21  ;;  %v5110_v40 = vsel %vm11375_vm1, %v9791_v46, 0  ;;  %vm11376_vm9 = vmmov %vm11375_vm1  ;;  %v7057_v21 = vld [vmem:[%s10667_s2 + $0x10] sm:$0xf]  ;;  %v7273_v38 = vld [vmem:[%s10667_s2 + $0x10] sm:$0x10] }
 0x9c3   :  { %7031 = vmatmul.msk.bf16.vlgmr.msrb.gmra.mxu0 %vm11371_vm11, %v9851_v48  ;;  %5067 = vmatpush.bf16.msrb.mxu2 %v4975_v37  ;;  %vm11377_vm11 = vmmov %vm11374_vm8  ;;  %v7058_v37 = vor.u32 %v7273_v38, %v7057_v21 }
 0x9c4   :  { %5212 = vmatpush.bf16.msrb.mxu1 %v7041_v50  ;;  %vm11379_vm0 = vmmov %vm11375_vm1 }
 0x9c5   :  { %vm11382_vm1 = vmmov %vm11379_vm0 }
 0x9c6   :  { %5183 = vmatpush.bf16.msra.mxu3 %v5113_v32  ;;  %5197 = vmatpush.bf16.msrb.mxu0 %v5116_v42 }
 0x9c7   :  { %7048 = vmatmul.msk.bf16.vlgmr.msra.gmra.mxu1 %vm11363_vm5, %v7037_v33 }
 0x9c8   :  { %v4915_v53 = vpop.permute.xlu0 %4914 }
 0x9c9   :  { %v4938_v45 = vsel %vm11373_vm7, %v9860_v60, %v4915_v53  ;;  %vm11380_vm7 = vmmov %vm11374_vm8 }
 0x9ca   :  { %5184 = vmatpush.bf16.msra.mxu3 %v9801_v15  ;;  %5198 = vmatpush.bf16.msrb.mxu0 %v9793_v55  ;;  %v5249_v31 = vpop.permute.xlu1 %5248  ;;  %v5265_v15 = vsel %vm11377_vm11, %v5243_v10, %v5245_v26  ;;  %vm11384_vm11 = vmmov %vm11363_vm5 }
 0x9cb   :  { %v5268_v6 = vsel %vm11374_vm8, %v5249_v31, %v5251_v41  ;;  %5068 = vmatpush.bf16.msrb.mxu2 %v4938_v45  ;;  %v5283_v55 = vsel %vm11379_vm0, %v5265_v15, 0  ;;  %vm11381_vm8 = vmmov %vm11380_vm7 }
 0x9cc   :  { %v5292_v22 = vsel %vm11376_vm9, %v5268_v6, 0  ;;  %vm11383_vm9 = vmmov %vm11379_vm0 }
 0x9cd   :  { %5351 = vmatpush.bf16.msra.mxu1 %v5292_v22  ;;  %7046 = vmatmul.msk.bf16.vlgmr.msrb.gmra.mxu3 %vm11363_vm5, %v7037_v33  ;;  %vm11386_vm0 = vmmov %vm11363_vm5 }
 0x9ce   :  { %7033 = vmatmul.msk.bf16.vlgmr.msrb.gmra.mxu2 %vm11378_vm12, %v9851_v48  ;;  %vm11385_vm12 = vmmov %vm11380_vm7 }
 0x9cf   :  { %5169 = vmatpush.bf16.msra.mxu2 %v5110_v40  ;;  %v5258_v48 = vsel %vm11385_vm12, %v5227_v29, %v5229_v43  ;;  %vm11387_vm5 = vmmov %vm11380_vm7  ;;  %vm11393_vm12 = vcmask 1046528  }
 0x9d0   :  { %v5247_v60 = vpop.permute.xlu0 %5246 }
 0x9d1   :  { %v5266_v36 = vsel %vm11380_vm7, %v5245_v26, %v5247_v60  ;;  %v5267_v46 = vsel %vm11381_vm8, %v5247_v60, %v5249_v31  ;;  %vm11388_vm7 = vmmov %vm11387_vm5 }
 0x9d2   :  { %v5286_v54 = vsel %vm11382_vm1, %v5266_v36, 0  ;;  %v5289_v11 = vsel %vm11383_vm9, %v5267_v46, 0  ;;  %v5255_v13 = vpop.permute.xlu1 %5254  ;;  %vm11389_vm8 = vmmov %vm11386_vm0 }
 0x9d3   :  { %5170 = vmatpush.bf16.msra.mxu2 %v9789_v2  ;;  %7047 = vmatmul.msk.bf16.vlgmr.msra.gmra.mxu0 %vm11384_vm11, %v7037_v33  ;;  %v5233_v2 = vpop.permute.xlu2 %5232  ;;  %vm11390_vm1 = vmmov %vm11386_vm0 }
 0x9d4   :  { %5323 = vmatpush.bf16.msrb.mxu3 %v5286_v54  ;;  %5337 = vmatpush.bf16.msra.mxu0 %v5289_v11  ;;  %vm11391_vm9 = vmmov %vm11387_vm5 }
 0x9d5   :  { %vm11392_vm11 = vmmov %vm11387_vm5 }
 0x9d6   :  { %vm11395_vm3 = vmmov %vm11390_vm1 }
 0x9d7   :  { %5309 = vmatpush.bf16.msrb.mxu2 %v5283_v55  ;;  %7052 = vmatmul.msk.bf16.vlgmr.msrb.gmra.mxu1 %vm11386_vm0, %v7037_v33  ;;  %vm11394_vm0 = vmmov %vm11393_vm12 }
 0x9d8   :  { %v5231_v20 = vpop.permute.xlu0 %5230 }
 0x9d9   :  { %v5259_v26 = vsel %vm11387_vm5, %v5229_v43, %v5231_v20  ;;  %v5260_v47 = vsel %vm11388_vm7, %v5231_v20, %v5233_v2 }
 0x9da   :  { %5324 = vmatpush.bf16.msrb.mxu3 %v5259_v26  ;;  %5338 = vmatpush.bf16.msra.mxu0 %v5260_v47  ;;  %v5237_v50 = vpop.permute.xlu1 %5236 }
 0x9db   :  { %5310 = vmatpush.bf16.msrb.mxu2 %v5258_v48  ;;  %v5239_v43 = vpop.permute.xlu2 %5238 }
 0x9dc   :  { %v5263_v32 = vsel %vm11387_vm5, %v5237_v50, %v5239_v43 }
 0x9dd   :  { %7050 = vmatmul.msk.bf16.vlgmr.msra.gmra.mxu3 %vm11390_vm1, %v7037_v33 }
 0x9de   :  { %7049 = vmatmul.msk.bf16.vlgmr.msra.gmra.mxu2 %vm11389_vm8, %v7037_v33  ;;  %vm11399_vm8 = vmmov %vm11390_vm1 }
 0x9e0   :  { %v5253_v10 = vpop.permute.xlu0 %5252 }
 0x9e1   :  { %v5269_v56 = vsel %vm11391_vm9, %v5251_v41, %v5253_v10  ;;  %v5270_v17 = vsel %vm11392_vm11, %v5253_v10, %v5255_v13  ;;  %vm11400_vm9 = vmmov %vm11390_vm1 }
 0x9e2   :  { %v5295_v0 = vsel %vm11393_vm12, %v5269_v56, 0  ;;  %v5298_v39 = vsel %vm11394_vm0, %v5270_v17, 0  ;;  %vm11402_vm12 = vmmov %vm11394_vm0  ;;  %v5241_v41 = vpop.permute.xlu1 %5240 }
 0x9e3   :  { %7051 = vmatmul.msk.bf16.vlgmr.msrb.gmra.mxu0 %vm11395_vm3, %v7037_v33  ;;  %5365 = vmatpush.bf16.msra.mxu2 %v5295_v0  ;;  %vm11397_vm3 = vmmov %vm11387_vm5 }
 0x9e4   :  { %5379 = vmatpush.bf16.msra.mxu3 %v5298_v39  ;;  %vm11398_vm7 = vmmov %vm11397_vm3 }
 0x9e5   :  { %vm11401_vm11 = vmmov %vm11397_vm3 }
 0x9e6   :  { %vm11403_vm0 = vmmov %vm11390_vm1 }
 0x9e7   :  { %vm11404_vm5 = vmmov %vm11397_vm3 }
 0x9e8   :  { %5380 = vmatpush.bf16.msra.mxu3 %v5263_v32  ;;  %v5235_v51 = vpop.permute.xlu0 %5234  ;;  %v5264_v31 = vsel %vm11404_vm5, %v5239_v43, %v5241_v41 }
 0x9e9   :  { %v5261_v29 = vsel %vm11397_vm3, %v5233_v2, %v5235_v51  ;;  %v5262_v58 = vsel %vm11398_vm7, %v5235_v51, %v5237_v50  ;;  %vm11405_vm3 = vmmov %vm11403_vm0 }
 0x9ea   :  { %5352 = vmatpush.bf16.msra.mxu1 %v5261_v29  ;;  %5366 = vmatpush.bf16.msra.mxu2 %v5262_v58  ;;  %vm11406_vm7 = vmmov %vm11403_vm0 }
 0x9ed   :  { %7060 = vmatmul.msk.bf16.vlgmr.msrb.gmra.mxu3 %vm11390_vm1, %v7058_v37  ;;  %7062 = vmatmul.msk.bf16.vlgmr.msra.gmra.mxu1 %vm11400_vm9, %v7058_v37  ;;  %vm11408_vm1 = vcmask 1043456   ;;  %vm11409_vm9 = vcmask 269312  }
 0x9ee   :  { %7059 = vmatmul.msk.bf16.vlgmr.msrb.gmra.mxu2 %vm11399_vm8, %v7058_v37  ;;  %vm11407_vm8 = vmmov %vm11403_vm0 }
 0x9f0   :  { %v5257_v42 = vpop.permute.xlu0 %5256 }
 0x9f1   :  { %v5271_v33 = vsel %vm11401_vm11, %v5255_v13, %v5257_v42  ;;  %vm11410_vm11 = vmmov %vm11409_vm9 }
 0x9f2   :  { %v5301_v53 = vsel %vm11402_vm12, %v5271_v33, 0  ;;  %vm11411_vm12 = vmmov %vm11408_vm1 }
 0x9f3   :  { %7061 = vmatmul.msk.bf16.vlgmr.msra.gmra.mxu0 %vm11403_vm0, %v7058_v37  ;;  %vm11412_vm0 = vmmov %vm11409_vm9 }
 0x9f4   :  { %5393 = vmatpush.bf16.msrb.mxu0 %v5301_v53  ;;  %vm11413_vm5 = vmmov %vm11412_vm0 }
 0x9f8   :  { %5394 = vmatpush.bf16.msrb.mxu0 %v5264_v31 }
 0x9fd   :  { %7064 = vmatmul.msk.bf16.vlgmr.msra.gmra.mxu3 %vm11406_vm7, %v7058_v37  ;;  %vm11415_vm7 = vmmov %vm11412_vm0 }
 0x9fe   :  { %7063 = vmatmul.msk.bf16.vlgmr.msra.gmra.mxu2 %vm11405_vm3, %v7058_v37  ;;  %vm11414_vm3 = vmmov %vm11408_vm1 }
 0xa03   :  { %7065 = vmatmul.msk.bf16.vlgmr.msrb.gmra.mxu0 %vm11407_vm8, %v7058_v37  ;;  %vm11417_vm8 = vmmov %vm11412_vm0 }
 0xa17   :  { %v9981_v37 = vpop.permute.xlu2 %5419 }
 0xa24   :  { %v5000_v45 = vpop.f32.mrf.mxu1 }
 0xa2c   :  { %v5002_v6 = vpop.f32.mrf.mxu1 }
 0xa2f   :  { %v4986_v40 = vpop.f32.mrf.mxu0 }
 0xa34   :  { %v9963_v22 = vpop.f32.mrf.mxu1 }
 0xa37   :  { %v4988_v15 = vpop.f32.mrf.mxu0 }
 0xa3c   :  { %v9965_v55 = vpop.f32.mrf.mxu1 }
 0xa3e   :  { %v5014_v60 = vpop.f32.mrf.mxu2 }
 0xa40   :  { %v9967_v36 = vpop.f32.mrf.mxu0  ;;  %v5028_v46 = vpop.f32.mrf.mxu3 }
 0xa44   :  { %v5158_v54 = vpop.f32.mrf.mxu1 }
 0xa45   :  { %v5159_v33 = vadd.f32 %v5158_v54, %v5014_v60 }
 0xa46   :  { %v5016_v48 = vpop.f32.mrf.mxu2 }
 0xa48   :  { %v9969_v11 = vpop.f32.mrf.mxu0  ;;  %v5030_v2 = vpop.f32.mrf.mxu3 }
 0xa4c   :  { %v5160_v20 = vpop.f32.mrf.mxu1 }
 0xa50   :  { %v5144_v13 = vpop.f32.mrf.mxu0  ;;  %v5130_v47 = vpop.f32.mrf.mxu3 }
 0xa51   :  { %v9971_v26 = vpop.f32.mrf.mxu2  ;;  %v5145_v41 = vadd.f32 %v5144_v13, %v5000_v45  ;;  %v5131_v31 = vadd.f32 %v5130_v47, %v4986_v40 }
 0xa54   :  { %v5214_v0 = vpop.f32.mrf.mxu1 }
 0xa58   :  { %v5146_v10 = vpop.f32.mrf.mxu0  ;;  %v5132_v17 = vpop.f32.mrf.mxu3 }
 0xa59   :  { %v9973_v56 = vpop.f32.mrf.mxu2 }
 0xa5c   :  { %v9975_v32 = vpop.f32.mrf.mxu1 }
 0xa60   :  { %v5200_v39 = vpop.f32.mrf.mxu0  ;;  %v5186_v43 = vpop.f32.mrf.mxu3 }
 0xa61   :  { %v5172_v50 = vpop.f32.mrf.mxu2 }
 0xa62   :  { %v5173_v29 = vadd.f32 %v5172_v50, %v5028_v46 }
 0xa68   :  { %v9977_v21 = vpop.f32.mrf.mxu0  ;;  %v9979_v51 = vpop.f32.mrf.mxu3 }
 0xa69   :  { %v5174_v38 = vpop.f32.mrf.mxu2 }
 0xa6a   :  { %v5354_v58 = vpop.f32.mrf.mxu1  ;;  %v5175_v1 = vadd.f32 %v5174_v38, %v5030_v2  ;;  %v5133_v2 = vadd.f32 %v5132_v17, %v4988_v15 }
 0xa6b   :  { %v5404_v42 = vadd.f32 %v5354_v58, %v5173_v29  ;;  %v9987_v58 = vpop.permute.xlu0 %5424 }
 0xa6d   :  { %v5430_v53 = vadd.f32 %v9981_v37, %v5404_v42 }
 0xa6f   :  { %v5444_v5 = vmax.f32 %v5430_v53, 0.0 }
 0xa70   :  { %v5340_v44 = vpop.f32.mrf.mxu0  ;;  %v5326_v61 = vpop.f32.mrf.mxu3 }
 0xa71   :  { %v5403_v30 = vadd.f32 %v5340_v44, %v5159_v33  ;;  %v5312_v52 = vpop.f32.mrf.mxu2  ;;  %v5402_v7 = vadd.f32 %v5326_v61, %v5145_v41  ;;  %v5161_v44 = vadd.f32 %v5160_v20, %v5016_v48  ;;  %v5458_v61 = vmul.f32 %v8032_v3, %v5444_v5 }
 0xa72   :  { %v5401_v16 = vadd.f32 %v5312_v52, %v5131_v31  ;;  %v5356_v29 = vpop.f32.mrf.mxu1  ;;  %v5215_v31 = vadd.f32 %v5214_v0, %v9971_v26 }
 0xa73   :  { %v5429_v23 = vadd.f32 %v9981_v37, %v5403_v30  ;;  %v5428_v50 = vadd.f32 %v9981_v37, %v5402_v7  ;;  %v5411_v54 = vadd.f32 %v5356_v29, %v5175_v1  ;;  %v5147_v30 = vadd.f32 %v5146_v10, %v5002_v6 }
 0xa74   :  { %v5427_v46 = vadd.f32 %v9981_v37, %v5401_v16  ;;  %v5201_v29 = vadd.f32 %v5200_v39, %v9963_v22 }
 0xa75   :  { %v5443_v60 = vmax.f32 %v5429_v23, 0.0  ;;  %v5442_v40 = vmax.f32 %v5428_v50, 0.0  ;;  %v5437_v52 = vadd.f32 %v9987_v58, %v5411_v54 }
 0xa76   :  { %v5441_v45 = vmax.f32 %v5427_v46, 0.0 }
 0xa77   :  { %v5457_v13 = vmul.f32 %v8029_v14, %v5443_v60  ;;  %v5456_v7 = vmul.f32 %v8045_v49, %v5442_v40  ;;  %v5451_v20 = vmax.f32 %v5437_v52, 0.0  ;;  %v5187_v60 = vadd.f32 %v5186_v43, %v9967_v36 }
 0xa78   :  { %v5455_v16 = vmul.f32 %v8038_v4, %v5441_v45  ;;  %v5342_v47 = vpop.f32.mrf.mxu0  ;;  %v5328_v42 = vpop.f32.mrf.mxu3 }
 0xa79   :  { %v5470_v23 = vpack.c.bf16 %v5458_v61, %v5457_v13  ;;  %v5410_v1 = vadd.f32 %v5342_v47, %v5161_v44  ;;  %v5314_v38 = vpop.f32.mrf.mxu2  ;;  %v5409_v48 = vadd.f32 %v5328_v42, %v5147_v30  ;;  %v5465_v46 = vmul.f32 %v8032_v3, %v5451_v20 }
 0xa7a   :  { %v5469_v33 = vpack.c.bf16 %v5456_v7, %v5455_v16  ;;  %v5408_v53 = vadd.f32 %v5314_v38, %v5133_v2  ;;  %v5217_v7 = vadd.f32 %v9975_v32, %v9973_v56 }
 0xa7b   :  { %v5436_v41 = vadd.f32 %v9987_v58, %v5410_v1  ;;  %5487 = vrot.lane.b32.xlu2 %v5470_v23, %s7408_s18  ;;  %v5435_v6 = vadd.f32 %v9987_v58, %v5409_v48  ;;  %v5203_v23 = vadd.f32 %v9977_v21, %v9965_v55  ;;  %v5189_v1 = vadd.f32 %v9979_v51, %v9969_v11 }
 0xa7c   :  { %v5434_v5 = vadd.f32 %v9987_v58, %v5408_v53  ;;  %5485 = vrot.lane.b32.xlu1 %v5469_v33, %s7408_s18 }
 0xa7d   :  { %v5450_v15 = vmax.f32 %v5436_v41, 0.0  ;;  %v5449_v17 = vmax.f32 %v5435_v6, 0.0 }
 0xa7e   :  { %v5448_v10 = vmax.f32 %v5434_v5, 0.0 }
 0xa7f   :  { %v5464_v50 = vmul.f32 %v8029_v14, %v5450_v15  ;;  %v5463_v45 = vmul.f32 %v8045_v49, %v5449_v17 }
 0xa80   :  { %v5462_v54 = vmul.f32 %v8038_v4, %v5448_v10  ;;  %v5396_v40 = vpop.f32.mrf.mxu0  ;;  %v5382_v52 = vpop.f32.mrf.mxu3 }
 0xa81   :  { %v5474_v44 = vpack.c.bf16 %v5465_v46, %v5464_v50  ;;  %v5407_v13 = vadd.f32 %v5396_v40, %v5215_v31  ;;  %v5368_v61 = vpop.f32.mrf.mxu2  ;;  %v5406_v26 = vadd.f32 %v5382_v52, %v5201_v29 }
 0xa82   :  { %v5473_v30 = vpack.c.bf16 %v5463_v45, %v5462_v54  ;;  %v5405_v2 = vadd.f32 %v5368_v61, %v5187_v60 }
 0xa83   :  { %v5433_v0 = vadd.f32 %v9981_v37, %v5407_v13  ;;  %v5432_v22 = vadd.f32 %v9981_v37, %v5406_v26 }
 0xa84   :  { %v5431_v16 = vadd.f32 %v9981_v37, %v5405_v2  ;;  %5495 = vrot.lane.b32.xlu1 %v5474_v44, %s7408_s18  ;;  %5493 = vrot.lane.b32.xlu0 %v5473_v30, %s7408_s18 }
 0xa85   :  { %v5447_v36 = vmax.f32 %v5433_v0, 0.0  ;;  %v5446_v43 = vmax.f32 %v5432_v22, 0.0 }
 0xa86   :  { %v5445_v39 = vmax.f32 %v5431_v16, 0.0 }
 0xa87   :  { %v5461_v47 = vmul.f32 %v11283_v19, %v5447_v36  ;;  %v5460_v38 = vmul.f32 %v8108_v9, %v5446_v43 }
 0xa88   :  { %v5459_v37 = vmul.f32 %v8111_v27, %v5445_v39  ;;  %v5398_v42 = vpop.f32.mrf.mxu0  ;;  %v5384_v20 = vpop.f32.mrf.mxu3 }
 0xa89   :  { %v5472_v33 = vpack.c.bf16 %v5461_v47, %v5461_v47  ;;  %v5414_v53 = vadd.f32 %v5398_v42, %v5217_v7  ;;  %v5370_v48 = vpop.f32.mrf.mxu2  ;;  %v5413_v56 = vadd.f32 %v5384_v20, %v5203_v23 }
 0xa8a   :  { %v5471_v41 = vpack.c.bf16 %v5460_v38, %v5459_v37  ;;  %v5412_v5 = vadd.f32 %v5370_v48, %v5189_v1 }
 0xa8b   :  { %v5440_v32 = vadd.f32 %v9987_v58, %v5414_v53  ;;  %v5439_v55 = vadd.f32 %v9987_v58, %v5413_v56 }
 0xa8c   :  { %v5438_v6 = vadd.f32 %v9987_v58, %v5412_v5  ;;  %5489 = vrot.lane.b32.xlu2 %v5471_v41, %s7408_s18  ;;  %5491 = vrot.lane.b32.xlu1 %v5472_v33, %s7408_s18 }
 0xa8d   :  { %v5454_v11 = vmax.f32 %v5440_v32, 0.0  ;;  %v5453_v51 = vmax.f32 %v5439_v55, 0.0 }
 0xa8e   :  { %v5452_v21 = vmax.f32 %v5438_v6, 0.0 }
 0xa8f   :  { %v5468_v15 = vmul.f32 %v11283_v19, %v5454_v11  ;;  %v5467_v17 = vmul.f32 %v8108_v9, %v5453_v51 }
 0xa90   :  { %v5466_v10 = vmul.f32 %v8111_v27, %v5452_v21 }
 0xa91   :  { %v5476_v31 = vpack.c.bf16 %v5468_v15, %v5468_v15 }
 0xa92   :  { %v5475_v46 = vpack.c.bf16 %v5467_v17, %v5466_v10 }
 0xa94   :  { %5499 = vrot.lane.b32.xlu2 %v5476_v31, %s7408_s18  ;;  %5497 = vrot.lane.b32.xlu0 %v5475_v46, %s7408_s18 }
 0xad5   :  { %v5488_v58 = vpop.permute.xlu2 %5487 }
 0xad6   :  { %v5502_v29 = vrot.slane %v5488_v58, 4 }
 0xae6   :  { %v5490_v50 = vpop.permute.xlu2 %5489 }
 0xae7   :  { %v5503_v60 = vrot.slane %v5490_v50, 4 }
 0xae9   :  { %v5512_v54 = vsel %vm11408_vm1, %v5502_v29, %v5503_v60 }
 0xaea   :  { %v10032_v45 = vsel %vm11409_vm9, %v5512_v54, %v5490_v50  ;;  %vm11420_vm9 = vmmov %vm11412_vm0 }
 0xaeb   :  { %5549 = vst [vmem:[#allocation4 + $0x10] sm:$0xff] %v10032_v45  ;;  %v5573_v1 = vrot.slane %v10032_v45, 7 }
 0xaee   :  { %v5486_v40 = vpop.permute.xlu1 %5485  ;;  %v5500_v5 = vpop.permute.xlu2 %5499 }
 0xaef   :  { %v5501_v44 = vrot.slane %v5486_v40, 4  ;;  %v5508_v21 = vrot.slane %v5500_v5, 4 }
 0xaf1   :  { %v5509_v13 = vsel %vm11410_vm11, %v5501_v44, %v5486_v40  ;;  %v5510_v61 = vsel %vm11411_vm12, %v5501_v44, %v5502_v29  ;;  %vm11425_vm11 = vnez %v11337_v57  ;;  %vm11426_vm12 = vmmov %vm11408_vm1 }
 0xaf2   :  { %v10038_v52 = vsel %vm11412_vm0, %v5510_v61, %v5488_v58  ;;  %5531 = vst.msk [vmem:[#allocation3] sm:$0xff] %vm8130_vm10, %v5509_v13  ;;  %vm11416_vm10 = vmmov %vm11408_vm1  ;;  %v5581_v13 = vrot.slane %v5573_v1, 4 }
 0xaf3   :  { %5548 = vst [vmem:[#allocation4 + $0x8] sm:$0xff] %v10038_v52  ;;  %v5658_v55 = vrot.slane %v10038_v52, 6  ;;  %v5572_v29 = vrot.slane %v10038_v52, 7  ;;  %v5659_v52 = vrot.slane %v10032_v45, 6 }
 0xaf5   :  { %v5664_v17 = vrot.slane %v5658_v55, 4  ;;  %v5578_v18 = vrot.slane %v5572_v29, 4 }
 0xaf6   :  { %v5496_v30 = vpop.permute.xlu1 %5495  ;;  %v5494_v2 = vpop.permute.xlu0 %5493 }
 0xaf7   :  { %v5506_v26 = vrot.slane %v5496_v30, 4  ;;  %v5505_v0 = vrot.slane %v5494_v2, 4 }
 0xaf9   :  { %v5539_v16 = vld [vmem:[#allocation3] sm:$0xff]  ;;  %v5516_v22 = vsel %vm11413_vm5, %v5505_v0, %v5494_v2  ;;  %v5517_v36 = vsel %vm11414_vm3, %v5505_v0, %v5506_v26  ;;  %vm11429_vm3 = vcmask 785408  }
 0xafa   :  { %5547 = vst [vmem:[#allocation4] sm:$0xff] %v5539_v16  ;;  %v5518_v39 = vsel %vm11415_vm7, %v5517_v36, %v5496_v30  ;;  %v5657_v43 = vrot.slane %v5539_v16, 6  ;;  %v5571_v7 = vrot.slane %v5539_v16, 7  ;;  %vm11430_vm7 = vmmov %vm11429_vm3 }
 0xafb   :  { %5535 = vst.msk [vmem:[#allocation3 + $0x20] sm:$0x11] %vm8138_vm4, %v5516_v22  ;;  %vm11418_vm4 = vmmov %vm11408_vm1 }
 0xafc   :  { %5536 = vst [vmem:[#allocation3 + $0x28] sm:$0x11] %v5518_v39  ;;  %5673 = vrot.lane.b32.xlu2 %v5657_v43, %s7399_s23  ;;  %5587 = vrot.lane.b32.xlu0 %v5571_v7, %s7398_s22  ;;  %v5661_v37 = vrot.slane %v5657_v43, 4  ;;  %v5575_v38 = vrot.slane %v5571_v7, 4  ;;  %v5667_v7 = vrot.slane %v5659_v52, 4 }
 0xafe   :  { %v5492_v34 = vpop.permute.xlu1 %5491 }
 0xaff   :  { %v5504_v47 = vrot.slane %v5492_v34, 4 }
 0xb01   :  { %v5514_v23 = vsel %vm11416_vm10, %v5503_v60, %v5504_v47 }
 0xb02   :  { %v5543_v42 = vld [vmem:[#allocation3 + $0x20] sm:$0x11]  ;;  %v5515_v33 = vsel %vm11417_vm8, %v5514_v23, %v5492_v34 }
 0xb03   :  { %v5645_v53 = vld [vmem:[#allocation3 + $0x20] sm:$0x11]  ;;  %v5544_v8 = vld [vmem:[#allocation3 + $0x28] sm:$0x11]  ;;  %5551 = vst [vmem:[#allocation4 + $0x20] sm:$0x11] %v5543_v42 }
 0xb04   :  { %v5559_v48 = vld [vmem:[#allocation3 + $0x20] sm:$0x11]  ;;  %v5662_v20 = vrot.slane %v5645_v53, 6  ;;  %5552 = vst [vmem:[#allocation4 + $0x28] sm:$0x11] %v5544_v8  ;;  %5591 = vrot.lane.b32.xlu2 %v5573_v1, %s7398_s22 }
 0xb05   :  { %v5576_v41 = vrot.slane %v5559_v48, 7  ;;  %v5646_v56 = vld [vmem:[#allocation3 + $0x28] sm:$0x11]  ;;  %5534 = vst.msk [vmem:[#allocation3 + $0x18] sm:$0xff] %vm11019_vm15, %v5515_v33  ;;  %vm11419_vm15 = vmmov %vm11412_vm0 }
 0xb06   :  { %v5663_v32 = vsel %vm8157_vm2, %v5661_v37, %v5662_v20  ;;  %v5498_v11 = vpop.permute.xlu0 %5497  ;;  %v5665_v15 = vrot.slane %v5646_v56, 6  ;;  %v5560_v60 = vld [vmem:[#allocation3 + $0x28] sm:$0x11]  ;;  %vm11427_vm0 = vmmov %vm11408_vm1 }
 0xb07   :  { %v5577_v6 = vsel %vm8163_vm13, %v5575_v38, %v5576_v41  ;;  %5681 = vrot.lane.b32.xlu1 %v5663_v32, %s7399_s23  ;;  %v5507_v51 = vrot.slane %v5498_v11, 4  ;;  %v5579_v54 = vrot.slane %v5560_v60, 7  ;;  %vm11428_vm5 = vmmov %vm11427_vm0 }
 0xb08   :  { %5595 = vrot.lane.b32.xlu0 %v5577_v6, %s7398_s22  ;;  %v5666_v58 = vsel %vm8157_vm2, %v5664_v17, %v5665_v15  ;;  %vm11432_vm8 = vmmov %vm11427_vm0 }
 0xb09   :  { %v5519_v10 = vsel %vm11418_vm4, %v5506_v26, %v5507_v51  ;;  %v5521_v25 = vsel %vm11408_vm1, %v5507_v51, %v5508_v21  ;;  %v5580_v24 = vsel %vm8163_vm13, %v5578_v18, %v5579_v54  ;;  %vm11433_vm4 = vmmov %vm11427_vm0 }
 0xb0a   :  { %v5520_v31 = vsel %vm11419_vm15, %v5519_v10, %v5498_v11  ;;  %v5522_v46 = vsel %vm11420_vm9, %v5521_v25, %v5500_v5  ;;  %vm11435_vm15 = vmmov %vm11429_vm3 }
 0xb0b   :  { %5537 = vst [vmem:[#allocation3 + $0x30] sm:$0x11] %v5520_v31  ;;  %vm11436_vm9 = vmmov %vm11429_vm3 }
 0xb0c   :  { %v5542_v50 = vld [vmem:[#allocation3 + $0x18] sm:$0xff]  ;;  %5538 = vst.msk [vmem:[#allocation3 + $0x38] sm:$0x11] %vm11311_vm6, %v5522_v46  ;;  %5683 = vrot.lane.b32.xlu2 %v5666_v58, %s7399_s23  ;;  %vm11421_vm6 = vnez %v11312_v12 }
 0xb0d   :  { %5550 = vst.msk [vmem:[#allocation4 + $0x18] sm:$0xff] %vm11024_vm14, %v5542_v50  ;;  %v5574_v16 = vrot.slane %v5542_v50, 7  ;;  %v5660_v12 = vrot.slane %v5542_v50, 6 }
 0xb0f   :  { %5589 = vrot.lane.b32.xlu1 %v5572_v29, %s7398_s22  ;;  %v5584_v43 = vrot.slane %v5574_v16, 4  ;;  %v5670_v34 = vrot.slane %v5660_v12, 4 }
 0xb10   :  { %5675 = vrot.lane.b32.xlu0 %v5658_v55, %s7399_s23 }
 0xb12   :  { %v5545_v40 = vld [vmem:[#allocation3 + $0x30] sm:$0x11] }
 0xb13   :  { %v5561_v44 = vld [vmem:[#allocation3 + $0x30] sm:$0x11]  ;;  %v5546_v61 = vld [vmem:[#allocation3 + $0x38] sm:$0x11]  ;;  %5553 = vst [vmem:[#allocation4 + $0x30] sm:$0x11] %v5545_v40 }
 0xb14   :  { %v5582_v30 = vrot.slane %v5561_v44, 7  ;;  %5554 = vst.msk [vmem:[#allocation4 + $0x38] sm:$0x11] %vm11421_vm6, %v5546_v61  ;;  %v5562_v26 = vld [vmem:[#allocation3 + $0x38] sm:$0x11] }
 0xb15   :  { %v5647_v0 = vld [vmem:[#allocation3 + $0x30] sm:$0x11]  ;;  %v5648_v22 = vld [vmem:[#allocation3 + $0x38] sm:$0x11]  ;;  %v5585_v36 = vrot.slane %v5562_v26, 7 }
 0xb16   :  { %v5583_v2 = vsel %vm8163_vm13, %v5581_v13, %v5582_v30  ;;  %v5668_v39 = vrot.slane %v5647_v0, 6  ;;  %v5671_v45 = vrot.slane %v5648_v22, 6  ;;  %v7074_v30 = vld [vmem:[#allocation4] sm:$0xf]  ;;  %v7275_v0 = vld [vmem:[#allocation4 + $0x4] sm:$0xf] }
 0xb17   :  { %5597 = vrot.lane.b32.xlu1 %v5580_v24, %s7398_s22  ;;  %5599 = vrot.lane.b32.xlu2 %v5583_v2, %s7398_s22  ;;  %v5586_v47 = vsel %vm8163_vm13, %v5584_v43, %v5585_v36  ;;  %vm11422_vm13 = vmmov %vm11408_vm1 }
 0xb18   :  { %5677 = vrot.lane.b32.xlu0 %v5659_v52, %s7399_s23  ;;  %v5669_v23 = vsel %vm8157_vm2, %v5667_v7, %v5668_v39  ;;  %v5672_v1 = vsel %vm8157_vm2, %v5670_v34, %v5671_v45  ;;  %vm11423_vm2 = vcmask 523264   ;;  %vm11434_vm1 = vmmov %vm11427_vm0 }
 0xb19   :  { %vm11424_vm14 = vmmov %vm11423_vm2 }
 0xb1a   :  { %vm11431_vm10 = vmmov %vm11423_vm2 }
 0xb1b   :  { %vm11437_vm6 = vmmov %vm11423_vm2 }
 0xb1f   :  { %5685 = vrot.lane.b32.xlu1 %v5669_v23, %s7399_s23  ;;  %5687 = vrot.lane.b32.xlu2 %v5672_v1, %s7399_s23 }
 0xb20   :  { %5601 = vrot.lane.b32.xlu0 %v5586_v47, %s7398_s22 }
 0xb27   :  { %5679 = vrot.lane.b32.xlu1 %v5660_v12, %s7399_s23  ;;  %s7411_s23 = smov 95  }
 0xb28   :  { %5593 = vrot.lane.b32.xlu0 %v5574_v16, %s7398_s22 }
 0xb56   :  { %v5674_v37 = vpop.permute.xlu2 %5673 }
 0xb57   :  { %v5689_v6 = vrot.slane %v5674_v37, 4 }
 0xb5e   :  { %v10098_v38 = vpop.permute.xlu2 %5591 }
 0xb5f   :  { %v5605_v21 = vrot.slane %v10098_v38, 4 }
 0xb66   :  { %v10100_v62 = vpop.permute.xlu2 %5683 }
 0xb67   :  { %v5694_v8 = vrot.slane %v10100_v62, 4 }
 0xb6e   :  { %v5588_v42 = vpop.permute.xlu0 %5587 }
 0xb6f   :  { %v5603_v51 = vrot.slane %v5588_v42, 4 }
 0xb71   :  { %v10102_v33 = vpop.permute.xlu2 %5599 }
 0xb72   :  { %v5609_v60 = vrot.slane %v10102_v33, 4 }
 0xb79   :  { %v5682_v53 = vpop.permute.xlu1 %5681  ;;  %v5688_v20 = vpop.permute.xlu2 %5687 }
 0xb7a   :  { %v5596_v48 = vpop.permute.xlu0 %5595  ;;  %v5693_v63 = vrot.slane %v5682_v53, 4  ;;  %v5696_v41 = vrot.slane %v5688_v20, 4 }
 0xb7b   :  { %v5607_v54 = vrot.slane %v5596_v48, 4 }
 0xb7c   :  { %v5704_v5 = vsel %vm11422_vm13, %v5693_v63, %v5694_v8  ;;  %v5710_v32 = vsel %vm11424_vm14, %v5688_v20, %v5696_v41  ;;  %vm11438_vm13 = vmmov %vm11427_vm0 }
 0xb7d   :  { %v5705_v56 = vsel %vm11423_vm2, %v5682_v53, %v5704_v5  ;;  %5726 = vst.msk [vmem:[#allocation4 + $0x78] sm:$0x77] %vm11425_vm11, %v5710_v32  ;;  %vm11439_vm2 = vmmov %vm11427_vm0 }
 0xb7e   :  { %5723 = vst [vmem:[#allocation4 + $0x60] sm:$0x77] %v5705_v56  ;;  %vm11440_vm14 = vmmov %vm11427_vm0 }
 0xb7f   :  { %vm11441_vm11 = vmmov %vm11429_vm3 }
 0xb81   :  { %v5590_v55 = vpop.permute.xlu1 %5589 }
 0xb82   :  { %v5676_v11 = vpop.permute.xlu0 %5675  ;;  %v5604_v15 = vrot.slane %v5590_v55, 4 }
 0xb83   :  { %v5690_v10 = vrot.slane %v5676_v11, 4 }
 0xb84   :  { %v5611_v25 = vsel %vm11426_vm12, %v5603_v51, %v5604_v15  ;;  %v5613_v17 = vsel %vm11427_vm0, %v5604_v15, %v5605_v21  ;;  %vm11442_vm12 = vmmov %vm11437_vm6  ;;  %v7082_v51 = vld [vmem:[#allocation4 + $0x8] sm:$0xf]  ;;  %v7276_v15 = vld [vmem:[#allocation4 + $0xc] sm:$0xf] }
 0xb85   :  { %v5697_v31 = vsel %vm11428_vm5, %v5689_v6, %v5690_v10  ;;  %v5612_v46 = vsel %vm11429_vm3, %v5588_v42, %v5611_v25  ;;  %v5614_v57 = vsel %vm11430_vm7, %v5590_v55, %v5613_v17  ;;  %v7285_v1 = vld [vmem:[#allocation4 + $0x5c] sm:$0x70]  ;;  %vm11443_vm0 = vmmov %vm11437_vm6 }
 0xb86   :  { %v5698_v58 = vsel %vm11431_vm10, %v5674_v37, %v5697_v31  ;;  %5633 = vst [vmem:[#allocation4 + $0x20] sm:$0xee] %v5612_v46  ;;  %v7108_v37 = vld [vmem:[#allocation4 + $0x60] sm:$0x70]  ;;  %vm11444_vm5 = vmmov %vm11429_vm3  ;;  %vm11445_vm3 = vnez %v11319_v59 }
 0xb87   :  { %5634 = vst [vmem:[#allocation4 + $0x28] sm:$0xee] %v5614_v57  ;;  %vm11446_vm7 = vmmov %vm11434_vm1 }
 0xb88   :  { %5719 = vst [vmem:[#allocation4 + $0x40] sm:$0xcc] %v5698_v58  ;;  %vm11447_vm10 = vmmov %vm11443_vm0 }
 0xb89   :  { %v5598_v50 = vpop.permute.xlu1 %5597 }
 0xb8a   :  { %v5678_v29 = vpop.permute.xlu0 %5677  ;;  %v5608_v40 = vrot.slane %v5598_v50, 4 }
 0xb8b   :  { %v5691_v44 = vrot.slane %v5678_v29, 4 }
 0xb8c   :  { %v5618_v13 = vsel %vm11432_vm8, %v5607_v54, %v5608_v40  ;;  %v5620_v61 = vsel %vm11433_vm4, %v5608_v40, %v5609_v60  ;;  %vm11448_vm8 = vmmov %vm11434_vm1 }
 0xb8d   :  { %v5699_v18 = vsel %vm11434_vm1, %v5690_v10, %v5691_v44  ;;  %v5619_v52 = vsel %vm11435_vm15, %v5596_v48, %v5618_v13  ;;  %v5621_v24 = vsel %vm11436_vm9, %v5598_v50, %v5620_v61  ;;  %v7278_v26 = vld [vmem:[#allocation4 + $0x1c] sm:$0xf0]  ;;  %v7076_v16 = vld [vmem:[#allocation4 + $0x20] sm:$0xf0]  ;;  %vm11449_vm4 = vmmov %vm11443_vm0  ;;  %vm11450_vm1 = vnez %v11341_v35 }
 0xb8e   :  { %v5700_v2 = vsel %vm11437_vm6, %v5676_v11, %v5699_v18  ;;  %5637 = vst [vmem:[#allocation4 + $0x40] sm:$0x33] %v5619_v52  ;;  %v10126_v22 = vor.u32 %v7278_v26, %v7074_v30  ;;  %v10128_v12 = vor.u32 %v7275_v0, %v7076_v16  ;;  %v7279_v56 = vld [vmem:[#allocation4 + $0x24] sm:$0xf0]  ;;  %v7084_v32 = vld [vmem:[#allocation4 + $0x28] sm:$0xf0]  ;;  %vm11451_vm15 = vmmov %vm11444_vm5  ;;  %vm11453_vm6 = vnez %v11322_v28 }
 0xb8f   :  { %5638 = vst [vmem:[#allocation4 + $0x48] sm:$0x33] %v5621_v24  ;;  %vm11452_vm9 = vmmov %vm11444_vm5  ;;  %v10164_v57 = vor.u32 %v7279_v56, %v7082_v51  ;;  %v10166_v58 = vor.u32 %v7276_v15, %v7084_v32  ;;  %v7293_v30 = vld [vmem:[#allocation4 + $0x74] sm:$0x70]  ;;  %v7090_v52 = vld [vmem:[#allocation4 + $0x10] sm:$0xf] }
 0xb90   :  { %5720 = vst [vmem:[#allocation4 + $0x48] sm:$0xcc] %v5700_v2  ;;  %5820 = vrot.lane.b32.xlu0 %v10126_v22, %s7401_s8  ;;  %5822 = vrot.lane.b32.xlu1 %v10128_v12, %s7401_s8  ;;  %v7277_v26 = vld [vmem:[#allocation4 + $0x14] sm:$0xf] }
 0xb91   :  { %v5686_v36 = vpop.permute.xlu1 %5685  ;;  %v11458_v51 = vld [vmem:[#allocation27_spill] sm:$0xff] }
 0xb92   :  { %v5602_v39 = vpop.permute.xlu0 %5601  ;;  %v5695_v45 = vrot.slane %v5686_v36, 4  ;;  %v3251_v15 = vunpack.c.l.bf16 %v11458_v51 }
 0xb93   :  { %v5610_v43 = vrot.slane %v5602_v39, 4 }
 0xb94   :  { %v5706_v7 = vsel %vm11438_vm13, %v5694_v8, %v5695_v45  ;;  %v5708_v34 = vsel %vm11439_vm2, %v5695_v45, %v5696_v41  ;;  %v7290_v45 = vld [vmem:[#allocation4 + $0x1c] sm:$0xf]  ;;  %vm11463_vm13 = vcmask 1039360   ;;  %vm11464_vm2 = vcmask 1046528  }
 0xb95   :  { %v5622_v47 = vsel %vm11440_vm14, %v5609_v60, %v5610_v43  ;;  %v5624_v23 = vsel %vm11441_vm11, %v5602_v39, %v5610_v43  ;;  %v5707_v42 = vsel %vm11442_vm12, %v10100_v62, %v5706_v7  ;;  %v5709_v53 = vsel %vm11443_vm0, %v5686_v36, %v5708_v34  ;;  %v7106_v8 = vld [vmem:[#allocation4 + $0x40] sm:$0xf]  ;;  %v7282_v63 = vld [vmem:[#allocation4 + $0x44] sm:$0xf]  ;;  %v7132_v43 = vld [vmem:[#allocation4 + $0x78] sm:$0x70] }
 0xb96   :  { %v5623_v48 = vsel %vm11444_vm5, %v10102_v33, %v5622_v47  ;;  %5640 = vst.msk [vmem:[#allocation4 + $0x58] sm:$0x33] %vm11445_vm3, %v5624_v23  ;;  %v10145_v20 = vor.u32 %v7285_v1, %v7106_v8  ;;  %v10147_v41 = vor.u32 %v7282_v63, %v7108_v37  ;;  %v7098_v47 = vld [vmem:[#allocation4 + $0x18] sm:$0xf]  ;;  %v7410_v1 = vmov 2   ;;  %vm11465_vm14 = vmmov %vm11463_vm13 }
 0xb97   :  { %5724 = vst [vmem:[#allocation4 + $0x68] sm:$0x77] %v5707_v42  ;;  %v7283_v31 = vld [vmem:[#allocation4 + $0x4c] sm:$0xf]  ;;  %7316 = vset.pattern.permute.xlu1 %v7410_v1  ;;  %7315 = vset.pattern.permute.xlu0 %v7410_v1  ;;  %v3200_v37 = vld [vmem:[%s10666_s4 + $0x8] sm:$0x3]  ;;  %vm11466_vm11 = vmmov %vm11464_vm2 }
 0xb98   :  { %5725 = vst [vmem:[#allocation4 + $0x70] sm:$0x77] %v5709_v53  ;;  %5836 = vrot.lane.b32.xlu1 %v10145_v20, %s7401_s8  ;;  %5838 = vrot.lane.b32.xlu2 %v10147_v41, %s7401_s8  ;;  %v11454_v42 = vld [vmem:[#allocation33_spill] sm:$0xff]  ;;  %v11455_v53 = vld [vmem:[#allocation46_spill] sm:$0xff]  ;;  %v11456_v63 = vld [vmem:[#allocation48_spill] sm:$0xff]  ;;  %vm11470_vm3 = vcmask 244736  }
 0xb99   :  { %5639 = vst [vmem:[#allocation4 + $0x50] sm:$0x33] %v5623_v48  ;;  %v5680_v62 = vpop.permute.xlu1 %5679  ;;  %7357 = vset.pattern.permute.xlu2 %v7410_v1  ;;  %v3247_v48 = vunpack.c.l.bf16 %v11455_v53  ;;  %v3248_v8 = vunpack.c.h.bf16 %v11455_v53  ;;  %vm11467_vm12 = vmmov %vm11463_vm13 }
 0xb9a   :  { %v5594_v33 = vpop.permute.xlu0 %5593  ;;  %v5692_v5 = vrot.slane %v5680_v62, 4  ;;  %vm11468_vm0 = vmmov %vm11467_vm12 }
 0xb9b   :  { %v5606_v59 = vrot.slane %v5594_v33, 4  ;;  %v7317_v32 = vpack.i.bf16 %v3248_v8, %v3247_v48  ;;  %vm11469_vm5 = vmmov %vm11468_vm0 }
 0xb9c   :  { %v5701_v6 = vsel %vm11446_vm7, %v5691_v44, %v5692_v5  ;;  %v5703_v55 = vsel %vm11447_vm10, %v5680_v62, %v5692_v5  ;;  %v3249_v62 = vunpack.c.l.bf16 %v11456_v63  ;;  %v11457_v5 = vld [vmem:[#allocation26_spill] sm:$0xff]  ;;  %vm11471_vm7 = vmmov %vm11464_vm2 }
 0xb9d   :  { %v5615_v11 = vsel %vm11448_vm8, %v5605_v21, %v5606_v59  ;;  %v5702_v10 = vsel %vm11449_vm4, %v5678_v29, %v5701_v6  ;;  %5722 = vst.msk [vmem:[#allocation4 + $0x58] sm:$0xcc] %vm11450_vm1, %v5703_v55  ;;  %v5617_v17 = vsel %vm11452_vm9, %v5594_v33, %v5606_v59  ;;  %v3250_v33 = vunpack.c.h.bf16 %v11456_v63  ;;  %v6376_v63 = vld [vmem:[#allocation2 + $0x8] sm:$0xff]  ;;  %vm11472_vm10 = vmmov %vm11470_vm3 }
 0xb9e   :  { %v5616_v25 = vsel %vm11451_vm15, %v10098_v38, %v5615_v11  ;;  %v7116_v46 = vld [vmem:[#allocation4 + $0x68] sm:$0x70]  ;;  %5721 = vst [vmem:[#allocation4 + $0x50] sm:$0xcc] %v5702_v10  ;;  %v7286_v35 = vld [vmem:[#allocation4 + $0x64] sm:$0x70]  ;;  %v3253_v59 = vunpack.c.l.bf16 %v11457_v5  ;;  %v3254_v56 = vunpack.c.h.bf16 %v11457_v5  ;;  %v3252_v10 = vunpack.c.h.bf16 %v11458_v51  ;;  %vm11473_vm8 = vmmov %vm11468_vm0 }
 0xb9f   :  { %v10168_v21 = vor.u32 %v7283_v31, %v7116_v46  ;;  %5635 = vst [vmem:[#allocation4 + $0x30] sm:$0xee] %v5616_v25  ;;  %v7114_v38 = vld [vmem:[#allocation4 + $0x48] sm:$0xf]  ;;  %v7287_v50 = vld [vmem:[#allocation4 + $0x6c] sm:$0x70]  ;;  %v7322_v6 = vpack.i.bf16 %v3250_v33, %v3249_v62  ;;  %vm11474_vm4 = vmmov %vm11468_vm0 }
 0xba0   :  { %5636 = vst.msk [vmem:[#allocation4 + $0x38] sm:$0xee] %vm11453_vm6, %v5617_v17  ;;  %5824 = vrot.lane.b32.xlu1 %v10164_v57, %s7401_s8  ;;  %5826 = vrot.lane.b32.xlu2 %v10166_v58, %s7401_s8  ;;  %v7124_v54 = vld [vmem:[#allocation4 + $0x70] sm:$0x70]  ;;  %v10178_v40 = vor.u32 %v7286_v35, %v7114_v38  ;;  %v7332_v55 = vpack.i.bf16 %v3254_v56, %v3253_v59  ;;  %v6378_v62 = vld [vmem:[#allocation2 + $0x18] sm:$0xff]  ;;  %v6385_v56 = vunpack.c.l.bf16 %v6376_v63  ;;  %vm11475_vm1 = vmmov %vm11468_vm0 }
 0xba1   :  { %5842 = vrot.lane.b32.xlu0 %v10168_v21, %s7401_s8  ;;  %v11459_v25 = vld [vmem:[#allocation47_spill] sm:$0xff]  ;;  %v6380_v33 = vld [vmem:[#allocation2 + $0x28] sm:$0x11]  ;;  %vm11476_vm15 = vmmov %vm11464_vm2 }
 0xba2   :  { %v3255_v17 = vunpack.c.l.bf16 %v11459_v25  ;;  %v3256_v31 = vunpack.c.h.bf16 %v11459_v25  ;;  %v11460_v46 = vld [vmem:[#allocation31_spill] sm:$0xff]  ;;  %v6394_v25 = vunpack.c.h.bf16 %v6380_v33  ;;  %vm11477_vm9 = vmmov %vm11464_vm2 }
 0xba3   :  { %v3259_v35 = vunpack.c.l.bf16 %v11460_v46  ;;  %v3260_v38 = vunpack.c.h.bf16 %v11460_v46  ;;  %vm11478_vm6 = vmmov %vm11470_vm3 }
 0xba4   :  { %v7130_v13 = vld [vmem:[#allocation4 + $0x58] sm:$0xf]  ;;  %v7292_v36 = vld [vmem:[#allocation4 + $0x5c] sm:$0xf] }
 0xba5   :  { %v7122_v29 = vld [vmem:[#allocation4 + $0x50] sm:$0xf]  ;;  %v7284_v60 = vld [vmem:[#allocation4 + $0x54] sm:$0xf]  ;;  %v7131_v24 = vor.u32 %v7293_v30, %v7130_v13  ;;  %v7135_v34 = vor.u32 %v7292_v36, %v7132_v43  ;;  %v11461_v13 = vld [vmem:[#allocation28_spill] sm:$0xff] }
 0xba6   :  { %v10180_v44 = vor.u32 %v7287_v50, %v7122_v29  ;;  %v10182_v28 = vor.u32 %v7284_v60, %v7124_v54  ;;  %v7280_v61 = vld [vmem:[#allocation4 + $0x2c] sm:$0xf0]  ;;  %v7092_v18 = vld [vmem:[#allocation4 + $0x30] sm:$0xf0]  ;;  %v7327_v50 = vpack.i.bf16 %v3252_v10, %v3251_v15  ;;  %v7337_v29 = vpack.i.bf16 %v3256_v31, %v3255_v17  ;;  %v11462_v30 = vld [vmem:[#allocation30_spill] sm:$0xff] }
 0xba7   :  { %v10190_v2 = vor.u32 %v7280_v61, %v7090_v52  ;;  %v10192_v0 = vor.u32 %v7277_v26, %v7092_v18  ;;  %v7100_v16 = vld [vmem:[#allocation4 + $0x38] sm:$0xf0]  ;;  %v7291_v39 = vld [vmem:[#allocation4 + $0x34] sm:$0xf0]  ;;  %v7347_v60 = vpack.i.bf16 %v3260_v38, %v3259_v35  ;;  %v3257_v61 = vunpack.c.l.bf16 %v11461_v13  ;;  %v6336_v36 = vld [vmem:[%s10666_s4 + $0x8] sm:$0x3] }
 0xba8   :  { %5840 = vrot.lane.b32.xlu2 %v10178_v40, %s7401_s8  ;;  %5846 = vrot.lane.b32.xlu1 %v10182_v28, %s7401_s8  ;;  %v7103_v7 = vor.u32 %v7290_v45, %v7100_v16  ;;  %v7099_v23 = vor.u32 %v7291_v39, %v7098_v47  ;;  %v3258_v18 = vunpack.c.h.bf16 %v11461_v13  ;;  %v3261_v52 = vunpack.c.l.bf16 %v11462_v30  ;;  %v6375_v39 = vld [vmem:[#allocation2] sm:$0xff]  ;;  %v6377_v45 = vld [vmem:[#allocation2 + $0x10] sm:$0xff] }
 0xba9   :  { %5844 = vrot.lane.b32.xlu0 %v10180_v44, %s7401_s8  ;;  %v6384_v47 = vunpack.c.h.bf16 %v6375_v39  ;;  %v6387_v1 = vunpack.c.l.bf16 %v6377_v45  ;;  %v6393_v10 = vunpack.c.l.bf16 %v6380_v33  ;;  %v7289_v31 = vld [vmem:[%s10668_s3 + $0x8] sm:$0x10] }
 0xbaa   :  { %v7342_v26 = vpack.i.bf16 %v3258_v18, %v3257_v61 }
 0xbab   :  { %v7383_v38 = vpack.i.bf16 %v6394_v25, %v6393_v10 }
 0xbb0   :  { %5848 = vrot.lane.b32.xlu1 %v7131_v24, %s7401_s8  ;;  %5828 = vrot.lane.b32.xlu2 %v10190_v2, %s7401_s8 }
 0xbb1   :  { %5830 = vrot.lane.b32.xlu0 %v10192_v0, %s7401_s8 }
 0xbb8   :  { %5834 = vrot.lane.b32.xlu1 %v7103_v7, %s7401_s8  ;;  %5850 = vrot.lane.b32.xlu2 %v7135_v34, %s7401_s8 }
 0xbb9   :  { %5832 = vrot.lane.b32.xlu0 %v7099_v23, %s7401_s8 }
 0xbc0   :  { %6146 = vrot.lane.b32.xlu1 %v10126_v22, %s7402_s9  ;;  %6162 = vrot.lane.b32.xlu2 %v10145_v20, %s7402_s9 }
 0xbc1   :  { %6164 = vrot.lane.b32.xlu0 %v10147_v41, %s7402_s9 }
 0xbc8   :  { %6168 = vrot.lane.b32.xlu1 %v10168_v21, %s7402_s9  ;;  %6148 = vrot.lane.b32.xlu2 %v10128_v12, %s7402_s9 }
 0xbc9   :  { %6152 = vrot.lane.b32.xlu0 %v10166_v58, %s7402_s9 }
 0xbd0   :  { %6170 = vrot.lane.b32.xlu1 %v10180_v44, %s7402_s9  ;;  %6150 = vrot.lane.b32.xlu2 %v10164_v57, %s7402_s9 }
 0xbd1   :  { %6166 = vrot.lane.b32.xlu0 %v10178_v40, %s7402_s9 }
 0xbd8   :  { %6172 = vrot.lane.b32.xlu2 %v10182_v28, %s7402_s9  ;;  %6156 = vrot.lane.b32.xlu1 %v10192_v0, %s7402_s9 }
 0xbd9   :  { %6154 = vrot.lane.b32.xlu0 %v10190_v2, %s7402_s9 }
 0xbe0   :  { %6174 = vrot.lane.b32.xlu2 %v7131_v24, %s7402_s9  ;;  %6158 = vrot.lane.b32.xlu1 %v7099_v23, %s7402_s9  ;;  %v3262_v24 = vunpack.c.h.bf16 %v11462_v30 }
 0xbe1   :  { %6176 = vrot.lane.b32.xlu0 %v7135_v34, %s7402_s9  ;;  %v6383_v34 = vunpack.c.l.bf16 %v6375_v39 }
 0xbe2   :  { %v7352_v16 = vpack.i.bf16 %v3262_v24, %v3261_v52 }
 0xbe3   :  { %v7358_v48 = vpack.i.bf16 %v6384_v47, %v6383_v34  ;;  %v6382_v47 = vld [vmem:[#allocation2 + $0x38] sm:$0x11] }
 0xbe8   :  { %6160 = vrot.lane.b32.xlu2 %v7103_v7, %s7402_s9  ;;  %3208 = vperm.xlu1 %7316, %v3200_v37   ;;  %v6388_v37 = vunpack.c.h.bf16 %v6377_v45 }
 0xbe9   :  { %3203 = vperm.xlu0 %7315, %v11454_v42  }
 0xbea   :  { %v7368_v8 = vpack.i.bf16 %v6388_v37, %v6387_v1  ;;  %v6397_v1 = vunpack.c.l.bf16 %v6382_v47  ;;  %v6398_v37 = vunpack.c.h.bf16 %v6382_v47 }
 0xbec   :  { %v7393_v33 = vpack.i.bf16 %v6398_v37, %v6397_v1 }
 0xbf0   :  { %7318 = vrot.lane.b32.xlu2 %v7317_v32, %s7411_s23  ;;  %7323 = vrot.lane.b32.xlu1 %v7322_v6, %s7411_s23  ;;  %v6386_v32 = vunpack.c.h.bf16 %v6376_v63  ;;  %v6389_v6 = vunpack.c.l.bf16 %v6378_v62 }
 0xbf1   :  { %7333 = vrot.lane.b32.xlu0 %v7332_v55, %s7411_s23  ;;  %v6390_v55 = vunpack.c.h.bf16 %v6378_v62 }
 0xbf2   :  { %v5839_v11 = vpop.permute.xlu2 %5838  ;;  %v7363_v46 = vpack.i.bf16 %v6386_v32, %v6385_v56 }
 0xbf3   :  { %v7373_v35 = vpack.i.bf16 %v6390_v55, %v6389_v6  ;;  %v6021_v6 = vsel %vm11464_vm2, %v10145_v20, 0 }
 0xbf8   :  { %7328 = vrot.lane.b32.xlu2 %v7327_v50, %s7411_s23  ;;  %7338 = vrot.lane.b32.xlu1 %v7337_v29, %s7411_s23  ;;  %v6379_v50 = vld [vmem:[#allocation2 + $0x20] sm:$0x11]  ;;  %v6381_v29 = vld [vmem:[#allocation2 + $0x30] sm:$0x11] }
 0xbf9   :  { %7348 = vrot.lane.b32.xlu0 %v7347_v60, %s7411_s23  ;;  %v6391_v18 = vunpack.c.l.bf16 %v6379_v50  ;;  %v6392_v30 = vunpack.c.h.bf16 %v6379_v50  ;;  %v6395_v52 = vunpack.c.l.bf16 %v6381_v29  ;;  %v6396_v24 = vunpack.c.h.bf16 %v6381_v29  ;;  %v7274_v50 = vld [vmem:[%s10668_s3] sm:$0x10] }
 0xbfa   :  { %v10252_v54 = vpop.permute.xlu2 %5826 }
 0xbfb   :  { %v7378_v45 = vpack.i.bf16 %v6392_v30, %v6391_v18  ;;  %v7388_v34 = vpack.i.bf16 %v6396_v24, %v6395_v52  ;;  %v7149_v18 = vld [vmem:[#allocation4 + $0x18] sm:$0xf] }
 0xc00   :  { %7343 = vrot.lane.b32.xlu2 %v7342_v26, %s7411_s23  ;;  %7353 = vrot.lane.b32.xlu1 %v7352_v16, %s7411_s23 }
 0xc01   :  { %6344 = vperm.xlu0 %7315, %v6336_v36  }
 0xc02   :  { %v5823_v43 = vpop.permute.xlu1 %5822  ;;  %v5841_v7 = vpop.permute.xlu2 %5840 }
 0xc03   :  { %v5860_v23 = vsel %vm11463_vm13, %v5839_v11, %v5841_v7  ;;  %v5821_v51 = vpop.permute.xlu0 %5820  ;;  %vm11479_vm13 = vmmov %vm11468_vm0 }
 0xc04   :  { %v5880_v53 = vsel %vm11464_vm2, %v5860_v23, 0 }
 0xc05   :  { %5917 = vmatpush.bf16.msrb.mxu2 %v5880_v53 }
 0xc08   :  { %6339 = vperm.xlu2 %7357, %v11454_v42   ;;  %7359 = vrot.lane.b32.xlu1 %v7358_v48, %s7411_s23  ;;  %v7070_v42 = vld [vmem:[%s10668_s3 + $0x8] sm:$0xf] }
 0xc09   :  { %7369 = vrot.lane.b32.xlu0 %v7368_v8, %s7411_s23  ;;  %v10281_v60 = vor.u32 %v7289_v31, %v7070_v42 }
 0xc0a   :  { %v5837_v5 = vpop.permute.xlu1 %5836  ;;  %v10268_v59 = vpop.permute.xlu2 %5828 }
 0xc0b   :  { %v5859_v15 = vsel %vm11465_vm14, %v5837_v5, %v5839_v11  ;;  %v5852_v11 = vsel %vm11467_vm12, %v5821_v51, %v5823_v43  ;;  %v5855_v5 = vsel %vm11479_vm13, %v10252_v54, %v10268_v59  ;;  %vm11480_vm14 = vmmov %vm11468_vm0 }
 0xc0c   :  { %v5877_v17 = vsel %vm11466_vm11, %v5859_v15, 0  ;;  %vm11481_vm11 = vmmov %vm11468_vm0 }
 0xc0d   :  { %5903 = vmatpush.bf16.msrb.mxu1 %v5877_v17  ;;  %vm11482_vm12 = vmmov %vm11464_vm2 }
 0xc0e   :  { %vm11492_vm13 = vmmov %vm11470_vm3 }
 0xc10   :  { %7364 = vrot.lane.b32.xlu2 %v7363_v46, %s7411_s23  ;;  %7374 = vrot.lane.b32.xlu1 %v7373_v35, %s7411_s23 }
 0xc11   :  { %7384 = vrot.lane.b32.xlu0 %v7383_v38, %s7411_s23  ;;  %5904 = vmatpush.bf16.msrb.mxu1 %v5852_v11  ;;  %v7288_v38 = vld [vmem:[#allocation4 + $0x74] sm:$0x70] }
 0xc12   :  { %v5825_v13 = vpop.permute.xlu1 %5824  ;;  %v5851_v61 = vpop.permute.xlu2 %5850 }
 0xc13   :  { %v5843_v26 = vpop.permute.xlu0 %5842  ;;  %v5853_v16 = vsel %vm11468_vm0, %v5823_v43, %v5825_v13  ;;  %v5854_v43 = vsel %vm11473_vm8, %v5825_v13, %v10252_v54  ;;  %vm11483_vm0 = vmmov %vm11464_vm2  ;;  %v7281_v13 = vld [vmem:[#allocation4 + $0x34] sm:$0xf0] }
 0xc14   :  { %v5861_v36 = vsel %vm11469_vm5, %v5841_v7, %v5843_v26  ;;  %5918 = vmatpush.bf16.msrb.mxu2 %v5853_v16  ;;  %7136 = vmatmul.msk.bf16.vlgmr.msrb.gmra.mxu1 %vm11470_vm3, %v10281_v60  ;;  %vm11484_vm5 = vmmov %vm11475_vm1 }
 0xc15   :  { %v5883_v39 = vsel %vm11471_vm7, %v5861_v36, 0  ;;  %vm11485_vm7 = vmmov %vm11483_vm0 }
 0xc16   :  { %5931 = vmatpush.bf16.msrb.mxu3 %v5883_v39  ;;  %v6024_v20 = vsel %vm11485_vm7, %v10147_v41, 0  ;;  %vm11487_vm8 = vmmov %vm11470_vm3  ;;  %v7153_v41 = vld [vmem:[#allocation4 + $0x58] sm:$0xf] }
 0xc17   :  { %7137 = vmatmul.msk.bf16.vlgmr.msrb.gmra.mxu2 %vm11472_vm10, %v10281_v60  ;;  %vm11486_vm10 = vmmov %vm11483_vm0 }
 0xc18   :  { %7379 = vrot.lane.b32.xlu2 %v7378_v45, %s7411_s23  ;;  %7389 = vrot.lane.b32.xlu1 %v7388_v34, %s7411_s23  ;;  %v6033_v17 = vsel %vm11486_vm10, %v10180_v44, 0  ;;  %vm11493_vm2 = vmmov %vm11470_vm3 }
 0xc1a   :  { %5932 = vmatpush.bf16.msrb.mxu3 %v5854_v43  ;;  %v5847_v7 = vpop.permute.xlu1 %5846  ;;  %v10295_v23 = vpop.permute.xlu2 %6162 }
 0xc1b   :  { %v5845_v53 = vpop.permute.xlu0 %5844 }
 0xc1c   :  { %v5862_v48 = vsel %vm11474_vm4, %v5843_v26, %v5845_v53  ;;  %v5863_v8 = vsel %vm11475_vm1, %v5845_v53, %v5847_v7  ;;  %vm11488_vm4 = vmmov %vm11483_vm0 }
 0xc1d   :  { %v5886_v63 = vsel %vm11476_vm15, %v5862_v48, 0  ;;  %v5889_v62 = vsel %vm11477_vm9, %v5863_v8, 0  ;;  %7138 = vmatmul.msk.bf16.vlgmr.msrb.gmra.mxu3 %vm11478_vm6, %v10281_v60  ;;  %v6036_v31 = vsel %vm11488_vm4, %v10182_v28, 0  ;;  %vm11489_vm15 = vmmov %vm11475_vm1  ;;  %v7154_v28 = vor.u32 %v7288_v38, %v7153_v41  ;;  %v11528_v41 = vld [vmem:[#allocation7_spill] sm:$0xff] }
 0xc1e   :  { %5945 = vmatpush.bf16.msra.mxu0 %v5886_v63  ;;  %5959 = vmatpush.bf16.msra.mxu1 %v5889_v62  ;;  %vm11490_vm9 = vmmov %vm11483_vm0 }
 0xc1f   :  { %v6027_v35 = vsel %vm11490_vm9, %v10178_v40, 0  ;;  %vm11491_vm6 = vmmov %vm11483_vm0 }
 0xc20   :  { %7394 = vrot.lane.b32.xlu2 %v7393_v33, %s7411_s23  ;;  %v7166_v33 = vld [vmem:[%s10668_s3 + $0x10] sm:$0xf] }
 0xc22   :  { %5946 = vmatpush.bf16.msra.mxu0 %v5855_v5  ;;  %v5849_v56 = vpop.permute.xlu1 %5848  ;;  %v10307_v32 = vpop.permute.xlu2 %6148  ;;  %v7294_v5 = vld [vmem:[%s10668_s3 + $0x10] sm:$0x10] }
 0xc23   :  { %v5864_v55 = vsel %vm11480_vm14, %v5847_v7, %v5849_v56  ;;  %v5865_v51 = vsel %vm11481_vm11, %v5849_v56, %v5851_v61  ;;  %v5831_v15 = vpop.permute.xlu0 %5830  ;;  %vm11494_vm14 = vmmov %vm11483_vm0  ;;  %vm11495_vm11 = vcmask 1031168  }
 0xc24   :  { %v5892_v10 = vsel %vm11482_vm12, %v5864_v55, 0  ;;  %v5895_v25 = vsel %vm11483_vm0, %v5865_v51, 0  ;;  %v5856_v54 = vsel %vm11484_vm5, %v10268_v59, %v5831_v15  ;;  %v6039_v11 = vsel %vm11494_vm14, %v7154_v28, 0  ;;  %vm11496_vm12 = vmmov %vm11483_vm0  ;;  %v11532_v28 = vld [vmem:[#allocation5_spill] sm:$0xff] }
 0xc25   :  { %7139 = vmatmul.msk.bf16.vlgmr.msra.gmra.mxu0 %vm11470_vm3, %v10281_v60  ;;  %5960 = vmatpush.bf16.msra.mxu1 %v5856_v54  ;;  %vm11497_vm0 = vmmov %vm11493_vm2  ;;  %v10388_v55 = vor.u32 %v7294_v5, %v7166_v33  ;;  %v11548_v5 = vld [vmem:[#allocation43_spill] sm:$0xff] }
 0xc26   :  { %6047 = vmatpush.bf16.msrb.mxu0 %v6021_v6  ;;  %5973 = vmatpush.bf16.msra.mxu2 %v5892_v10  ;;  %vm11498_vm5 = vmmov %vm11497_vm0 }
 0xc27   :  { %5987 = vmatpush.bf16.msra.mxu3 %v5895_v25  ;;  %vm11499_vm3 = vmmov %vm11495_vm11 }
 0xc28   :  { %7140 = vmatmul.msk.bf16.vlgmr.msra.gmra.mxu1 %vm11487_vm8, %v10281_v60  ;;  %vm11500_vm7 = vmmov %vm11497_vm0 }
 0xc29   :  { %6061 = vmatpush.bf16.msrb.mxu1 %v6024_v20  ;;  %vm11501_vm10 = vmmov %vm11497_vm0 }
 0xc2a   :  { %6048 = vmatpush.bf16.msrb.mxu0 %v10126_v22  ;;  %v5835_v59 = vpop.permute.xlu1 %5834  ;;  %v10326_v42 = vpop.permute.xlu2 %6150  ;;  %vm11502_vm8 = vmmov %vm11499_vm3 }
 0xc2b   :  { %v5833_v46 = vpop.permute.xlu0 %5832  ;;  %vm11503_vm4 = vmmov %vm11499_vm3 }
 0xc2c   :  { %v5857_v22 = vsel %vm11475_vm1, %v5831_v15, %v5833_v46  ;;  %v5858_v44 = vsel %vm11489_vm15, %v5833_v46, %v5835_v59  ;;  %vm11504_vm1 = vmmov %vm11491_vm6  ;;  %v11526_v59 = vld [vmem:[#allocation8_spill] sm:$0xff] }
 0xc2d   :  { %6062 = vmatpush.bf16.msrb.mxu1 %v10128_v12  ;;  %5974 = vmatpush.bf16.msra.mxu2 %v5857_v22  ;;  %v6030_v12 = vsel %vm11491_vm6, %v10168_v21, 0  ;;  %vm11505_vm15 = vmmov %vm11504_vm1  ;;  %v11529_v22 = vld [vmem:[#allocation14_spill] sm:$0xff] }
 0xc2e   :  { %6103 = vmatpush.bf16.msra.mxu0 %v6033_v17  ;;  %5988 = vmatpush.bf16.msra.mxu3 %v5858_v44  ;;  %vm11506_vm9 = vmmov %vm11499_vm3  ;;  %v2930_v44 = vadd.f32 %v11529_v22, %v11528_v41 }
 0xc2f   :  { %vm11507_vm6 = vmmov %vm11499_vm3 }
 0xc30   :  { %7141 = vmatmul.msk.bf16.vlgmr.msra.gmra.mxu2 %vm11492_vm13, %v10281_v60  ;;  %vm11508_vm13 = vmmov %vm11504_vm1 }
 0xc31   :  { %6117 = vmatpush.bf16.msra.mxu1 %v6036_v31  ;;  %6075 = vmatpush.bf16.msrb.mxu2 %v6027_v35  ;;  %vm11510_vm14 = vmmov %vm11497_vm0  ;;  %v11530_v35 = vld [vmem:[#allocation11_spill] sm:$0xff] }
 0xc32   :  { %6104 = vmatpush.bf16.msra.mxu0 %v10190_v2  ;;  %6089 = vmatpush.bf16.msrb.mxu3 %v6030_v12  ;;  %v7145_v2 = vld [vmem:[%s10668_s3] sm:$0xf]  ;;  %v6147_v40 = vpop.permute.xlu1 %6146  ;;  %v6173_v29 = vpop.permute.xlu2 %6172  ;;  %v11531_v12 = vld [vmem:[#allocation23_spill] sm:$0xff] }
 0xc33   :  { %7142 = vmatmul.msk.bf16.vlgmr.msra.gmra.mxu3 %vm11493_vm2, %v10281_v60  ;;  %v7146_v21 = vor.u32 %v7274_v50, %v7145_v2  ;;  %v6165_v61 = vpop.permute.xlu0 %6164  ;;  %v7150_v60 = vor.u32 %v7281_v13, %v7149_v18  ;;  %vm11509_vm2 = vmmov %vm11504_vm1  ;;  %v2944_v38 = vadd.f32 %v11531_v12, %v11530_v35  ;;  %v11533_v2 = vld [vmem:[#allocation16_spill] sm:$0xff] }
 0xc34   :  { %v2958_v50 = vadd.f32 %v11533_v2, %v11532_v28 }
 0xc35   :  { %6118 = vmatpush.bf16.msra.mxu1 %v10192_v0  ;;  %6076 = vmatpush.bf16.msrb.mxu2 %v10164_v57  ;;  %v6185_v0 = vsel %vm11495_vm11, %v10295_v23, %v6165_v61  ;;  %v6178_v57 = vsel %vm11499_vm3, %v6147_v40, %v10307_v32  ;;  %vm11511_vm11 = vmmov %vm11499_vm3  ;;  %v11535_v40 = vld [vmem:[#allocation19_spill] sm:$0xff] }
 0xc36   :  { %6090 = vmatpush.bf16.msrb.mxu3 %v10166_v58  ;;  %v6203_v30 = vsel %vm11496_vm12, %v6185_v0, 0  ;;  %7155 = vmatmul.msk.bf16.vlgmr.msrb.gmra.mxu0 %vm11497_vm0, %v7146_v21  ;;  %vm11512_vm12 = vmmov %vm11497_vm0  ;;  %v11536_v0 = vld [vmem:[#allocation13_spill] sm:$0xff] }
 0xc37   :  { %vm11513_vm0 = vmmov %vm11499_vm3 }
 0xc38   :  { %7156 = vmatmul.msk.bf16.vlgmr.msrb.gmra.mxu1 %vm11498_vm5, %v7146_v21  ;;  %v6179_v53 = vsel %vm11513_vm0, %v10307_v32, %v10326_v42  ;;  %vm11514_vm5 = vmmov %vm11513_vm0 }
 0xc39   :  { %6131 = vmatpush.bf16.msra.mxu2 %v6039_v11  ;;  %vm11515_vm3 = vmmov %vm11504_vm1 }
 0xc3a   :  { %6229 = vmatpush.bf16.msra.mxu3 %v6203_v30  ;;  %v6169_v58 = vpop.permute.xlu1 %6168  ;;  %v6175_v52 = vpop.permute.xlu2 %6174  ;;  %v11537_v30 = vld [vmem:[#allocation17_spill] sm:$0xff] }
 0xc3b   :  { %v6153_v24 = vpop.permute.xlu0 %6152  ;;  %v6190_v37 = vsel %vm11511_vm11, %v6173_v29, %v6175_v52 }
 0xc3c   :  { %v6180_v48 = vsel %vm11514_vm5, %v10326_v42, %v6153_v24  ;;  %v6218_v8 = vsel %vm11515_vm3, %v6190_v37, 0  ;;  %v11527_v42 = vld [vmem:[#allocation15_spill] sm:$0xff]  ;;  %v11545_v37 = vld [vmem:[#allocation25_spill] sm:$0xff] }
 0xc3d   :  { %6132 = vmatpush.bf16.msra.mxu2 %v7150_v60  ;;  %v2916_v31 = vadd.f32 %v11527_v42, %v11526_v59 }
 0xc3e   :  { %6230 = vmatpush.bf16.msra.mxu3 %v6178_v57  ;;  %v11538_v57 = vld [vmem:[#allocation9_spill] sm:$0xff] }
 0xc40   :  { %7157 = vmatmul.msk.bf16.vlgmr.msrb.gmra.mxu2 %vm11500_vm7, %v7146_v21  ;;  %vm11516_vm7 = vmmov %vm11513_vm0 }
 0xc42   :  { %v6171_v26 = vpop.permute.xlu1 %6170  ;;  %v6161_v16 = vpop.permute.xlu2 %6160 }
 0xc43   :  { %7158 = vmatmul.msk.bf16.vlgmr.msrb.gmra.mxu3 %vm11501_vm10, %v7146_v21  ;;  %v6188_v36 = vsel %vm11502_vm8, %v6169_v58, %v6171_v26  ;;  %v6189_v39 = vsel %vm11503_vm4, %v6171_v26, %v6173_v29  ;;  %v6167_v45 = vpop.permute.xlu0 %6166  ;;  %vm11517_vm10 = vmmov %vm11513_vm0 }
 0xc44   :  { %v6212_v34 = vsel %vm11504_vm1, %v6188_v36, 0  ;;  %v6215_v47 = vsel %vm11505_vm15, %v6189_v39, 0  ;;  %v6186_v43 = vsel %vm11506_vm9, %v6165_v61, %v6167_v45  ;;  %v6187_v7 = vsel %vm11507_vm6, %v6167_v45, %v6169_v58  ;;  %vm11518_vm8 = vmmov %vm11512_vm12  ;;  %v11539_v58 = vld [vmem:[#allocation18_spill] sm:$0xff]  ;;  %v11541_v36 = vld [vmem:[#allocation24_spill] sm:$0xff] }
 0xc45   :  { %v6206_v23 = vsel %vm11508_vm13, %v6186_v43, 0  ;;  %v6209_v1 = vsel %vm11509_vm2, %v6187_v7, 0  ;;  %6271 = vmatpush.bf16.msrb.mxu2 %v6212_v34  ;;  %6285 = vmatpush.bf16.msrb.mxu3 %v6215_v47  ;;  %vm11519_vm4 = vmmov %vm11518_vm8  ;;  %v11542_v45 = vld [vmem:[#allocation20_spill] sm:$0xff]  ;;  %v11543_v43 = vld [vmem:[#allocation22_spill] sm:$0xff] }
 0xc46   :  { %7159 = vmatmul.msk.bf16.vlgmr.msra.gmra.mxu0 %vm11510_vm14, %v7146_v21  ;;  %6257 = vmatpush.bf16.msrb.mxu1 %v6209_v1  ;;  %vm11520_vm1 = vmmov %vm11513_vm0  ;;  %vm3311_vm14 = vcmask 777216   ;;  %v3192_v34 = vadd.f32 %v11542_v45, %v2916_v31 }
 0xc47   :  { %6243 = vmatpush.bf16.msrb.mxu0 %v6206_v23  ;;  %vm11521_vm15 = vmmov %vm11513_vm0  ;;  %v11544_v23 = vld [vmem:[#allocation21_spill] sm:$0xff] }
 0xc48   :  { %7160 = vmatmul.msk.bf16.vlgmr.msra.gmra.mxu1 %vm11512_vm12, %v7146_v21  ;;  %vm11522_vm9 = vmmov %vm11509_vm2 }
 0xc49   :  { %vm11523_vm6 = vmmov %vm11519_vm4 }
 0xc4a   :  { %6258 = vmatpush.bf16.msrb.mxu1 %v6180_v48  ;;  %v10378_v63 = vpop.permute.xlu2 %7318  ;;  %v6157_v62 = vpop.permute.xlu1 %6156  ;;  %vm11524_vm13 = vmmov %vm11519_vm4  ;;  %v11546_v48 = vld [vmem:[#allocation39_spill] sm:$0xff] }
 0xc4b   :  { %6244 = vmatpush.bf16.msrb.mxu0 %v6179_v53  ;;  %v6155_v56 = vpop.permute.xlu0 %6154  ;;  %vm11525_vm2 = vmmov %vm11513_vm0  ;;  %v7321_v13 = vunpack.i.h.bf16 %v10378_v63  ;;  %v7320_v61 = vunpack.i.l.bf16 %v10378_v63  ;;  %v3193_v53 = vadd.f32 %v11545_v37, %v2930_v44 }
 0xc4c   :  { %v6181_v32 = vsel %vm11516_vm7, %v6153_v24, %v6155_v56  ;;  %v6182_v6 = vsel %vm11517_vm10, %v6155_v56, %v6157_v62  ;;  %v3195_v56 = vadd.f32 %v11548_v5, %v2958_v50  ;;  %vm11549_vm11 = vmmov %vm11519_vm4 }
 0xc4d   :  { %6272 = vmatpush.bf16.msrb.mxu2 %v6181_v32  ;;  %6286 = vmatpush.bf16.msrb.mxu3 %v6182_v6  ;;  %v3312_v32 = vsel %vm3311_vm14, %v7320_v61, %v7321_v13  ;;  %vm11551_vm12 = vmmov %vm11519_vm4 }
 0xc4e   :  { %vm11553_vm0 = vmmov %vm11519_vm4 }
 0xc4f   :  { %6299 = vmatpush.bf16.msra.mxu0 %v6218_v8  ;;  %v3194_v8 = vadd.f32 %v11546_v48, %v2944_v38  ;;  %vm11554_vm5 = vmmov %vm11553_vm0 }
 0xc50   :  { %7161 = vmatmul.msk.bf16.vlgmr.msra.gmra.mxu2 %vm11518_vm8, %v7146_v21  ;;  %v11534_v21 = vld [vmem:[#allocation10_spill] sm:$0xff] }
 0xc51   :  { %v10415_v29 = vadd.f32 %v11535_v40, %v11534_v21 }
 0xc52   :  { %v6159_v51 = vpop.permute.xlu1 %6158  ;;  %v10394_v25 = vpop.permute.xlu2 %7328 }
 0xc53   :  { %7168 = vmatmul.msk.bf16.vlgmr.msra.gmra.mxu3 %vm11519_vm4, %v10388_v55  ;;  %v6177_v15 = vpop.permute.xlu0 %6176  ;;  %v6183_v10 = vsel %vm11520_vm1, %v6157_v62, %v6159_v51  ;;  %v6184_v17 = vsel %vm11525_vm2, %v6159_v51, %v6161_v16  ;;  %v7331_v24 = vunpack.i.h.bf16 %v10394_v25  ;;  %v7330_v26 = vunpack.i.l.bf16 %v10394_v25  ;;  %v11540_v16 = vld [vmem:[#allocation6_spill] sm:$0xff]  ;;  %v11547_v62 = vld [vmem:[#allocation12_spill] sm:$0xff] }
 0xc54   :  { %v6191_v54 = vsel %vm11521_vm15, %v6175_v52, %v6177_v15  ;;  %6300 = vmatpush.bf16.msra.mxu0 %v6183_v10  ;;  %v10423_v52 = vadd.f32 %v11539_v58, %v11538_v57  ;;  %v10429_v39 = vadd.f32 %v11541_v36, %v11540_v16  ;;  %v11550_v51 = vld [vmem:[#allocation40_spill] sm:$0xff] }
 0xc55   :  { %v6221_v20 = vsel %vm11522_vm9, %v6191_v54, 0  ;;  %v3316_v10 = vsel %vm3311_vm14, %v7330_v26, %v7331_v24 }
 0xc56   :  { %7169 = vmatmul.msk.bf16.vlgmr.msrb.gmra.mxu0 %vm11523_vm6, %v10388_v55  ;;  %6313 = vmatpush.bf16.msra.mxu1 %v6221_v20  ;;  %v11552_v20 = vld [vmem:[#allocation41_spill] sm:$0xff] }
 0xc58   :  { %7170 = vmatmul.msk.bf16.vlgmr.msrb.gmra.mxu1 %vm11524_vm13, %v10388_v55 }
 0xc5a   :  { %6314 = vmatpush.bf16.msra.mxu1 %v6184_v17  ;;  %v10405_v46 = vpop.permute.xlu1 %3208  ;;  %v10432_v47 = vpop.permute.xlu2 %7343 }
 0xc5b   :  { %v3204_v11 = vpop.permute.xlu0 %3203  ;;  %v7346_v25 = vunpack.i.h.bf16 %v10432_v47  ;;  %v7345_v54 = vunpack.i.l.bf16 %v10432_v47  ;;  %v3220_v59 = vadd.f32 %v10405_v46, %v3194_v8  ;;  %v3218_v22 = vadd.f32 %v10405_v46, %v3192_v34 }
 0xc5c   :  { %v3211_v18 = vadd.f32 %v3204_v11, %v11536_v0  ;;  %v3215_v60 = vadd.f32 %v3204_v11, %v11537_v30  ;;  %v3212_v7 = vadd.f32 %v3204_v11, %v11543_v43  ;;  %v3213_v1 = vadd.f32 %v3204_v11, %v11544_v23 }
 0xc5d   :  { %v3214_v33 = vadd.f32 %v3204_v11, %v11547_v62  ;;  %v3216_v15 = vadd.f32 %v3204_v11, %v11550_v51  ;;  %v3217_v17 = vadd.f32 %v3204_v11, %v11552_v20  ;;  %v3234_v23 = vmax.f32 %v3220_v59, 0.0 }
 0xc5e   :  { %v3225_v63 = vmax.f32 %v3211_v18, 0.0  ;;  %v3229_v6 = vmax.f32 %v3215_v60, 0.0  ;;  %v3226_v31 = vmax.f32 %v3212_v7, 0.0  ;;  %v3227_v41 = vmax.f32 %v3213_v1, 0.0 }
 0xc5f   :  { %v3228_v12 = vmax.f32 %v3214_v33, 0.0  ;;  %v3230_v2 = vmax.f32 %v3216_v15, 0.0  ;;  %v3231_v18 = vmax.f32 %v3217_v17, 0.0  ;;  %v3221_v37 = vadd.f32 %v10405_v46, %v3195_v56  ;;  %v11555_v33 = vld [vmem:[#allocation42_spill] sm:$0xff] }
 0xc60   :  { %7171 = vmatmul.msk.bf16.vlgmr.msrb.gmra.mxu2 %vm11549_vm11, %v10388_v55  ;;  %v3340_v38 = vadd.f32 %v3312_v32, %v3225_v63  ;;  %v3344_v50 = vadd.f32 %v3316_v10, %v3229_v6  ;;  %v3196_v5 = vadd.f32 %v11555_v33, %v10415_v29  ;;  %v3232_v59 = vmax.f32 %v3218_v22, 0.0 }
 0xc62   :  { %v7324_v42 = vpop.permute.xlu1 %7323  ;;  %v3354_v16 = vmul.f32 %v8038_v4, %v3340_v38  ;;  %v3222_v22 = vadd.f32 %v10405_v46, %v3196_v5 }
 0xc63   :  { %7172 = vmatmul.msk.bf16.vlgmr.msrb.gmra.mxu3 %vm11551_vm12, %v10388_v55  ;;  %v7326_v44 = vunpack.i.h.bf16 %v7324_v42  ;;  %v7325_v35 = vunpack.i.l.bf16 %v7324_v42  ;;  %v7334_v28 = vpop.permute.xlu0 %7333  ;;  %v3235_v42 = vmax.f32 %v3221_v37, 0.0 }
 0xc64   :  { %v7336_v21 = vunpack.i.h.bf16 %v7334_v28  ;;  %v7335_v40 = vunpack.i.l.bf16 %v7334_v28 }
 0xc65   :  { %v3315_v61 = vsel %vm3311_vm14, %v7326_v44, %v7330_v26  ;;  %v3313_v11 = vsel %vm3311_vm14, %v7321_v13, %v7325_v35  ;;  %v3314_v0 = vsel %vm3311_vm14, %v7325_v35, %v7326_v44  ;;  %v3219_v26 = vadd.f32 %v10405_v46, %v3193_v53 }
 0xc66   :  { %7173 = vmatmul.msk.bf16.vlgmr.msra.gmra.mxu0 %vm11553_vm0, %v10388_v55  ;;  %v3341_v30 = vadd.f32 %v3313_v11, %v3226_v31  ;;  %v3342_v60 = vadd.f32 %v3314_v0, %v3227_v41  ;;  %v3343_v57 = vadd.f32 %v3315_v61, %v3228_v12  ;;  %v3317_v58 = vsel %vm3311_vm14, %v7331_v24, %v7335_v40  ;;  %v11557_v12 = vld [vmem:[#allocation45_spill] sm:$0xff] }
 0xc67   :  { %v3318_v36 = vsel %vm3311_vm14, %v7335_v40, %v7336_v21  ;;  %v3345_v45 = vadd.f32 %v3317_v58, %v3230_v2  ;;  %v3358_v24 = vmul.f32 %v8111_v27, %v3344_v50  ;;  %v3321_v53 = vsel %vm3311_vm14, %v7345_v54, %v7346_v25 }
 0xc68   :  { %v3355_v13 = vmul.f32 %v8045_v49, %v3341_v30  ;;  %v3356_v34 = vmul.f32 %v8029_v14, %v3342_v60  ;;  %v3357_v43 = vmul.f32 %v8032_v3, %v3343_v57  ;;  %v3346_v7 = vadd.f32 %v3318_v36, %v3231_v18  ;;  %7174 = vmatmul.msk.bf16.vlgmr.msra.gmra.mxu1 %vm11554_vm5, %v10388_v55  ;;  %v11556_v55 = vld [vmem:[#allocation44_spill] sm:$0xff] }
 0xc69   :  { %v3359_v1 = vmul.f32 %v8108_v9, %v3345_v45  ;;  %v3197_v32 = vadd.f32 %v11556_v55, %v10423_v52  ;;  %v3233_v10 = vmax.f32 %v3219_v26, 0.0  ;;  %v3349_v52 = vadd.f32 %v3321_v53, %v3234_v23 }
 0xc6a   :  { %v3368_v48 = vpack.c.bf16 %v3355_v13, %v3354_v16  ;;  %v3369_v8 = vpack.c.bf16 %v3357_v43, %v3356_v34  ;;  %v3360_v63 = vmul.f32 %v11283_v19, %v3346_v7  ;;  %v7339_v62 = vpop.permute.xlu1 %7338  ;;  %v3198_v38 = vadd.f32 %v11557_v12, %v10429_v39 }
 0xc6b   :  { %v3370_v6 = vpack.c.bf16 %v3359_v1, %v3358_v24  ;;  %v7341_v51 = vunpack.i.h.bf16 %v7339_v62  ;;  %v7349_v15 = vpop.permute.xlu0 %7348  ;;  %v7340_v20 = vunpack.i.l.bf16 %v7339_v62  ;;  %v3223_v50 = vadd.f32 %v10405_v46, %v3197_v32 }
 0xc6c   :  { %3376 = vst [vmem:[%s10669_s5] sm:$0xff] %v3368_v48  ;;  %v3371_v56 = vpack.c.bf16 %v3360_v63, %v3360_v63  ;;  %v7350_v17 = vunpack.i.l.bf16 %v7349_v15  ;;  %v7351_v44 = vunpack.i.h.bf16 %v7349_v15  ;;  %v3363_v47 = vmul.f32 %v8029_v14, %v3349_v52 }
 0xc6d   :  { %3377 = vst [vmem:[%s10669_s5 + $0x8] sm:$0xff] %v3369_v8  ;;  %v3320_v29 = vsel %vm3311_vm14, %v7341_v51, %v7345_v54  ;;  %v3319_v41 = vsel %vm3311_vm14, %v7340_v20, %v7341_v51  ;;  %v3224_v39 = vadd.f32 %v10405_v46, %v3198_v38  ;;  %v3236_v0 = vmax.f32 %v3222_v22, 0.0 }
 0xc6e   :  { %3378 = vst [vmem:[%s10669_s5 + $0x10] sm:$0xff] %v3370_v6  ;;  %v3348_v31 = vadd.f32 %v3320_v29, %v3233_v10  ;;  %v3322_v35 = vsel %vm3311_vm14, %v7346_v25, %v7350_v17  ;;  %v3347_v54 = vadd.f32 %v3319_v41, %v3232_v59  ;;  %v3323_v40 = vsel %vm3311_vm14, %v7350_v17, %v7351_v44  ;;  %v10537_v10 = vpop.permute.xlu2 %6339 }
 0xc6f   :  { %3379 = vst [vmem:[%s10669_s5 + $0x18] sm:$0xf] %v3371_v56  ;;  %v3350_v28 = vadd.f32 %v3322_v35, %v3235_v42  ;;  %v3351_v57 = vadd.f32 %v3323_v40, %v3236_v0  ;;  %v3237_v58 = vmax.f32 %v3223_v50, 0.0  ;;  %v3238_v16 = vmax.f32 %v3224_v39, 0.0 }
 0xc70   :  { %v3362_v2 = vmul.f32 %v8045_v49, %v3348_v31  ;;  %v3361_v21 = vmul.f32 %v8038_v4, %v3347_v54 }
 0xc71   :  { %v3364_v25 = vmul.f32 %v8032_v3, %v3350_v28  ;;  %v3365_v13 = vmul.f32 %v8111_v27, %v3351_v57 }
 0xc72   :  { %v7354_v61 = vpop.permute.xlu1 %7353  ;;  %v3372_v11 = vpack.c.bf16 %v3362_v2, %v3361_v21 }
 0xc73   :  { %v3373_v18 = vpack.c.bf16 %v3364_v25, %v3363_v47  ;;  %v7356_v30 = vunpack.i.h.bf16 %v7354_v61  ;;  %v7355_v60 = vunpack.i.l.bf16 %v7354_v61  ;;  %v10545_v52 = vpop.permute.xlu0 %6344 }
 0xc74   :  { %3380 = vst [vmem:[%s10669_s5 + $0x1c] sm:$0x11] %v3372_v11 }
 0xc75   :  { %3381 = vst [vmem:[%s10669_s5 + $0x24] sm:$0x11] %v3373_v18  ;;  %v3324_v46 = vsel %vm3311_vm14, %v7351_v44, %v7355_v60  ;;  %v3325_v36 = vsel %vm3311_vm14, %v7355_v60, %v7356_v30 }
 0xc76   :  { %v3352_v45 = vadd.f32 %v3324_v46, %v3237_v58  ;;  %v3353_v26 = vadd.f32 %v3325_v36, %v3238_v16  ;;  %v7365_v41 = vpop.permute.xlu2 %7364 }
 0xc77   :  { %v7366_v18 = vunpack.i.l.bf16 %v7365_v41  ;;  %v7367_v58 = vunpack.i.h.bf16 %v7365_v41 }
 0xc78   :  { %v3366_v34 = vmul.f32 %v8108_v9, %v3352_v45  ;;  %v3367_v43 = vmul.f32 %v11283_v19, %v3353_v26 }
 0xc7a   :  { %v3374_v7 = vpack.c.bf16 %v3366_v34, %v3365_v13  ;;  %v3375_v23 = vpack.c.bf16 %v3367_v43, %v3367_v43  ;;  %v7360_v28 = vpop.permute.xlu1 %7359 }
 0xc7b   :  { %v10555_v54 = vpop.permute.xlu0 %7369  ;;  %v7362_v39 = vunpack.i.h.bf16 %v7360_v28  ;;  %v7361_v30 = vunpack.i.l.bf16 %v7360_v28 }
 0xc7c   :  { %3382 = vst [vmem:[%s10669_s5 + $0x2c] sm:$0x11] %v3374_v7 }
 0xc7d   :  { %3383 = vst [vmem:[%s10669_s5 + $0x34] sm:$0x1] %v3375_v23  ;;  %v6448_v16 = vsel %vm3311_vm14, %v7362_v39, %v7366_v18 }
 0xc7e   :  { %v7380_v22 = vpop.permute.xlu2 %7379 }
 0xc7f   :  { %v7382_v34 = vunpack.i.h.bf16 %v7380_v22  ;;  %v7381_v43 = vunpack.i.l.bf16 %v7380_v22 }
 0xc83   :  { %v10562_v46 = vpop.permute.xlu0 %7384 }
 0xc86   :  { %v10564_v7 = vpop.permute.xlu2 %7394 }
 0xc91   :  { %v5906_v24 = vpop.f32.mrf.mxu1 }
 0xc99   :  { %v5908_v1 = vpop.f32.mrf.mxu1 }
 0xc9a   :  { %v5920_v37 = vpop.f32.mrf.mxu2 }
 0xca0   :  { %v5934_v48 = vpop.f32.mrf.mxu3 }
 0xca2   :  { %v10521_v53 = vpop.f32.mrf.mxu0  ;;  %v5922_v62 = vpop.f32.mrf.mxu2 }
 0xca5   :  { %v10523_v8 = vpop.f32.mrf.mxu1 }
 0xca8   :  { %v10527_v33 = vpop.f32.mrf.mxu3 }
 0xcaa   :  { %v10525_v63 = vpop.f32.mrf.mxu0 }
 0xcad   :  { %v10529_v5 = vpop.f32.mrf.mxu1 }
 0xcb3   :  { %v6050_v55 = vpop.f32.mrf.mxu0  ;;  %v10531_v32 = vpop.f32.mrf.mxu2 }
 0xcb4   :  { %v6051_v21 = vadd.f32 %v6050_v55, %v5906_v24  ;;  %v6447_v24 = vsel %vm3311_vm14, %v7361_v30, %v7362_v39  ;;  %v7375_v55 = vpop.permute.xlu1 %7374  ;;  %v6449_v39 = vsel %vm3311_vm14, %v7366_v18, %v7367_v58 }
 0xcb5   :  { %v6064_v51 = vpop.f32.mrf.mxu1 }
 0xcb6   :  { %v10533_v6 = vpop.f32.mrf.mxu3  ;;  %v6065_v2 = vadd.f32 %v6064_v51, %v5920_v37 }
 0xcbb   :  { %v6052_v15 = vpop.f32.mrf.mxu0  ;;  %v10535_v56 = vpop.f32.mrf.mxu2 }
 0xcbc   :  { %v6053_v23 = vadd.f32 %v6052_v15, %v5908_v1 }
 0xcbd   :  { %v6066_v17 = vpop.f32.mrf.mxu1 }
 0xcbe   :  { %v10539_v20 = vpop.f32.mrf.mxu3  ;;  %v6067_v36 = vadd.f32 %v6066_v17, %v5922_v62  ;;  %v7386_v62 = vunpack.i.l.bf16 %v10562_v46 }
 0xcc3   :  { %v10541_v59 = vpop.f32.mrf.mxu0  ;;  %v6078_v29 = vpop.f32.mrf.mxu2 }
 0xcc4   :  { %v6079_v45 = vadd.f32 %v6078_v29, %v5934_v48  ;;  %v7371_v48 = vunpack.i.l.bf16 %v10555_v54 }
 0xcc5   :  { %v6120_v31 = vpop.f32.mrf.mxu1 }
 0xcc6   :  { %v10543_v42 = vpop.f32.mrf.mxu3 }
 0xccb   :  { %v10547_v44 = vpop.f32.mrf.mxu0  ;;  %v10549_v35 = vpop.f32.mrf.mxu2 }
 0xccd   :  { %v10553_v38 = vpop.f32.mrf.mxu1 }
 0xcce   :  { %v10551_v12 = vpop.f32.mrf.mxu3 }
 0xcd3   :  { %v6246_v50 = vpop.f32.mrf.mxu0  ;;  %v10557_v25 = vpop.f32.mrf.mxu2 }
 0xcd4   :  { %v6322_v47 = vadd.f32 %v6246_v50, %v6065_v2 }
 0xcd5   :  { %v6260_v0 = vpop.f32.mrf.mxu1 }
 0xcd6   :  { %v6232_v40 = vpop.f32.mrf.mxu3  ;;  %v6348_v61 = vadd.f32 %v10537_v10, %v6322_v47  ;;  %v6323_v28 = vadd.f32 %v6260_v0, %v6079_v45  ;;  %v7396_v47 = vunpack.i.l.bf16 %v10564_v7  ;;  %v7376_v45 = vunpack.i.l.bf16 %v7375_v55 }
 0xcd7   :  { %v6321_v11 = vadd.f32 %v6232_v40, %v6051_v21  ;;  %v7397_v21 = vunpack.i.h.bf16 %v10564_v7  ;;  %v6454_v40 = vsel %vm3311_vm14, %v7381_v43, %v7382_v34  ;;  %v7387_v43 = vunpack.i.h.bf16 %v10562_v46 }
 0xcd8   :  { %v6362_v60 = vmax.f32 %v6348_v61, 0.0 }
 0xcd9   :  { %v6347_v57 = vadd.f32 %v10537_v10, %v6321_v11  ;;  %v6349_v11 = vadd.f32 %v10537_v10, %v6323_v28 }
 0xcda   :  { %v6476_v26 = vadd.f32 %v6448_v16, %v6362_v60  ;;  %v7372_v60 = vunpack.i.h.bf16 %v10555_v54  ;;  %v6455_v16 = vsel %vm3311_vm14, %v7382_v34, %v7386_v62  ;;  %v6093_v54 = vadd.f32 %v10543_v42, %v10521_v53 }
 0xcdb   :  { %v6361_v13 = vmax.f32 %v6347_v57, 0.0  ;;  %v6248_v37 = vpop.f32.mrf.mxu0  ;;  %v10568_v50 = vpop.f32.mrf.mxu2  ;;  %v7377_v57 = vunpack.i.h.bf16 %v7375_v55 }
 0xcdc   :  { %v6490_v51 = vmul.f32 %v8045_v49, %v6476_v26  ;;  %v6329_v2 = vadd.f32 %v6248_v37, %v6067_v36  ;;  %v6450_v36 = vsel %vm3311_vm14, %v7367_v58, %v7371_v48  ;;  %v6121_v26 = vadd.f32 %v6120_v31, %v10531_v32 }
 0xcdd   :  { %v6475_v41 = vadd.f32 %v6447_v24, %v6361_v13  ;;  %v6262_v22 = vpop.f32.mrf.mxu1  ;;  %v6081_v58 = vadd.f32 %v10549_v35, %v10527_v33  ;;  %v6363_v24 = vmax.f32 %v6349_v11, 0.0  ;;  %v6452_v42 = vsel %vm3311_vm14, %v7372_v60, %v7376_v45 }
 0xcde   :  { %v6234_v17 = vpop.f32.mrf.mxu3  ;;  %v6355_v1 = vadd.f32 %v10545_v52, %v6329_v2 }
 0xcdf   :  { %v6489_v29 = vmul.f32 %v8038_v4, %v6475_v41  ;;  %v6328_v15 = vadd.f32 %v6234_v17, %v6053_v23  ;;  %v6107_v23 = vadd.f32 %v10541_v59, %v10523_v8  ;;  %v6330_v41 = vadd.f32 %v6262_v22, %v6081_v58  ;;  %v7390_v59 = vpop.permute.xlu1 %7389 }
 0xce0   :  { %v6369_v0 = vmax.f32 %v6355_v1, 0.0  ;;  %v6451_v8 = vsel %vm3311_vm14, %v7371_v48, %v7372_v60  ;;  %v6456_v17 = vsel %vm3311_vm14, %v7386_v62, %v7387_v43  ;;  %v6477_v1 = vadd.f32 %v6449_v39, %v6363_v24 }
 0xce1   :  { %v6503_v61 = vpack.c.bf16 %v6490_v51, %v6489_v29  ;;  %v6354_v30 = vadd.f32 %v10545_v52, %v6328_v15  ;;  %v6135_v51 = vadd.f32 %v10557_v25, %v10533_v6  ;;  %v6453_v29 = vsel %vm3311_vm14, %v7376_v45, %v7377_v57 }
 0xce2   :  { %v6483_v18 = vadd.f32 %v6455_v16, %v6369_v0  ;;  %v7392_v22 = vunpack.i.h.bf16 %v7390_v59  ;;  %v6109_v0 = vadd.f32 %v10547_v44, %v10529_v5  ;;  %v6123_v62 = vadd.f32 %v10553_v38, %v10535_v56 }
 0xce3   :  { %7175 = vst [vmem:[%s10669_s5 + $0x38] sm:$0xff] %v6503_v61  ;;  %v6368_v13 = vmax.f32 %v6354_v30, 0.0  ;;  %v6302_v34 = vpop.f32.mrf.mxu0  ;;  %v6274_v55 = vpop.f32.mrf.mxu2  ;;  %v6095_v60 = vadd.f32 %v10551_v12, %v10525_v63  ;;  %v6137_v57 = vadd.f32 %v10568_v50, %v10539_v20  ;;  %v6491_v5 = vmul.f32 %v8029_v14, %v6477_v1 }
 0xce4   :  { %v6497_v32 = vmul.f32 %v8045_v49, %v6483_v18  ;;  %v6326_v37 = vadd.f32 %v6302_v34, %v6121_v26  ;;  %v6324_v28 = vadd.f32 %v6274_v55, %v6093_v54  ;;  %v7391_v63 = vunpack.i.l.bf16 %v7390_v59 }
 0xce5   :  { %v6482_v31 = vadd.f32 %v6454_v40, %v6368_v13  ;;  %v6316_v49 = vpop.f32.mrf.mxu1  ;;  %v6356_v40 = vadd.f32 %v10545_v52, %v6330_v41 }
 0xce6   :  { %v6288_v2 = vpop.f32.mrf.mxu3  ;;  %v6352_v33 = vadd.f32 %v10537_v10, %v6326_v37  ;;  %v6350_v6 = vadd.f32 %v10537_v10, %v6324_v28  ;;  %v6327_v25 = vadd.f32 %v6316_v49, %v6135_v51  ;;  %v6459_v37 = vsel %vm3311_vm14, %v7392_v22, %v7396_v47 }
 0xce7   :  { %v6496_v53 = vmul.f32 %v8038_v4, %v6482_v31  ;;  %v6325_v35 = vadd.f32 %v6288_v2, %v6107_v23  ;;  %v6370_v18 = vmax.f32 %v6356_v40, 0.0 }
 0xce8   :  { %v6366_v15 = vmax.f32 %v6352_v33, 0.0  ;;  %v6364_v61 = vmax.f32 %v6350_v6, 0.0  ;;  %v6353_v11 = vadd.f32 %v10537_v10, %v6327_v25 }
 0xce9   :  { %v6507_v48 = vpack.c.bf16 %v6497_v32, %v6496_v53  ;;  %v6351_v4 = vadd.f32 %v10537_v10, %v6325_v35  ;;  %v6484_v28 = vadd.f32 %v6456_v17, %v6370_v18  ;;  %v6457_v53 = vsel %vm3311_vm14, %v7387_v43, %v7391_v63 }
 0xcea   :  { %v6480_v39 = vadd.f32 %v6452_v42, %v6366_v15  ;;  %v6478_v16 = vadd.f32 %v6450_v36, %v6364_v61  ;;  %v6367_v10 = vmax.f32 %v6353_v11, 0.0  ;;  %v6458_v35 = vsel %vm3311_vm14, %v7391_v63, %v7392_v22 }
 0xceb   :  { %7179 = vst [vmem:[%s10669_s5 + $0x54] sm:$0x11] %v6507_v48  ;;  %v6365_v30 = vmax.f32 %v6351_v4, 0.0  ;;  %v6304_v45 = vpop.f32.mrf.mxu0  ;;  %v6276_v26 = vpop.f32.mrf.mxu2  ;;  %v6498_v6 = vmul.f32 %v8029_v14, %v6484_v28 }
 0xcec   :  { %v6494_v44 = vmul.f32 %v8108_v9, %v6480_v39  ;;  %v6333_v38 = vadd.f32 %v6304_v45, %v6123_v62  ;;  %v6492_v13 = vmul.f32 %v8032_v3, %v6478_v16  ;;  %v6481_v23 = vadd.f32 %v6453_v29, %v6367_v10 }
 0xced   :  { %v6479_v56 = vadd.f32 %v6451_v8, %v6365_v30  ;;  %v6331_v54 = vadd.f32 %v6276_v26, %v6095_v60  ;;  %v6318_v36 = vpop.f32.mrf.mxu1 }
 0xcee   :  { %v6290_v58 = vpop.f32.mrf.mxu3  ;;  %v6359_v20 = vadd.f32 %v10545_v52, %v6333_v38  ;;  %v6504_v34 = vpack.c.bf16 %v6492_v13, %v6491_v5  ;;  %v6495_v24 = vmul.f32 %v11283_v19, %v6481_v23  ;;  %v6334_v31 = vadd.f32 %v6318_v36, %v6137_v57 }
 0xcef   :  { %v6493_v12 = vmul.f32 %v8111_v27, %v6479_v56  ;;  %v6332_v50 = vadd.f32 %v6290_v58, %v6109_v0  ;;  %v6357_v32 = vadd.f32 %v10545_v52, %v6331_v54 }
 0xcf0   :  { %v6373_v51 = vmax.f32 %v6359_v20, 0.0  ;;  %7176 = vst [vmem:[%s10669_s5 + $0x40] sm:$0xff] %v6504_v34  ;;  %v6506_v2 = vpack.c.bf16 %v6495_v24, %v6495_v24  ;;  %v6360_v59 = vadd.f32 %v10545_v52, %v6334_v31 }
 0xcf1   :  { %v6505_v55 = vpack.c.bf16 %v6494_v44, %v6493_v12  ;;  %v6358_v41 = vadd.f32 %v10545_v52, %v6332_v50  ;;  %v6371_v8 = vmax.f32 %v6357_v32, 0.0  ;;  %v6460_v52 = vsel %vm3311_vm14, %v7396_v47, %v7397_v21 }
 0xcf2   :  { %v6487_v33 = vadd.f32 %v6459_v37, %v6373_v51  ;;  %7178 = vst [vmem:[%s10669_s5 + $0x50] sm:$0xf] %v6506_v2  ;;  %v6374_v17 = vmax.f32 %v6360_v59, 0.0 }
 0xcf3   :  { %7177 = vst [vmem:[%s10669_s5 + $0x48] sm:$0xff] %v6505_v55  ;;  %v6372_v42 = vmax.f32 %v6358_v41, 0.0  ;;  %v6485_v49 = vadd.f32 %v6457_v53, %v6371_v8 }
 0xcf4   :  { %v6501_v46 = vmul.f32 %v8108_v9, %v6487_v33  ;;  %v6488_v29 = vadd.f32 %v6460_v52, %v6374_v17 }
 0xcf5   :  { %v6486_v43 = vadd.f32 %v6458_v35, %v6372_v42  ;;  %v6499_v25 = vmul.f32 %v8032_v3, %v6485_v49 }
 0xcf6   :  { %v6502_v15 = vmul.f32 %v11283_v19, %v6488_v29 }
 0xcf7   :  { %v6500_v1 = vmul.f32 %v8111_v27, %v6486_v43  ;;  %v6508_v48 = vpack.c.bf16 %v6499_v25, %v6498_v6 }
 0xcf8   :  { %v6510_v7 = vpack.c.bf16 %v6502_v15, %v6502_v15 }
 0xcf9   :  { %v6509_v4 = vpack.c.bf16 %v6501_v46, %v6500_v1  ;;  %7180 = vst [vmem:[%s10669_s5 + $0x5c] sm:$0x11] %v6508_v48 }
 0xcfa   :  { %7182 = vst [vmem:[%s10669_s5 + $0x6c] sm:$0x1] %v6510_v7 }
 0xcfb   :  { %7181 = vst [vmem:[%s10669_s5 + $0x64] sm:$0x11] %v6509_v4 }

</bundles_post_ra>
